<compile_context>
chip_gen: v7x
topology: tpu7x:2x2x1
jax: 0.10.0
libtpu: 0.0.40
codegen_flags: <defaults>
</compile_context>

<pallas_src>
import functools
import math

import jax
import jax.numpy as jnp
from jax.experimental import pallas as pl
from jax.experimental.pallas import tpu as pltpu


# ----------------------------------------------------------------------------
# small helpers
# ----------------------------------------------------------------------------

def _round_up(x, m):
    return ((x + m - 1) // m) * m


def _largest_tile(n, max_tile, step):
    """Largest multiple of `step` that divides n and is <= max_tile; fallback: n."""
    t = (min(n, max_tile) // step) * step
    while t >= step:
        if n % t == 0:
            return t
        t -= step
    return n


# ----------------------------------------------------------------------------
# Pallas kernels
# ----------------------------------------------------------------------------

def _matmul_kernel(x_ref, w_ref, b_ref, o_ref, acc_ref):
    """One (tm, tn) output tile: accumulate over the K grid axis, bias in the epilogue."""
    k = pl.program_id(3)

    @pl.when(k == 0)
    def _():
        acc_ref[...] = jnp.zeros_like(acc_ref)

    acc_ref[...] += jnp.dot(x_ref[0], w_ref[...],
                            preferred_element_type=jnp.float32)

    @pl.when(k == pl.num_programs(3) - 1)
    def _():
        o_ref[0] = (acc_ref[...] + b_ref[...]).astype(o_ref.dtype)


def _matmul_res_kernel(x_ref, w_ref, b_ref, r_ref, o_ref, acc_ref):
    """Same as _matmul_kernel but fuses a residual add into the epilogue."""
    k = pl.program_id(3)

    @pl.when(k == 0)
    def _():
        acc_ref[...] = jnp.zeros_like(acc_ref)

    acc_ref[...] += jnp.dot(x_ref[0], w_ref[...],
                            preferred_element_type=jnp.float32)

    @pl.when(k == pl.num_programs(3) - 1)
    def _():
        o_ref[0] = (acc_ref[...] + b_ref[...]
                    + r_ref[0].astype(jnp.float32)).astype(o_ref.dtype)


def _gn_stats_kernel(x_ref, s_ref, ss_ref):
    """Pass 1 of GroupNorm: accumulate per-channel sum / sum-of-squares over HW tiles."""
    @pl.when(pl.program_id(1) == 0)
    def _():
        s_ref[...] = jnp.zeros_like(s_ref)
        ss_ref[...] = jnp.zeros_like(ss_ref)

    x = x_ref[0].astype(jnp.float32)                     # (tile, C)
    s_ref[0] = s_ref[0] + jnp.sum(x, axis=0, keepdims=True)
    ss_ref[0] = ss_ref[0] + jnp.sum(x * x, axis=0, keepdims=True)


def _gn_apply_kernel(x_ref, s_ref, ss_ref, m_ref, g_ref, b_ref, o_ref, *,
                     n_per_group, eps, apply_silu):
    """Pass 2 of GroupNorm: normalize one HW tile (+ optional fused SiLU).

    m_ref is a (C, G) 0/1 group-membership matrix: per-channel sums @ m gives per-group
    sums; (per-group values) @ m^T broadcasts them back onto the channels.
    """
    x = x_ref[0].astype(jnp.float32)                     # (tile, C)
    m = m_ref[...]                                       # (C, G)

    sum_g = jnp.dot(s_ref[0], m, preferred_element_type=jnp.float32)    # (1, G)
    ssq_g = jnp.dot(ss_ref[0], m, preferred_element_type=jnp.float32)   # (1, G)
    mean_g = sum_g / n_per_group
    var_g = jnp.maximum(ssq_g / n_per_group - mean_g * mean_g, 0.0)
    inv_g = jax.lax.rsqrt(var_g + eps)

    mean_c = jax.lax.dot_general(mean_g, m, (((1,), (1,)), ((), ())),
                                 preferred_element_type=jnp.float32)    # (1, C)
    inv_c = jax.lax.dot_general(inv_g, m, (((1,), (1,)), ((), ())),
                                preferred_element_type=jnp.float32)     # (1, C)

    y = (x - mean_c) * inv_c * g_ref[...] + b_ref[...]
    if apply_silu:
        y = y * jax.nn.sigmoid(y)                        # SiLU == F.silu
    o_ref[0] = y.astype(o_ref.dtype)


def _flash_attn_kernel(q_ref, k_ref, v_ref, o_ref, m_sc, l_sc, acc_sc, *, scale):
    """Single-head flash attention: online softmax over KV tiles (grid axis 2)."""
    kv = pl.program_id(2)

    @pl.when(kv == 0)
    def _():
        m_sc[...] = jnp.full_like(m_sc, -jnp.inf)
        l_sc[...] = jnp.zeros_like(l_sc)
        acc_sc[...] = jnp.zeros_like(acc_sc)

    q = q_ref[0]                                         # (tq, C) bf16
    k = k_ref[0]                                         # (tk, C) bf16
    v = v_ref[0]                                         # (tk, C) bf16

    s = jax.lax.dot_general(q, k, (((1,), (1,)), ((), ())),
                            preferred_element_type=jnp.float32) * scale   # (tq, tk)

    m_prev = m_sc[...]
    m_new = jnp.maximum(m_prev, jnp.max(s, axis=-1, keepdims=True))
    alpha = jnp.exp(m_prev - m_new)
    p = jnp.exp(s - m_new)
    l_sc[...] = alpha * l_sc[...] + jnp.sum(p, axis=-1, keepdims=True)
    acc_sc[...] = alpha * acc_sc[...] + jnp.dot(p.astype(v.dtype), v,
                                                preferred_element_type=jnp.float32)
    m_sc[...] = m_new

    @pl.when(kv == pl.num_programs(2) - 1)
    def _():
        o_ref[0] = (acc_sc[...] *
                    pl.reciprocal(l_sc[...], approx=True)).astype(o_ref.dtype)


# ----------------------------------------------------------------------------
# pallas_call wrappers
# ----------------------------------------------------------------------------

def pallas_matmul_bias(x, w, b, residual=None, *, tm_max=256, tk_max=512, tn_max=256):
    """y[b] = x[b] @ w + bias (+ residual[b]).

    x: (B, N, K); w: (K, Cout); b: (1, Cout) f32; residual: (B, N, Cout) or None.
    Inputs are cast to bf16 for the MXU; accumulation is f32; output is bf16.
    N/K/Cout are padded so every block is (8,128)-aligned and outputs are lane-dense.
    """
    B, N, K = x.shape
    Cout = w.shape[1]

    tm = min(tm_max, _round_up(N, 8))
    Np = _round_up(N, tm)
    Kp = _round_up(K, 128)
    tk = _largest_tile(Kp, tk_max, 128)
    Cp = _round_up(Cout, 128)
    tn = _largest_tile(Cp, tn_max, 128)

    xd = x.astype(jnp.bfloat16)
    if Np != N or Kp != K:
        xd = jnp.pad(xd, ((0, 0), (0, Np - N), (0, Kp - K)))
    wd = w.astype(jnp.bfloat16)
    if Kp != K or Cp != Cout:
        wd = jnp.pad(wd, ((0, Kp - K), (0, Cp - Cout)))
    bd = b.astype(jnp.float32)
    if Cp != Cout:
        bd = jnp.pad(bd, ((0, 0), (0, Cp - Cout)))

    in_specs = [
        pl.BlockSpec((1, tm, tk), lambda bb, i, j, k: (bb, i, k)),
        pl.BlockSpec((tk, tn), lambda bb, i, j, k: (k, j)),
        pl.BlockSpec((1, tn), lambda bb, i, j, k: (0, j)),
    ]
    args = [xd, wd, bd]
    kernel = _matmul_kernel
    if residual is not None:
        rd = residual.astype(jnp.bfloat16)
        if Np != N or Cp != Cout:
            rd = jnp.pad(rd, ((0, 0), (0, Np - N), (0, Cp - Cout)))
        in_specs.append(pl.BlockSpec((1, tm, tn), lambda bb, i, j, k: (bb, i, j)))
        args.append(rd)
        kernel = _matmul_res_kernel

    out = pl.pallas_call(
        kernel,
        out_shape=jax.ShapeDtypeStruct((B, Np, Cp), jnp.bfloat16),
        grid=(B, Np // tm, Cp // tn, Kp // tk),
        in_specs=in_specs,
        out_specs=pl.BlockSpec((1, tm, tn), lambda bb, i, j, k: (bb, i, j)),
        scratch_shapes=[pltpu.VMEM((tm, tn), jnp.float32)],
        compiler_params=pltpu.CompilerParams(
            dimension_semantics=("parallel", "parallel", "parallel", "arbitrary")),
    )(*args)

    if Np != N or Cp != Cout:
        out = out[:, :N, :Cout]
    return out


def pallas_group_norm(x, gamma, beta, *, num_groups=32, apply_silu=False, eps=1e-6):
    """GroupNorm(num_groups, eps) over x: (B, N, C), optionally fused with SiLU.

    Two tiled passes: (1) per-channel sum/sumsq reduction over HW tiles,
    (2) per-tile normalization + affine (+ SiLU).  Stats math is f32.
    """
    B, N, C = x.shape
    tile = _largest_tile(N, 1024, 8)
    nt = N // tile

    s, ss = pl.pallas_call(
        _gn_stats_kernel,
        out_shape=(jax.ShapeDtypeStruct((B, 1, C), jnp.float32),
                   jax.ShapeDtypeStruct((B, 1, C), jnp.float32)),
        grid=(B, nt),
        in_specs=[pl.BlockSpec((1, tile, C), lambda b, t: (b, t, 0))],
        out_specs=(pl.BlockSpec((1, 1, C), lambda b, t: (b, 0, 0)),
                   pl.BlockSpec((1, 1, C), lambda b, t: (b, 0, 0))),
        compiler_params=pltpu.CompilerParams(
            dimension_semantics=("parallel", "arbitrary")),
    )(x)

    cg = C // num_groups
    gid = jnp.arange(C) // cg
    member = (gid[:, None] == jnp.arange(num_groups)[None, :]).astype(jnp.float32)

    kernel = functools.partial(_gn_apply_kernel,
                               n_per_group=float(N * cg), eps=eps,
                               apply_silu=apply_silu)
    return pl.pallas_call(
        kernel,
        out_shape=jax.ShapeDtypeStruct((B, N, C), x.dtype),
        grid=(B, nt),
        in_specs=[pl.BlockSpec((1, tile, C), lambda b, t: (b, t, 0)),
                  pl.BlockSpec((1, 1, C), lambda b, t: (b, 0, 0)),
                  pl.BlockSpec((1, 1, C), lambda b, t: (b, 0, 0)),
                  pl.BlockSpec((C, num_groups), lambda b, t: (0, 0)),
                  pl.BlockSpec((1, C), lambda b, t: (0, 0)),
                  pl.BlockSpec((1, C), lambda b, t: (0, 0))],
        out_specs=pl.BlockSpec((1, tile, C), lambda b, t: (b, t, 0)),
        compiler_params=pltpu.CompilerParams(
            dimension_semantics=("parallel", "parallel")),
    )(x, s, ss, member, gamma, beta)


def pallas_flash_attention(q, k, v):
    """Single-head scaled-dot-product attention over (B, N, C); never builds (N, N)."""
    B, N, C = q.shape
    tq = _largest_tile(N, 256, 8)
    tk = _largest_tile(N, 256, 8)
    kernel = functools.partial(_flash_attn_kernel, scale=1.0 / math.sqrt(C))
    return pl.pallas_call(
        kernel,
        out_shape=jax.ShapeDtypeStruct((B, N, C), q.dtype),
        grid=(B, N // tq, N // tk),
        in_specs=[pl.BlockSpec((1, tq, C), lambda b, i, j: (b, i, 0)),
                  pl.BlockSpec((1, tk, C), lambda b, i, j: (b, j, 0)),
                  pl.BlockSpec((1, tk, C), lambda b, i, j: (b, j, 0))],
        out_specs=pl.BlockSpec((1, tq, C), lambda b, i, j: (b, i, 0)),
        scratch_shapes=[pltpu.VMEM((tq, 1), jnp.float32),
                        pltpu.VMEM((tq, 1), jnp.float32),
                        pltpu.VMEM((tq, C), jnp.float32)],
        compiler_params=pltpu.CompilerParams(
            dimension_semantics=("parallel", "parallel", "arbitrary")),
    )(q, k, v)


# ----------------------------------------------------------------------------
# NHWC op helpers (glue around the kernels); activations are bf16
# ----------------------------------------------------------------------------

def conv1x1(x, p, residual=None):
    B, H, W, Cin = x.shape
    res2d = None if residual is None else residual.reshape(B, H * W, -1)
    y = pallas_matmul_bias(x.reshape(B, H * W, Cin), p['w'], p['b'], residual=res2d)
    return y.reshape(B, H, W, -1)


def conv3x3(x, p, residual=None):
    # TODO(synk): replace this im2col with an in-kernel 9-tap accumulation so the
    # activation is read once from HBM instead of 9x (needs overlapping input windows
    # or a manual-DMA conv kernel).
    B, H, W, Cin = x.shape
    xp = jnp.pad(x, ((0, 0), (1, 1), (1, 1), (0, 0)))
    patches = jnp.concatenate(
        [xp[:, dy:dy + H, dx:dx + W, :] for dy in range(3) for dx in range(3)],
        axis=-1)                                          # (B, H, W, 9*Cin) bf16
    res2d = None if residual is None else residual.reshape(B, H * W, -1)
    y = pallas_matmul_bias(patches.reshape(B, H * W, 9 * Cin), p['w'], p['b'],
                           residual=res2d)
    return y.reshape(B, H, W, -1)


def group_norm(x, p, *, apply_silu):
    B, H, W, C = x.shape
    y = pallas_group_norm(x.reshape(B, H * W, C), p['gamma'], p['beta'],
                          apply_silu=apply_silu)
    return y.reshape(B, H, W, C)


def upsample_nearest2x(x):
    # TODO(synk): fold this into the following conv's input indexing instead of
    # materializing a 4x larger activation in HBM.
    return jnp.repeat(jnp.repeat(x, 2, axis=1), 2, axis=2)


# ----------------------------------------------------------------------------
# Parameter initialization (deterministic, synthetic)
# ----------------------------------------------------------------------------

def _conv3x3_params(key, cin, cout):
    kw, kb = jax.random.split(key)
    w = jax.random.normal(kw, (3, 3, cin, cout), jnp.float32) / math.sqrt(9 * cin)
    b = 0.01 * jax.random.normal(kb, (1, cout), jnp.float32)
    return {'w': w.reshape(9 * cin, cout), 'b': b}


def _conv1x1_params(key, cin, cout):
    kw, kb = jax.random.split(key)
    w = jax.random.normal(kw, (cin, cout), jnp.float32) / math.sqrt(cin)
    b = 0.01 * jax.random.normal(kb, (1, cout), jnp.float32)
    return {'w': w, 'b': b}


def _gn_params(c):
    # PyTorch GroupNorm default affine init: weight=1, bias=0.
    return {'gamma': jnp.ones((1, c), jnp.float32),
            'beta': jnp.zeros((1, c), jnp.float32)}


def _resnet_params(key, cin, cout):
    k1, k2, k3 = jax.random.split(key, 3)
    p = {'norm1': _gn_params(cin), 'conv1': _conv3x3_params(k1, cin, cout),
         'norm2': _gn_params(cout), 'conv2': _conv3x3_params(k2, cout, cout)}
    if cin != cout:
        p['nin_shortcut'] = _conv1x1_params(k3, cin, cout)
    return p


def _attn_params(key, c):
    kq, kk, kv, kp = jax.random.split(key, 4)

    def proj(k):
        kw, kb = jax.random.split(k)
        return (jax.random.normal(kw, (c, c), jnp.float32) / math.sqrt(c),
                0.01 * jax.random.normal(kb, (1, c), jnp.float32))

    wq, bq = proj(kq); wk, bk = proj(kk); wv, bv = proj(kv); wp, bp = proj(kp)
    return {'norm': _gn_params(c),
            'wq': wq, 'bq': bq, 'wk': wk, 'bk': bk,
            'wv': wv, 'bv': bv, 'wp': wp, 'bp': bp}


def init_decoder_params(key, in_channels, out_channels, ch,
                        ch_mult=(1, 2, 4, 8), num_res_blocks=2):
    num_resolutions = len(ch_mult)
    keys = iter(jax.random.split(key, 128))
    params = {}
    block_in = ch * ch_mult[num_resolutions - 1]
    params['conv_in'] = _conv3x3_params(next(keys), in_channels, block_in)
    params['mid_block_1'] = _resnet_params(next(keys), block_in, block_in)
    params['mid_attn_1'] = _attn_params(next(keys), block_in)
    params['mid_block_2'] = _resnet_params(next(keys), block_in, block_in)
    up = [None] * num_resolutions
    for i_level in reversed(range(num_resolutions)):
        block_out = ch * ch_mult[i_level]
        blocks = []
        for _ in range(num_res_blocks + 1):
            blocks.append(_resnet_params(next(keys), block_in, block_out))
            block_in = block_out
        lvl = {'block': blocks}
        if i_level != 0:
            lvl['upsample_conv'] = _conv3x3_params(next(keys), block_in, block_in)
        up[i_level] = lvl
    params['up'] = up
    params['norm_out'] = _gn_params(block_in)
    params['conv_out'] = _conv3x3_params(next(keys), block_in, out_channels)
    return params


# ----------------------------------------------------------------------------
# Forward pass (mirrors Decoder.forward)
# ----------------------------------------------------------------------------

def resnet_block_fwd(x, p):
    h = group_norm(x, p['norm1'], apply_silu=True)
    h = conv3x3(h, p['conv1'])
    h = group_norm(h, p['norm2'], apply_silu=True)
    # Dropout(p=0.0) is the identity.
    if 'nin_shortcut' in p:
        shortcut = conv1x1(x, p['nin_shortcut'])
    else:
        shortcut = x
    # Residual add fused into the conv2 matmul epilogue.
    return conv3x3(h, p['conv2'], residual=shortcut)


def attn_block_fwd(x, p):
    B, H, W, C = x.shape
    xf = x.reshape(B, H * W, C)
    hn = pallas_group_norm(xf, p['norm']['gamma'], p['norm']['beta'],
                           apply_silu=False)
    q = pallas_matmul_bias(hn, p['wq'], p['bq'])
    k = pallas_matmul_bias(hn, p['wk'], p['bk'])
    v = pallas_matmul_bias(hn, p['wv'], p['bv'])
    a = pallas_flash_attention(q, k, v)
    # proj_out + residual fused into one matmul epilogue.
    y = pallas_matmul_bias(a, p['wp'], p['bp'], residual=xf)
    return y.reshape(B, H, W, C)


def decoder_forward(z_nchw, params, *, num_resolutions, num_res_blocks,
                    tanh_out=False):
    h = jnp.transpose(z_nchw, (0, 2, 3, 1)).astype(jnp.bfloat16)   # NCHW -> NHWC, bf16
    h = conv3x3(h, params['conv_in'])
    h = resnet_block_fwd(h, params['mid_block_1'])
    h = attn_block_fwd(h, params['mid_attn_1'])
    h = resnet_block_fwd(h, params['mid_block_2'])
    for i_level in reversed(range(num_resolutions)):
        for i_block in range(num_res_blocks + 1):
            h = resnet_block_fwd(h, params['up'][i_level]['block'][i_block])
        if i_level != 0:
            h = upsample_nearest2x(h)
            h = conv3x3(h, params['up'][i_level]['upsample_conv'])
    h = group_norm(h, params['norm_out'], apply_silu=True)
    h = conv3x3(h, params['conv_out'])
    if tanh_out:
        h = jnp.tanh(h)
    return jnp.transpose(h, (0, 3, 1, 2)).astype(jnp.float32)      # NHWC -> NCHW


# ----------------------------------------------------------------------------
# main
# ----------------------------------------------------------------------------

if __name__ == "__main__":
    key = jax.random.PRNGKey(0)
    kz, kp = jax.random.split(key)

    # Small config: Decoder(in_channels=4, out_channels=3, ch=32, ch_mult=(1, 2),
    #                       num_res_blocks=1, resamp_with_conv=True, tanh_out=False)
    in_channels, out_channels, ch = 4, 3, 32
    ch_mult = (1, 2)
    num_res_blocks = 1
    B, H, W = 2, 8, 8

    z = jax.random.normal(kz, (B, in_channels, H, W), jnp.float32)   # NCHW, like PyTorch
    params = init_decoder_params(kp, in_channels, out_channels, ch,
                                 ch_mult=ch_mult, num_res_blocks=num_res_blocks)

    fwd = jax.jit(functools.partial(decoder_forward,
                                    num_resolutions=len(ch_mult),
                                    num_res_blocks=num_res_blocks,
                                    tanh_out=False))
    out = fwd(z, params)
    jax.block_until_ready(out)

    scale = 2 ** (len(ch_mult) - 1)
    assert out.shape == (B, out_channels, H * scale, W * scale), out.shape
    assert bool(jnp.all(jnp.isfinite(out)))
    print("KERNEL_OK")
</pallas_src>

<mosaic_0001>
module attributes {stable_mosaic.version = 11 : i64} {
  func.func @_matmul_kernel(%arg0: i32, %arg1: i32, %arg2: i32, %arg3: i32, %arg4: memref<1x64x128xbf16, #tpu.memory_space<vmem>>, %arg5: memref<128x128xbf16, #tpu.memory_space<vmem>>, %arg6: memref<1x128xf32, #tpu.memory_space<vmem>>, %arg7: memref<1x64x128xbf16, #tpu.memory_space<vmem>>, %arg8: memref<64x128xf32, #tpu.memory_space<vmem>>) attributes {dimension_semantics = [#tpu.dimension_semantics<parallel>, #tpu.dimension_semantics<parallel>, #tpu.dimension_semantics<parallel>, #tpu.dimension_semantics<arbitrary>], iteration_bounds = array<i64: 2, 1, 1, 1>, scalar_prefetch = 0 : i64, scratch_operands = 1 : i64, tpu.core_type = #tpu.core_type<tc>, window_params = [{transform_indices = @transform_0, window_bounds = array<i64: 1, 64, 128>}, {transform_indices = @transform_1, window_bounds = array<i64: 128, 128>}, {transform_indices = @transform_2, window_bounds = array<i64: 1, 128>}, {transform_indices = @transform_3, window_bounds = array<i64: 1, 64, 128>}]} {
    %c0_i32 = arith.constant 0 : i32
    %0 = arith.cmpi eq, %arg3, %c0_i32 : i32
    %1 = arith.extui %0 : i1 to i32
    %c0_i32_0 = arith.constant 0 : i32
    %2 = arith.cmpi ne, %1, %c0_i32_0 : i32
    scf.if %2 {
      %cst_11 = arith.constant 0.000000e+00 : f32
      %13 = vector.broadcast %cst_11 : f32 to vector<64x128xf32>
      %c0_12 = arith.constant 0 : index
      %c0_13 = arith.constant 0 : index
      %14 = vector.load %arg8[%c0_12, %c0_13] : memref<64x128xf32, #tpu.memory_space<vmem>>, vector<64x128xf32>
      tpu.vector_store %arg8[%c0_12, %c0_13], %13 {strides = array<i32>} : memref<64x128xf32, #tpu.memory_space<vmem>>, vector<64x128xf32>,
    } else {
    }
    %c0 = arith.constant 0 : index
    %c0_1 = arith.constant 0 : index
    %3 = vector.load %arg8[%c0, %c0_1] : memref<64x128xf32, #tpu.memory_space<vmem>>, vector<64x128xf32>
    %c0_2 = arith.constant 0 : index
    %c0_3 = arith.constant 0 : index
    %c0_4 = arith.constant 0 : index
    %4 = vector.load %arg4[%c0_2, %c0_3, %c0_4] : memref<1x64x128xbf16, #tpu.memory_space<vmem>>, vector<1x64x128xbf16>
    %5 = vector.shape_cast %4 : vector<1x64x128xbf16> to vector<64x128xbf16>
    %c0_5 = arith.constant 0 : index
    %c0_6 = arith.constant 0 : index
    %6 = vector.load %arg5[%c0_5, %c0_6] : memref<128x128xbf16, #tpu.memory_space<vmem>>, vector<128x128xbf16>
    %cst = arith.constant dense<0.000000e+00> : vector<64x128xf32>
    %7 = tpu.matmul %5, %6, %cst {dimension_numbers = #tpu.dot_dimension_numbers<[1], [0], [0], [1], [0, 0, 1, 1], [], []>} : vector<64x128xbf16>, vector<128x128xbf16>, vector<64x128xf32> -> vector<64x128xf32>
    %8 = arith.addf %3, %7 : vector<64x128xf32>
    %c0_7 = arith.constant 0 : index
    %c0_8 = arith.constant 0 : index
    %9 = vector.load %arg8[%c0_7, %c0_8] : memref<64x128xf32, #tpu.memory_space<vmem>>, vector<64x128xf32>
    tpu.vector_store %arg8[%c0_7, %c0_8], %8 {strides = array<i32>} : memref<64x128xf32, #tpu.memory_space<vmem>>, vector<64x128xf32>,
    %c0_i32_9 = arith.constant 0 : i32
    %10 = arith.cmpi eq, %arg3, %c0_i32_9 : i32
    %11 = arith.extui %10 : i1 to i32
    %c0_i32_10 = arith.constant 0 : i32
    %12 = arith.cmpi ne, %11, %c0_i32_10 : i32
    scf.if %12 {
      %c0_11 = arith.constant 0 : index
      %c0_12 = arith.constant 0 : index
      %13 = vector.load %arg8[%c0_11, %c0_12] : memref<64x128xf32, #tpu.memory_space<vmem>>, vector<64x128xf32>
      %c0_13 = arith.constant 0 : index
      %c0_14 = arith.constant 0 : index
      %14 = vector.load %arg6[%c0_13, %c0_14] : memref<1x128xf32, #tpu.memory_space<vmem>>, vector<1x128xf32>
      %15 = vector.broadcast %14 : vector<1x128xf32> to vector<64x128xf32>
      %16 = arith.addf %13, %15 : vector<64x128xf32>
      %17 = arith.truncf %16 : vector<64x128xf32> to vector<64x128xbf16>
      %c0_15 = arith.constant 0 : index
      %c0_16 = arith.constant 0 : index
      %c0_17 = arith.constant 0 : index
      %18 = vector.load %arg7[%c0_15, %c0_16, %c0_17] : memref<1x64x128xbf16, #tpu.memory_space<vmem>>, vector<1x64x128xbf16>
      %19 = vector.shape_cast %18 : vector<1x64x128xbf16> to vector<64x128xbf16>
      %20 = vector.shape_cast %17 : vector<64x128xbf16> to vector<1x64x128xbf16>
      tpu.vector_store %arg7[%c0_15, %c0_16, %c0_17], %20 {strides = array<i32>} : memref<1x64x128xbf16, #tpu.memory_space<vmem>>, vector<1x64x128xbf16>,
    } else {
    }
    return
  }
  func.func @transform_0(%arg0: i32, %arg1: i32, %arg2: i32, %arg3: i32) -> (i32, i32, i32) {
    %c0_i32 = arith.constant 0 : i32
    return %arg0, %arg1, %arg3 : i32, i32, i32
  }
  func.func @transform_1(%arg0: i32, %arg1: i32, %arg2: i32, %arg3: i32) -> (i32, i32) {
    %c0_i32 = arith.constant 0 : i32
    return %arg3, %arg2 : i32, i32
  }
  func.func @transform_2(%arg0: i32, %arg1: i32, %arg2: i32, %arg3: i32) -> (i32, i32) {
    %c0_i32 = arith.constant 0 : i32
    %c0_i32_0 = arith.constant 0 : i32
    return %c0_i32, %arg2 : i32, i32
  }
  func.func @transform_3(%arg0: i32, %arg1: i32, %arg2: i32, %arg3: i32) -> (i32, i32, i32) {
    %c0_i32 = arith.constant 0 : i32
    return %arg0, %arg1, %arg2 : i32, i32, i32
  }
}

module attributes {stable_mosaic.version = 11 : i64} {
  func.func @_gn_apply_kernel(%arg0: i32, %arg1: i32, %arg2: memref<1x64x64xbf16, #tpu.memory_space<vmem>>, %arg3: memref<1x1x64xf32, #tpu.memory_space<vmem>>, %arg4: memref<1x1x64xf32, #tpu.memory_space<vmem>>, %arg5: memref<64x32xf32, #tpu.memory_space<vmem>>, %arg6: memref<1x64xf32, #tpu.memory_space<vmem>>, %arg7: memref<1x64xf32, #tpu.memory_space<vmem>>, %arg8: memref<1x64x64xbf16, #tpu.memory_space<vmem>>) attributes {dimension_semantics = [#tpu.dimension_semantics<parallel>, #tpu.dimension_semantics<parallel>], iteration_bounds = array<i64: 2, 1>, scalar_prefetch = 0 : i64, scratch_operands = 0 : i64, tpu.core_type = #tpu.core_type<tc>, window_params = [{transform_indices = @transform_0, window_bounds = array<i64: 1, 64, 64>}, {transform_indices = @transform_1, window_bounds = array<i64: 1, 1, 64>}, {transform_indices = @transform_2, window_bounds = array<i64: 1, 1, 64>}, {pipeline_mode = #tpu.pipeline_mode<synchronous>, transform_indices = @transform_3, window_bounds = array<i64: 64, 32>}, {pipeline_mode = #tpu.pipeline_mode<synchronous>, transform_indices = @transform_4, window_bounds = array<i64: 1, 64>}, {pipeline_mode = #tpu.pipeline_mode<synchronous>, transform_indices = @transform_5, window_bounds = array<i64: 1, 64>}, {transform_indices = @transform_6, window_bounds = array<i64: 1, 64, 64>}]} {
    %c0 = arith.constant 0 : index
    %c0_0 = arith.constant 0 : index
    %c0_1 = arith.constant 0 : index
    %0 = vector.load %arg2[%c0, %c0_0, %c0_1] : memref<1x64x64xbf16, #tpu.memory_space<vmem>>, vector<1x64x64xbf16>
    %1 = vector.shape_cast %0 : vector<1x64x64xbf16> to vector<64x64xbf16>
    %2 = arith.extf %1 : vector<64x64xbf16> to vector<64x64xf32>
    %c0_2 = arith.constant 0 : index
    %c0_3 = arith.constant 0 : index
    %3 = vector.load %arg5[%c0_2, %c0_3] : memref<64x32xf32, #tpu.memory_space<vmem>>, vector<64x32xf32>
    %c0_4 = arith.constant 0 : index
    %c0_5 = arith.constant 0 : index
    %c0_6 = arith.constant 0 : index
    %4 = vector.load %arg3[%c0_4, %c0_5, %c0_6] : memref<1x1x64xf32, #tpu.memory_space<vmem>>, vector<1x1x64xf32>
    %5 = vector.shape_cast %4 : vector<1x1x64xf32> to vector<1x64xf32>
    %cst = arith.constant dense<0.000000e+00> : vector<1x32xf32>
    %6 = tpu.matmul %5, %3, %cst {dimension_numbers = #tpu.dot_dimension_numbers<[1], [0], [0], [1], [0, 0, 1, 1], [], []>} : vector<1x64xf32>, vector<64x32xf32>, vector<1x32xf32> -> vector<1x32xf32>
    %c0_7 = arith.constant 0 : index
    %c0_8 = arith.constant 0 : index
    %c0_9 = arith.constant 0 : index
    %7 = vector.load %arg4[%c0_7, %c0_8, %c0_9] : memref<1x1x64xf32, #tpu.memory_space<vmem>>, vector<1x1x64xf32>
    %8 = vector.shape_cast %7 : vector<1x1x64xf32> to vector<1x64xf32>
    %cst_10 = arith.constant dense<0.000000e+00> : vector<1x32xf32>
    %9 = tpu.matmul %8, %3, %cst_10 {dimension_numbers = #tpu.dot_dimension_numbers<[1], [0], [0], [1], [0, 0, 1, 1], [], []>} : vector<1x64xf32>, vector<64x32xf32>, vector<1x32xf32> -> vector<1x32xf32>
    %cst_11 = arith.constant 1.280000e+02 : f32
    %10 = vector.broadcast %cst_11 : f32 to vector<1x32xf32>
    %11 = arith.divf %6, %10 : vector<1x32xf32>
    %cst_12 = arith.constant 1.280000e+02 : f32
    %12 = vector.broadcast %cst_12 : f32 to vector<1x32xf32>
    %13 = arith.divf %9, %12 : vector<1x32xf32>
    %14 = arith.mulf %11, %11 : vector<1x32xf32>
    %15 = arith.subf %13, %14 : vector<1x32xf32>
    %cst_13 = arith.constant 0.000000e+00 : f32
    %16 = vector.broadcast %cst_13 : f32 to vector<1x32xf32>
    %17 = arith.maximumf %15, %16 : vector<1x32xf32>
    %cst_14 = arith.constant 9.99999997E-7 : f32
    %18 = vector.broadcast %cst_14 : f32 to vector<1x32xf32>
    %19 = arith.addf %17, %18 : vector<1x32xf32>
    %20 = math.rsqrt %19 : vector<1x32xf32>
    %cst_15 = arith.constant dense<0.000000e+00> : vector<1x64xf32>
    %21 = tpu.matmul %11, %3, %cst_15 {dimension_numbers = #tpu.dot_dimension_numbers<[1], [1], [0], [0], [0, 0, 1, 0], [], []>} : vector<1x32xf32>, vector<64x32xf32>, vector<1x64xf32> -> vector<1x64xf32>
    %cst_16 = arith.constant dense<0.000000e+00> : vector<1x64xf32>
    %22 = tpu.matmul %20, %3, %cst_16 {dimension_numbers = #tpu.dot_dimension_numbers<[1], [1], [0], [0], [0, 0, 1, 0], [], []>} : vector<1x32xf32>, vector<64x32xf32>, vector<1x64xf32> -> vector<1x64xf32>
    %23 = vector.broadcast %21 : vector<1x64xf32> to vector<64x64xf32>
    %24 = arith.subf %2, %23 : vector<64x64xf32>
    %25 = vector.broadcast %22 : vector<1x64xf32> to vector<64x64xf32>
    %26 = arith.mulf %24, %25 : vector<64x64xf32>
    %c0_17 = arith.constant 0 : index
    %c0_18 = arith.constant 0 : index
    %27 = vector.load %arg6[%c0_17, %c0_18] : memref<1x64xf32, #tpu.memory_space<vmem>>, vector<1x64xf32>
    %28 = vector.broadcast %27 : vector<1x64xf32> to vector<64x64xf32>
    %29 = arith.mulf %26, %28 : vector<64x64xf32>
    %c0_19 = arith.constant 0 : index
    %c0_20 = arith.constant 0 : index
    %30 = vector.load %arg7[%c0_19, %c0_20] : memref<1x64xf32, #tpu.memory_space<vmem>>, vector<1x64xf32>
    %31 = vector.broadcast %30 : vector<1x64xf32> to vector<64x64xf32>
    %32 = arith.addf %29, %31 : vector<64x64xf32>
    %33 = arith.negf %32 : vector<64x64xf32>
    %34 = math.exp %33 : vector<64x64xf32>
    %cst_21 = arith.constant 1.000000e+00 : f32
    %35 = vector.broadcast %cst_21 : f32 to vector<64x64xf32>
    %36 = arith.addf %35, %34 : vector<64x64xf32>
    %37 = arith.divf %35, %36 : vector<64x64xf32>
    %38 = arith.mulf %32, %37 : vector<64x64xf32>
    %39 = arith.truncf %38 : vector<64x64xf32> to vector<64x64xbf16>
    %c0_22 = arith.constant 0 : index
    %c0_23 = arith.constant 0 : index
    %c0_24 = arith.constant 0 : index
    %40 = vector.load %arg8[%c0_22, %c0_23, %c0_24] : memref<1x64x64xbf16, #tpu.memory_space<vmem>>, vector<1x64x64xbf16>
    %41 = vector.shape_cast %40 : vector<1x64x64xbf16> to vector<64x64xbf16>
    %42 = vector.shape_cast %39 : vector<64x64xbf16> to vector<1x64x64xbf16>
    tpu.vector_store %arg8[%c0_22, %c0_23, %c0_24], %42 {strides = array<i32>} : memref<1x64x64xbf16, #tpu.memory_space<vmem>>, vector<1x64x64xbf16>,
    return
  }
  func.func @transform_0(%arg0: i32, %arg1: i32) -> (i32, i32, i32) {
    %c0_i32 = arith.constant 0 : i32
    %c0_i32_0 = arith.constant 0 : i32
    return %arg0, %arg1, %c0_i32 : i32, i32, i32
  }
  func.func @transform_1(%arg0: i32, %arg1: i32) -> (i32, i32, i32) {
    %c0_i32 = arith.constant 0 : i32
    %c0_i32_0 = arith.constant 0 : i32
    %c0_i32_1 = arith.constant 0 : i32
    return %arg0, %c0_i32, %c0_i32_0 : i32, i32, i32
  }
  func.func @transform_2(%arg0: i32, %arg1: i32) -> (i32, i32, i32) {
    %c0_i32 = arith.constant 0 : i32
    %c0_i32_0 = arith.constant 0 : i32
    %c0_i32_1 = arith.constant 0 : i32
    return %arg0, %c0_i32, %c0_i32_0 : i32, i32, i32
  }
  func.func @transform_3(%arg0: i32, %arg1: i32) -> (i32, i32) {
    %c0_i32 = arith.constant 0 : i32
    %c0_i32_0 = arith.constant 0 : i32
    %c0_i32_1 = arith.constant 0 : i32
    return %c0_i32, %c0_i32_0 : i32, i32
  }
  func.func @transform_4(%arg0: i32, %arg1: i32) -> (i32, i32) {
    %c0_i32 = arith.constant 0 : i32
    %c0_i32_0 = arith.constant 0 : i32
    %c0_i32_1 = arith.constant 0 : i32
    return %c0_i32, %c0_i32_0 : i32, i32
  }
  func.func @transform_5(%arg0: i32, %arg1: i32) -> (i32, i32) {
    %c0_i32 = arith.constant 0 : i32
    %c0_i32_0 = arith.constant 0 : i32
    %c0_i32_1 = arith.constant 0 : i32
    return %c0_i32, %c0_i32_0 : i32, i32
  }
  func.func @transform_6(%arg0: i32, %arg1: i32) -> (i32, i32, i32) {
    %c0_i32 = arith.constant 0 : i32
    %c0_i32_0 = arith.constant 0 : i32
    return %arg0, %arg1, %c0_i32 : i32, i32, i32
  }
}

module attributes {stable_mosaic.version = 11 : i64} {
  func.func @_gn_stats_kernel(%arg0: i32, %arg1: i32, %arg2: memref<1x64x64xbf16, #tpu.memory_space<vmem>>, %arg3: memref<1x1x64xf32, #tpu.memory_space<vmem>>, %arg4: memref<1x1x64xf32, #tpu.memory_space<vmem>>) attributes {dimension_semantics = [#tpu.dimension_semantics<parallel>, #tpu.dimension_semantics<arbitrary>], iteration_bounds = array<i64: 2, 1>, scalar_prefetch = 0 : i64, scratch_operands = 0 : i64, tpu.core_type = #tpu.core_type<tc>, window_params = [{transform_indices = @transform_0, window_bounds = array<i64: 1, 64, 64>}, {transform_indices = @transform_1, window_bounds = array<i64: 1, 1, 64>}, {transform_indices = @transform_2, window_bounds = array<i64: 1, 1, 64>}]} {
    %c0_i32 = arith.constant 0 : i32
    %0 = arith.cmpi eq, %arg1, %c0_i32 : i32
    %1 = arith.extui %0 : i1 to i32
    %c0_i32_0 = arith.constant 0 : i32
    %2 = arith.cmpi ne, %1, %c0_i32_0 : i32
    scf.if %2 {
      %cst_16 = arith.constant 0.000000e+00 : f32
      %23 = vector.broadcast %cst_16 : f32 to vector<1x1x64xf32>
      %c0_17 = arith.constant 0 : index
      %c0_18 = arith.constant 0 : index
      %c0_19 = arith.constant 0 : index
      %24 = vector.load %arg3[%c0_17, %c0_18, %c0_19] : memref<1x1x64xf32, #tpu.memory_space<vmem>>, vector<1x1x64xf32>
      tpu.vector_store %arg3[%c0_17, %c0_18, %c0_19], %23 {strides = array<i32>} : memref<1x1x64xf32, #tpu.memory_space<vmem>>, vector<1x1x64xf32>,
      %cst_20 = arith.constant 0.000000e+00 : f32
      %25 = vector.broadcast %cst_20 : f32 to vector<1x1x64xf32>
      %c0_21 = arith.constant 0 : index
      %c0_22 = arith.constant 0 : index
      %c0_23 = arith.constant 0 : index
      %26 = vector.load %arg4[%c0_21, %c0_22, %c0_23] : memref<1x1x64xf32, #tpu.memory_space<vmem>>, vector<1x1x64xf32>
      tpu.vector_store %arg4[%c0_21, %c0_22, %c0_23], %25 {strides = array<i32>} : memref<1x1x64xf32, #tpu.memory_space<vmem>>, vector<1x1x64xf32>,
    } else {
    }
    %c0 = arith.constant 0 : index
    %c0_1 = arith.constant 0 : index
    %c0_2 = arith.constant 0 : index
    %3 = vector.load %arg2[%c0, %c0_1, %c0_2] : memref<1x64x64xbf16, #tpu.memory_space<vmem>>, vector<1x64x64xbf16>
    %4 = vector.shape_cast %3 : vector<1x64x64xbf16> to vector<64x64xbf16>
    %5 = arith.extf %4 : vector<64x64xbf16> to vector<64x64xf32>
    %c0_3 = arith.constant 0 : index
    %c0_4 = arith.constant 0 : index
    %c0_5 = arith.constant 0 : index
    %6 = vector.load %arg3[%c0_3, %c0_4, %c0_5] : memref<1x1x64xf32, #tpu.memory_space<vmem>>, vector<1x1x64xf32>
    %7 = vector.shape_cast %6 : vector<1x1x64xf32> to vector<1x64xf32>
    %cst = arith.constant dense<0.000000e+00> : vector<64xf32>
    %8 = vector.multi_reduction <add>, %5, %cst [0] : vector<64x64xf32> to vector<64xf32>
    %9 = vector.shape_cast %8 : vector<64xf32> to vector<1x64xf32>
    %10 = arith.addf %7, %9 : vector<1x64xf32>
    %c0_6 = arith.constant 0 : index
    %c0_7 = arith.constant 0 : index
    %c0_8 = arith.constant 0 : index
    %11 = vector.load %arg3[%c0_6, %c0_7, %c0_8] : memref<1x1x64xf32, #tpu.memory_space<vmem>>, vector<1x1x64xf32>
    %12 = vector.shape_cast %11 : vector<1x1x64xf32> to vector<1x64xf32>
    %13 = vector.shape_cast %10 : vector<1x64xf32> to vector<1x1x64xf32>
    tpu.vector_store %arg3[%c0_6, %c0_7, %c0_8], %13 {strides = array<i32>} : memref<1x1x64xf32, #tpu.memory_space<vmem>>, vector<1x1x64xf32>,
    %c0_9 = arith.constant 0 : index
    %c0_10 = arith.constant 0 : index
    %c0_11 = arith.constant 0 : index
    %14 = vector.load %arg4[%c0_9, %c0_10, %c0_11] : memref<1x1x64xf32, #tpu.memory_space<vmem>>, vector<1x1x64xf32>
    %15 = vector.shape_cast %14 : vector<1x1x64xf32> to vector<1x64xf32>
    %16 = arith.mulf %5, %5 : vector<64x64xf32>
    %cst_12 = arith.constant dense<0.000000e+00> : vector<64xf32>
    %17 = vector.multi_reduction <add>, %16, %cst_12 [0] : vector<64x64xf32> to vector<64xf32>
    %18 = vector.shape_cast %17 : vector<64xf32> to vector<1x64xf32>
    %19 = arith.addf %15, %18 : vector<1x64xf32>
    %c0_13 = arith.constant 0 : index
    %c0_14 = arith.constant 0 : index
    %c0_15 = arith.constant 0 : index
    %20 = vector.load %arg4[%c0_13, %c0_14, %c0_15] : memref<1x1x64xf32, #tpu.memory_space<vmem>>, vector<1x1x64xf32>
    %21 = vector.shape_cast %20 : vector<1x1x64xf32> to vector<1x64xf32>
    %22 = vector.shape_cast %19 : vector<1x64xf32> to vector<1x1x64xf32>
    tpu.vector_store %arg4[%c0_13, %c0_14, %c0_15], %22 {strides = array<i32>} : memref<1x1x64xf32, #tpu.memory_space<vmem>>, vector<1x1x64xf32>,
    return
  }
  func.func @transform_0(%arg0: i32, %arg1: i32) -> (i32, i32, i32) {
    %c0_i32 = arith.constant 0 : i32
    %c0_i32_0 = arith.constant 0 : i32
    return %arg0, %arg1, %c0_i32 : i32, i32, i32
  }
  func.func @transform_1(%arg0: i32, %arg1: i32) -> (i32, i32, i32) {
    %c0_i32 = arith.constant 0 : i32
    %c0_i32_0 = arith.constant 0 : i32
    %c0_i32_1 = arith.constant 0 : i32
    return %arg0, %c0_i32, %c0_i32_0 : i32, i32, i32
  }
  func.func @transform_2(%arg0: i32, %arg1: i32) -> (i32, i32, i32) {
    %c0_i32 = arith.constant 0 : i32
    %c0_i32_0 = arith.constant 0 : i32
    %c0_i32_1 = arith.constant 0 : i32
    return %arg0, %c0_i32, %c0_i32_0 : i32, i32, i32
  }
}

module attributes {stable_mosaic.version = 11 : i64} {
  func.func @_matmul_kernel(%arg0: i32, %arg1: i32, %arg2: i32, %arg3: i32, %arg4: memref<1x64x128xbf16, #tpu.memory_space<vmem>>, %arg5: memref<128x128xbf16, #tpu.memory_space<vmem>>, %arg6: memref<1x128xf32, #tpu.memory_space<vmem>>, %arg7: memref<1x64x128xbf16, #tpu.memory_space<vmem>>, %arg8: memref<64x128xf32, #tpu.memory_space<vmem>>) attributes {dimension_semantics = [#tpu.dimension_semantics<parallel>, #tpu.dimension_semantics<parallel>, #tpu.dimension_semantics<parallel>, #tpu.dimension_semantics<arbitrary>], iteration_bounds = array<i64: 2, 1, 1, 5>, scalar_prefetch = 0 : i64, scratch_operands = 1 : i64, tpu.core_type = #tpu.core_type<tc>, window_params = [{transform_indices = @transform_0, window_bounds = array<i64: 1, 64, 128>}, {transform_indices = @transform_1, window_bounds = array<i64: 128, 128>}, {transform_indices = @transform_2, window_bounds = array<i64: 1, 128>}, {transform_indices = @transform_3, window_bounds = array<i64: 1, 64, 128>}]} {
    %c0_i32 = arith.constant 0 : i32
    %0 = arith.cmpi eq, %arg3, %c0_i32 : i32
    %1 = arith.extui %0 : i1 to i32
    %c0_i32_0 = arith.constant 0 : i32
    %2 = arith.cmpi ne, %1, %c0_i32_0 : i32
    scf.if %2 {
      %cst_10 = arith.constant 0.000000e+00 : f32
      %13 = vector.broadcast %cst_10 : f32 to vector<64x128xf32>
      %c0_11 = arith.constant 0 : index
      %c0_12 = arith.constant 0 : index
      %14 = vector.load %arg8[%c0_11, %c0_12] : memref<64x128xf32, #tpu.memory_space<vmem>>, vector<64x128xf32>
      tpu.vector_store %arg8[%c0_11, %c0_12], %13 {strides = array<i32>} : memref<64x128xf32, #tpu.memory_space<vmem>>, vector<64x128xf32>,
    } else {
    }
    %c0 = arith.constant 0 : index
    %c0_1 = arith.constant 0 : index
    %3 = vector.load %arg8[%c0, %c0_1] : memref<64x128xf32, #tpu.memory_space<vmem>>, vector<64x128xf32>
    %c0_2 = arith.constant 0 : index
    %c0_3 = arith.constant 0 : index
    %c0_4 = arith.constant 0 : index
    %4 = vector.load %arg4[%c0_2, %c0_3, %c0_4] : memref<1x64x128xbf16, #tpu.memory_space<vmem>>, vector<1x64x128xbf16>
    %5 = vector.shape_cast %4 : vector<1x64x128xbf16> to vector<64x128xbf16>
    %c0_5 = arith.constant 0 : index
    %c0_6 = arith.constant 0 : index
    %6 = vector.load %arg5[%c0_5, %c0_6] : memref<128x128xbf16, #tpu.memory_space<vmem>>, vector<128x128xbf16>
    %cst = arith.constant dense<0.000000e+00> : vector<64x128xf32>
    %7 = tpu.matmul %5, %6, %cst {dimension_numbers = #tpu.dot_dimension_numbers<[1], [0], [0], [1], [0, 0, 1, 1], [], []>} : vector<64x128xbf16>, vector<128x128xbf16>, vector<64x128xf32> -> vector<64x128xf32>
    %8 = arith.addf %3, %7 : vector<64x128xf32>
    %c0_7 = arith.constant 0 : index
    %c0_8 = arith.constant 0 : index
    %9 = vector.load %arg8[%c0_7, %c0_8] : memref<64x128xf32, #tpu.memory_space<vmem>>, vector<64x128xf32>
    tpu.vector_store %arg8[%c0_7, %c0_8], %8 {strides = array<i32>} : memref<64x128xf32, #tpu.memory_space<vmem>>, vector<64x128xf32>,
    %c4_i32 = arith.constant 4 : i32
    %10 = arith.cmpi eq, %arg3, %c4_i32 : i32
    %11 = arith.extui %10 : i1 to i32
    %c0_i32_9 = arith.constant 0 : i32
    %12 = arith.cmpi ne, %11, %c0_i32_9 : i32
    scf.if %12 {
      %c0_10 = arith.constant 0 : index
      %c0_11 = arith.constant 0 : index
      %13 = vector.load %arg8[%c0_10, %c0_11] : memref<64x128xf32, #tpu.memory_space<vmem>>, vector<64x128xf32>
      %c0_12 = arith.constant 0 : index
      %c0_13 = arith.constant 0 : index
      %14 = vector.load %arg6[%c0_12, %c0_13] : memref<1x128xf32, #tpu.memory_space<vmem>>, vector<1x128xf32>
      %15 = vector.broadcast %14 : vector<1x128xf32> to vector<64x128xf32>
      %16 = arith.addf %13, %15 : vector<64x128xf32>
      %17 = arith.truncf %16 : vector<64x128xf32> to vector<64x128xbf16>
      %c0_14 = arith.constant 0 : index
      %c0_15 = arith.constant 0 : index
      %c0_16 = arith.constant 0 : index
      %18 = vector.load %arg7[%c0_14, %c0_15, %c0_16] : memref<1x64x128xbf16, #tpu.memory_space<vmem>>, vector<1x64x128xbf16>
      %19 = vector.shape_cast %18 : vector<1x64x128xbf16> to vector<64x128xbf16>
      %20 = vector.shape_cast %17 : vector<64x128xbf16> to vector<1x64x128xbf16>
      tpu.vector_store %arg7[%c0_14, %c0_15, %c0_16], %20 {strides = array<i32>} : memref<1x64x128xbf16, #tpu.memory_space<vmem>>, vector<1x64x128xbf16>,
    } else {
    }
    return
  }
  func.func @transform_0(%arg0: i32, %arg1: i32, %arg2: i32, %arg3: i32) -> (i32, i32, i32) {
    %c0_i32 = arith.constant 0 : i32
    return %arg0, %arg1, %arg3 : i32, i32, i32
  }
  func.func @transform_1(%arg0: i32, %arg1: i32, %arg2: i32, %arg3: i32) -> (i32, i32) {
    %c0_i32 = arith.constant 0 : i32
    return %arg3, %arg2 : i32, i32
  }
  func.func @transform_2(%arg0: i32, %arg1: i32, %arg2: i32, %arg3: i32) -> (i32, i32) {
    %c0_i32 = arith.constant 0 : i32
    %c0_i32_0 = arith.constant 0 : i32
    return %c0_i32, %arg2 : i32, i32
  }
  func.func @transform_3(%arg0: i32, %arg1: i32, %arg2: i32, %arg3: i32) -> (i32, i32, i32) {
    %c0_i32 = arith.constant 0 : i32
    return %arg0, %arg1, %arg2 : i32, i32, i32
  }
}

module attributes {stable_mosaic.version = 11 : i64} {
  func.func @_matmul_res_kernel(%arg0: i32, %arg1: i32, %arg2: i32, %arg3: i32, %arg4: memref<1x64x128xbf16, #tpu.memory_space<vmem>>, %arg5: memref<128x128xbf16, #tpu.memory_space<vmem>>, %arg6: memref<1x128xf32, #tpu.memory_space<vmem>>, %arg7: memref<1x64x128xbf16, #tpu.memory_space<vmem>>, %arg8: memref<1x64x128xbf16, #tpu.memory_space<vmem>>, %arg9: memref<64x128xf32, #tpu.memory_space<vmem>>) attributes {dimension_semantics = [#tpu.dimension_semantics<parallel>, #tpu.dimension_semantics<parallel>, #tpu.dimension_semantics<parallel>, #tpu.dimension_semantics<arbitrary>], iteration_bounds = array<i64: 2, 1, 1, 5>, scalar_prefetch = 0 : i64, scratch_operands = 1 : i64, tpu.core_type = #tpu.core_type<tc>, window_params = [{transform_indices = @transform_0, window_bounds = array<i64: 1, 64, 128>}, {transform_indices = @transform_1, window_bounds = array<i64: 128, 128>}, {transform_indices = @transform_2, window_bounds = array<i64: 1, 128>}, {transform_indices = @transform_3, window_bounds = array<i64: 1, 64, 128>}, {transform_indices = @transform_4, window_bounds = array<i64: 1, 64, 128>}]} {
    %c0_i32 = arith.constant 0 : i32
    %0 = arith.cmpi eq, %arg3, %c0_i32 : i32
    %1 = arith.extui %0 : i1 to i32
    %c0_i32_0 = arith.constant 0 : i32
    %2 = arith.cmpi ne, %1, %c0_i32_0 : i32
    scf.if %2 {
      %cst_10 = arith.constant 0.000000e+00 : f32
      %13 = vector.broadcast %cst_10 : f32 to vector<64x128xf32>
      %c0_11 = arith.constant 0 : index
      %c0_12 = arith.constant 0 : index
      %14 = vector.load %arg9[%c0_11, %c0_12] : memref<64x128xf32, #tpu.memory_space<vmem>>, vector<64x128xf32>
      tpu.vector_store %arg9[%c0_11, %c0_12], %13 {strides = array<i32>} : memref<64x128xf32, #tpu.memory_space<vmem>>, vector<64x128xf32>,
    } else {
    }
    %c0 = arith.constant 0 : index
    %c0_1 = arith.constant 0 : index
    %3 = vector.load %arg9[%c0, %c0_1] : memref<64x128xf32, #tpu.memory_space<vmem>>, vector<64x128xf32>
    %c0_2 = arith.constant 0 : index
    %c0_3 = arith.constant 0 : index
    %c0_4 = arith.constant 0 : index
    %4 = vector.load %arg4[%c0_2, %c0_3, %c0_4] : memref<1x64x128xbf16, #tpu.memory_space<vmem>>, vector<1x64x128xbf16>
    %5 = vector.shape_cast %4 : vector<1x64x128xbf16> to vector<64x128xbf16>
    %c0_5 = arith.constant 0 : index
    %c0_6 = arith.constant 0 : index
    %6 = vector.load %arg5[%c0_5, %c0_6] : memref<128x128xbf16, #tpu.memory_space<vmem>>, vector<128x128xbf16>
    %cst = arith.constant dense<0.000000e+00> : vector<64x128xf32>
    %7 = tpu.matmul %5, %6, %cst {dimension_numbers = #tpu.dot_dimension_numbers<[1], [0], [0], [1], [0, 0, 1, 1], [], []>} : vector<64x128xbf16>, vector<128x128xbf16>, vector<64x128xf32> -> vector<64x128xf32>
    %8 = arith.addf %3, %7 : vector<64x128xf32>
    %c0_7 = arith.constant 0 : index
    %c0_8 = arith.constant 0 : index
    %9 = vector.load %arg9[%c0_7, %c0_8] : memref<64x128xf32, #tpu.memory_space<vmem>>, vector<64x128xf32>
    tpu.vector_store %arg9[%c0_7, %c0_8], %8 {strides = array<i32>} : memref<64x128xf32, #tpu.memory_space<vmem>>, vector<64x128xf32>,
    %c4_i32 = arith.constant 4 : i32
    %10 = arith.cmpi eq, %arg3, %c4_i32 : i32
    %11 = arith.extui %10 : i1 to i32
    %c0_i32_9 = arith.constant 0 : i32
    %12 = arith.cmpi ne, %11, %c0_i32_9 : i32
    scf.if %12 {
      %c0_10 = arith.constant 0 : index
      %c0_11 = arith.constant 0 : index
      %13 = vector.load %arg9[%c0_10, %c0_11] : memref<64x128xf32, #tpu.memory_space<vmem>>, vector<64x128xf32>
      %c0_12 = arith.constant 0 : index
      %c0_13 = arith.constant 0 : index
      %14 = vector.load %arg6[%c0_12, %c0_13] : memref<1x128xf32, #tpu.memory_space<vmem>>, vector<1x128xf32>
      %15 = vector.broadcast %14 : vector<1x128xf32> to vector<64x128xf32>
      %16 = arith.addf %13, %15 : vector<64x128xf32>
      %c0_14 = arith.constant 0 : index
      %c0_15 = arith.constant 0 : index
      %c0_16 = arith.constant 0 : index
      %17 = vector.load %arg7[%c0_14, %c0_15, %c0_16] : memref<1x64x128xbf16, #tpu.memory_space<vmem>>, vector<1x64x128xbf16>
      %18 = vector.shape_cast %17 : vector<1x64x128xbf16> to vector<64x128xbf16>
      %19 = arith.extf %18 : vector<64x128xbf16> to vector<64x128xf32>
      %20 = arith.addf %16, %19 : vector<64x128xf32>
      %21 = arith.truncf %20 : vector<64x128xf32> to vector<64x128xbf16>
      %c0_17 = arith.constant 0 : index
      %c0_18 = arith.constant 0 : index
      %c0_19 = arith.constant 0 : index
      %22 = vector.load %arg8[%c0_17, %c0_18, %c0_19] : memref<1x64x128xbf16, #tpu.memory_space<vmem>>, vector<1x64x128xbf16>
      %23 = vector.shape_cast %22 : vector<1x64x128xbf16> to vector<64x128xbf16>
      %24 = vector.shape_cast %21 : vector<64x128xbf16> to vector<1x64x128xbf16>
      tpu.vector_store %arg8[%c0_17, %c0_18, %c0_19], %24 {strides = array<i32>} : memref<1x64x128xbf16, #tpu.memory_space<vmem>>, vector<1x64x128xbf16>,
    } else {
    }
    return
  }
  func.func @transform_0(%arg0: i32, %arg1: i32, %arg2: i32, %arg3: i32) -> (i32, i32, i32) {
    %c0_i32 = arith.constant 0 : i32
    return %arg0, %arg1, %arg3 : i32, i32, i32
  }
  func.func @transform_1(%arg0: i32, %arg1: i32, %arg2: i32, %arg3: i32) -> (i32, i32) {
    %c0_i32 = arith.constant 0 : i32
    return %arg3, %arg2 : i32, i32
  }
  func.func @transform_2(%arg0: i32, %arg1: i32, %arg2: i32, %arg3: i32) -> (i32, i32) {
    %c0_i32 = arith.constant 0 : i32
    %c0_i32_0 = arith.constant 0 : i32
    return %c0_i32, %arg2 : i32, i32
  }
  func.func @transform_3(%arg0: i32, %arg1: i32, %arg2: i32, %arg3: i32) -> (i32, i32, i32) {
    %c0_i32 = arith.constant 0 : i32
    return %arg0, %arg1, %arg2 : i32, i32, i32
  }
  func.func @transform_4(%arg0: i32, %arg1: i32, %arg2: i32, %arg3: i32) -> (i32, i32, i32) {
    %c0_i32 = arith.constant 0 : i32
    return %arg0, %arg1, %arg2 : i32, i32, i32
  }
}

module attributes {stable_mosaic.version = 11 : i64} {
  func.func @_gn_apply_kernel(%arg0: i32, %arg1: i32, %arg2: memref<1x64x64xbf16, #tpu.memory_space<vmem>>, %arg3: memref<1x1x64xf32, #tpu.memory_space<vmem>>, %arg4: memref<1x1x64xf32, #tpu.memory_space<vmem>>, %arg5: memref<64x32xf32, #tpu.memory_space<vmem>>, %arg6: memref<1x64xf32, #tpu.memory_space<vmem>>, %arg7: memref<1x64xf32, #tpu.memory_space<vmem>>, %arg8: memref<1x64x64xbf16, #tpu.memory_space<vmem>>) attributes {dimension_semantics = [#tpu.dimension_semantics<parallel>, #tpu.dimension_semantics<parallel>], iteration_bounds = array<i64: 2, 1>, scalar_prefetch = 0 : i64, scratch_operands = 0 : i64, tpu.core_type = #tpu.core_type<tc>, window_params = [{transform_indices = @transform_0, window_bounds = array<i64: 1, 64, 64>}, {transform_indices = @transform_1, window_bounds = array<i64: 1, 1, 64>}, {transform_indices = @transform_2, window_bounds = array<i64: 1, 1, 64>}, {pipeline_mode = #tpu.pipeline_mode<synchronous>, transform_indices = @transform_3, window_bounds = array<i64: 64, 32>}, {pipeline_mode = #tpu.pipeline_mode<synchronous>, transform_indices = @transform_4, window_bounds = array<i64: 1, 64>}, {pipeline_mode = #tpu.pipeline_mode<synchronous>, transform_indices = @transform_5, window_bounds = array<i64: 1, 64>}, {transform_indices = @transform_6, window_bounds = array<i64: 1, 64, 64>}]} {
    %c0 = arith.constant 0 : index
    %c0_0 = arith.constant 0 : index
    %c0_1 = arith.constant 0 : index
    %0 = vector.load %arg2[%c0, %c0_0, %c0_1] : memref<1x64x64xbf16, #tpu.memory_space<vmem>>, vector<1x64x64xbf16>
    %1 = vector.shape_cast %0 : vector<1x64x64xbf16> to vector<64x64xbf16>
    %2 = arith.extf %1 : vector<64x64xbf16> to vector<64x64xf32>
    %c0_2 = arith.constant 0 : index
    %c0_3 = arith.constant 0 : index
    %3 = vector.load %arg5[%c0_2, %c0_3] : memref<64x32xf32, #tpu.memory_space<vmem>>, vector<64x32xf32>
    %c0_4 = arith.constant 0 : index
    %c0_5 = arith.constant 0 : index
    %c0_6 = arith.constant 0 : index
    %4 = vector.load %arg3[%c0_4, %c0_5, %c0_6] : memref<1x1x64xf32, #tpu.memory_space<vmem>>, vector<1x1x64xf32>
    %5 = vector.shape_cast %4 : vector<1x1x64xf32> to vector<1x64xf32>
    %cst = arith.constant dense<0.000000e+00> : vector<1x32xf32>
    %6 = tpu.matmul %5, %3, %cst {dimension_numbers = #tpu.dot_dimension_numbers<[1], [0], [0], [1], [0, 0, 1, 1], [], []>} : vector<1x64xf32>, vector<64x32xf32>, vector<1x32xf32> -> vector<1x32xf32>
    %c0_7 = arith.constant 0 : index
    %c0_8 = arith.constant 0 : index
    %c0_9 = arith.constant 0 : index
    %7 = vector.load %arg4[%c0_7, %c0_8, %c0_9] : memref<1x1x64xf32, #tpu.memory_space<vmem>>, vector<1x1x64xf32>
    %8 = vector.shape_cast %7 : vector<1x1x64xf32> to vector<1x64xf32>
    %cst_10 = arith.constant dense<0.000000e+00> : vector<1x32xf32>
    %9 = tpu.matmul %8, %3, %cst_10 {dimension_numbers = #tpu.dot_dimension_numbers<[1], [0], [0], [1], [0, 0, 1, 1], [], []>} : vector<1x64xf32>, vector<64x32xf32>, vector<1x32xf32> -> vector<1x32xf32>
    %cst_11 = arith.constant 1.280000e+02 : f32
    %10 = vector.broadcast %cst_11 : f32 to vector<1x32xf32>
    %11 = arith.divf %6, %10 : vector<1x32xf32>
    %cst_12 = arith.constant 1.280000e+02 : f32
    %12 = vector.broadcast %cst_12 : f32 to vector<1x32xf32>
    %13 = arith.divf %9, %12 : vector<1x32xf32>
    %14 = arith.mulf %11, %11 : vector<1x32xf32>
    %15 = arith.subf %13, %14 : vector<1x32xf32>
    %cst_13 = arith.constant 0.000000e+00 : f32
    %16 = vector.broadcast %cst_13 : f32 to vector<1x32xf32>
    %17 = arith.maximumf %15, %16 : vector<1x32xf32>
    %cst_14 = arith.constant 9.99999997E-7 : f32
    %18 = vector.broadcast %cst_14 : f32 to vector<1x32xf32>
    %19 = arith.addf %17, %18 : vector<1x32xf32>
    %20 = math.rsqrt %19 : vector<1x32xf32>
    %cst_15 = arith.constant dense<0.000000e+00> : vector<1x64xf32>
    %21 = tpu.matmul %11, %3, %cst_15 {dimension_numbers = #tpu.dot_dimension_numbers<[1], [1], [0], [0], [0, 0, 1, 0], [], []>} : vector<1x32xf32>, vector<64x32xf32>, vector<1x64xf32> -> vector<1x64xf32>
    %cst_16 = arith.constant dense<0.000000e+00> : vector<1x64xf32>
    %22 = tpu.matmul %20, %3, %cst_16 {dimension_numbers = #tpu.dot_dimension_numbers<[1], [1], [0], [0], [0, 0, 1, 0], [], []>} : vector<1x32xf32>, vector<64x32xf32>, vector<1x64xf32> -> vector<1x64xf32>
    %23 = vector.broadcast %21 : vector<1x64xf32> to vector<64x64xf32>
    %24 = arith.subf %2, %23 : vector<64x64xf32>
    %25 = vector.broadcast %22 : vector<1x64xf32> to vector<64x64xf32>
    %26 = arith.mulf %24, %25 : vector<64x64xf32>
    %c0_17 = arith.constant 0 : index
    %c0_18 = arith.constant 0 : index
    %27 = vector.load %arg6[%c0_17, %c0_18] : memref<1x64xf32, #tpu.memory_space<vmem>>, vector<1x64xf32>
    %28 = vector.broadcast %27 : vector<1x64xf32> to vector<64x64xf32>
    %29 = arith.mulf %26, %28 : vector<64x64xf32>
    %c0_19 = arith.constant 0 : index
    %c0_20 = arith.constant 0 : index
    %30 = vector.load %arg7[%c0_19, %c0_20] : memref<1x64xf32, #tpu.memory_space<vmem>>, vector<1x64xf32>
    %31 = vector.broadcast %30 : vector<1x64xf32> to vector<64x64xf32>
    %32 = arith.addf %29, %31 : vector<64x64xf32>
    %33 = arith.truncf %32 : vector<64x64xf32> to vector<64x64xbf16>
    %c0_21 = arith.constant 0 : index
    %c0_22 = arith.constant 0 : index
    %c0_23 = arith.constant 0 : index
    %34 = vector.load %arg8[%c0_21, %c0_22, %c0_23] : memref<1x64x64xbf16, #tpu.memory_space<vmem>>, vector<1x64x64xbf16>
    %35 = vector.shape_cast %34 : vector<1x64x64xbf16> to vector<64x64xbf16>
    %36 = vector.shape_cast %33 : vector<64x64xbf16> to vector<1x64x64xbf16>
    tpu.vector_store %arg8[%c0_21, %c0_22, %c0_23], %36 {strides = array<i32>} : memref<1x64x64xbf16, #tpu.memory_space<vmem>>, vector<1x64x64xbf16>,
    return
  }
  func.func @transform_0(%arg0: i32, %arg1: i32) -> (i32, i32, i32) {
    %c0_i32 = arith.constant 0 : i32
    %c0_i32_0 = arith.constant 0 : i32
    return %arg0, %arg1, %c0_i32 : i32, i32, i32
  }
  func.func @transform_1(%arg0: i32, %arg1: i32) -> (i32, i32, i32) {
    %c0_i32 = arith.constant 0 : i32
    %c0_i32_0 = arith.constant 0 : i32
    %c0_i32_1 = arith.constant 0 : i32
    return %arg0, %c0_i32, %c0_i32_0 : i32, i32, i32
  }
  func.func @transform_2(%arg0: i32, %arg1: i32) -> (i32, i32, i32) {
    %c0_i32 = arith.constant 0 : i32
    %c0_i32_0 = arith.constant 0 : i32
    %c0_i32_1 = arith.constant 0 : i32
    return %arg0, %c0_i32, %c0_i32_0 : i32, i32, i32
  }
  func.func @transform_3(%arg0: i32, %arg1: i32) -> (i32, i32) {
    %c0_i32 = arith.constant 0 : i32
    %c0_i32_0 = arith.constant 0 : i32
    %c0_i32_1 = arith.constant 0 : i32
    return %c0_i32, %c0_i32_0 : i32, i32
  }
  func.func @transform_4(%arg0: i32, %arg1: i32) -> (i32, i32) {
    %c0_i32 = arith.constant 0 : i32
    %c0_i32_0 = arith.constant 0 : i32
    %c0_i32_1 = arith.constant 0 : i32
    return %c0_i32, %c0_i32_0 : i32, i32
  }
  func.func @transform_5(%arg0: i32, %arg1: i32) -> (i32, i32) {
    %c0_i32 = arith.constant 0 : i32
    %c0_i32_0 = arith.constant 0 : i32
    %c0_i32_1 = arith.constant 0 : i32
    return %c0_i32, %c0_i32_0 : i32, i32
  }
  func.func @transform_6(%arg0: i32, %arg1: i32) -> (i32, i32, i32) {
    %c0_i32 = arith.constant 0 : i32
    %c0_i32_0 = arith.constant 0 : i32
    return %arg0, %arg1, %c0_i32 : i32, i32, i32
  }
}

module attributes {stable_mosaic.version = 11 : i64} {
  func.func @_matmul_res_kernel(%arg0: i32, %arg1: i32, %arg2: i32, %arg3: i32, %arg4: memref<1x64x128xbf16, #tpu.memory_space<vmem>>, %arg5: memref<128x128xbf16, #tpu.memory_space<vmem>>, %arg6: memref<1x128xf32, #tpu.memory_space<vmem>>, %arg7: memref<1x64x128xbf16, #tpu.memory_space<vmem>>, %arg8: memref<1x64x128xbf16, #tpu.memory_space<vmem>>, %arg9: memref<64x128xf32, #tpu.memory_space<vmem>>) attributes {dimension_semantics = [#tpu.dimension_semantics<parallel>, #tpu.dimension_semantics<parallel>, #tpu.dimension_semantics<parallel>, #tpu.dimension_semantics<arbitrary>], iteration_bounds = array<i64: 2, 1, 1, 1>, scalar_prefetch = 0 : i64, scratch_operands = 1 : i64, tpu.core_type = #tpu.core_type<tc>, window_params = [{transform_indices = @transform_0, window_bounds = array<i64: 1, 64, 128>}, {transform_indices = @transform_1, window_bounds = array<i64: 128, 128>}, {transform_indices = @transform_2, window_bounds = array<i64: 1, 128>}, {transform_indices = @transform_3, window_bounds = array<i64: 1, 64, 128>}, {transform_indices = @transform_4, window_bounds = array<i64: 1, 64, 128>}]} {
    %c0_i32 = arith.constant 0 : i32
    %0 = arith.cmpi eq, %arg3, %c0_i32 : i32
    %1 = arith.extui %0 : i1 to i32
    %c0_i32_0 = arith.constant 0 : i32
    %2 = arith.cmpi ne, %1, %c0_i32_0 : i32
    scf.if %2 {
      %cst_11 = arith.constant 0.000000e+00 : f32
      %13 = vector.broadcast %cst_11 : f32 to vector<64x128xf32>
      %c0_12 = arith.constant 0 : index
      %c0_13 = arith.constant 0 : index
      %14 = vector.load %arg9[%c0_12, %c0_13] : memref<64x128xf32, #tpu.memory_space<vmem>>, vector<64x128xf32>
      tpu.vector_store %arg9[%c0_12, %c0_13], %13 {strides = array<i32>} : memref<64x128xf32, #tpu.memory_space<vmem>>, vector<64x128xf32>,
    } else {
    }
    %c0 = arith.constant 0 : index
    %c0_1 = arith.constant 0 : index
    %3 = vector.load %arg9[%c0, %c0_1] : memref<64x128xf32, #tpu.memory_space<vmem>>, vector<64x128xf32>
    %c0_2 = arith.constant 0 : index
    %c0_3 = arith.constant 0 : index
    %c0_4 = arith.constant 0 : index
    %4 = vector.load %arg4[%c0_2, %c0_3, %c0_4] : memref<1x64x128xbf16, #tpu.memory_space<vmem>>, vector<1x64x128xbf16>
    %5 = vector.shape_cast %4 : vector<1x64x128xbf16> to vector<64x128xbf16>
    %c0_5 = arith.constant 0 : index
    %c0_6 = arith.constant 0 : index
    %6 = vector.load %arg5[%c0_5, %c0_6] : memref<128x128xbf16, #tpu.memory_space<vmem>>, vector<128x128xbf16>
    %cst = arith.constant dense<0.000000e+00> : vector<64x128xf32>
    %7 = tpu.matmul %5, %6, %cst {dimension_numbers = #tpu.dot_dimension_numbers<[1], [0], [0], [1], [0, 0, 1, 1], [], []>} : vector<64x128xbf16>, vector<128x128xbf16>, vector<64x128xf32> -> vector<64x128xf32>
    %8 = arith.addf %3, %7 : vector<64x128xf32>
    %c0_7 = arith.constant 0 : index
    %c0_8 = arith.constant 0 : index
    %9 = vector.load %arg9[%c0_7, %c0_8] : memref<64x128xf32, #tpu.memory_space<vmem>>, vector<64x128xf32>
    tpu.vector_store %arg9[%c0_7, %c0_8], %8 {strides = array<i32>} : memref<64x128xf32, #tpu.memory_space<vmem>>, vector<64x128xf32>,
    %c0_i32_9 = arith.constant 0 : i32
    %10 = arith.cmpi eq, %arg3, %c0_i32_9 : i32
    %11 = arith.extui %10 : i1 to i32
    %c0_i32_10 = arith.constant 0 : i32
    %12 = arith.cmpi ne, %11, %c0_i32_10 : i32
    scf.if %12 {
      %c0_11 = arith.constant 0 : index
      %c0_12 = arith.constant 0 : index
      %13 = vector.load %arg9[%c0_11, %c0_12] : memref<64x128xf32, #tpu.memory_space<vmem>>, vector<64x128xf32>
      %c0_13 = arith.constant 0 : index
      %c0_14 = arith.constant 0 : index
      %14 = vector.load %arg6[%c0_13, %c0_14] : memref<1x128xf32, #tpu.memory_space<vmem>>, vector<1x128xf32>
      %15 = vector.broadcast %14 : vector<1x128xf32> to vector<64x128xf32>
      %16 = arith.addf %13, %15 : vector<64x128xf32>
      %c0_15 = arith.constant 0 : index
      %c0_16 = arith.constant 0 : index
      %c0_17 = arith.constant 0 : index
      %17 = vector.load %arg7[%c0_15, %c0_16, %c0_17] : memref<1x64x128xbf16, #tpu.memory_space<vmem>>, vector<1x64x128xbf16>
      %18 = vector.shape_cast %17 : vector<1x64x128xbf16> to vector<64x128xbf16>
      %19 = arith.extf %18 : vector<64x128xbf16> to vector<64x128xf32>
      %20 = arith.addf %16, %19 : vector<64x128xf32>
      %21 = arith.truncf %20 : vector<64x128xf32> to vector<64x128xbf16>
      %c0_18 = arith.constant 0 : index
      %c0_19 = arith.constant 0 : index
      %c0_20 = arith.constant 0 : index
      %22 = vector.load %arg8[%c0_18, %c0_19, %c0_20] : memref<1x64x128xbf16, #tpu.memory_space<vmem>>, vector<1x64x128xbf16>
      %23 = vector.shape_cast %22 : vector<1x64x128xbf16> to vector<64x128xbf16>
      %24 = vector.shape_cast %21 : vector<64x128xbf16> to vector<1x64x128xbf16>
      tpu.vector_store %arg8[%c0_18, %c0_19, %c0_20], %24 {strides = array<i32>} : memref<1x64x128xbf16, #tpu.memory_space<vmem>>, vector<1x64x128xbf16>,
    } else {
    }
    return
  }
  func.func @transform_0(%arg0: i32, %arg1: i32, %arg2: i32, %arg3: i32) -> (i32, i32, i32) {
    %c0_i32 = arith.constant 0 : i32
    return %arg0, %arg1, %arg3 : i32, i32, i32
  }
  func.func @transform_1(%arg0: i32, %arg1: i32, %arg2: i32, %arg3: i32) -> (i32, i32) {
    %c0_i32 = arith.constant 0 : i32
    return %arg3, %arg2 : i32, i32
  }
  func.func @transform_2(%arg0: i32, %arg1: i32, %arg2: i32, %arg3: i32) -> (i32, i32) {
    %c0_i32 = arith.constant 0 : i32
    %c0_i32_0 = arith.constant 0 : i32
    return %c0_i32, %arg2 : i32, i32
  }
  func.func @transform_3(%arg0: i32, %arg1: i32, %arg2: i32, %arg3: i32) -> (i32, i32, i32) {
    %c0_i32 = arith.constant 0 : i32
    return %arg0, %arg1, %arg2 : i32, i32, i32
  }
  func.func @transform_4(%arg0: i32, %arg1: i32, %arg2: i32, %arg3: i32) -> (i32, i32, i32) {
    %c0_i32 = arith.constant 0 : i32
    return %arg0, %arg1, %arg2 : i32, i32, i32
  }
}

module attributes {stable_mosaic.version = 11 : i64} {
  func.func @_flash_attn_kernel(%arg0: i32, %arg1: i32, %arg2: i32, %arg3: memref<1x64x64xbf16, #tpu.memory_space<vmem>>, %arg4: memref<1x64x64xbf16, #tpu.memory_space<vmem>>, %arg5: memref<1x64x64xbf16, #tpu.memory_space<vmem>>, %arg6: memref<1x64x64xbf16, #tpu.memory_space<vmem>>, %arg7: memref<64x1xf32, #tpu.memory_space<vmem>>, %arg8: memref<64x1xf32, #tpu.memory_space<vmem>>, %arg9: memref<64x64xf32, #tpu.memory_space<vmem>>) attributes {dimension_semantics = [#tpu.dimension_semantics<parallel>, #tpu.dimension_semantics<parallel>, #tpu.dimension_semantics<arbitrary>], iteration_bounds = array<i64: 2, 1, 1>, scalar_prefetch = 0 : i64, scratch_operands = 3 : i64, tpu.core_type = #tpu.core_type<tc>, window_params = [{transform_indices = @transform_0, window_bounds = array<i64: 1, 64, 64>}, {transform_indices = @transform_1, window_bounds = array<i64: 1, 64, 64>}, {transform_indices = @transform_2, window_bounds = array<i64: 1, 64, 64>}, {transform_indices = @transform_3, window_bounds = array<i64: 1, 64, 64>}]} {
    %c0_i32 = arith.constant 0 : i32
    %0 = arith.cmpi eq, %arg2, %c0_i32 : i32
    %1 = arith.extui %0 : i1 to i32
    %c0_i32_0 = arith.constant 0 : i32
    %2 = arith.cmpi ne, %1, %c0_i32_0 : i32
    scf.if %2 {
      %cst_27 = arith.constant 0xFF800000 : f32
      %38 = vector.broadcast %cst_27 : f32 to vector<64x1xf32>
      %c0_28 = arith.constant 0 : index
      %c0_29 = arith.constant 0 : index
      %39 = vector.load %arg7[%c0_28, %c0_29] : memref<64x1xf32, #tpu.memory_space<vmem>>, vector<64x1xf32>
      tpu.vector_store %arg7[%c0_28, %c0_29], %38 {strides = array<i32>} : memref<64x1xf32, #tpu.memory_space<vmem>>, vector<64x1xf32>,
      %cst_30 = arith.constant 0.000000e+00 : f32
      %40 = vector.broadcast %cst_30 : f32 to vector<64x1xf32>
      %c0_31 = arith.constant 0 : index
      %c0_32 = arith.constant 0 : index
      %41 = vector.load %arg8[%c0_31, %c0_32] : memref<64x1xf32, #tpu.memory_space<vmem>>, vector<64x1xf32>
      tpu.vector_store %arg8[%c0_31, %c0_32], %40 {strides = array<i32>} : memref<64x1xf32, #tpu.memory_space<vmem>>, vector<64x1xf32>,
      %cst_33 = arith.constant 0.000000e+00 : f32
      %42 = vector.broadcast %cst_33 : f32 to vector<64x64xf32>
      %c0_34 = arith.constant 0 : index
      %c0_35 = arith.constant 0 : index
      %43 = vector.load %arg9[%c0_34, %c0_35] : memref<64x64xf32, #tpu.memory_space<vmem>>, vector<64x64xf32>
      tpu.vector_store %arg9[%c0_34, %c0_35], %42 {strides = array<i32>} : memref<64x64xf32, #tpu.memory_space<vmem>>, vector<64x64xf32>,
    } else {
    }
    %c0 = arith.constant 0 : index
    %c0_1 = arith.constant 0 : index
    %c0_2 = arith.constant 0 : index
    %3 = vector.load %arg3[%c0, %c0_1, %c0_2] : memref<1x64x64xbf16, #tpu.memory_space<vmem>>, vector<1x64x64xbf16>
    %4 = vector.shape_cast %3 : vector<1x64x64xbf16> to vector<64x64xbf16>
    %c0_3 = arith.constant 0 : index
    %c0_4 = arith.constant 0 : index
    %c0_5 = arith.constant 0 : index
    %5 = vector.load %arg4[%c0_3, %c0_4, %c0_5] : memref<1x64x64xbf16, #tpu.memory_space<vmem>>, vector<1x64x64xbf16>
    %6 = vector.shape_cast %5 : vector<1x64x64xbf16> to vector<64x64xbf16>
    %c0_6 = arith.constant 0 : index
    %c0_7 = arith.constant 0 : index
    %c0_8 = arith.constant 0 : index
    %7 = vector.load %arg5[%c0_6, %c0_7, %c0_8] : memref<1x64x64xbf16, #tpu.memory_space<vmem>>, vector<1x64x64xbf16>
    %8 = vector.shape_cast %7 : vector<1x64x64xbf16> to vector<64x64xbf16>
    %cst = arith.constant dense<0.000000e+00> : vector<64x64xf32>
    %9 = tpu.matmul %4, %6, %cst {dimension_numbers = #tpu.dot_dimension_numbers<[1], [1], [0], [0], [0, 0, 1, 0], [], []>} : vector<64x64xbf16>, vector<64x64xbf16>, vector<64x64xf32> -> vector<64x64xf32>
    %cst_9 = arith.constant 1.250000e-01 : f32
    %10 = vector.broadcast %cst_9 : f32 to vector<64x64xf32>
    %11 = arith.mulf %9, %10 : vector<64x64xf32>
    %c0_10 = arith.constant 0 : index
    %c0_11 = arith.constant 0 : index
    %12 = vector.load %arg7[%c0_10, %c0_11] : memref<64x1xf32, #tpu.memory_space<vmem>>, vector<64x1xf32>
    %cst_12 = arith.constant dense<0xFF800000> : vector<64xf32>
    %13 = vector.multi_reduction <maximumf>, %11, %cst_12 [1] : vector<64x64xf32> to vector<64xf32>
    %14 = vector.shape_cast %13 : vector<64xf32> to vector<64x1xf32>
    %15 = arith.maximumf %12, %14 : vector<64x1xf32>
    %16 = arith.subf %12, %15 : vector<64x1xf32>
    %17 = math.exp %16 : vector<64x1xf32>
    %18 = vector.broadcast %15 : vector<64x1xf32> to vector<64x64xf32>
    %19 = arith.subf %11, %18 : vector<64x64xf32>
    %20 = math.exp %19 : vector<64x64xf32>
    %c0_13 = arith.constant 0 : index
    %c0_14 = arith.constant 0 : index
    %21 = vector.load %arg8[%c0_13, %c0_14] : memref<64x1xf32, #tpu.memory_space<vmem>>, vector<64x1xf32>
    %22 = arith.mulf %17, %21 : vector<64x1xf32>
    %cst_15 = arith.constant dense<0.000000e+00> : vector<64xf32>
    %23 = vector.multi_reduction <add>, %20, %cst_15 [1] : vector<64x64xf32> to vector<64xf32>
    %24 = vector.shape_cast %23 : vector<64xf32> to vector<64x1xf32>
    %25 = arith.addf %22, %24 : vector<64x1xf32>
    %c0_16 = arith.constant 0 : index
    %c0_17 = arith.constant 0 : index
    %26 = vector.load %arg8[%c0_16, %c0_17] : memref<64x1xf32, #tpu.memory_space<vmem>>, vector<64x1xf32>
    tpu.vector_store %arg8[%c0_16, %c0_17], %25 {strides = array<i32>} : memref<64x1xf32, #tpu.memory_space<vmem>>, vector<64x1xf32>,
    %c0_18 = arith.constant 0 : index
    %c0_19 = arith.constant 0 : index
    %27 = vector.load %arg9[%c0_18, %c0_19] : memref<64x64xf32, #tpu.memory_space<vmem>>, vector<64x64xf32>
    %28 = vector.broadcast %17 : vector<64x1xf32> to vector<64x64xf32>
    %29 = arith.mulf %28, %27 : vector<64x64xf32>
    %30 = arith.truncf %20 : vector<64x64xf32> to vector<64x64xbf16>
    %cst_20 = arith.constant dense<0.000000e+00> : vector<64x64xf32>
    %31 = tpu.matmul %30, %8, %cst_20 {dimension_numbers = #tpu.dot_dimension_numbers<[1], [0], [0], [1], [0, 0, 1, 1], [], []>} : vector<64x64xbf16>, vector<64x64xbf16>, vector<64x64xf32> -> vector<64x64xf32>
    %32 = arith.addf %29, %31 : vector<64x64xf32>
    %c0_21 = arith.constant 0 : index
    %c0_22 = arith.constant 0 : index
    %33 = vector.load %arg9[%c0_21, %c0_22] : memref<64x64xf32, #tpu.memory_space<vmem>>, vector<64x64xf32>
    tpu.vector_store %arg9[%c0_21, %c0_22], %32 {strides = array<i32>} : memref<64x64xf32, #tpu.memory_space<vmem>>, vector<64x64xf32>,
    %c0_23 = arith.constant 0 : index
    %c0_24 = arith.constant 0 : index
    %34 = vector.load %arg7[%c0_23, %c0_24] : memref<64x1xf32, #tpu.memory_space<vmem>>, vector<64x1xf32>
    tpu.vector_store %arg7[%c0_23, %c0_24], %15 {strides = array<i32>} : memref<64x1xf32, #tpu.memory_space<vmem>>, vector<64x1xf32>,
    %c0_i32_25 = arith.constant 0 : i32
    %35 = arith.cmpi eq, %arg2, %c0_i32_25 : i32
    %36 = arith.extui %35 : i1 to i32
    %c0_i32_26 = arith.constant 0 : i32
    %37 = arith.cmpi ne, %36, %c0_i32_26 : i32
    scf.if %37 {
      %c0_27 = arith.constant 0 : index
      %c0_28 = arith.constant 0 : index
      %38 = vector.load %arg9[%c0_27, %c0_28] : memref<64x64xf32, #tpu.memory_space<vmem>>, vector<64x64xf32>
      %c0_29 = arith.constant 0 : index
      %c0_30 = arith.constant 0 : index
      %39 = vector.load %arg8[%c0_29, %c0_30] : memref<64x1xf32, #tpu.memory_space<vmem>>, vector<64x1xf32>
      %40 = tpu.reciprocal %39 {approx = true} : vector<64x1xf32> -> vector<64x1xf32>
      %41 = vector.broadcast %40 : vector<64x1xf32> to vector<64x64xf32>
      %42 = arith.mulf %38, %41 : vector<64x64xf32>
      %43 = arith.truncf %42 : vector<64x64xf32> to vector<64x64xbf16>
      %c0_31 = arith.constant 0 : index
      %c0_32 = arith.constant 0 : index
      %c0_33 = arith.constant 0 : index
      %44 = vector.load %arg6[%c0_31, %c0_32, %c0_33] : memref<1x64x64xbf16, #tpu.memory_space<vmem>>, vector<1x64x64xbf16>
      %45 = vector.shape_cast %44 : vector<1x64x64xbf16> to vector<64x64xbf16>
      %46 = vector.shape_cast %43 : vector<64x64xbf16> to vector<1x64x64xbf16>
      tpu.vector_store %arg6[%c0_31, %c0_32, %c0_33], %46 {strides = array<i32>} : memref<1x64x64xbf16, #tpu.memory_space<vmem>>, vector<1x64x64xbf16>,
    } else {
    }
    return
  }
  func.func @transform_0(%arg0: i32, %arg1: i32, %arg2: i32) -> (i32, i32, i32) {
    %c0_i32 = arith.constant 0 : i32
    %c0_i32_0 = arith.constant 0 : i32
    return %arg0, %arg1, %c0_i32 : i32, i32, i32
  }
  func.func @transform_1(%arg0: i32, %arg1: i32, %arg2: i32) -> (i32, i32, i32) {
    %c0_i32 = arith.constant 0 : i32
    %c0_i32_0 = arith.constant 0 : i32
    return %arg0, %arg2, %c0_i32 : i32, i32, i32
  }
  func.func @transform_2(%arg0: i32, %arg1: i32, %arg2: i32) -> (i32, i32, i32) {
    %c0_i32 = arith.constant 0 : i32
    %c0_i32_0 = arith.constant 0 : i32
    return %arg0, %arg2, %c0_i32 : i32, i32, i32
  }
  func.func @transform_3(%arg0: i32, %arg1: i32, %arg2: i32) -> (i32, i32, i32) {
    %c0_i32 = arith.constant 0 : i32
    %c0_i32_0 = arith.constant 0 : i32
    return %arg0, %arg1, %c0_i32 : i32, i32, i32
  }
}

module attributes {stable_mosaic.version = 11 : i64} {
  func.func @_matmul_kernel(%arg0: i32, %arg1: i32, %arg2: i32, %arg3: i32, %arg4: memref<1x256x128xbf16, #tpu.memory_space<vmem>>, %arg5: memref<128x128xbf16, #tpu.memory_space<vmem>>, %arg6: memref<1x128xf32, #tpu.memory_space<vmem>>, %arg7: memref<1x256x128xbf16, #tpu.memory_space<vmem>>, %arg8: memref<256x128xf32, #tpu.memory_space<vmem>>) attributes {dimension_semantics = [#tpu.dimension_semantics<parallel>, #tpu.dimension_semantics<parallel>, #tpu.dimension_semantics<parallel>, #tpu.dimension_semantics<arbitrary>], iteration_bounds = array<i64: 2, 1, 1, 5>, scalar_prefetch = 0 : i64, scratch_operands = 1 : i64, tpu.core_type = #tpu.core_type<tc>, window_params = [{transform_indices = @transform_0, window_bounds = array<i64: 1, 256, 128>}, {transform_indices = @transform_1, window_bounds = array<i64: 128, 128>}, {transform_indices = @transform_2, window_bounds = array<i64: 1, 128>}, {transform_indices = @transform_3, window_bounds = array<i64: 1, 256, 128>}]} {
    %c0_i32 = arith.constant 0 : i32
    %0 = arith.cmpi eq, %arg3, %c0_i32 : i32
    %1 = arith.extui %0 : i1 to i32
    %c0_i32_0 = arith.constant 0 : i32
    %2 = arith.cmpi ne, %1, %c0_i32_0 : i32
    scf.if %2 {
      %cst_10 = arith.constant 0.000000e+00 : f32
      %13 = vector.broadcast %cst_10 : f32 to vector<256x128xf32>
      %c0_11 = arith.constant 0 : index
      %c0_12 = arith.constant 0 : index
      %14 = vector.load %arg8[%c0_11, %c0_12] : memref<256x128xf32, #tpu.memory_space<vmem>>, vector<256x128xf32>
      tpu.vector_store %arg8[%c0_11, %c0_12], %13 {strides = array<i32>} : memref<256x128xf32, #tpu.memory_space<vmem>>, vector<256x128xf32>,
    } else {
    }
    %c0 = arith.constant 0 : index
    %c0_1 = arith.constant 0 : index
    %3 = vector.load %arg8[%c0, %c0_1] : memref<256x128xf32, #tpu.memory_space<vmem>>, vector<256x128xf32>
    %c0_2 = arith.constant 0 : index
    %c0_3 = arith.constant 0 : index
    %c0_4 = arith.constant 0 : index
    %4 = vector.load %arg4[%c0_2, %c0_3, %c0_4] : memref<1x256x128xbf16, #tpu.memory_space<vmem>>, vector<1x256x128xbf16>
    %5 = vector.shape_cast %4 : vector<1x256x128xbf16> to vector<256x128xbf16>
    %c0_5 = arith.constant 0 : index
    %c0_6 = arith.constant 0 : index
    %6 = vector.load %arg5[%c0_5, %c0_6] : memref<128x128xbf16, #tpu.memory_space<vmem>>, vector<128x128xbf16>
    %cst = arith.constant dense<0.000000e+00> : vector<256x128xf32>
    %7 = tpu.matmul %5, %6, %cst {dimension_numbers = #tpu.dot_dimension_numbers<[1], [0], [0], [1], [0, 0, 1, 1], [], []>} : vector<256x128xbf16>, vector<128x128xbf16>, vector<256x128xf32> -> vector<256x128xf32>
    %8 = arith.addf %3, %7 : vector<256x128xf32>
    %c0_7 = arith.constant 0 : index
    %c0_8 = arith.constant 0 : index
    %9 = vector.load %arg8[%c0_7, %c0_8] : memref<256x128xf32, #tpu.memory_space<vmem>>, vector<256x128xf32>
    tpu.vector_store %arg8[%c0_7, %c0_8], %8 {strides = array<i32>} : memref<256x128xf32, #tpu.memory_space<vmem>>, vector<256x128xf32>,
    %c4_i32 = arith.constant 4 : i32
    %10 = arith.cmpi eq, %arg3, %c4_i32 : i32
    %11 = arith.extui %10 : i1 to i32
    %c0_i32_9 = arith.constant 0 : i32
    %12 = arith.cmpi ne, %11, %c0_i32_9 : i32
    scf.if %12 {
      %c0_10 = arith.constant 0 : index
      %c0_11 = arith.constant 0 : index
      %13 = vector.load %arg8[%c0_10, %c0_11] : memref<256x128xf32, #tpu.memory_space<vmem>>, vector<256x128xf32>
      %c0_12 = arith.constant 0 : index
      %c0_13 = arith.constant 0 : index
      %14 = vector.load %arg6[%c0_12, %c0_13] : memref<1x128xf32, #tpu.memory_space<vmem>>, vector<1x128xf32>
      %15 = vector.broadcast %14 : vector<1x128xf32> to vector<256x128xf32>
      %16 = arith.addf %13, %15 : vector<256x128xf32>
      %17 = arith.truncf %16 : vector<256x128xf32> to vector<256x128xbf16>
      %c0_14 = arith.constant 0 : index
      %c0_15 = arith.constant 0 : index
      %c0_16 = arith.constant 0 : index
      %18 = vector.load %arg7[%c0_14, %c0_15, %c0_16] : memref<1x256x128xbf16, #tpu.memory_space<vmem>>, vector<1x256x128xbf16>
      %19 = vector.shape_cast %18 : vector<1x256x128xbf16> to vector<256x128xbf16>
      %20 = vector.shape_cast %17 : vector<256x128xbf16> to vector<1x256x128xbf16>
      tpu.vector_store %arg7[%c0_14, %c0_15, %c0_16], %20 {strides = array<i32>} : memref<1x256x128xbf16, #tpu.memory_space<vmem>>, vector<1x256x128xbf16>,
    } else {
    }
    return
  }
  func.func @transform_0(%arg0: i32, %arg1: i32, %arg2: i32, %arg3: i32) -> (i32, i32, i32) {
    %c0_i32 = arith.constant 0 : i32
    return %arg0, %arg1, %arg3 : i32, i32, i32
  }
  func.func @transform_1(%arg0: i32, %arg1: i32, %arg2: i32, %arg3: i32) -> (i32, i32) {
    %c0_i32 = arith.constant 0 : i32
    return %arg3, %arg2 : i32, i32
  }
  func.func @transform_2(%arg0: i32, %arg1: i32, %arg2: i32, %arg3: i32) -> (i32, i32) {
    %c0_i32 = arith.constant 0 : i32
    %c0_i32_0 = arith.constant 0 : i32
    return %c0_i32, %arg2 : i32, i32
  }
  func.func @transform_3(%arg0: i32, %arg1: i32, %arg2: i32, %arg3: i32) -> (i32, i32, i32) {
    %c0_i32 = arith.constant 0 : i32
    return %arg0, %arg1, %arg2 : i32, i32, i32
  }
}

module attributes {stable_mosaic.version = 11 : i64} {
  func.func @_gn_stats_kernel(%arg0: i32, %arg1: i32, %arg2: memref<1x256x64xbf16, #tpu.memory_space<vmem>>, %arg3: memref<1x1x64xf32, #tpu.memory_space<vmem>>, %arg4: memref<1x1x64xf32, #tpu.memory_space<vmem>>) attributes {dimension_semantics = [#tpu.dimension_semantics<parallel>, #tpu.dimension_semantics<arbitrary>], iteration_bounds = array<i64: 2, 1>, scalar_prefetch = 0 : i64, scratch_operands = 0 : i64, tpu.core_type = #tpu.core_type<tc>, window_params = [{transform_indices = @transform_0, window_bounds = array<i64: 1, 256, 64>}, {transform_indices = @transform_1, window_bounds = array<i64: 1, 1, 64>}, {transform_indices = @transform_2, window_bounds = array<i64: 1, 1, 64>}]} {
    %c0_i32 = arith.constant 0 : i32
    %0 = arith.cmpi eq, %arg1, %c0_i32 : i32
    %1 = arith.extui %0 : i1 to i32
    %c0_i32_0 = arith.constant 0 : i32
    %2 = arith.cmpi ne, %1, %c0_i32_0 : i32
    scf.if %2 {
      %cst_16 = arith.constant 0.000000e+00 : f32
      %23 = vector.broadcast %cst_16 : f32 to vector<1x1x64xf32>
      %c0_17 = arith.constant 0 : index
      %c0_18 = arith.constant 0 : index
      %c0_19 = arith.constant 0 : index
      %24 = vector.load %arg3[%c0_17, %c0_18, %c0_19] : memref<1x1x64xf32, #tpu.memory_space<vmem>>, vector<1x1x64xf32>
      tpu.vector_store %arg3[%c0_17, %c0_18, %c0_19], %23 {strides = array<i32>} : memref<1x1x64xf32, #tpu.memory_space<vmem>>, vector<1x1x64xf32>,
      %cst_20 = arith.constant 0.000000e+00 : f32
      %25 = vector.broadcast %cst_20 : f32 to vector<1x1x64xf32>
      %c0_21 = arith.constant 0 : index
      %c0_22 = arith.constant 0 : index
      %c0_23 = arith.constant 0 : index
      %26 = vector.load %arg4[%c0_21, %c0_22, %c0_23] : memref<1x1x64xf32, #tpu.memory_space<vmem>>, vector<1x1x64xf32>
      tpu.vector_store %arg4[%c0_21, %c0_22, %c0_23], %25 {strides = array<i32>} : memref<1x1x64xf32, #tpu.memory_space<vmem>>, vector<1x1x64xf32>,
    } else {
    }
    %c0 = arith.constant 0 : index
    %c0_1 = arith.constant 0 : index
    %c0_2 = arith.constant 0 : index
    %3 = vector.load %arg2[%c0, %c0_1, %c0_2] : memref<1x256x64xbf16, #tpu.memory_space<vmem>>, vector<1x256x64xbf16>
    %4 = vector.shape_cast %3 : vector<1x256x64xbf16> to vector<256x64xbf16>
    %5 = arith.extf %4 : vector<256x64xbf16> to vector<256x64xf32>
    %c0_3 = arith.constant 0 : index
    %c0_4 = arith.constant 0 : index
    %c0_5 = arith.constant 0 : index
    %6 = vector.load %arg3[%c0_3, %c0_4, %c0_5] : memref<1x1x64xf32, #tpu.memory_space<vmem>>, vector<1x1x64xf32>
    %7 = vector.shape_cast %6 : vector<1x1x64xf32> to vector<1x64xf32>
    %cst = arith.constant dense<0.000000e+00> : vector<64xf32>
    %8 = vector.multi_reduction <add>, %5, %cst [0] : vector<256x64xf32> to vector<64xf32>
    %9 = vector.shape_cast %8 : vector<64xf32> to vector<1x64xf32>
    %10 = arith.addf %7, %9 : vector<1x64xf32>
    %c0_6 = arith.constant 0 : index
    %c0_7 = arith.constant 0 : index
    %c0_8 = arith.constant 0 : index
    %11 = vector.load %arg3[%c0_6, %c0_7, %c0_8] : memref<1x1x64xf32, #tpu.memory_space<vmem>>, vector<1x1x64xf32>
    %12 = vector.shape_cast %11 : vector<1x1x64xf32> to vector<1x64xf32>
    %13 = vector.shape_cast %10 : vector<1x64xf32> to vector<1x1x64xf32>
    tpu.vector_store %arg3[%c0_6, %c0_7, %c0_8], %13 {strides = array<i32>} : memref<1x1x64xf32, #tpu.memory_space<vmem>>, vector<1x1x64xf32>,
    %c0_9 = arith.constant 0 : index
    %c0_10 = arith.constant 0 : index
    %c0_11 = arith.constant 0 : index
    %14 = vector.load %arg4[%c0_9, %c0_10, %c0_11] : memref<1x1x64xf32, #tpu.memory_space<vmem>>, vector<1x1x64xf32>
    %15 = vector.shape_cast %14 : vector<1x1x64xf32> to vector<1x64xf32>
    %16 = arith.mulf %5, %5 : vector<256x64xf32>
    %cst_12 = arith.constant dense<0.000000e+00> : vector<64xf32>
    %17 = vector.multi_reduction <add>, %16, %cst_12 [0] : vector<256x64xf32> to vector<64xf32>
    %18 = vector.shape_cast %17 : vector<64xf32> to vector<1x64xf32>
    %19 = arith.addf %15, %18 : vector<1x64xf32>
    %c0_13 = arith.constant 0 : index
    %c0_14 = arith.constant 0 : index
    %c0_15 = arith.constant 0 : index
    %20 = vector.load %arg4[%c0_13, %c0_14, %c0_15] : memref<1x1x64xf32, #tpu.memory_space<vmem>>, vector<1x1x64xf32>
    %21 = vector.shape_cast %20 : vector<1x1x64xf32> to vector<1x64xf32>
    %22 = vector.shape_cast %19 : vector<1x64xf32> to vector<1x1x64xf32>
    tpu.vector_store %arg4[%c0_13, %c0_14, %c0_15], %22 {strides = array<i32>} : memref<1x1x64xf32, #tpu.memory_space<vmem>>, vector<1x1x64xf32>,
    return
  }
  func.func @transform_0(%arg0: i32, %arg1: i32) -> (i32, i32, i32) {
    %c0_i32 = arith.constant 0 : i32
    %c0_i32_0 = arith.constant 0 : i32
    return %arg0, %arg1, %c0_i32 : i32, i32, i32
  }
  func.func @transform_1(%arg0: i32, %arg1: i32) -> (i32, i32, i32) {
    %c0_i32 = arith.constant 0 : i32
    %c0_i32_0 = arith.constant 0 : i32
    %c0_i32_1 = arith.constant 0 : i32
    return %arg0, %c0_i32, %c0_i32_0 : i32, i32, i32
  }
  func.func @transform_2(%arg0: i32, %arg1: i32) -> (i32, i32, i32) {
    %c0_i32 = arith.constant 0 : i32
    %c0_i32_0 = arith.constant 0 : i32
    %c0_i32_1 = arith.constant 0 : i32
    return %arg0, %c0_i32, %c0_i32_0 : i32, i32, i32
  }
}

module attributes {stable_mosaic.version = 11 : i64} {
  func.func @_gn_apply_kernel(%arg0: i32, %arg1: i32, %arg2: memref<1x256x64xbf16, #tpu.memory_space<vmem>>, %arg3: memref<1x1x64xf32, #tpu.memory_space<vmem>>, %arg4: memref<1x1x64xf32, #tpu.memory_space<vmem>>, %arg5: memref<64x32xf32, #tpu.memory_space<vmem>>, %arg6: memref<1x64xf32, #tpu.memory_space<vmem>>, %arg7: memref<1x64xf32, #tpu.memory_space<vmem>>, %arg8: memref<1x256x64xbf16, #tpu.memory_space<vmem>>) attributes {dimension_semantics = [#tpu.dimension_semantics<parallel>, #tpu.dimension_semantics<parallel>], iteration_bounds = array<i64: 2, 1>, scalar_prefetch = 0 : i64, scratch_operands = 0 : i64, tpu.core_type = #tpu.core_type<tc>, window_params = [{transform_indices = @transform_0, window_bounds = array<i64: 1, 256, 64>}, {transform_indices = @transform_1, window_bounds = array<i64: 1, 1, 64>}, {transform_indices = @transform_2, window_bounds = array<i64: 1, 1, 64>}, {pipeline_mode = #tpu.pipeline_mode<synchronous>, transform_indices = @transform_3, window_bounds = array<i64: 64, 32>}, {pipeline_mode = #tpu.pipeline_mode<synchronous>, transform_indices = @transform_4, window_bounds = array<i64: 1, 64>}, {pipeline_mode = #tpu.pipeline_mode<synchronous>, transform_indices = @transform_5, window_bounds = array<i64: 1, 64>}, {transform_indices = @transform_6, window_bounds = array<i64: 1, 256, 64>}]} {
    %c0 = arith.constant 0 : index
    %c0_0 = arith.constant 0 : index
    %c0_1 = arith.constant 0 : index
    %0 = vector.load %arg2[%c0, %c0_0, %c0_1] : memref<1x256x64xbf16, #tpu.memory_space<vmem>>, vector<1x256x64xbf16>
    %1 = vector.shape_cast %0 : vector<1x256x64xbf16> to vector<256x64xbf16>
    %2 = arith.extf %1 : vector<256x64xbf16> to vector<256x64xf32>
    %c0_2 = arith.constant 0 : index
    %c0_3 = arith.constant 0 : index
    %3 = vector.load %arg5[%c0_2, %c0_3] : memref<64x32xf32, #tpu.memory_space<vmem>>, vector<64x32xf32>
    %c0_4 = arith.constant 0 : index
    %c0_5 = arith.constant 0 : index
    %c0_6 = arith.constant 0 : index
    %4 = vector.load %arg3[%c0_4, %c0_5, %c0_6] : memref<1x1x64xf32, #tpu.memory_space<vmem>>, vector<1x1x64xf32>
    %5 = vector.shape_cast %4 : vector<1x1x64xf32> to vector<1x64xf32>
    %cst = arith.constant dense<0.000000e+00> : vector<1x32xf32>
    %6 = tpu.matmul %5, %3, %cst {dimension_numbers = #tpu.dot_dimension_numbers<[1], [0], [0], [1], [0, 0, 1, 1], [], []>} : vector<1x64xf32>, vector<64x32xf32>, vector<1x32xf32> -> vector<1x32xf32>
    %c0_7 = arith.constant 0 : index
    %c0_8 = arith.constant 0 : index
    %c0_9 = arith.constant 0 : index
    %7 = vector.load %arg4[%c0_7, %c0_8, %c0_9] : memref<1x1x64xf32, #tpu.memory_space<vmem>>, vector<1x1x64xf32>
    %8 = vector.shape_cast %7 : vector<1x1x64xf32> to vector<1x64xf32>
    %cst_10 = arith.constant dense<0.000000e+00> : vector<1x32xf32>
    %9 = tpu.matmul %8, %3, %cst_10 {dimension_numbers = #tpu.dot_dimension_numbers<[1], [0], [0], [1], [0, 0, 1, 1], [], []>} : vector<1x64xf32>, vector<64x32xf32>, vector<1x32xf32> -> vector<1x32xf32>
    %cst_11 = arith.constant 5.120000e+02 : f32
    %10 = vector.broadcast %cst_11 : f32 to vector<1x32xf32>
    %11 = arith.divf %6, %10 : vector<1x32xf32>
    %cst_12 = arith.constant 5.120000e+02 : f32
    %12 = vector.broadcast %cst_12 : f32 to vector<1x32xf32>
    %13 = arith.divf %9, %12 : vector<1x32xf32>
    %14 = arith.mulf %11, %11 : vector<1x32xf32>
    %15 = arith.subf %13, %14 : vector<1x32xf32>
    %cst_13 = arith.constant 0.000000e+00 : f32
    %16 = vector.broadcast %cst_13 : f32 to vector<1x32xf32>
    %17 = arith.maximumf %15, %16 : vector<1x32xf32>
    %cst_14 = arith.constant 9.99999997E-7 : f32
    %18 = vector.broadcast %cst_14 : f32 to vector<1x32xf32>
    %19 = arith.addf %17, %18 : vector<1x32xf32>
    %20 = math.rsqrt %19 : vector<1x32xf32>
    %cst_15 = arith.constant dense<0.000000e+00> : vector<1x64xf32>
    %21 = tpu.matmul %11, %3, %cst_15 {dimension_numbers = #tpu.dot_dimension_numbers<[1], [1], [0], [0], [0, 0, 1, 0], [], []>} : vector<1x32xf32>, vector<64x32xf32>, vector<1x64xf32> -> vector<1x64xf32>
    %cst_16 = arith.constant dense<0.000000e+00> : vector<1x64xf32>
    %22 = tpu.matmul %20, %3, %cst_16 {dimension_numbers = #tpu.dot_dimension_numbers<[1], [1], [0], [0], [0, 0, 1, 0], [], []>} : vector<1x32xf32>, vector<64x32xf32>, vector<1x64xf32> -> vector<1x64xf32>
    %23 = vector.broadcast %21 : vector<1x64xf32> to vector<256x64xf32>
    %24 = arith.subf %2, %23 : vector<256x64xf32>
    %25 = vector.broadcast %22 : vector<1x64xf32> to vector<256x64xf32>
    %26 = arith.mulf %24, %25 : vector<256x64xf32>
    %c0_17 = arith.constant 0 : index
    %c0_18 = arith.constant 0 : index
    %27 = vector.load %arg6[%c0_17, %c0_18] : memref<1x64xf32, #tpu.memory_space<vmem>>, vector<1x64xf32>
    %28 = vector.broadcast %27 : vector<1x64xf32> to vector<256x64xf32>
    %29 = arith.mulf %26, %28 : vector<256x64xf32>
    %c0_19 = arith.constant 0 : index
    %c0_20 = arith.constant 0 : index
    %30 = vector.load %arg7[%c0_19, %c0_20] : memref<1x64xf32, #tpu.memory_space<vmem>>, vector<1x64xf32>
    %31 = vector.broadcast %30 : vector<1x64xf32> to vector<256x64xf32>
    %32 = arith.addf %29, %31 : vector<256x64xf32>
    %33 = arith.negf %32 : vector<256x64xf32>
    %34 = math.exp %33 : vector<256x64xf32>
    %cst_21 = arith.constant 1.000000e+00 : f32
    %35 = vector.broadcast %cst_21 : f32 to vector<256x64xf32>
    %36 = arith.addf %35, %34 : vector<256x64xf32>
    %37 = arith.divf %35, %36 : vector<256x64xf32>
    %38 = arith.mulf %32, %37 : vector<256x64xf32>
    %39 = arith.truncf %38 : vector<256x64xf32> to vector<256x64xbf16>
    %c0_22 = arith.constant 0 : index
    %c0_23 = arith.constant 0 : index
    %c0_24 = arith.constant 0 : index
    %40 = vector.load %arg8[%c0_22, %c0_23, %c0_24] : memref<1x256x64xbf16, #tpu.memory_space<vmem>>, vector<1x256x64xbf16>
    %41 = vector.shape_cast %40 : vector<1x256x64xbf16> to vector<256x64xbf16>
    %42 = vector.shape_cast %39 : vector<256x64xbf16> to vector<1x256x64xbf16>
    tpu.vector_store %arg8[%c0_22, %c0_23, %c0_24], %42 {strides = array<i32>} : memref<1x256x64xbf16, #tpu.memory_space<vmem>>, vector<1x256x64xbf16>,
    return
  }
  func.func @transform_0(%arg0: i32, %arg1: i32) -> (i32, i32, i32) {
    %c0_i32 = arith.constant 0 : i32
    %c0_i32_0 = arith.constant 0 : i32
    return %arg0, %arg1, %c0_i32 : i32, i32, i32
  }
  func.func @transform_1(%arg0: i32, %arg1: i32) -> (i32, i32, i32) {
    %c0_i32 = arith.constant 0 : i32
    %c0_i32_0 = arith.constant 0 : i32
    %c0_i32_1 = arith.constant 0 : i32
    return %arg0, %c0_i32, %c0_i32_0 : i32, i32, i32
  }
  func.func @transform_2(%arg0: i32, %arg1: i32) -> (i32, i32, i32) {
    %c0_i32 = arith.constant 0 : i32
    %c0_i32_0 = arith.constant 0 : i32
    %c0_i32_1 = arith.constant 0 : i32
    return %arg0, %c0_i32, %c0_i32_0 : i32, i32, i32
  }
  func.func @transform_3(%arg0: i32, %arg1: i32) -> (i32, i32) {
    %c0_i32 = arith.constant 0 : i32
    %c0_i32_0 = arith.constant 0 : i32
    %c0_i32_1 = arith.constant 0 : i32
    return %c0_i32, %c0_i32_0 : i32, i32
  }
  func.func @transform_4(%arg0: i32, %arg1: i32) -> (i32, i32) {
    %c0_i32 = arith.constant 0 : i32
    %c0_i32_0 = arith.constant 0 : i32
    %c0_i32_1 = arith.constant 0 : i32
    return %c0_i32, %c0_i32_0 : i32, i32
  }
  func.func @transform_5(%arg0: i32, %arg1: i32) -> (i32, i32) {
    %c0_i32 = arith.constant 0 : i32
    %c0_i32_0 = arith.constant 0 : i32
    %c0_i32_1 = arith.constant 0 : i32
    return %c0_i32, %c0_i32_0 : i32, i32
  }
  func.func @transform_6(%arg0: i32, %arg1: i32) -> (i32, i32, i32) {
    %c0_i32 = arith.constant 0 : i32
    %c0_i32_0 = arith.constant 0 : i32
    return %arg0, %arg1, %c0_i32 : i32, i32, i32
  }
}

module attributes {stable_mosaic.version = 11 : i64} {
  func.func @_gn_stats_kernel(%arg0: i32, %arg1: i32, %arg2: memref<1x256x32xbf16, #tpu.memory_space<vmem>>, %arg3: memref<1x1x32xf32, #tpu.memory_space<vmem>>, %arg4: memref<1x1x32xf32, #tpu.memory_space<vmem>>) attributes {dimension_semantics = [#tpu.dimension_semantics<parallel>, #tpu.dimension_semantics<arbitrary>], iteration_bounds = array<i64: 2, 1>, scalar_prefetch = 0 : i64, scratch_operands = 0 : i64, tpu.core_type = #tpu.core_type<tc>, window_params = [{transform_indices = @transform_0, window_bounds = array<i64: 1, 256, 32>}, {transform_indices = @transform_1, window_bounds = array<i64: 1, 1, 32>}, {transform_indices = @transform_2, window_bounds = array<i64: 1, 1, 32>}]} {
    %c0_i32 = arith.constant 0 : i32
    %0 = arith.cmpi eq, %arg1, %c0_i32 : i32
    %1 = arith.extui %0 : i1 to i32
    %c0_i32_0 = arith.constant 0 : i32
    %2 = arith.cmpi ne, %1, %c0_i32_0 : i32
    scf.if %2 {
      %cst_16 = arith.constant 0.000000e+00 : f32
      %23 = vector.broadcast %cst_16 : f32 to vector<1x1x32xf32>
      %c0_17 = arith.constant 0 : index
      %c0_18 = arith.constant 0 : index
      %c0_19 = arith.constant 0 : index
      %24 = vector.load %arg3[%c0_17, %c0_18, %c0_19] : memref<1x1x32xf32, #tpu.memory_space<vmem>>, vector<1x1x32xf32>
      tpu.vector_store %arg3[%c0_17, %c0_18, %c0_19], %23 {strides = array<i32>} : memref<1x1x32xf32, #tpu.memory_space<vmem>>, vector<1x1x32xf32>,
      %cst_20 = arith.constant 0.000000e+00 : f32
      %25 = vector.broadcast %cst_20 : f32 to vector<1x1x32xf32>
      %c0_21 = arith.constant 0 : index
      %c0_22 = arith.constant 0 : index
      %c0_23 = arith.constant 0 : index
      %26 = vector.load %arg4[%c0_21, %c0_22, %c0_23] : memref<1x1x32xf32, #tpu.memory_space<vmem>>, vector<1x1x32xf32>
      tpu.vector_store %arg4[%c0_21, %c0_22, %c0_23], %25 {strides = array<i32>} : memref<1x1x32xf32, #tpu.memory_space<vmem>>, vector<1x1x32xf32>,
    } else {
    }
    %c0 = arith.constant 0 : index
    %c0_1 = arith.constant 0 : index
    %c0_2 = arith.constant 0 : index
    %3 = vector.load %arg2[%c0, %c0_1, %c0_2] : memref<1x256x32xbf16, #tpu.memory_space<vmem>>, vector<1x256x32xbf16>
    %4 = vector.shape_cast %3 : vector<1x256x32xbf16> to vector<256x32xbf16>
    %5 = arith.extf %4 : vector<256x32xbf16> to vector<256x32xf32>
    %c0_3 = arith.constant 0 : index
    %c0_4 = arith.constant 0 : index
    %c0_5 = arith.constant 0 : index
    %6 = vector.load %arg3[%c0_3, %c0_4, %c0_5] : memref<1x1x32xf32, #tpu.memory_space<vmem>>, vector<1x1x32xf32>
    %7 = vector.shape_cast %6 : vector<1x1x32xf32> to vector<1x32xf32>
    %cst = arith.constant dense<0.000000e+00> : vector<32xf32>
    %8 = vector.multi_reduction <add>, %5, %cst [0] : vector<256x32xf32> to vector<32xf32>
    %9 = vector.shape_cast %8 : vector<32xf32> to vector<1x32xf32>
    %10 = arith.addf %7, %9 : vector<1x32xf32>
    %c0_6 = arith.constant 0 : index
    %c0_7 = arith.constant 0 : index
    %c0_8 = arith.constant 0 : index
    %11 = vector.load %arg3[%c0_6, %c0_7, %c0_8] : memref<1x1x32xf32, #tpu.memory_space<vmem>>, vector<1x1x32xf32>
    %12 = vector.shape_cast %11 : vector<1x1x32xf32> to vector<1x32xf32>
    %13 = vector.shape_cast %10 : vector<1x32xf32> to vector<1x1x32xf32>
    tpu.vector_store %arg3[%c0_6, %c0_7, %c0_8], %13 {strides = array<i32>} : memref<1x1x32xf32, #tpu.memory_space<vmem>>, vector<1x1x32xf32>,
    %c0_9 = arith.constant 0 : index
    %c0_10 = arith.constant 0 : index
    %c0_11 = arith.constant 0 : index
    %14 = vector.load %arg4[%c0_9, %c0_10, %c0_11] : memref<1x1x32xf32, #tpu.memory_space<vmem>>, vector<1x1x32xf32>
    %15 = vector.shape_cast %14 : vector<1x1x32xf32> to vector<1x32xf32>
    %16 = arith.mulf %5, %5 : vector<256x32xf32>
    %cst_12 = arith.constant dense<0.000000e+00> : vector<32xf32>
    %17 = vector.multi_reduction <add>, %16, %cst_12 [0] : vector<256x32xf32> to vector<32xf32>
    %18 = vector.shape_cast %17 : vector<32xf32> to vector<1x32xf32>
    %19 = arith.addf %15, %18 : vector<1x32xf32>
    %c0_13 = arith.constant 0 : index
    %c0_14 = arith.constant 0 : index
    %c0_15 = arith.constant 0 : index
    %20 = vector.load %arg4[%c0_13, %c0_14, %c0_15] : memref<1x1x32xf32, #tpu.memory_space<vmem>>, vector<1x1x32xf32>
    %21 = vector.shape_cast %20 : vector<1x1x32xf32> to vector<1x32xf32>
    %22 = vector.shape_cast %19 : vector<1x32xf32> to vector<1x1x32xf32>
    tpu.vector_store %arg4[%c0_13, %c0_14, %c0_15], %22 {strides = array<i32>} : memref<1x1x32xf32, #tpu.memory_space<vmem>>, vector<1x1x32xf32>,
    return
  }
  func.func @transform_0(%arg0: i32, %arg1: i32) -> (i32, i32, i32) {
    %c0_i32 = arith.constant 0 : i32
    %c0_i32_0 = arith.constant 0 : i32
    return %arg0, %arg1, %c0_i32 : i32, i32, i32
  }
  func.func @transform_1(%arg0: i32, %arg1: i32) -> (i32, i32, i32) {
    %c0_i32 = arith.constant 0 : i32
    %c0_i32_0 = arith.constant 0 : i32
    %c0_i32_1 = arith.constant 0 : i32
    return %arg0, %c0_i32, %c0_i32_0 : i32, i32, i32
  }
  func.func @transform_2(%arg0: i32, %arg1: i32) -> (i32, i32, i32) {
    %c0_i32 = arith.constant 0 : i32
    %c0_i32_0 = arith.constant 0 : i32
    %c0_i32_1 = arith.constant 0 : i32
    return %arg0, %c0_i32, %c0_i32_0 : i32, i32, i32
  }
}

module attributes {stable_mosaic.version = 11 : i64} {
  func.func @_gn_apply_kernel(%arg0: i32, %arg1: i32, %arg2: memref<1x256x32xbf16, #tpu.memory_space<vmem>>, %arg3: memref<1x1x32xf32, #tpu.memory_space<vmem>>, %arg4: memref<1x1x32xf32, #tpu.memory_space<vmem>>, %arg5: memref<32x32xf32, #tpu.memory_space<vmem>>, %arg6: memref<1x32xf32, #tpu.memory_space<vmem>>, %arg7: memref<1x32xf32, #tpu.memory_space<vmem>>, %arg8: memref<1x256x32xbf16, #tpu.memory_space<vmem>>) attributes {dimension_semantics = [#tpu.dimension_semantics<parallel>, #tpu.dimension_semantics<parallel>], iteration_bounds = array<i64: 2, 1>, scalar_prefetch = 0 : i64, scratch_operands = 0 : i64, tpu.core_type = #tpu.core_type<tc>, window_params = [{transform_indices = @transform_0, window_bounds = array<i64: 1, 256, 32>}, {transform_indices = @transform_1, window_bounds = array<i64: 1, 1, 32>}, {transform_indices = @transform_2, window_bounds = array<i64: 1, 1, 32>}, {pipeline_mode = #tpu.pipeline_mode<synchronous>, transform_indices = @transform_3, window_bounds = array<i64: 32, 32>}, {pipeline_mode = #tpu.pipeline_mode<synchronous>, transform_indices = @transform_4, window_bounds = array<i64: 1, 32>}, {pipeline_mode = #tpu.pipeline_mode<synchronous>, transform_indices = @transform_5, window_bounds = array<i64: 1, 32>}, {transform_indices = @transform_6, window_bounds = array<i64: 1, 256, 32>}]} {
    %c0 = arith.constant 0 : index
    %c0_0 = arith.constant 0 : index
    %c0_1 = arith.constant 0 : index
    %0 = vector.load %arg2[%c0, %c0_0, %c0_1] : memref<1x256x32xbf16, #tpu.memory_space<vmem>>, vector<1x256x32xbf16>
    %1 = vector.shape_cast %0 : vector<1x256x32xbf16> to vector<256x32xbf16>
    %2 = arith.extf %1 : vector<256x32xbf16> to vector<256x32xf32>
    %c0_2 = arith.constant 0 : index
    %c0_3 = arith.constant 0 : index
    %3 = vector.load %arg5[%c0_2, %c0_3] : memref<32x32xf32, #tpu.memory_space<vmem>>, vector<32x32xf32>
    %c0_4 = arith.constant 0 : index
    %c0_5 = arith.constant 0 : index
    %c0_6 = arith.constant 0 : index
    %4 = vector.load %arg3[%c0_4, %c0_5, %c0_6] : memref<1x1x32xf32, #tpu.memory_space<vmem>>, vector<1x1x32xf32>
    %5 = vector.shape_cast %4 : vector<1x1x32xf32> to vector<1x32xf32>
    %cst = arith.constant dense<0.000000e+00> : vector<1x32xf32>
    %6 = tpu.matmul %5, %3, %cst {dimension_numbers = #tpu.dot_dimension_numbers<[1], [0], [0], [1], [0, 0, 1, 1], [], []>} : vector<1x32xf32>, vector<32x32xf32>, vector<1x32xf32> -> vector<1x32xf32>
    %c0_7 = arith.constant 0 : index
    %c0_8 = arith.constant 0 : index
    %c0_9 = arith.constant 0 : index
    %7 = vector.load %arg4[%c0_7, %c0_8, %c0_9] : memref<1x1x32xf32, #tpu.memory_space<vmem>>, vector<1x1x32xf32>
    %8 = vector.shape_cast %7 : vector<1x1x32xf32> to vector<1x32xf32>
    %cst_10 = arith.constant dense<0.000000e+00> : vector<1x32xf32>
    %9 = tpu.matmul %8, %3, %cst_10 {dimension_numbers = #tpu.dot_dimension_numbers<[1], [0], [0], [1], [0, 0, 1, 1], [], []>} : vector<1x32xf32>, vector<32x32xf32>, vector<1x32xf32> -> vector<1x32xf32>
    %cst_11 = arith.constant 2.560000e+02 : f32
    %10 = vector.broadcast %cst_11 : f32 to vector<1x32xf32>
    %11 = arith.divf %6, %10 : vector<1x32xf32>
    %cst_12 = arith.constant 2.560000e+02 : f32
    %12 = vector.broadcast %cst_12 : f32 to vector<1x32xf32>
    %13 = arith.divf %9, %12 : vector<1x32xf32>
    %14 = arith.mulf %11, %11 : vector<1x32xf32>
    %15 = arith.subf %13, %14 : vector<1x32xf32>
    %cst_13 = arith.constant 0.000000e+00 : f32
    %16 = vector.broadcast %cst_13 : f32 to vector<1x32xf32>
    %17 = arith.maximumf %15, %16 : vector<1x32xf32>
    %cst_14 = arith.constant 9.99999997E-7 : f32
    %18 = vector.broadcast %cst_14 : f32 to vector<1x32xf32>
    %19 = arith.addf %17, %18 : vector<1x32xf32>
    %20 = math.rsqrt %19 : vector<1x32xf32>
    %cst_15 = arith.constant dense<0.000000e+00> : vector<1x32xf32>
    %21 = tpu.matmul %11, %3, %cst_15 {dimension_numbers = #tpu.dot_dimension_numbers<[1], [1], [0], [0], [0, 0, 1, 0], [], []>} : vector<1x32xf32>, vector<32x32xf32>, vector<1x32xf32> -> vector<1x32xf32>
    %cst_16 = arith.constant dense<0.000000e+00> : vector<1x32xf32>
    %22 = tpu.matmul %20, %3, %cst_16 {dimension_numbers = #tpu.dot_dimension_numbers<[1], [1], [0], [0], [0, 0, 1, 0], [], []>} : vector<1x32xf32>, vector<32x32xf32>, vector<1x32xf32> -> vector<1x32xf32>
    %23 = vector.broadcast %21 : vector<1x32xf32> to vector<256x32xf32>
    %24 = arith.subf %2, %23 : vector<256x32xf32>
    %25 = vector.broadcast %22 : vector<1x32xf32> to vector<256x32xf32>
    %26 = arith.mulf %24, %25 : vector<256x32xf32>
    %c0_17 = arith.constant 0 : index
    %c0_18 = arith.constant 0 : index
    %27 = vector.load %arg6[%c0_17, %c0_18] : memref<1x32xf32, #tpu.memory_space<vmem>>, vector<1x32xf32>
    %28 = vector.broadcast %27 : vector<1x32xf32> to vector<256x32xf32>
    %29 = arith.mulf %26, %28 : vector<256x32xf32>
    %c0_19 = arith.constant 0 : index
    %c0_20 = arith.constant 0 : index
    %30 = vector.load %arg7[%c0_19, %c0_20] : memref<1x32xf32, #tpu.memory_space<vmem>>, vector<1x32xf32>
    %31 = vector.broadcast %30 : vector<1x32xf32> to vector<256x32xf32>
    %32 = arith.addf %29, %31 : vector<256x32xf32>
    %33 = arith.negf %32 : vector<256x32xf32>
    %34 = math.exp %33 : vector<256x32xf32>
    %cst_21 = arith.constant 1.000000e+00 : f32
    %35 = vector.broadcast %cst_21 : f32 to vector<256x32xf32>
    %36 = arith.addf %35, %34 : vector<256x32xf32>
    %37 = arith.divf %35, %36 : vector<256x32xf32>
    %38 = arith.mulf %32, %37 : vector<256x32xf32>
    %39 = arith.truncf %38 : vector<256x32xf32> to vector<256x32xbf16>
    %c0_22 = arith.constant 0 : index
    %c0_23 = arith.constant 0 : index
    %c0_24 = arith.constant 0 : index
    %40 = vector.load %arg8[%c0_22, %c0_23, %c0_24] : memref<1x256x32xbf16, #tpu.memory_space<vmem>>, vector<1x256x32xbf16>
    %41 = vector.shape_cast %40 : vector<1x256x32xbf16> to vector<256x32xbf16>
    %42 = vector.shape_cast %39 : vector<256x32xbf16> to vector<1x256x32xbf16>
    tpu.vector_store %arg8[%c0_22, %c0_23, %c0_24], %42 {strides = array<i32>} : memref<1x256x32xbf16, #tpu.memory_space<vmem>>, vector<1x256x32xbf16>,
    return
  }
  func.func @transform_0(%arg0: i32, %arg1: i32) -> (i32, i32, i32) {
    %c0_i32 = arith.constant 0 : i32
    %c0_i32_0 = arith.constant 0 : i32
    return %arg0, %arg1, %c0_i32 : i32, i32, i32
  }
  func.func @transform_1(%arg0: i32, %arg1: i32) -> (i32, i32, i32) {
    %c0_i32 = arith.constant 0 : i32
    %c0_i32_0 = arith.constant 0 : i32
    %c0_i32_1 = arith.constant 0 : i32
    return %arg0, %c0_i32, %c0_i32_0 : i32, i32, i32
  }
  func.func @transform_2(%arg0: i32, %arg1: i32) -> (i32, i32, i32) {
    %c0_i32 = arith.constant 0 : i32
    %c0_i32_0 = arith.constant 0 : i32
    %c0_i32_1 = arith.constant 0 : i32
    return %arg0, %c0_i32, %c0_i32_0 : i32, i32, i32
  }
  func.func @transform_3(%arg0: i32, %arg1: i32) -> (i32, i32) {
    %c0_i32 = arith.constant 0 : i32
    %c0_i32_0 = arith.constant 0 : i32
    %c0_i32_1 = arith.constant 0 : i32
    return %c0_i32, %c0_i32_0 : i32, i32
  }
  func.func @transform_4(%arg0: i32, %arg1: i32) -> (i32, i32) {
    %c0_i32 = arith.constant 0 : i32
    %c0_i32_0 = arith.constant 0 : i32
    %c0_i32_1 = arith.constant 0 : i32
    return %c0_i32, %c0_i32_0 : i32, i32
  }
  func.func @transform_5(%arg0: i32, %arg1: i32) -> (i32, i32) {
    %c0_i32 = arith.constant 0 : i32
    %c0_i32_0 = arith.constant 0 : i32
    %c0_i32_1 = arith.constant 0 : i32
    return %c0_i32, %c0_i32_0 : i32, i32
  }
  func.func @transform_6(%arg0: i32, %arg1: i32) -> (i32, i32, i32) {
    %c0_i32 = arith.constant 0 : i32
    %c0_i32_0 = arith.constant 0 : i32
    return %arg0, %arg1, %c0_i32 : i32, i32, i32
  }
}

module attributes {stable_mosaic.version = 11 : i64} {
  func.func @_matmul_kernel(%arg0: i32, %arg1: i32, %arg2: i32, %arg3: i32, %arg4: memref<1x256x128xbf16, #tpu.memory_space<vmem>>, %arg5: memref<128x128xbf16, #tpu.memory_space<vmem>>, %arg6: memref<1x128xf32, #tpu.memory_space<vmem>>, %arg7: memref<1x256x128xbf16, #tpu.memory_space<vmem>>, %arg8: memref<256x128xf32, #tpu.memory_space<vmem>>) attributes {dimension_semantics = [#tpu.dimension_semantics<parallel>, #tpu.dimension_semantics<parallel>, #tpu.dimension_semantics<parallel>, #tpu.dimension_semantics<arbitrary>], iteration_bounds = array<i64: 2, 1, 1, 1>, scalar_prefetch = 0 : i64, scratch_operands = 1 : i64, tpu.core_type = #tpu.core_type<tc>, window_params = [{transform_indices = @transform_0, window_bounds = array<i64: 1, 256, 128>}, {transform_indices = @transform_1, window_bounds = array<i64: 128, 128>}, {transform_indices = @transform_2, window_bounds = array<i64: 1, 128>}, {transform_indices = @transform_3, window_bounds = array<i64: 1, 256, 128>}]} {
    %c0_i32 = arith.constant 0 : i32
    %0 = arith.cmpi eq, %arg3, %c0_i32 : i32
    %1 = arith.extui %0 : i1 to i32
    %c0_i32_0 = arith.constant 0 : i32
    %2 = arith.cmpi ne, %1, %c0_i32_0 : i32
    scf.if %2 {
      %cst_11 = arith.constant 0.000000e+00 : f32
      %13 = vector.broadcast %cst_11 : f32 to vector<256x128xf32>
      %c0_12 = arith.constant 0 : index
      %c0_13 = arith.constant 0 : index
      %14 = vector.load %arg8[%c0_12, %c0_13] : memref<256x128xf32, #tpu.memory_space<vmem>>, vector<256x128xf32>
      tpu.vector_store %arg8[%c0_12, %c0_13], %13 {strides = array<i32>} : memref<256x128xf32, #tpu.memory_space<vmem>>, vector<256x128xf32>,
    } else {
    }
    %c0 = arith.constant 0 : index
    %c0_1 = arith.constant 0 : index
    %3 = vector.load %arg8[%c0, %c0_1] : memref<256x128xf32, #tpu.memory_space<vmem>>, vector<256x128xf32>
    %c0_2 = arith.constant 0 : index
    %c0_3 = arith.constant 0 : index
    %c0_4 = arith.constant 0 : index
    %4 = vector.load %arg4[%c0_2, %c0_3, %c0_4] : memref<1x256x128xbf16, #tpu.memory_space<vmem>>, vector<1x256x128xbf16>
    %5 = vector.shape_cast %4 : vector<1x256x128xbf16> to vector<256x128xbf16>
    %c0_5 = arith.constant 0 : index
    %c0_6 = arith.constant 0 : index
    %6 = vector.load %arg5[%c0_5, %c0_6] : memref<128x128xbf16, #tpu.memory_space<vmem>>, vector<128x128xbf16>
    %cst = arith.constant dense<0.000000e+00> : vector<256x128xf32>
    %7 = tpu.matmul %5, %6, %cst {dimension_numbers = #tpu.dot_dimension_numbers<[1], [0], [0], [1], [0, 0, 1, 1], [], []>} : vector<256x128xbf16>, vector<128x128xbf16>, vector<256x128xf32> -> vector<256x128xf32>
    %8 = arith.addf %3, %7 : vector<256x128xf32>
    %c0_7 = arith.constant 0 : index
    %c0_8 = arith.constant 0 : index
    %9 = vector.load %arg8[%c0_7, %c0_8] : memref<256x128xf32, #tpu.memory_space<vmem>>, vector<256x128xf32>
    tpu.vector_store %arg8[%c0_7, %c0_8], %8 {strides = array<i32>} : memref<256x128xf32, #tpu.memory_space<vmem>>, vector<256x128xf32>,
    %c0_i32_9 = arith.constant 0 : i32
    %10 = arith.cmpi eq, %arg3, %c0_i32_9 : i32
    %11 = arith.extui %10 : i1 to i32
    %c0_i32_10 = arith.constant 0 : i32
    %12 = arith.cmpi ne, %11, %c0_i32_10 : i32
    scf.if %12 {
      %c0_11 = arith.constant 0 : index
      %c0_12 = arith.constant 0 : index
      %13 = vector.load %arg8[%c0_11, %c0_12] : memref<256x128xf32, #tpu.memory_space<vmem>>, vector<256x128xf32>
      %c0_13 = arith.constant 0 : index
      %c0_14 = arith.constant 0 : index
      %14 = vector.load %arg6[%c0_13, %c0_14] : memref<1x128xf32, #tpu.memory_space<vmem>>, vector<1x128xf32>
      %15 = vector.broadcast %14 : vector<1x128xf32> to vector<256x128xf32>
      %16 = arith.addf %13, %15 : vector<256x128xf32>
      %17 = arith.truncf %16 : vector<256x128xf32> to vector<256x128xbf16>
      %c0_15 = arith.constant 0 : index
      %c0_16 = arith.constant 0 : index
      %c0_17 = arith.constant 0 : index
      %18 = vector.load %arg7[%c0_15, %c0_16, %c0_17] : memref<1x256x128xbf16, #tpu.memory_space<vmem>>, vector<1x256x128xbf16>
      %19 = vector.shape_cast %18 : vector<1x256x128xbf16> to vector<256x128xbf16>
      %20 = vector.shape_cast %17 : vector<256x128xbf16> to vector<1x256x128xbf16>
      tpu.vector_store %arg7[%c0_15, %c0_16, %c0_17], %20 {strides = array<i32>} : memref<1x256x128xbf16, #tpu.memory_space<vmem>>, vector<1x256x128xbf16>,
    } else {
    }
    return
  }
  func.func @transform_0(%arg0: i32, %arg1: i32, %arg2: i32, %arg3: i32) -> (i32, i32, i32) {
    %c0_i32 = arith.constant 0 : i32
    return %arg0, %arg1, %arg3 : i32, i32, i32
  }
  func.func @transform_1(%arg0: i32, %arg1: i32, %arg2: i32, %arg3: i32) -> (i32, i32) {
    %c0_i32 = arith.constant 0 : i32
    return %arg3, %arg2 : i32, i32
  }
  func.func @transform_2(%arg0: i32, %arg1: i32, %arg2: i32, %arg3: i32) -> (i32, i32) {
    %c0_i32 = arith.constant 0 : i32
    %c0_i32_0 = arith.constant 0 : i32
    return %c0_i32, %arg2 : i32, i32
  }
  func.func @transform_3(%arg0: i32, %arg1: i32, %arg2: i32, %arg3: i32) -> (i32, i32, i32) {
    %c0_i32 = arith.constant 0 : i32
    return %arg0, %arg1, %arg2 : i32, i32, i32
  }
}

module attributes {stable_mosaic.version = 11 : i64} {
  func.func @_matmul_res_kernel(%arg0: i32, %arg1: i32, %arg2: i32, %arg3: i32, %arg4: memref<1x256x384xbf16, #tpu.memory_space<vmem>>, %arg5: memref<384x128xbf16, #tpu.memory_space<vmem>>, %arg6: memref<1x128xf32, #tpu.memory_space<vmem>>, %arg7: memref<1x256x128xbf16, #tpu.memory_space<vmem>>, %arg8: memref<1x256x128xbf16, #tpu.memory_space<vmem>>, %arg9: memref<256x128xf32, #tpu.memory_space<vmem>>) attributes {dimension_semantics = [#tpu.dimension_semantics<parallel>, #tpu.dimension_semantics<parallel>, #tpu.dimension_semantics<parallel>, #tpu.dimension_semantics<arbitrary>], iteration_bounds = array<i64: 2, 1, 1, 1>, scalar_prefetch = 0 : i64, scratch_operands = 1 : i64, tpu.core_type = #tpu.core_type<tc>, window_params = [{transform_indices = @transform_0, window_bounds = array<i64: 1, 256, 384>}, {transform_indices = @transform_1, window_bounds = array<i64: 384, 128>}, {transform_indices = @transform_2, window_bounds = array<i64: 1, 128>}, {transform_indices = @transform_3, window_bounds = array<i64: 1, 256, 128>}, {transform_indices = @transform_4, window_bounds = array<i64: 1, 256, 128>}]} {
    %c0_i32 = arith.constant 0 : i32
    %0 = arith.cmpi eq, %arg3, %c0_i32 : i32
    %1 = arith.extui %0 : i1 to i32
    %c0_i32_0 = arith.constant 0 : i32
    %2 = arith.cmpi ne, %1, %c0_i32_0 : i32
    scf.if %2 {
      %cst_11 = arith.constant 0.000000e+00 : f32
      %13 = vector.broadcast %cst_11 : f32 to vector<256x128xf32>
      %c0_12 = arith.constant 0 : index
      %c0_13 = arith.constant 0 : index
      %14 = vector.load %arg9[%c0_12, %c0_13] : memref<256x128xf32, #tpu.memory_space<vmem>>, vector<256x128xf32>
      tpu.vector_store %arg9[%c0_12, %c0_13], %13 {strides = array<i32>} : memref<256x128xf32, #tpu.memory_space<vmem>>, vector<256x128xf32>,
    } else {
    }
    %c0 = arith.constant 0 : index
    %c0_1 = arith.constant 0 : index
    %3 = vector.load %arg9[%c0, %c0_1] : memref<256x128xf32, #tpu.memory_space<vmem>>, vector<256x128xf32>
    %c0_2 = arith.constant 0 : index
    %c0_3 = arith.constant 0 : index
    %c0_4 = arith.constant 0 : index
    %4 = vector.load %arg4[%c0_2, %c0_3, %c0_4] : memref<1x256x384xbf16, #tpu.memory_space<vmem>>, vector<1x256x384xbf16>
    %5 = vector.shape_cast %4 : vector<1x256x384xbf16> to vector<256x384xbf16>
    %c0_5 = arith.constant 0 : index
    %c0_6 = arith.constant 0 : index
    %6 = vector.load %arg5[%c0_5, %c0_6] : memref<384x128xbf16, #tpu.memory_space<vmem>>, vector<384x128xbf16>
    %cst = arith.constant dense<0.000000e+00> : vector<256x128xf32>
    %7 = tpu.matmul %5, %6, %cst {dimension_numbers = #tpu.dot_dimension_numbers<[1], [0], [0], [1], [0, 0, 1, 1], [], []>} : vector<256x384xbf16>, vector<384x128xbf16>, vector<256x128xf32> -> vector<256x128xf32>
    %8 = arith.addf %3, %7 : vector<256x128xf32>
    %c0_7 = arith.constant 0 : index
    %c0_8 = arith.constant 0 : index
    %9 = vector.load %arg9[%c0_7, %c0_8] : memref<256x128xf32, #tpu.memory_space<vmem>>, vector<256x128xf32>
    tpu.vector_store %arg9[%c0_7, %c0_8], %8 {strides = array<i32>} : memref<256x128xf32, #tpu.memory_space<vmem>>, vector<256x128xf32>,
    %c0_i32_9 = arith.constant 0 : i32
    %10 = arith.cmpi eq, %arg3, %c0_i32_9 : i32
    %11 = arith.extui %10 : i1 to i32
    %c0_i32_10 = arith.constant 0 : i32
    %12 = arith.cmpi ne, %11, %c0_i32_10 : i32
    scf.if %12 {
      %c0_11 = arith.constant 0 : index
      %c0_12 = arith.constant 0 : index
      %13 = vector.load %arg9[%c0_11, %c0_12] : memref<256x128xf32, #tpu.memory_space<vmem>>, vector<256x128xf32>
      %c0_13 = arith.constant 0 : index
      %c0_14 = arith.constant 0 : index
      %14 = vector.load %arg6[%c0_13, %c0_14] : memref<1x128xf32, #tpu.memory_space<vmem>>, vector<1x128xf32>
      %15 = vector.broadcast %14 : vector<1x128xf32> to vector<256x128xf32>
      %16 = arith.addf %13, %15 : vector<256x128xf32>
      %c0_15 = arith.constant 0 : index
      %c0_16 = arith.constant 0 : index
      %c0_17 = arith.constant 0 : index
      %17 = vector.load %arg7[%c0_15, %c0_16, %c0_17] : memref<1x256x128xbf16, #tpu.memory_space<vmem>>, vector<1x256x128xbf16>
      %18 = vector.shape_cast %17 : vector<1x256x128xbf16> to vector<256x128xbf16>
      %19 = arith.extf %18 : vector<256x128xbf16> to vector<256x128xf32>
      %20 = arith.addf %16, %19 : vector<256x128xf32>
      %21 = arith.truncf %20 : vector<256x128xf32> to vector<256x128xbf16>
      %c0_18 = arith.constant 0 : index
      %c0_19 = arith.constant 0 : index
      %c0_20 = arith.constant 0 : index
      %22 = vector.load %arg8[%c0_18, %c0_19, %c0_20] : memref<1x256x128xbf16, #tpu.memory_space<vmem>>, vector<1x256x128xbf16>
      %23 = vector.shape_cast %22 : vector<1x256x128xbf16> to vector<256x128xbf16>
      %24 = vector.shape_cast %21 : vector<256x128xbf16> to vector<1x256x128xbf16>
      tpu.vector_store %arg8[%c0_18, %c0_19, %c0_20], %24 {strides = array<i32>} : memref<1x256x128xbf16, #tpu.memory_space<vmem>>, vector<1x256x128xbf16>,
    } else {
    }
    return
  }
  func.func @transform_0(%arg0: i32, %arg1: i32, %arg2: i32, %arg3: i32) -> (i32, i32, i32) {
    %c0_i32 = arith.constant 0 : i32
    return %arg0, %arg1, %arg3 : i32, i32, i32
  }
  func.func @transform_1(%arg0: i32, %arg1: i32, %arg2: i32, %arg3: i32) -> (i32, i32) {
    %c0_i32 = arith.constant 0 : i32
    return %arg3, %arg2 : i32, i32
  }
  func.func @transform_2(%arg0: i32, %arg1: i32, %arg2: i32, %arg3: i32) -> (i32, i32) {
    %c0_i32 = arith.constant 0 : i32
    %c0_i32_0 = arith.constant 0 : i32
    return %c0_i32, %arg2 : i32, i32
  }
  func.func @transform_3(%arg0: i32, %arg1: i32, %arg2: i32, %arg3: i32) -> (i32, i32, i32) {
    %c0_i32 = arith.constant 0 : i32
    return %arg0, %arg1, %arg2 : i32, i32, i32
  }
  func.func @transform_4(%arg0: i32, %arg1: i32, %arg2: i32, %arg3: i32) -> (i32, i32, i32) {
    %c0_i32 = arith.constant 0 : i32
    return %arg0, %arg1, %arg2 : i32, i32, i32
  }
}

module attributes {stable_mosaic.version = 11 : i64} {
  func.func @_matmul_kernel(%arg0: i32, %arg1: i32, %arg2: i32, %arg3: i32, %arg4: memref<1x256x384xbf16, #tpu.memory_space<vmem>>, %arg5: memref<384x128xbf16, #tpu.memory_space<vmem>>, %arg6: memref<1x128xf32, #tpu.memory_space<vmem>>, %arg7: memref<1x256x128xbf16, #tpu.memory_space<vmem>>, %arg8: memref<256x128xf32, #tpu.memory_space<vmem>>) attributes {dimension_semantics = [#tpu.dimension_semantics<parallel>, #tpu.dimension_semantics<parallel>, #tpu.dimension_semantics<parallel>, #tpu.dimension_semantics<arbitrary>], iteration_bounds = array<i64: 2, 1, 1, 1>, scalar_prefetch = 0 : i64, scratch_operands = 1 : i64, tpu.core_type = #tpu.core_type<tc>, window_params = [{transform_indices = @transform_0, window_bounds = array<i64: 1, 256, 384>}, {transform_indices = @transform_1, window_bounds = array<i64: 384, 128>}, {transform_indices = @transform_2, window_bounds = array<i64: 1, 128>}, {transform_indices = @transform_3, window_bounds = array<i64: 1, 256, 128>}]} {
    %c0_i32 = arith.constant 0 : i32
    %0 = arith.cmpi eq, %arg3, %c0_i32 : i32
    %1 = arith.extui %0 : i1 to i32
    %c0_i32_0 = arith.constant 0 : i32
    %2 = arith.cmpi ne, %1, %c0_i32_0 : i32
    scf.if %2 {
      %cst_11 = arith.constant 0.000000e+00 : f32
      %13 = vector.broadcast %cst_11 : f32 to vector<256x128xf32>
      %c0_12 = arith.constant 0 : index
      %c0_13 = arith.constant 0 : index
      %14 = vector.load %arg8[%c0_12, %c0_13] : memref<256x128xf32, #tpu.memory_space<vmem>>, vector<256x128xf32>
      tpu.vector_store %arg8[%c0_12, %c0_13], %13 {strides = array<i32>} : memref<256x128xf32, #tpu.memory_space<vmem>>, vector<256x128xf32>,
    } else {
    }
    %c0 = arith.constant 0 : index
    %c0_1 = arith.constant 0 : index
    %3 = vector.load %arg8[%c0, %c0_1] : memref<256x128xf32, #tpu.memory_space<vmem>>, vector<256x128xf32>
    %c0_2 = arith.constant 0 : index
    %c0_3 = arith.constant 0 : index
    %c0_4 = arith.constant 0 : index
    %4 = vector.load %arg4[%c0_2, %c0_3, %c0_4] : memref<1x256x384xbf16, #tpu.memory_space<vmem>>, vector<1x256x384xbf16>
    %5 = vector.shape_cast %4 : vector<1x256x384xbf16> to vector<256x384xbf16>
    %c0_5 = arith.constant 0 : index
    %c0_6 = arith.constant 0 : index
    %6 = vector.load %arg5[%c0_5, %c0_6] : memref<384x128xbf16, #tpu.memory_space<vmem>>, vector<384x128xbf16>
    %cst = arith.constant dense<0.000000e+00> : vector<256x128xf32>
    %7 = tpu.matmul %5, %6, %cst {dimension_numbers = #tpu.dot_dimension_numbers<[1], [0], [0], [1], [0, 0, 1, 1], [], []>} : vector<256x384xbf16>, vector<384x128xbf16>, vector<256x128xf32> -> vector<256x128xf32>
    %8 = arith.addf %3, %7 : vector<256x128xf32>
    %c0_7 = arith.constant 0 : index
    %c0_8 = arith.constant 0 : index
    %9 = vector.load %arg8[%c0_7, %c0_8] : memref<256x128xf32, #tpu.memory_space<vmem>>, vector<256x128xf32>
    tpu.vector_store %arg8[%c0_7, %c0_8], %8 {strides = array<i32>} : memref<256x128xf32, #tpu.memory_space<vmem>>, vector<256x128xf32>,
    %c0_i32_9 = arith.constant 0 : i32
    %10 = arith.cmpi eq, %arg3, %c0_i32_9 : i32
    %11 = arith.extui %10 : i1 to i32
    %c0_i32_10 = arith.constant 0 : i32
    %12 = arith.cmpi ne, %11, %c0_i32_10 : i32
    scf.if %12 {
      %c0_11 = arith.constant 0 : index
      %c0_12 = arith.constant 0 : index
      %13 = vector.load %arg8[%c0_11, %c0_12] : memref<256x128xf32, #tpu.memory_space<vmem>>, vector<256x128xf32>
      %c0_13 = arith.constant 0 : index
      %c0_14 = arith.constant 0 : index
      %14 = vector.load %arg6[%c0_13, %c0_14] : memref<1x128xf32, #tpu.memory_space<vmem>>, vector<1x128xf32>
      %15 = vector.broadcast %14 : vector<1x128xf32> to vector<256x128xf32>
      %16 = arith.addf %13, %15 : vector<256x128xf32>
      %17 = arith.truncf %16 : vector<256x128xf32> to vector<256x128xbf16>
      %c0_15 = arith.constant 0 : index
      %c0_16 = arith.constant 0 : index
      %c0_17 = arith.constant 0 : index
      %18 = vector.load %arg7[%c0_15, %c0_16, %c0_17] : memref<1x256x128xbf16, #tpu.memory_space<vmem>>, vector<1x256x128xbf16>
      %19 = vector.shape_cast %18 : vector<1x256x128xbf16> to vector<256x128xbf16>
      %20 = vector.shape_cast %17 : vector<256x128xbf16> to vector<1x256x128xbf16>
      tpu.vector_store %arg7[%c0_15, %c0_16, %c0_17], %20 {strides = array<i32>} : memref<1x256x128xbf16, #tpu.memory_space<vmem>>, vector<1x256x128xbf16>,
    } else {
    }
    return
  }
  func.func @transform_0(%arg0: i32, %arg1: i32, %arg2: i32, %arg3: i32) -> (i32, i32, i32) {
    %c0_i32 = arith.constant 0 : i32
    return %arg0, %arg1, %arg3 : i32, i32, i32
  }
  func.func @transform_1(%arg0: i32, %arg1: i32, %arg2: i32, %arg3: i32) -> (i32, i32) {
    %c0_i32 = arith.constant 0 : i32
    return %arg3, %arg2 : i32, i32
  }
  func.func @transform_2(%arg0: i32, %arg1: i32, %arg2: i32, %arg3: i32) -> (i32, i32) {
    %c0_i32 = arith.constant 0 : i32
    %c0_i32_0 = arith.constant 0 : i32
    return %c0_i32, %arg2 : i32, i32
  }
  func.func @transform_3(%arg0: i32, %arg1: i32, %arg2: i32, %arg3: i32) -> (i32, i32, i32) {
    %c0_i32 = arith.constant 0 : i32
    return %arg0, %arg1, %arg2 : i32, i32, i32
  }
}

</mosaic_0001>

<bundles_post_ra>
// kernel: decoder_forward.49
= control target key start
LH: loop header
LB: loop body
LE: loop exit
PB: predicated region body
PF: predicated region fallthrough
CT: control target
= control target key end

     0   :  { %s889_s12 = smov 0   ;;  %s891_s13 = smov 0   ;;  %s962_s0 = inlined_call_operand.vmem [shape: bf16[2,64,128], index: 0, kind: input, shape index: {}]   ;;  %s963_s1 = inlined_call_operand.vmem [shape: bf16[128,128], index: 1, kind: input, shape index: {}]   ;;  %s964_s2 = inlined_call_operand.vmem [shape: f32[1,128], index: 2, kind: input, shape index: {}]   ;;  %s965_s3 = inlined_call_operand.vmem [shape: bf16[2,64,128], index: 3, kind: output, shape index: {}]  }
   0x1   :  { %s893_s14 = smov 0  }
   0x2 LB: > { %s39_s15 = sadd.s32 1, %s863_s13  ;;  %p696_p0 = scmp.ge.s32.totalorder %s867_s14, 1  ;;  %s867_s14 = sphi %s893_s14, %s13_s14   ;;  %s863_s13 = sphi %s891_s13, %s967_s13   ;;  %s859_s12 = sphi %s889_s12, %s966_s12  }
   0x3   : > { %p41_p1 = scmp.ge.s32.totalorder %s39_s15, 2  ;;  %p203_p2 = scmp.lt.s32.totalorder %s867_s14, 3 }
   0x5   : > { %s969_s15 = smov (%p41_p1, %s39_s15), 0  ;;  %p204_p3 = pnand %p696_p0, %p203_p2 }
   0x6   : > { %v833_v0 = vld [vmem:[%s963_s1] sm:$0xff] (!%p204_p3)   ;;  %p253_p4 = scmp.lt.s32.totalorder (!%p204_p3), %s859_s12, 1  ;;  %v834_v1 = vld [vmem:[%s963_s1 + $0x8] sm:$0xff] (!%p204_p3)   ;;  %v835_v2 = vld [vmem:[%s963_s1 + $0x10] sm:$0xff] (!%p204_p3)  }
   0x7   : > { %207 = sbr.rel (%p204_p3) target bundleno = 259 (0x103), region = 32  ;;  %769 = vmatprep.subr.bf16.mxu0 (!%p204_p3), %v833_v0  ;;  %793 = vmatprep.subr.bf16.mxu1 (!%p204_p3), %v833_v0  ;;  %v836_v3 = vld [vmem:[%s963_s1 + $0x18] sm:$0xff] (!%p204_p3)   ;;  %v837_v6 = vld [vmem:[%s963_s1 + $0x20] sm:$0xff] (!%p204_p3)   ;;  %v838_v7 = vld [vmem:[%s963_s1 + $0x28] sm:$0xff] (!%p204_p3)  }
   0x8   : > { %770 = vmatpush3.bf16.msra.mxu0 (!%p204_p3), %v833_v0  ;;  %801 = vmatpush3.bf16.msra.mxu1 (!%p204_p3), %v833_v0  ;;  %v839_v8 = vld [vmem:[%s963_s1 + $0x30] sm:$0xff] (!%p204_p3)   ;;  %v840_v9 = vld [vmem:[%s963_s1 + $0x38] sm:$0xff] (!%p204_p3)   ;;  %v713_v13 = vld [vmem:[%s964_s2] ss:$0 sm:$0xff] (!%p204_p3) }
   0x9   : > { %771 = vmatprep.subr.bf16.mxu0 (!%p204_p3), %v834_v1  ;;  %794 = vmatprep.subr.bf16.mxu1 (!%p204_p3), %v834_v1 }
   0xc   : > { %772 = vmatpush3.bf16.msra.mxu0 (!%p204_p3), %v834_v1  ;;  %802 = vmatpush3.bf16.msra.mxu1 (!%p204_p3), %v834_v1 }
   0xd   : > { %773 = vmatprep.subr.bf16.mxu0 (!%p204_p3), %v835_v2  ;;  %795 = vmatprep.subr.bf16.mxu1 (!%p204_p3), %v835_v2 }
   0xe   : > { %s971_s12 = smov (!%p253_p4, %s859_s12), 1 }
   0xf   : > { %s724_s22 = sshll.u32 %s971_s12, 5 }
  0x10   : > { %s924_s25 = scalar_lea.vmem %s962_s0, %s724_s22  ;;  %774 = vmatpush3.bf16.msra.mxu0 %v835_v2  ;;  %803 = vmatpush3.bf16.msra.mxu1 %v835_v2  ;;  %s288_s17 = scalar_lea.vmem %s965_s3, %s724_s22 }
  0x11   : > { %v841_v4 = vld [vmem:[%s924_s25] sm:$0xff]   ;;  %v842_v5 = vld [vmem:[%s924_s25 + $0x10] sm:$0xff]   ;;  %775 = vmatprep.subr.bf16.mxu0 %v836_v3  ;;  %796 = vmatprep.subr.bf16.mxu1 %v836_v3  ;;  %v843_v10 = vld [vmem:[%s924_s25 + $0x8] sm:$0xff]  }
  0x12   : > { %785 = vmatprep.mubr.bf16.mxu0 %v841_v4  ;;  %789 = vmatprep.mubr.bf16.mxu1 %v842_v5  ;;  %v844_v11 = vld [vmem:[%s924_s25 + $0x18] sm:$0xff]  }
  0x14   : > { %776 = vmatpush3.bf16.msra.mxu0 %v836_v3  ;;  %804 = vmatpush3.bf16.msra.mxu1 %v836_v3 }
  0x15   : > { %777 = vmatprep.subr.bf16.mxu0 %v837_v6  ;;  %797 = vmatprep.subr.bf16.mxu1 %v837_v6 }
  0x18   : > { %778 = vmatpush3.bf16.msra.mxu0 %v837_v6  ;;  %805 = vmatpush3.bf16.msra.mxu1 %v837_v6 }
  0x19   : > { %779 = vmatprep.subr.bf16.mxu0 %v838_v7  ;;  %798 = vmatprep.subr.bf16.mxu1 %v838_v7 }
  0x1c   : > { %780 = vmatpush3.bf16.msra.mxu0 %v838_v7  ;;  %806 = vmatpush3.bf16.msra.mxu1 %v838_v7 }
  0x1d   : > { %781 = vmatprep.subr.bf16.mxu0 %v839_v8  ;;  %799 = vmatprep.subr.bf16.mxu1 %v839_v8 }
  0x20   : > { %782 = vmatpush3.bf16.msra.mxu0 %v839_v8  ;;  %807 = vmatpush3.bf16.msra.mxu1 %v839_v8 }
  0x21   : > { %783 = vmatprep.subr.bf16.mxu0 %v840_v9  ;;  %800 = vmatprep.subr.bf16.mxu1 %v840_v9 }
  0x24   : > { %784 = vmatpush3.bf16.msra.mxu0 %v840_v9  ;;  %808 = vmatpush3.bf16.msra.mxu1 %v840_v9 }
  0x27   : > { %786 = vmatmul.mubr.bf16.vlgmr.msra.gmra.mrb[0].mxu0 %v843_v10  ;;  %790 = vmatmul.mubr.bf16.vlgmr.msra.gmra.mrb[0].mxu1 %v844_v11 }
  0xfa   : > { %v787_v12 = vpop.f32.mrb[0].mxu0  ;;  %v791_v14 = vpop.f32.mrb[0].mxu1 }
  0xfb   : > { %v441_v15 = vpop.f32.mrb[1].mxu0  ;;  %v457_v16 = vpop.f32.mrb[1].mxu1  ;;  %v508_v19 = vadd.f32 %v787_v12, %v713_v13  ;;  %v512_v20 = vadd.f32 %v791_v14, %v713_v13 }
  0xfc   : > { %v788_v17 = vpop.f32.mrb[2].mxu0  ;;  %v792_v18 = vpop.f32.mrb[2].mxu1  ;;  %v506_v25 = vadd.f32 %v713_v13, %v441_v15  ;;  %v510_v26 = vadd.f32 %v713_v13, %v457_v16 }
  0xfd   : > { %v509_v21 = vadd.f32 %v788_v17, %v713_v13  ;;  %v513_v22 = vadd.f32 %v792_v18, %v713_v13  ;;  %v444_v23 = vpop.f32.mrb[3].mxu0  ;;  %v460_v24 = vpop.f32.mrb[3].mxu1 }
  0xfe   : > { %v507_v27 = vadd.f32 %v713_v13, %v444_v23  ;;  %v511_v28 = vadd.f32 %v713_v13, %v460_v24 }
  0xff   : > { %v742_v29 = vpack.c.bf16 %v509_v21, %v508_v19  ;;  %v752_v30 = vpack.c.bf16 %v513_v22, %v512_v20 }
 0x100   : > { %v737_v31 = vpack.c.bf16 %v507_v27, %v506_v25  ;;  %v747_v32 = vpack.c.bf16 %v511_v28, %v510_v26 }
 0x101   : > { %754 = vst [vmem:[%s288_s17 + $0x8] sm:$0xff] %v742_v29   ;;  %756 = vst [vmem:[%s288_s17 + $0x18] sm:$0xff] %v752_v30  }
 0x102   : > { %738 = vst [vmem:[%s288_s17] sm:$0xff] %v737_v31   ;;  %755 = vst [vmem:[%s288_s17 + $0x10] sm:$0xff] %v747_v32  }
 0x103 PF: > { %s13_s14 = sadd.s32 1, %s867_s14   ;;  %s966_s12 = smov %s863_s13 }
 0x104   : > { %p10_p5 = scmp.ge.s32.totalorder %s13_s14, 4   ;;  %s967_s13 = smov %s969_s15 }
 0x106   :  { %12 = sbr.rel (!%p10_p5) target bundleno = 2 (0x2), region = 76 }

// kernel: decoder_forward.50
= control target key start
LH: loop header
LB: loop body
LE: loop exit
PB: predicated region body
PF: predicated region fallthrough
CT: control target
= control target key end

     0   :  { %s438_s9 = smov 0   ;;  %s440_s10 = smov 0   ;;  %s504_s0 = inlined_call_operand.vmem [shape: bf16[2,64,64], index: 0, kind: input, shape index: {}]   ;;  %s505_s1 = inlined_call_operand.vmem [shape: f32[2,1,64], index: 1, kind: output, shape index: {0}]   ;;  %s506_s2 = inlined_call_operand.vmem [shape: f32[2,1,64], index: 2, kind: output, shape index: {1}]  }
   0x1   :  { %s442_s11 = smov 0  }
   0x2 LB: > { %s25_s12 = sadd.s32 1, %s416_s10  ;;  %p348_p0 = scmp.ge.s32.totalorder %s420_s11, 1  ;;  %s420_s11 = sphi %s442_s11, %s13_s11   ;;  %s416_s10 = sphi %s440_s10, %s508_s10   ;;  %s412_s9 = sphi %s438_s9, %s507_s9  }
   0x3   : > { %p27_p1 = scmp.ge.s32.totalorder %s25_s12, 2  ;;  %p134_p2 = scmp.lt.s32.totalorder %s420_s11, 3 }
   0x5   : > { %s510_s12 = smov (%p27_p1, %s25_s12), 0  ;;  %p135_p3 = pnand %p348_p0, %p134_p2 }
   0x6   : > { %p162_p4 = scmp.lt.s32.totalorder (!%p135_p3), %s412_s9, 1  ;;  %vm181_vm0 = vcmask (!%p135_p3), 516096   ;;  %v422_v0 = vmov (!%p135_p3), 0.0   ;;  %vm201_vm1 = vcmask (!%p135_p3), 523264  }
   0x7   : > { %138 = sbr.rel (%p135_p3) target bundleno = 53 (0x35), region = 24 }
   0xe   : > { %s512_s9 = smov (!%p162_p4, %s412_s9), 1 }
   0xf   : > { %s353_s13 = sshll.u32 %s512_s9, 5  ;;  %s459_s16 = scalar_lea.vmem %s505_s1, %s512_s9 }
  0x10   : > { %s169_s19 = scalar_lea.vmem %s504_s0, %s353_s13  ;;  %182 = vst.msk [vmem:[%s459_s16] sm:$0x1] %vm181_vm0, %v422_v0  ;;  %s469_s22 = scalar_lea.vmem %s506_s2, %s512_s9 }
  0x11   : > { %v355_v1 = vld [vmem:[%s169_s19] sm:$0xff]   ;;  %v370_v2 = vld [vmem:[%s169_s19 + $0x8] sm:$0xff]   ;;  %v371_v3 = vld [vmem:[%s169_s19 + $0x10] sm:$0xff]   ;;  %183 = vst.msk [vmem:[%s469_s22] sm:$0x1] %vm181_vm0, %v422_v0 }
  0x12   : > { %v356_v4 = vunpack.c.l.bf16 %v355_v1  ;;  %v357_v5 = vunpack.c.h.bf16 %v355_v1  ;;  %v360_v6 = vunpack.c.l.bf16 %v370_v2  ;;  %v361_v7 = vunpack.c.h.bf16 %v370_v2  ;;  %v372_v9 = vld [vmem:[%s169_s19 + $0x18] sm:$0xff]  }
  0x13   : > { %v364_v8 = vunpack.c.l.bf16 %v371_v3  ;;  %v365_v13 = vunpack.c.h.bf16 %v371_v3  ;;  %v368_v19 = vunpack.c.l.bf16 %v372_v9  ;;  %v369_v29 = vunpack.c.h.bf16 %v372_v9 }
  0x14   : > { %v202_v10 = vsel %vm201_vm1, %v356_v4, 0.0  ;;  %v203_v11 = vsel %vm201_vm1, %v357_v5, 0.0  ;;  %v205_v12 = vsel %vm201_vm1, %v360_v6, 0.0  ;;  %v207_v15 = vsel %vm201_vm1, %v361_v7, 0.0 }
  0x15   : > { %v204_v14 = vadd.f32 %v203_v11, %v202_v10  ;;  %v227_v16 = vmul.f32 %v356_v4, %v356_v4  ;;  %v228_v17 = vmul.f32 %v357_v5, %v357_v5  ;;  %v229_v18 = vmul.f32 %v360_v6, %v360_v6 }
  0x16   : > { %v209_v21 = vsel %vm201_vm1, %v364_v8, 0.0  ;;  %v230_v22 = vmul.f32 %v361_v7, %v361_v7  ;;  %v231_v23 = vmul.f32 %v364_v8, %v364_v8  ;;  %v211_v30 = vsel %vm201_vm1, %v365_v13, 0.0 }
  0x17   : > { %v206_v20 = vadd.f32 %v205_v12, %v204_v14  ;;  %v235_v24 = vsel %vm201_vm1, %v227_v16, 0.0  ;;  %v236_v25 = vsel %vm201_vm1, %v228_v17, 0.0  ;;  %v238_v26 = vsel %vm201_vm1, %v229_v18, 0.0  ;;  %v200_v59 = vld [vmem:[%s459_s16] sm:$0x1] }
  0x18   : > { %v237_v28 = vadd.f32 %v236_v25, %v235_v24  ;;  %v232_v31 = vmul.f32 %v365_v13, %v365_v13  ;;  %v240_v32 = vsel %vm201_vm1, %v230_v22, 0.0  ;;  %v213_v35 = vsel %vm201_vm1, %v368_v19, 0.0  ;;  %v226_v0 = vld [vmem:[%s469_s22] sm:$0x1] }
  0x19   : > { %v208_v27 = vadd.f32 %v207_v15, %v206_v20  ;;  %v233_v36 = vmul.f32 %v368_v19, %v368_v19  ;;  %v242_v37 = vsel %vm201_vm1, %v231_v23, 0.0  ;;  %v215_v40 = vsel %vm201_vm1, %v369_v29, 0.0 }
  0x1a   : > { %v239_v34 = vadd.f32 %v238_v26, %v237_v28  ;;  %v234_v41 = vmul.f32 %v369_v29, %v369_v29  ;;  %v244_v42 = vsel %vm201_vm1, %v232_v31, 0.0 }
  0x1b   : > { %v210_v33 = vadd.f32 %v209_v21, %v208_v27  ;;  %v246_v45 = vsel %vm201_vm1, %v233_v36, 0.0 }
  0x1c   : > { %v241_v39 = vadd.f32 %v240_v32, %v239_v34  ;;  %v248_v48 = vsel %vm201_vm1, %v234_v41, 0.0 }
  0x1d   : > { %v212_v38 = vadd.f32 %v211_v30, %v210_v33 }
  0x1e   : > { %v243_v44 = vadd.f32 %v242_v37, %v241_v39 }
  0x1f   : > { %v214_v43 = vadd.f32 %v213_v35, %v212_v38 }
  0x20   : > { %v245_v47 = vadd.f32 %v244_v42, %v243_v44 }
  0x21   : > { %v216_v46 = vadd.f32 %v215_v40, %v214_v43 }
  0x22   : > { %v247_v50 = vadd.f32 %v246_v45, %v245_v47 }
  0x23   : > { %v217_v49 = vrot.slane %v216_v46, 4 }
  0x24   : > { %v249_v52 = vadd.f32 %v248_v48, %v247_v50 }
  0x25   : > { %v218_v51 = vadd.f32 %v217_v49, %v216_v46 }
  0x26   : > { %v250_v54 = vrot.slane %v249_v52, 4 }
  0x27   : > { %v219_v53 = vrot.slane %v218_v51, 2 }
  0x28   : > { %v251_v56 = vadd.f32 %v250_v54, %v249_v52 }
  0x29   : > { %v220_v55 = vadd.f32 %v219_v53, %v218_v51 }
  0x2a   : > { %v252_v58 = vrot.slane %v251_v56, 2 }
  0x2b   : > { %v221_v57 = vrot.slane %v220_v55, 1 }
  0x2c   : > { %v253_v61 = vadd.f32 %v252_v58, %v251_v56 }
  0x2d   : > { %v222_v60 = vadd.f32 %v221_v57, %v220_v55 }
  0x2e   : > { %v254_v63 = vrot.slane %v253_v61, 1 }
  0x2f   : > { %v223_v62 = vadd.f32 %v222_v60, %v200_v59 }
  0x30   : > { %v255_v1 = vadd.f32 %v254_v63, %v253_v61 }
  0x31   : > { %225 = vst.msk [vmem:[%s459_s16] sm:$0x1] %vm181_vm0, %v223_v62 }
  0x32   : > { %v256_v2 = vadd.f32 %v255_v1, %v226_v0 }
  0x34   : > { %257 = vst.msk [vmem:[%s469_s22] sm:$0x1] %vm181_vm0, %v256_v2 }
  0x35 PF: > { %s13_s11 = sadd.s32 1, %s420_s11   ;;  %s507_s9 = smov %s416_s10 }
  0x36   : > { %p10_p5 = scmp.ge.s32.totalorder %s13_s11, 4   ;;  %s508_s10 = smov %s510_s12 }
  0x38   :  { %12 = sbr.rel (!%p10_p5) target bundleno = 2 (0x2), region = 70 }

// kernel: decoder_forward.51
= control target key start
LH: loop header
LB: loop body
LE: loop exit
PB: predicated region body
PF: predicated region fallthrough
CT: control target
= control target key end

     0   :  { %s1296_s21 = smov 0   ;;  %s1298_s22 = smov 0   ;;  %s1402_s0 = inlined_call_operand.vmem [shape: bf16[2,64,64], index: 0, kind: input, shape index: {}]   ;;  %s1403_s1 = inlined_call_operand.vmem [shape: f32[2,1,64], index: 1, kind: input, shape index: {}]   ;;  %s1404_s2 = inlined_call_operand.vmem [shape: f32[2,1,64], index: 2, kind: input, shape index: {}]   ;;  %s1405_s3 = inlined_call_operand.vmem [shape: f32[64,32], index: 3, kind: input, shape index: {}]   ;;  %s1406_s4 = inlined_call_operand.vmem [shape: f32[1,64], index: 4, kind: input, shape index: {}]   ;;  %s1407_s5 = inlined_call_operand.vmem [shape: f32[1,64], index: 5, kind: input, shape index: {}]   ;;  %s1408_s6 = inlined_call_operand.vmem [shape: bf16[2,64,64], index: 6, kind: output, shape index: {}]  }
   0x1   :  { %s1300_s23 = smov 0  }
   0x2 LB: > { %s28_s24 = sadd.s32 1, %s1252_s22  ;;  %p931_p0 = scmp.ge.s32.totalorder %s1256_s23, 1  ;;  %s1256_s23 = sphi %s1300_s23, %s16_s23   ;;  %s1252_s22 = sphi %s1298_s22, %s1410_s22   ;;  %s1248_s21 = sphi %s1296_s21, %s1409_s21  }
   0x3   : > { %p30_p1 = scmp.ge.s32.totalorder %s28_s24, 2  ;;  %p249_p2 = scmp.lt.s32.totalorder %s1256_s23, 3 }
   0x5   : > { %s1412_s24 = smov (%p30_p1, %s28_s24), 0  ;;  %p250_p3 = pnand %p931_p0, %p249_p2 }
   0x6   : > { %v335_v0 = vld [vmem:[%s1405_s3] sm:$0xff] (!%p250_p3)  ;;  %v336_v1 = vld [vmem:[%s1405_s3 + $0x8] sm:$0xff] (!%p250_p3)  ;;  %v337_v2 = vld [vmem:[%s1405_s3 + $0x10] sm:$0xff] (!%p250_p3)  ;;  %v1258_v3 = vmov (!%p250_p3), 0.0|0.0   ;;  %vm1259_vm0 = vmmov (!%p250_p3), 0   ;;  %v1260_v6 = vmov (!%p250_p3), 0.0   ;;  %v671_v27 = vlaneseq (!%p250_p3) }
   0x7   : > { %253 = sbr.rel (%p250_p3) target bundleno = 515 (0x203), region = 44  ;;  %1117 = vmatprep.subr.bf16.mxu0 (!%p250_p3), %v1258_v3  ;;  %v1118_v4 = vpack.c.bf16 (!%p250_p3), %v336_v1, %v335_v0  ;;  %1129 = vmatprep.subr.bf16.mxu1 (!%p250_p3), %v1258_v3  ;;  %v338_v5 = vld [vmem:[%s1405_s3 + $0x18] sm:$0xff] (!%p250_p3)  ;;  %v339_v8 = vld [vmem:[%s1405_s3 + $0x20] sm:$0xff] (!%p250_p3)  ;;  %v340_v9 = vld [vmem:[%s1405_s3 + $0x28] sm:$0xff] (!%p250_p3)  ;;  %p294_p4 = scmp.lt.s32.totalorder (!%p250_p3), %s1248_s21, 1  ;;  %vm344_vm1 = vcmask (!%p250_p3), 523264  }
   0x8   : > { %1057 = vmatprep.mubr.msk.f32.mxu0 (!%p250_p3), %vm1259_vm0, %v1260_v6  ;;  %1076 = vmatprep.mubr.msk.f32.mxu1 (!%p250_p3), %vm1259_vm0, %v1260_v6  ;;  %v1121_v7 = vpack.c.bf16 (!%p250_p3), %v338_v5, %v337_v2  ;;  %v1124_v10 = vpack.c.bf16 (!%p250_p3), %v340_v9, %v339_v8  ;;  %v341_v11 = vld [vmem:[%s1405_s3 + $0x30] sm:$0xff] (!%p250_p3)  ;;  %v342_v12 = vld [vmem:[%s1405_s3 + $0x38] sm:$0xff] (!%p250_p3)  ;;  %vm500_vm2 = vcmask (!%p250_p3), 261120   ;;  %v672_v28 = vshrl.u32 (!%p250_p3), %v671_v27, 7  ;;  %v956_v56 = vld [vmem:[%s1406_s4] ss:$0 sm:$0xff] (!%p250_p3) }
   0x9   : > { %1119 = vmatpush3.bf16.msra.mxu0 (!%p250_p3), %v1118_v4  ;;  %1131 = vmatpush3.bf16.msra.mxu1 (!%p250_p3), %v1118_v4  ;;  %v1127_v13 = vpack.c.bf16 (!%p250_p3), %v342_v12, %v341_v11  ;;  %vm1143_vm3 = vmpackc.low (!%p250_p3), %vm500_vm2, %vm500_vm2  ;;  %v957_v1 = vld [vmem:[%s1407_s5] ss:$0 sm:$0xff] (!%p250_p3)  ;;  %vm813_vm4 = vcmask (!%p250_p3), 519168  }
   0xa   : > { %1120 = vmatprep.subr.bf16.mxu0 (!%p250_p3), %v1258_v3  ;;  %1132 = vmatprep.subr.bf16.mxu1 (!%p250_p3), %v1258_v3  ;;  %v673_v33 = vsub.s32 (!%p250_p3), 0, %v672_v28 }
   0xd   : > { %1122 = vmatpush3.bf16.msra.mxu0 (!%p250_p3), %v1121_v7  ;;  %1134 = vmatpush3.bf16.msra.mxu1 (!%p250_p3), %v1121_v7 }
   0xe   : > { %1123 = vmatprep.subr.bf16.mxu0 %v1258_v3  ;;  %1135 = vmatprep.subr.bf16.mxu1 %v1258_v3  ;;  %s1414_s21 = smov (!%p294_p4, %s1248_s21), 1 }
   0xf   : > { %s305_s19 = scalar_lea.vmem %s1403_s1, %s1414_s21  ;;  %s308_s26 = scalar_lea.vmem %s1404_s2, %s1414_s21 }
  0x10   : > { %v343_v14 = vld [vmem:[%s305_s19] sm:$0x1]  ;;  %s976_s27 = sshll.u32 %s1414_s21, 5 }
  0x11   : > { %1125 = vmatpush3.bf16.msra.mxu0 %v1124_v10  ;;  %1137 = vmatpush3.bf16.msra.mxu1 %v1124_v10  ;;  %v418_v15 = vld [vmem:[%s308_s26] sm:$0x1]  ;;  %s301_s30 = scalar_lea.vmem %s1402_s0, %s976_s27  ;;  %s317_s13 = scalar_lea.vmem %s1408_s6, %s976_s27 }
  0x12   : > { %1126 = vmatprep.subr.bf16.mxu0 %v1258_v3  ;;  %1138 = vmatprep.subr.bf16.mxu1 %v1258_v3  ;;  %v987_v29 = vld [vmem:[%s301_s30] sm:$0xff]   ;;  %v1002_v30 = vld [vmem:[%s301_s30 + $0x8] sm:$0xff]   ;;  %v1003_v31 = vld [vmem:[%s301_s30 + $0x10] sm:$0xff]  }
  0x13   : > { %v1004_v32 = vld [vmem:[%s301_s30 + $0x18] sm:$0xff]   ;;  %v988_v34 = vunpack.c.l.bf16 %v987_v29  ;;  %v989_v35 = vunpack.c.h.bf16 %v987_v29  ;;  %v992_v36 = vunpack.c.l.bf16 %v1002_v30  ;;  %v993_v37 = vunpack.c.h.bf16 %v1002_v30 }
  0x14   : > { %v996_v38 = vunpack.c.l.bf16 %v1003_v31  ;;  %v997_v39 = vunpack.c.h.bf16 %v1003_v31  ;;  %v1000_v40 = vunpack.c.l.bf16 %v1004_v32  ;;  %v1001_v41 = vunpack.c.h.bf16 %v1004_v32 }
  0x15   : > { %1128 = vmatpush3.bf16.msra.mxu0 %v1127_v13  ;;  %1140 = vmatpush3.bf16.msra.mxu1 %v1127_v13 }
  0x16   : > { %1141 = vmatprep.subr.bf16.mxu0 %v1258_v3  ;;  %1157 = vmatprep.subr.bf16.mxu1 %v1258_v3 }
  0x18   : > { %1058 = vmatmul.mubr.msk.f32.vlgmr.msra.gmra.mrb[0].mxu0 %vm344_vm1, %v343_v14  ;;  %1077 = vmatmul.mubr.msk.f32.vlgmr.msra.gmra.mrb[0].mxu1 %vm344_vm1, %v418_v15 }
  0x19   : > { %1095 = vmatprep.mubr.msk.f32.mxu0 %vm1259_vm0, %v1260_v6  ;;  %1114 = vmatprep.mubr.msk.f32.mxu1 %vm1259_vm0, %v1260_v6 }
  0x1e   : > { %1144 = vmatpush3.bf16.xpose.msk.msra.mxu0 %vm1143_vm3, %v1118_v4  ;;  %1160 = vmatpush3.bf16.xpose.msk.msra.mxu1 %vm1143_vm3, %v1118_v4 }
  0x1f   : > { %1145 = vmatprep.subr.bf16.mxu0 %v1258_v3  ;;  %1161 = vmatprep.subr.bf16.mxu1 %v1258_v3 }
  0x26   : > { %1148 = vmatpush3.bf16.xpose.msk.msra.mxu0 %vm1143_vm3, %v1121_v7  ;;  %1164 = vmatpush3.bf16.xpose.msk.msra.mxu1 %vm1143_vm3, %v1121_v7 }
  0x27   : > { %1149 = vmatprep.subr.bf16.mxu0 %v1258_v3  ;;  %1165 = vmatprep.subr.bf16.mxu1 %v1258_v3 }
  0x2e   : > { %1152 = vmatpush3.bf16.xpose.msk.msra.mxu0 %vm1143_vm3, %v1124_v10  ;;  %1168 = vmatpush3.bf16.xpose.msk.msra.mxu1 %vm1143_vm3, %v1124_v10 }
  0x2f   : > { %1153 = vmatprep.subr.bf16.mxu0 %v1258_v3  ;;  %1169 = vmatprep.subr.bf16.mxu1 %v1258_v3 }
  0x36   : > { %1156 = vmatpush3.bf16.xpose.msk.msra.mxu0 %vm1143_vm3, %v1127_v13  ;;  %1172 = vmatpush3.bf16.xpose.msk.msra.mxu1 %vm1143_vm3, %v1127_v13 }
  0xeb   : > { %v414_v16 = vpop.f32.mrb[0].mxu0  ;;  %v488_v17 = vpop.f32.mrb[0].mxu1 }
  0xec   : > { %v493_v18 = vmul.f32 0.0078125, %v414_v16  ;;  %v1059_v19 = vpop.f32.mrb[1].mxu0  ;;  %v494_v20 = vmul.f32 0.0078125, %v488_v17  ;;  %v1078_v21 = vpop.f32.mrb[1].mxu1 }
  0xee   : > { %v495_v22 = vmul.f32 %v493_v18, %v493_v18  ;;  %1096 = vmatmul.mubr.msk.f32.vlgmr.msra.gmra.mrb[2].mxu0 %vm500_vm2, %v493_v18 }
  0xf0   : > { %v496_v23 = vsub.f32 %v494_v20, %v495_v22 }
  0xf2   : > { %v497_v24 = vmax.f32 %v496_v23, 0.0 }
  0xf4   : > { %v498_v25 = vadd.f32 1e-06, %v497_v24 }
  0xf6   : > { %1200 = vrsqrt.f32 %v498_v25 }
 0x100   : > { %v1201_v26 = vpop.eup %1200 }
 0x101   : > { %1115 = vmatmul.mubr.msk.f32.vlgmr.msra.gmra.mrb[2].mxu1 %vm500_vm2, %v1201_v26 }
 0x1c1   : > { %v594_v42 = vpop.f32.mrb[2].mxu0 }
 0x1c2   : > { %v674_v43 = vrot.slane %v594_v42, %v673_v33  ;;  %v1097_v44 = vpop.f32.mrb[3].mxu0 }
 0x1c4   : > { %v675_v45 = vsub.f32 %v988_v34, %v674_v43  ;;  %v676_v46 = vsub.f32 %v989_v35, %v674_v43  ;;  %v677_v47 = vsub.f32 %v992_v36, %v674_v43  ;;  %v678_v48 = vsub.f32 %v993_v37, %v674_v43 }
 0x1c5   : > { %v679_v49 = vsub.f32 %v996_v38, %v674_v43  ;;  %v680_v50 = vsub.f32 %v997_v39, %v674_v43  ;;  %v681_v51 = vsub.f32 %v1000_v40, %v674_v43  ;;  %v682_v52 = vsub.f32 %v1001_v41, %v674_v43 }
 0x1d4   : > { %v667_v53 = vpop.f32.mrb[2].mxu1 }
 0x1d5   : > { %v686_v54 = vrot.slane %v667_v53, %v673_v33  ;;  %v1116_v55 = vpop.f32.mrb[3].mxu1 }
 0x1d7   : > { %v687_v57 = vmul.f32 %v686_v54, %v675_v45  ;;  %v688_v58 = vmul.f32 %v686_v54, %v676_v46  ;;  %v689_v59 = vmul.f32 %v686_v54, %v677_v47  ;;  %v690_v60 = vmul.f32 %v686_v54, %v678_v48 }
 0x1d8   : > { %v691_v61 = vmul.f32 %v686_v54, %v679_v49  ;;  %v692_v62 = vmul.f32 %v686_v54, %v680_v50  ;;  %v693_v63 = vmul.f32 %v686_v54, %v681_v51  ;;  %v694_v0 = vmul.f32 %v686_v54, %v682_v52 }
 0x1d9   : > { %v702_v2 = vmul.f32 %v956_v56, %v687_v57  ;;  %v703_v3 = vmul.f32 %v956_v56, %v688_v58  ;;  %v704_v4 = vmul.f32 %v956_v56, %v689_v59  ;;  %v705_v5 = vmul.f32 %v956_v56, %v690_v60 }
 0x1da   : > { %v706_v6 = vmul.f32 %v956_v56, %v691_v61  ;;  %v707_v7 = vmul.f32 %v956_v56, %v692_v62  ;;  %v708_v8 = vmul.f32 %v956_v56, %v693_v63  ;;  %v709_v9 = vmul.f32 %v956_v56, %v694_v0 }
 0x1db   : > { %v717_v10 = vadd.f32 %v957_v1, %v702_v2  ;;  %v718_v11 = vadd.f32 %v957_v1, %v703_v3  ;;  %v719_v12 = vadd.f32 %v957_v1, %v704_v4  ;;  %v720_v13 = vadd.f32 %v957_v1, %v705_v5 }
 0x1dc   : > { %v721_v14 = vadd.f32 %v957_v1, %v706_v6  ;;  %v722_v15 = vadd.f32 %v957_v1, %v707_v7  ;;  %v1372_v16 = vadd.f32 %v957_v1, %v708_v8  ;;  %v1374_v20 = vadd.f32 %v957_v1, %v709_v9 }
 0x1dd   : > { %v958_v17 = vmul.f32 -1.442695, %v717_v10  ;;  %v959_v18 = vmul.f32 -1.442695, %v718_v11  ;;  %v960_v19 = vmul.f32 -1.442695, %v719_v12 }
 0x1de   : > { %v961_v21 = vmul.f32 -1.442695, %v720_v13  ;;  %v962_v22 = vmul.f32 -1.442695, %v721_v14  ;;  %v963_v23 = vmul.f32 -1.442695, %v722_v15 }
 0x1df   : > { %1202 = vpow2.f32 %v958_v17  ;;  %v964_v24 = vmul.f32 -1.442695, %v1372_v16  ;;  %v965_v25 = vmul.f32 -1.442695, %v1374_v20 }
 0x1e0   : > { %1204 = vpow2.f32 %v959_v18 }
 0x1e1   : > { %1206 = vpow2.f32 %v960_v19 }
 0x1e2   : > { %1208 = vpow2.f32 %v961_v21 }
 0x1e3   : > { %1210 = vpow2.f32 %v962_v22 }
 0x1e4   : > { %1212 = vpow2.f32 %v963_v23 }
 0x1e5   : > { %1214 = vpow2.f32 %v964_v24 }
 0x1e6   : > { %1216 = vpow2.f32 %v965_v25 }
 0x1e9   : > { %v1203_v26 = vpop.eup %1202 }
 0x1ea   : > { %v1205_v27 = vpop.eup %1204  ;;  %v749_v28 = vadd.f32 1.0, %v1203_v26 }
 0x1eb   : > { %v1207_v29 = vpop.eup %1206  ;;  %v750_v30 = vadd.f32 1.0, %v1205_v27 }
 0x1ec   : > { %v1209_v31 = vpop.eup %1208  ;;  %v751_v32 = vadd.f32 1.0, %v1207_v29  ;;  %1218 = vrcp.f32 %v749_v28 }
 0x1ed   : > { %v1211_v33 = vpop.eup %1210  ;;  %v752_v34 = vadd.f32 1.0, %v1209_v31  ;;  %1220 = vrcp.f32 %v750_v30 }
 0x1ee   : > { %v1213_v35 = vpop.eup %1212  ;;  %v753_v36 = vadd.f32 1.0, %v1211_v33  ;;  %1222 = vrcp.f32 %v751_v32 }
 0x1ef   : > { %v1215_v37 = vpop.eup %1214  ;;  %v754_v38 = vadd.f32 1.0, %v1213_v35  ;;  %1224 = vrcp.f32 %v752_v34 }
 0x1f0   : > { %v1217_v39 = vpop.eup %1216  ;;  %v755_v40 = vadd.f32 1.0, %v1215_v37  ;;  %1226 = vrcp.f32 %v753_v36 }
 0x1f1   : > { %v756_v41 = vadd.f32 1.0, %v1217_v39  ;;  %1228 = vrcp.f32 %v754_v38 }
 0x1f2   : > { %1230 = vrcp.f32 %v755_v40 }
 0x1f3   : > { %1232 = vrcp.f32 %v756_v41 }
 0x1f6   : > { %v1219_v42 = vpop.eup %1218 }
 0x1f7   : > { %v1221_v43 = vpop.eup %1220  ;;  %v773_v44 = vmul.f32 %v1219_v42, %v717_v10 }
 0x1f8   : > { %v1223_v45 = vpop.eup %1222  ;;  %v774_v46 = vmul.f32 %v1221_v43, %v718_v11 }
 0x1f9   : > { %v1225_v47 = vpop.eup %1224  ;;  %v775_v48 = vmul.f32 %v1223_v45, %v719_v12  ;;  %v978_v49 = vpack.c.bf16 %v773_v44, %v773_v44 }
 0x1fa   : > { %v1227_v50 = vpop.eup %1226  ;;  %v776_v51 = vmul.f32 %v1225_v47, %v720_v13  ;;  %v979_v52 = vpack.c.bf16 %v774_v46, %v774_v46 }
 0x1fb   : > { %v1229_v53 = vpop.eup %1228  ;;  %v777_v54 = vmul.f32 %v1227_v50, %v721_v14  ;;  %v980_v55 = vpack.c.bf16 %v775_v48, %v775_v48  ;;  %814 = vst.msk [vmem:[%s317_s13] sm:$0xf] %vm813_vm4, %v978_v49 }
 0x1fc   : > { %v1231_v56 = vpop.eup %1230  ;;  %v778_v57 = vmul.f32 %v1229_v53, %v722_v15  ;;  %v981_v58 = vpack.c.bf16 %v776_v51, %v776_v51  ;;  %815 = vst.msk [vmem:[%s317_s13 + $0x4] sm:$0xf] %vm813_vm4, %v979_v52 }
 0x1fd   : > { %v1233_v59 = vpop.eup %1232  ;;  %v779_v60 = vmul.f32 %v1231_v56, %v1372_v16  ;;  %v982_v61 = vpack.c.bf16 %v777_v54, %v777_v54  ;;  %816 = vst.msk [vmem:[%s317_s13 + $0x8] sm:$0xf] %vm813_vm4, %v980_v55 }
 0x1fe   : > { %v780_v62 = vmul.f32 %v1233_v59, %v1374_v20  ;;  %v983_v63 = vpack.c.bf16 %v778_v57, %v778_v57  ;;  %817 = vst.msk [vmem:[%s317_s13 + $0xc] sm:$0xf] %vm813_vm4, %v981_v58 }
 0x1ff   : > { %v984_v0 = vpack.c.bf16 %v779_v60, %v779_v60  ;;  %818 = vst.msk [vmem:[%s317_s13 + $0x10] sm:$0xf] %vm813_vm4, %v982_v61 }
 0x200   : > { %v985_v1 = vpack.c.bf16 %v780_v62, %v780_v62  ;;  %819 = vst.msk [vmem:[%s317_s13 + $0x14] sm:$0xf] %vm813_vm4, %v983_v63 }
 0x201   : > { %820 = vst.msk [vmem:[%s317_s13 + $0x18] sm:$0xf] %vm813_vm4, %v984_v0 }
 0x202   : > { %821 = vst.msk [vmem:[%s317_s13 + $0x1c] sm:$0xf] %vm813_vm4, %v985_v1 }
 0x203 PF: > { %s16_s23 = sadd.s32 1, %s1256_s23   ;;  %s1409_s21 = smov %s1252_s22 }
 0x204   : > { %p13_p5 = scmp.ge.s32.totalorder %s16_s23, 4   ;;  %s1410_s22 = smov %s1412_s24 }
 0x206   :  { %15 = sbr.rel (!%p13_p5) target bundleno = 2 (0x2), region = 80 }

// kernel: decoder_forward.52
= control target key start
LH: loop header
LB: loop body
LE: loop exit
PB: predicated region body
PF: predicated region fallthrough
CT: control target
= control target key end

     0   :  { %s1013_s12 = smov 0   ;;  %s1015_s13 = smov 0   ;;  %s1133_s0 = inlined_call_operand.vmem [shape: bf16[2,64,640], index: 0, kind: input, shape index: {}]   ;;  %s1134_s1 = inlined_call_operand.vmem [shape: bf16[640,128], index: 1, kind: input, shape index: {}]   ;;  %s1135_s2 = inlined_call_operand.vmem [shape: f32[1,128], index: 2, kind: input, shape index: {}]   ;;  %s1136_s3 = inlined_call_operand.vmem [shape: bf16[2,64,128], index: 3, kind: output, shape index: {}]  }
   0x1   :  { %s1017_s14 = smov 0   ;;  %s1019_s15 = smov 0  }
   0x2   :  { %s1021_s16 = smov 0   ;;  %s1023_s17 = smov 0  }
   0x3   :  { %s1025_s18 = smov 0  }
   0x4 LB: > { %s28_s19 = sadd.s32 1, %s982_s16  ;;  %s39_s20 = sadd.s32 1, %s986_s17  ;;  %s990_s18 = sphi %s1025_s18, %s13_s18   ;;  %s986_s17 = sphi %s1023_s17, %s1142_s17   ;;  %s982_s16 = sphi %s1021_s16, %s1141_s16   ;;  %s978_s15 = sphi %s1019_s15, %s1140_s15   ;;  %s974_s14 = sphi %s1017_s14, %s1139_s14   ;;  %s970_s13 = sphi %s1015_s13, %s1138_s13   ;;  %s966_s12 = sphi %s1013_s12, %s1137_s12  }
   0x5   : > { %p29_p0 = scmp.ge.s32.totalorder %s28_s19, 5  ;;  %p57_p1 = scmp.ne.s32.totalorder %s970_s13, %s966_s12 }
   0x6   : > { %p58_p2 = scmp.eq.s32.totalorder %s990_s18, 0  ;;  %s50_s24 = sadd.s32 1, %s970_s13 }
   0x7   : > { %s1144_s19 = smov (%p29_p0, %s28_s19), 0  ;;  %s1146_s20 = smov (!%p29_p0, %s39_s20), %s986_s17 }
   0x8   : > { %p59_p3 = por %p58_p2, %p57_p1  ;;  %p41_p4 = scmp.ge.s32.totalorder %s1146_s20, 2 }
   0x9   : > { %s46_s21 = ssub.s32 %s982_s16, %s1144_s19  ;;  %p748_p6 = scmp.ge.s32.totalorder %s990_s18, 10 }
   0xa   : > { %s1148_s20 = smov (%p41_p4, %s1146_s20), 0 }
   0xb   : > { %s43_s22 = ssub.s32 %s986_s17, %s1148_s20  ;;  %173 = sbr.rel (%p748_p6) target bundleno = 30 (0x1e), region = 20 }
   0xc   : > { %s47_s23 = sor.u32 %s46_s21, %s43_s22 }
   0xd   : > { %p48_p5 = scmp.eq.s32.totalorder %s47_s23, 0 }
   0xf   : > { %s1064_s25 = scalar_select %p48_p5, %s970_s13, %s50_s24  }
  0x12   : > { %176 = sbr.rel (!%p59_p3) target bundleno = 30 (0x1e), region = 24  ;;  %s178_s26 = sand.u32 (%p59_p3), 1, %s970_s13  }
  0x13   : > { %s866_s27 = smul.u32 (%p59_p3), 40, %s986_s17  ;;  %s749_s28 = sshll.u32 (%p59_p3), %s178_s26, 5 }
  0x14   : > { %s180_s7 = scalar_lea.vmem (%p59_p3), [#allocation3], %s749_s28 }
  0x15   : > { %s185_s29 = sadd.s32 (%p59_p3), %s982_s16, %s866_s27 }
  0x16   : > { %s750_s30 = sshll.u32 (%p59_p3), %s185_s29, 2 }
  0x17   : > { %s187_s6 = scalar_lea.vmem (%p59_p3), %s1133_s0, %s750_s30 }
  0x18   : > { %v203_v0 = vld [vmem:[%s187_s6] sm:$0xf] (%p59_p3)  ;;  %v205_v1 = vld [vmem:[%s187_s6 + $0x14] sm:$0xf] (%p59_p3)  ;;  %v207_v2 = vld [vmem:[%s187_s6 + $0x28] sm:$0xf] (%p59_p3) }
  0x19   : > { %204 = vst [vmem:[%s180_s7] sm:$0xf] %v203_v0  ;;  %206 = vst [vmem:[%s180_s7 + $0x4] sm:$0xf] %v205_v1  ;;  %v209_v3 = vld [vmem:[%s187_s6 + $0x3c] sm:$0xf] }
  0x1a   : > { %208 = vst [vmem:[%s180_s7 + $0x8] sm:$0xf] %v207_v2  ;;  %v211_v4 = vld [vmem:[%s187_s6 + $0x50] sm:$0xf]  ;;  %v213_v5 = vld [vmem:[%s187_s6 + $0x64] sm:$0xf] }
  0x1b   : > { %210 = vst [vmem:[%s180_s7 + $0xc] sm:$0xf] %v209_v3  ;;  %212 = vst [vmem:[%s180_s7 + $0x10] sm:$0xf] %v211_v4  ;;  %v215_v6 = vld [vmem:[%s187_s6 + $0x78] sm:$0xf] }
  0x1c   : > { %214 = vst [vmem:[%s180_s7 + $0x14] sm:$0xf] %v213_v5  ;;  %v217_v7 = vld [vmem:[%s187_s6 + $0x8c] sm:$0xf]  ;;  %216 = vst [vmem:[%s180_s7 + $0x18] sm:$0xf] %v215_v6 }
  0x1d   : > { %218 = vst [vmem:[%s180_s7 + $0x1c] sm:$0xf] %v217_v7 }
  0x1e PF: > { %p751_p7 = scmp.ge.s32.totalorder %s990_s18, 1  ;;  %p268_p8 = scmp.lt.s32.totalorder %s990_s18, 11 }
  0x20   : > { %p269_p9 = pnand %p751_p7, %p268_p8 }
  0x21   : > { %s275_s8 = sand.u32 (!%p269_p9), 1, %s966_s12   ;;  %s753_s9 = sshll.u32 (!%p269_p9), %s974_s14, 4 }
  0x22   : > { %272 = sbr.rel (%p269_p9) target bundleno = 315 (0x13b), region = 69  ;;  %s752_s10 = sshll.u32 (!%p269_p9), %s275_s8, 5 }
  0x23   : > { %p318_p10 = scmp.lt.s32.totalorder (!%p269_p9), %s753_s9, 79  ;;  %p330_p11 = scmp.lt.s32.totalorder (!%p269_p9), %s978_s15, 1 }
  0x24   : > { %s1089_s29 = scalar_lea.vmem (!%p269_p9), [#allocation3], %s752_s10  ;;  %p757_p12 = scmp.ne.s32.totalorder (!%p269_p9), %s974_s14, 0 }
  0x29   : > { %s1150_s9 = smov (!%p318_p10, %s753_s9), 79  ;;  %s1152_s15 = smov (!%p330_p11, %s978_s15), 1 }
  0x2a   : > { %s754_s11 = sshll.u32 %s1150_s9, 2  ;;  %s782_s24 = sshll.u32 %s1152_s15, 5  ;;  %v992_v8 = vmov (!%p757_p12), 0.0  }
  0x2b   : > { %s1082_s23 = scalar_lea.vmem %s1134_s1, %s754_s11  ;;  %s1087_s28 = scalar_lea.vmem %s1136_s3, %s782_s24  ;;  %347 = vst [vmem:[#allocation2] sm:$0xff] (!%p757_p12), %v992_v8  ;;  %348 = vst [vmem:[#allocation2 + $0x8] sm:$0xff] (!%p757_p12), %v992_v8 }
  0x2c   : > { %346 = sbr.rel (%p757_p12) target bundleno = 51 (0x33), region = 77  ;;  %349 = vst [vmem:[#allocation2 + $0x10] sm:$0xff] (!%p757_p12), %v992_v8  ;;  %350 = vst [vmem:[#allocation2 + $0x18] sm:$0xff] (!%p757_p12), %v992_v8 }
  0x2d   : > { %351 = vst [vmem:[#allocation2 + $0x20] sm:$0xff] (!%p757_p12), %v992_v8  ;;  %352 = vst [vmem:[#allocation2 + $0x28] sm:$0xff] (!%p757_p12), %v992_v8 }
  0x2e   : > { %353 = vst [vmem:[#allocation2 + $0x30] sm:$0xff] (!%p757_p12), %v992_v8  ;;  %354 = vst [vmem:[#allocation2 + $0x38] sm:$0xff] (!%p757_p12), %v992_v8 }
  0x33 PF: > { %v924_v9 = vld [vmem:[%s1082_s23] sm:$0xff]   ;;  %v925_v10 = vld [vmem:[%s1082_s23 + $0x8] sm:$0xff]   ;;  %v926_v11 = vld [vmem:[%s1082_s23 + $0x10] sm:$0xff]   ;;  %p770_p13 = scmp.ne.s32.totalorder %s974_s14, 4 }
  0x34   : > { %826 = vmatprep.subr.bf16.mxu0 %v924_v9  ;;  %850 = vmatprep.subr.bf16.mxu1 %v924_v9  ;;  %v927_v12 = vld [vmem:[%s1082_s23 + $0x18] sm:$0xff]   ;;  %v932_v13 = vld [vmem:[%s1089_s29] sm:$0xff]   ;;  %v933_v14 = vld [vmem:[%s1089_s29 + $0x10] sm:$0xff]  }
  0x35   : > { %827 = vmatpush3.bf16.msra.mxu0 %v924_v9  ;;  %858 = vmatpush3.bf16.msra.mxu1 %v924_v9  ;;  %v928_v15 = vld [vmem:[%s1082_s23 + $0x20] sm:$0xff]   ;;  %v929_v16 = vld [vmem:[%s1082_s23 + $0x28] sm:$0xff]   ;;  %v930_v17 = vld [vmem:[%s1082_s23 + $0x30] sm:$0xff]  }
  0x36   : > { %828 = vmatprep.subr.bf16.mxu0 %v925_v10  ;;  %851 = vmatprep.subr.bf16.mxu1 %v925_v10  ;;  %v931_v18 = vld [vmem:[%s1082_s23 + $0x38] sm:$0xff]   ;;  %v934_v19 = vld [vmem:[%s1089_s29 + $0x8] sm:$0xff]   ;;  %v357_v21 = vld [vmem:[#allocation2 + $0x10] sm:$0xff] }
  0x37   : > { %842 = vmatprep.mubr.bf16.mxu0 %v932_v13  ;;  %846 = vmatprep.mubr.bf16.mxu1 %v933_v14  ;;  %v935_v20 = vld [vmem:[%s1089_s29 + $0x18] sm:$0xff]   ;;  %v361_v22 = vld [vmem:[#allocation2 + $0x30] sm:$0xff]  ;;  %v355_v23 = vld [vmem:[#allocation2] sm:$0xff] }
  0x38   : > { %v359_v24 = vld [vmem:[#allocation2 + $0x20] sm:$0xff]  ;;  %v358_v27 = vld [vmem:[#allocation2 + $0x18] sm:$0xff]  ;;  %v356_v33 = vld [vmem:[#allocation2 + $0x8] sm:$0xff] }
  0x39   : > { %829 = vmatpush3.bf16.msra.mxu0 %v925_v10  ;;  %859 = vmatpush3.bf16.msra.mxu1 %v925_v10  ;;  %v362_v28 = vld [vmem:[#allocation2 + $0x38] sm:$0xff]  ;;  %v360_v34 = vld [vmem:[#allocation2 + $0x28] sm:$0xff]  ;;  %v771_v47 = vld [vmem:[%s1135_s2] ss:$0 sm:$0xff] (!%p770_p13) }
  0x3a   : > { %830 = vmatprep.subr.bf16.mxu0 %v926_v11  ;;  %852 = vmatprep.subr.bf16.mxu1 %v926_v11 }
  0x3d   : > { %831 = vmatpush3.bf16.msra.mxu0 %v926_v11  ;;  %860 = vmatpush3.bf16.msra.mxu1 %v926_v11 }
  0x3e   : > { %832 = vmatprep.subr.bf16.mxu0 %v927_v12  ;;  %853 = vmatprep.subr.bf16.mxu1 %v927_v12 }
  0x41   : > { %833 = vmatpush3.bf16.msra.mxu0 %v927_v12  ;;  %861 = vmatpush3.bf16.msra.mxu1 %v927_v12 }
  0x42   : > { %834 = vmatprep.subr.bf16.mxu0 %v928_v15  ;;  %854 = vmatprep.subr.bf16.mxu1 %v928_v15 }
  0x45   : > { %835 = vmatpush3.bf16.msra.mxu0 %v928_v15  ;;  %862 = vmatpush3.bf16.msra.mxu1 %v928_v15 }
  0x46   : > { %836 = vmatprep.subr.bf16.mxu0 %v929_v16  ;;  %855 = vmatprep.subr.bf16.mxu1 %v929_v16 }
  0x49   : > { %837 = vmatpush3.bf16.msra.mxu0 %v929_v16  ;;  %863 = vmatpush3.bf16.msra.mxu1 %v929_v16 }
  0x4a   : > { %838 = vmatprep.subr.bf16.mxu0 %v930_v17  ;;  %856 = vmatprep.subr.bf16.mxu1 %v930_v17 }
  0x4d   : > { %839 = vmatpush3.bf16.msra.mxu0 %v930_v17  ;;  %864 = vmatpush3.bf16.msra.mxu1 %v930_v17 }
  0x4e   : > { %840 = vmatprep.subr.bf16.mxu0 %v931_v18  ;;  %857 = vmatprep.subr.bf16.mxu1 %v931_v18 }
  0x51   : > { %841 = vmatpush3.bf16.msra.mxu0 %v931_v18  ;;  %865 = vmatpush3.bf16.msra.mxu1 %v931_v18 }
  0x54   : > { %843 = vmatmul.mubr.bf16.vlgmr.msra.gmra.mrb[0].mxu0 %v934_v19  ;;  %847 = vmatmul.mubr.bf16.vlgmr.msra.gmra.mrb[0].mxu1 %v935_v20 }
 0x127   : > { %v844_v25 = vpop.f32.mrb[0].mxu0  ;;  %v848_v26 = vpop.f32.mrb[0].mxu1  ;;  %543 = sbr.rel (%p770_p13) target bundleno = 315 (0x13b), region = 81 }
 0x128   : > { %v526_v29 = vadd.f32 %v844_v25, %v357_v21  ;;  %v530_v30 = vadd.f32 %v848_v26, %v361_v22  ;;  %v493_v31 = vpop.f32.mrb[1].mxu0  ;;  %v509_v32 = vpop.f32.mrb[1].mxu1 }
 0x129   : > { %v524_v35 = vadd.f32 %v493_v31, %v355_v23  ;;  %v528_v36 = vadd.f32 %v509_v32, %v359_v24  ;;  %v845_v37 = vpop.f32.mrb[2].mxu0  ;;  %v849_v38 = vpop.f32.mrb[2].mxu1 }
 0x12a   : > { %534 = vst [vmem:[#allocation2 + $0x10] sm:$0xff] %v526_v29  ;;  %538 = vst [vmem:[#allocation2 + $0x30] sm:$0xff] %v530_v30  ;;  %v527_v39 = vadd.f32 %v845_v37, %v358_v27  ;;  %v531_v40 = vadd.f32 %v849_v38, %v362_v28  ;;  %v496_v41 = vpop.f32.mrb[3].mxu0  ;;  %v512_v42 = vpop.f32.mrb[3].mxu1 }
 0x12b   : > { %532 = vst [vmem:[#allocation2] sm:$0xff] %v524_v35  ;;  %536 = vst [vmem:[#allocation2 + $0x20] sm:$0xff] %v528_v36  ;;  %v525_v43 = vadd.f32 %v496_v41, %v356_v33  ;;  %v529_v44 = vadd.f32 %v512_v42, %v360_v34 }
 0x12c   : > { %535 = vst [vmem:[#allocation2 + $0x18] sm:$0xff] %v527_v39  ;;  %539 = vst [vmem:[#allocation2 + $0x38] sm:$0xff] %v531_v40 }
 0x12d   : > { %533 = vst [vmem:[#allocation2 + $0x8] sm:$0xff] %v525_v43  ;;  %537 = vst [vmem:[#allocation2 + $0x28] sm:$0xff] %v529_v44 }
 0x131   : > { %v546_v50 = vld [vmem:[#allocation2 + $0x10] sm:$0xff] }
 0x132   : > { %v544_v45 = vld [vmem:[#allocation2] sm:$0xff]  ;;  %v561_v53 = vadd.f32 %v771_v47, %v546_v50  ;;  %v550_v57 = vld [vmem:[#allocation2 + $0x30] sm:$0xff] }
 0x133   : > { %v559_v48 = vadd.f32 %v771_v47, %v544_v45  ;;  %v547_v51 = vld [vmem:[#allocation2 + $0x18] sm:$0xff]  ;;  %v548_v52 = vld [vmem:[#allocation2 + $0x20] sm:$0xff]  ;;  %v565_v61 = vadd.f32 %v771_v47, %v550_v57 }
 0x134   : > { %v545_v46 = vld [vmem:[#allocation2 + $0x8] sm:$0xff]  ;;  %v562_v54 = vadd.f32 %v771_v47, %v547_v51  ;;  %v563_v56 = vadd.f32 %v771_v47, %v548_v52  ;;  %v551_v58 = vld [vmem:[#allocation2 + $0x38] sm:$0xff] }
 0x135   : > { %v560_v49 = vadd.f32 %v771_v47, %v545_v46  ;;  %v549_v55 = vld [vmem:[#allocation2 + $0x28] sm:$0xff]  ;;  %v566_v62 = vadd.f32 %v771_v47, %v551_v58 }
 0x136   : > { %v564_v60 = vadd.f32 %v771_v47, %v549_v55  ;;  %v799_v63 = vpack.c.bf16 %v562_v54, %v561_v53 }
 0x137   : > { %v794_v59 = vpack.c.bf16 %v560_v49, %v559_v48  ;;  %v809_v1 = vpack.c.bf16 %v566_v62, %v565_v61 }
 0x138   : > { %v804_v0 = vpack.c.bf16 %v564_v60, %v563_v56  ;;  %811 = vst [vmem:[%s1087_s28 + $0x8] sm:$0xff] %v799_v63  }
 0x139   : > { %795 = vst [vmem:[%s1087_s28] sm:$0xff] %v794_v59   ;;  %813 = vst [vmem:[%s1087_s28 + $0x18] sm:$0xff] %v809_v1  }
 0x13a   : > { %812 = vst [vmem:[%s1087_s28 + $0x10] sm:$0xff] %v804_v0  }
 0x13b PF: > { %s13_s18 = sadd.s32 1, %s990_s18   ;;  %s1137_s12 = smov %s970_s13 }
 0x13c   : > { %p10_p0 = scmp.ge.s32.totalorder %s13_s18, 12   ;;  %s1138_s13 = smov %s1064_s25 }
 0x13d   : > { %s1139_s14 = smov %s982_s16  ;;  %s1140_s15 = smov %s986_s17 }
 0x13e   : > { %s1141_s16 = smov %s1144_s19  ;;  %s1142_s17 = smov %s1148_s20 }
 0x13f   :  { %12 = sbr.rel (!%p10_p0) target bundleno = 4 (0x4), region = 122 }

// kernel: decoder_forward.55
= control target key start
LH: loop header
LB: loop body
LE: loop exit
PB: predicated region body
PF: predicated region fallthrough
CT: control target
= control target key end

     0   :  { %s1159_s15 = smov 0   ;;  %s1161_s16 = smov 0   ;;  %s1288_s0 = inlined_call_operand.vmem [shape: bf16[2,64,640], index: 0, kind: input, shape index: {}]   ;;  %s1289_s1 = inlined_call_operand.vmem [shape: bf16[640,128], index: 1, kind: input, shape index: {}]   ;;  %s1290_s2 = inlined_call_operand.vmem [shape: f32[1,128], index: 2, kind: input, shape index: {}]   ;;  %s1291_s3 = inlined_call_operand.vmem [shape: bf16[2,64,128], index: 3, kind: input, shape index: {}]   ;;  %s1292_s4 = inlined_call_operand.vmem [shape: bf16[2,64,128], index: 4, kind: output, shape index: {}]  }
   0x1   :  { %s1163_s17 = smov 0   ;;  %s1165_s18 = smov 0  }
   0x2   :  { %s1167_s19 = smov 0   ;;  %s1169_s20 = smov 0  }
   0x3   :  { %s1171_s21 = smov 0  }
   0x4 LB: > { %s29_s22 = sadd.s32 1, %s1123_s19  ;;  %s40_s23 = sadd.s32 1, %s1127_s20  ;;  %s1131_s21 = sphi %s1171_s21, %s14_s21   ;;  %s1127_s20 = sphi %s1169_s20, %s1298_s20   ;;  %s1123_s19 = sphi %s1167_s19, %s1297_s19   ;;  %s1119_s18 = sphi %s1165_s18, %s1296_s18   ;;  %s1115_s17 = sphi %s1163_s17, %s1295_s17   ;;  %s1111_s16 = sphi %s1161_s16, %s1294_s16   ;;  %s1107_s15 = sphi %s1159_s15, %s1293_s15  }
   0x5   : > { %p30_p0 = scmp.ge.s32.totalorder %s29_s22, 5  ;;  %p58_p1 = scmp.ne.s32.totalorder %s1111_s16, %s1107_s15 }
   0x6   : > { %p59_p2 = scmp.eq.s32.totalorder %s1131_s21, 0  ;;  %s51_s27 = sadd.s32 1, %s1111_s16 }
   0x7   : > { %s1300_s22 = smov (%p30_p0, %s29_s22), 0  ;;  %s1302_s23 = smov (!%p30_p0, %s40_s23), %s1127_s20 }
   0x8   : > { %p60_p3 = por %p59_p2, %p58_p1  ;;  %p42_p4 = scmp.ge.s32.totalorder %s1302_s23, 2 }
   0x9   : > { %s47_s24 = ssub.s32 %s1123_s19, %s1300_s22  ;;  %p867_p6 = scmp.ge.s32.totalorder %s1131_s21, 10 }
   0xa   : > { %s1304_s23 = smov (%p42_p4, %s1302_s23), 0 }
   0xb   : > { %s44_s25 = ssub.s32 %s1127_s20, %s1304_s23  ;;  %204 = sbr.rel (%p867_p6) target bundleno = 30 (0x1e), region = 20 }
   0xc   : > { %s48_s26 = sor.u32 %s47_s24, %s44_s25 }
   0xd   : > { %p49_p5 = scmp.eq.s32.totalorder %s48_s26, 0 }
   0xf   : > { %s1210_s28 = scalar_select %p49_p5, %s1111_s16, %s51_s27  }
  0x12   : > { %207 = sbr.rel (!%p60_p3) target bundleno = 30 (0x1e), region = 24  ;;  %s209_s29 = sand.u32 (%p60_p3), 1, %s1111_s16  }
  0x13   : > { %s1007_s30 = smul.u32 (%p60_p3), 40, %s1127_s20  ;;  %s868_s5 = sshll.u32 (%p60_p3), %s209_s29, 5 }
  0x14   : > { %s211_s11 = scalar_lea.vmem (%p60_p3), [#allocation3], %s868_s5 }
  0x15   : > { %s216_s6 = sadd.s32 (%p60_p3), %s1123_s19, %s1007_s30 }
  0x16   : > { %s869_s7 = sshll.u32 (%p60_p3), %s216_s6, 2 }
  0x17   : > { %s218_s10 = scalar_lea.vmem (%p60_p3), %s1288_s0, %s869_s7 }
  0x18   : > { %v234_v0 = vld [vmem:[%s218_s10] sm:$0xf] (%p60_p3)  ;;  %v236_v1 = vld [vmem:[%s218_s10 + $0x14] sm:$0xf] (%p60_p3)  ;;  %v238_v2 = vld [vmem:[%s218_s10 + $0x28] sm:$0xf] (%p60_p3) }
  0x19   : > { %235 = vst [vmem:[%s211_s11] sm:$0xf] %v234_v0  ;;  %237 = vst [vmem:[%s211_s11 + $0x4] sm:$0xf] %v236_v1  ;;  %v240_v3 = vld [vmem:[%s218_s10 + $0x3c] sm:$0xf] }
  0x1a   : > { %239 = vst [vmem:[%s211_s11 + $0x8] sm:$0xf] %v238_v2  ;;  %v242_v4 = vld [vmem:[%s218_s10 + $0x50] sm:$0xf]  ;;  %v244_v5 = vld [vmem:[%s218_s10 + $0x64] sm:$0xf] }
  0x1b   : > { %241 = vst [vmem:[%s211_s11 + $0xc] sm:$0xf] %v240_v3  ;;  %243 = vst [vmem:[%s211_s11 + $0x10] sm:$0xf] %v242_v4  ;;  %v246_v6 = vld [vmem:[%s218_s10 + $0x78] sm:$0xf] }
  0x1c   : > { %245 = vst [vmem:[%s211_s11 + $0x14] sm:$0xf] %v244_v5  ;;  %v248_v7 = vld [vmem:[%s218_s10 + $0x8c] sm:$0xf]  ;;  %247 = vst [vmem:[%s211_s11 + $0x18] sm:$0xf] %v246_v6 }
  0x1d   : > { %249 = vst [vmem:[%s211_s11 + $0x1c] sm:$0xf] %v248_v7 }
  0x1e PF: > { %p870_p7 = scmp.ge.s32.totalorder %s1131_s21, 1  ;;  %p315_p8 = scmp.lt.s32.totalorder %s1131_s21, 11 }
  0x20   : > { %p316_p9 = pnand %p870_p7, %p315_p8 }
  0x21   : > { %s322_s12 = sand.u32 (!%p316_p9), 1, %s1107_s15   ;;  %s872_s13 = sshll.u32 (!%p316_p9), %s1115_s17, 4 }
  0x22   : > { %319 = sbr.rel (%p316_p9) target bundleno = 317 (0x13d), region = 73  ;;  %s871_s14 = sshll.u32 (!%p316_p9), %s322_s12, 5 }
  0x23   : > { %p379_p10 = scmp.lt.s32.totalorder (!%p316_p9), %s872_s13, 79  ;;  %p391_p11 = scmp.lt.s32.totalorder (!%p316_p9), %s1119_s18, 1 }
  0x24   : > { %s1240_s9 = scalar_lea.vmem (!%p316_p9), [#allocation3], %s871_s14  ;;  %p878_p12 = scmp.ne.s32.totalorder (!%p316_p9), %s1115_s17, 0 }
  0x29   : > { %s1306_s13 = smov (!%p379_p10, %s872_s13), 79  ;;  %s1308_s18 = smov (!%p391_p11, %s1119_s18), 1 }
  0x2a   : > { %s873_s24 = sshll.u32 %s1306_s13, 2  ;;  %s903_s29 = sshll.u32 %s1308_s18, 5  ;;  %v1133_v8 = vmov (!%p878_p12), 0.0  }
  0x2b   : > { %s1228_s27 = scalar_lea.vmem %s1289_s1, %s873_s24  ;;  %s1233_s6 = scalar_lea.vmem %s1291_s3, %s903_s29  ;;  %421 = vst [vmem:[#allocation2] sm:$0xff] (!%p878_p12), %v1133_v8  ;;  %422 = vst [vmem:[#allocation2 + $0x8] sm:$0xff] (!%p878_p12), %v1133_v8 }
  0x2c   : > { %s1238_s8 = scalar_lea.vmem %s1292_s4, %s903_s29  ;;  %420 = sbr.rel (%p878_p12) target bundleno = 51 (0x33), region = 81  ;;  %423 = vst [vmem:[#allocation2 + $0x10] sm:$0xff] (!%p878_p12), %v1133_v8  ;;  %424 = vst [vmem:[#allocation2 + $0x18] sm:$0xff] (!%p878_p12), %v1133_v8 }
  0x2d   : > { %425 = vst [vmem:[#allocation2 + $0x20] sm:$0xff] (!%p878_p12), %v1133_v8  ;;  %426 = vst [vmem:[#allocation2 + $0x28] sm:$0xff] (!%p878_p12), %v1133_v8 }
  0x2e   : > { %427 = vst [vmem:[#allocation2 + $0x30] sm:$0xff] (!%p878_p12), %v1133_v8  ;;  %428 = vst [vmem:[#allocation2 + $0x38] sm:$0xff] (!%p878_p12), %v1133_v8 }
  0x33 PF: > { %v1065_v9 = vld [vmem:[%s1228_s27] sm:$0xff]   ;;  %v1066_v10 = vld [vmem:[%s1228_s27 + $0x8] sm:$0xff]   ;;  %v1067_v11 = vld [vmem:[%s1228_s27 + $0x10] sm:$0xff]   ;;  %p891_p13 = scmp.ne.s32.totalorder %s1115_s17, 4 }
  0x34   : > { %967 = vmatprep.subr.bf16.mxu0 %v1065_v9  ;;  %991 = vmatprep.subr.bf16.mxu1 %v1065_v9  ;;  %v1068_v12 = vld [vmem:[%s1228_s27 + $0x18] sm:$0xff]   ;;  %v1073_v13 = vld [vmem:[%s1240_s9] sm:$0xff]   ;;  %v1074_v14 = vld [vmem:[%s1240_s9 + $0x10] sm:$0xff]  }
  0x35   : > { %968 = vmatpush3.bf16.msra.mxu0 %v1065_v9  ;;  %999 = vmatpush3.bf16.msra.mxu1 %v1065_v9  ;;  %v1069_v15 = vld [vmem:[%s1228_s27 + $0x20] sm:$0xff]   ;;  %v1070_v16 = vld [vmem:[%s1228_s27 + $0x28] sm:$0xff]   ;;  %v1071_v17 = vld [vmem:[%s1228_s27 + $0x30] sm:$0xff]  }
  0x36   : > { %969 = vmatprep.subr.bf16.mxu0 %v1066_v10  ;;  %992 = vmatprep.subr.bf16.mxu1 %v1066_v10  ;;  %v1072_v18 = vld [vmem:[%s1228_s27 + $0x38] sm:$0xff]   ;;  %v1075_v19 = vld [vmem:[%s1240_s9 + $0x8] sm:$0xff]   ;;  %v431_v21 = vld [vmem:[#allocation2 + $0x10] sm:$0xff] }
  0x37   : > { %983 = vmatprep.mubr.bf16.mxu0 %v1073_v13  ;;  %987 = vmatprep.mubr.bf16.mxu1 %v1074_v14  ;;  %v1076_v20 = vld [vmem:[%s1240_s9 + $0x18] sm:$0xff]   ;;  %v435_v22 = vld [vmem:[#allocation2 + $0x30] sm:$0xff]  ;;  %v429_v23 = vld [vmem:[#allocation2] sm:$0xff] }
  0x38   : > { %v433_v24 = vld [vmem:[#allocation2 + $0x20] sm:$0xff]  ;;  %v432_v27 = vld [vmem:[#allocation2 + $0x18] sm:$0xff]  ;;  %v430_v33 = vld [vmem:[#allocation2 + $0x8] sm:$0xff] }
  0x39   : > { %970 = vmatpush3.bf16.msra.mxu0 %v1066_v10  ;;  %1000 = vmatpush3.bf16.msra.mxu1 %v1066_v10  ;;  %v436_v28 = vld [vmem:[#allocation2 + $0x38] sm:$0xff]  ;;  %v434_v34 = vld [vmem:[#allocation2 + $0x28] sm:$0xff]  ;;  %v892_v47 = vld [vmem:[%s1290_s2] ss:$0 sm:$0xff] (!%p891_p13) }
  0x3a   : > { %971 = vmatprep.subr.bf16.mxu0 %v1067_v11  ;;  %993 = vmatprep.subr.bf16.mxu1 %v1067_v11  ;;  %v914_v50 = vld [vmem:[%s1233_s6] sm:$0xff] (!%p891_p13)   ;;  %v949_v57 = vld [vmem:[%s1233_s6 + $0x8] sm:$0xff] (!%p891_p13)   ;;  %v950_v0 = vld [vmem:[%s1233_s6 + $0x10] sm:$0xff] (!%p891_p13)  }
  0x3b   : > { %v915_v53 = vunpack.c.l.bf16 (!%p891_p13), %v914_v50  ;;  %v916_v54 = vunpack.c.h.bf16 (!%p891_p13), %v914_v50  ;;  %v919_v60 = vunpack.c.l.bf16 (!%p891_p13), %v949_v57  ;;  %v920_v61 = vunpack.c.h.bf16 (!%p891_p13), %v949_v57  ;;  %v951_v7 = vld [vmem:[%s1233_s6 + $0x18] sm:$0xff] (!%p891_p13)  }
  0x3c   : > { %v923_v5 = vunpack.c.l.bf16 (!%p891_p13), %v950_v0  ;;  %v924_v6 = vunpack.c.h.bf16 (!%p891_p13), %v950_v0 }
  0x3d   : > { %972 = vmatpush3.bf16.msra.mxu0 %v1067_v11  ;;  %1001 = vmatpush3.bf16.msra.mxu1 %v1067_v11 }
  0x3e   : > { %973 = vmatprep.subr.bf16.mxu0 %v1068_v12  ;;  %994 = vmatprep.subr.bf16.mxu1 %v1068_v12 }
  0x41   : > { %974 = vmatpush3.bf16.msra.mxu0 %v1068_v12  ;;  %1002 = vmatpush3.bf16.msra.mxu1 %v1068_v12 }
  0x42   : > { %975 = vmatprep.subr.bf16.mxu0 %v1069_v15  ;;  %995 = vmatprep.subr.bf16.mxu1 %v1069_v15 }
  0x45   : > { %976 = vmatpush3.bf16.msra.mxu0 %v1069_v15  ;;  %1003 = vmatpush3.bf16.msra.mxu1 %v1069_v15  ;;  %v927_v15 = vunpack.c.l.bf16 (!%p891_p13), %v951_v7 }
  0x46   : > { %977 = vmatprep.subr.bf16.mxu0 %v1070_v16  ;;  %996 = vmatprep.subr.bf16.mxu1 %v1070_v16 }
  0x49   : > { %978 = vmatpush3.bf16.msra.mxu0 %v1070_v16  ;;  %1004 = vmatpush3.bf16.msra.mxu1 %v1070_v16 }
  0x4a   : > { %979 = vmatprep.subr.bf16.mxu0 %v1071_v17  ;;  %997 = vmatprep.subr.bf16.mxu1 %v1071_v17 }
  0x4d   : > { %980 = vmatpush3.bf16.msra.mxu0 %v1071_v17  ;;  %1005 = vmatpush3.bf16.msra.mxu1 %v1071_v17  ;;  %v928_v17 = vunpack.c.h.bf16 (!%p891_p13), %v951_v7 }
  0x4e   : > { %981 = vmatprep.subr.bf16.mxu0 %v1072_v18  ;;  %998 = vmatprep.subr.bf16.mxu1 %v1072_v18 }
  0x51   : > { %982 = vmatpush3.bf16.msra.mxu0 %v1072_v18  ;;  %1006 = vmatpush3.bf16.msra.mxu1 %v1072_v18 }
  0x54   : > { %984 = vmatmul.mubr.bf16.vlgmr.msra.gmra.mrb[0].mxu0 %v1075_v19  ;;  %988 = vmatmul.mubr.bf16.vlgmr.msra.gmra.mrb[0].mxu1 %v1076_v20 }
 0x127   : > { %v985_v25 = vpop.f32.mrb[0].mxu0  ;;  %v989_v26 = vpop.f32.mrb[0].mxu1  ;;  %617 = sbr.rel (%p891_p13) target bundleno = 317 (0x13d), region = 85 }
 0x128   : > { %v600_v29 = vadd.f32 %v985_v25, %v431_v21  ;;  %v604_v30 = vadd.f32 %v989_v26, %v435_v22  ;;  %v567_v31 = vpop.f32.mrb[1].mxu0  ;;  %v583_v32 = vpop.f32.mrb[1].mxu1 }
 0x129   : > { %v598_v35 = vadd.f32 %v567_v31, %v429_v23  ;;  %v602_v36 = vadd.f32 %v583_v32, %v433_v24  ;;  %v986_v37 = vpop.f32.mrb[2].mxu0  ;;  %v990_v38 = vpop.f32.mrb[2].mxu1 }
 0x12a   : > { %608 = vst [vmem:[#allocation2 + $0x10] sm:$0xff] %v600_v29  ;;  %612 = vst [vmem:[#allocation2 + $0x30] sm:$0xff] %v604_v30  ;;  %v601_v39 = vadd.f32 %v986_v37, %v432_v27  ;;  %v605_v40 = vadd.f32 %v990_v38, %v436_v28  ;;  %v570_v41 = vpop.f32.mrb[3].mxu0  ;;  %v586_v42 = vpop.f32.mrb[3].mxu1 }
 0x12b   : > { %606 = vst [vmem:[#allocation2] sm:$0xff] %v598_v35  ;;  %610 = vst [vmem:[#allocation2 + $0x20] sm:$0xff] %v602_v36  ;;  %v599_v43 = vadd.f32 %v570_v41, %v430_v33  ;;  %v603_v44 = vadd.f32 %v586_v42, %v434_v34 }
 0x12c   : > { %609 = vst [vmem:[#allocation2 + $0x18] sm:$0xff] %v601_v39  ;;  %613 = vst [vmem:[#allocation2 + $0x38] sm:$0xff] %v605_v40 }
 0x12d   : > { %607 = vst [vmem:[#allocation2 + $0x8] sm:$0xff] %v599_v43  ;;  %611 = vst [vmem:[#allocation2 + $0x28] sm:$0xff] %v603_v44 }
 0x131   : > { %v620_v51 = vld [vmem:[#allocation2 + $0x10] sm:$0xff] }
 0x132   : > { %v618_v45 = vld [vmem:[#allocation2] sm:$0xff]  ;;  %v635_v55 = vadd.f32 %v892_v47, %v620_v51  ;;  %v624_v1 = vld [vmem:[#allocation2 + $0x30] sm:$0xff] }
 0x133   : > { %v633_v48 = vadd.f32 %v892_v47, %v618_v45  ;;  %v621_v52 = vld [vmem:[#allocation2 + $0x18] sm:$0xff]  ;;  %v622_v58 = vld [vmem:[#allocation2 + $0x20] sm:$0xff]  ;;  %v639_v10 = vadd.f32 %v892_v47, %v624_v1 }
 0x134   : > { %v619_v46 = vld [vmem:[#allocation2 + $0x8] sm:$0xff]  ;;  %v636_v56 = vadd.f32 %v892_v47, %v621_v52  ;;  %v637_v62 = vadd.f32 %v892_v47, %v622_v58  ;;  %v625_v2 = vld [vmem:[#allocation2 + $0x38] sm:$0xff]  ;;  %v659_v8 = vadd.f32 %v919_v60, %v635_v55 }
 0x135   : > { %v634_v49 = vadd.f32 %v892_v47, %v619_v46  ;;  %v623_v59 = vld [vmem:[#allocation2 + $0x28] sm:$0xff]  ;;  %v657_v3 = vadd.f32 %v915_v53, %v633_v48  ;;  %v640_v11 = vadd.f32 %v892_v47, %v625_v2  ;;  %v663_v19 = vadd.f32 %v927_v15, %v639_v10 }
 0x136   : > { %v638_v63 = vadd.f32 %v892_v47, %v623_v59  ;;  %v660_v9 = vadd.f32 %v920_v61, %v636_v56  ;;  %v661_v13 = vadd.f32 %v923_v5, %v637_v62 }
 0x137   : > { %v658_v4 = vadd.f32 %v916_v54, %v634_v49  ;;  %v664_v20 = vadd.f32 %v928_v17, %v640_v11 }
 0x138   : > { %v662_v14 = vadd.f32 %v924_v6, %v638_v63  ;;  %v937_v16 = vpack.c.bf16 %v660_v9, %v659_v8 }
 0x139   : > { %v932_v12 = vpack.c.bf16 %v658_v4, %v657_v3  ;;  %v947_v21 = vpack.c.bf16 %v664_v20, %v663_v19 }
 0x13a   : > { %v942_v18 = vpack.c.bf16 %v662_v14, %v661_v13  ;;  %952 = vst [vmem:[%s1238_s8 + $0x8] sm:$0xff] %v937_v16  }
 0x13b   : > { %933 = vst [vmem:[%s1238_s8] sm:$0xff] %v932_v12   ;;  %954 = vst [vmem:[%s1238_s8 + $0x18] sm:$0xff] %v947_v21  }
 0x13c   : > { %953 = vst [vmem:[%s1238_s8 + $0x10] sm:$0xff] %v942_v18  }
 0x13d PF: > { %s14_s21 = sadd.s32 1, %s1131_s21   ;;  %s1293_s15 = smov %s1111_s16 }
 0x13e   : > { %p11_p0 = scmp.ge.s32.totalorder %s14_s21, 12   ;;  %s1294_s16 = smov %s1210_s28 }
 0x13f   : > { %s1295_s17 = smov %s1123_s19  ;;  %s1296_s18 = smov %s1127_s20 }
 0x140   : > { %s1297_s19 = smov %s1300_s22  ;;  %s1298_s20 = smov %s1304_s23 }
 0x141   :  { %13 = sbr.rel (!%p11_p0) target bundleno = 4 (0x4), region = 129 }

// kernel: decoder_forward.57
= control target key start
LH: loop header
LB: loop body
LE: loop exit
PB: predicated region body
PF: predicated region fallthrough
CT: control target
= control target key end

     0   :  { %s1200_s21 = smov 0   ;;  %s1202_s22 = smov 0   ;;  %s1298_s0 = inlined_call_operand.vmem [shape: bf16[2,64,64], index: 0, kind: input, shape index: {}]   ;;  %s1299_s1 = inlined_call_operand.vmem [shape: f32[2,1,64], index: 1, kind: input, shape index: {}]   ;;  %s1300_s2 = inlined_call_operand.vmem [shape: f32[2,1,64], index: 2, kind: input, shape index: {}]   ;;  %s1301_s3 = inlined_call_operand.vmem [shape: f32[64,32], index: 3, kind: input, shape index: {}]   ;;  %s1302_s4 = inlined_call_operand.vmem [shape: f32[1,64], index: 4, kind: input, shape index: {}]   ;;  %s1303_s5 = inlined_call_operand.vmem [shape: f32[1,64], index: 5, kind: input, shape index: {}]   ;;  %s1304_s6 = inlined_call_operand.vmem [shape: bf16[2,64,64], index: 6, kind: output, shape index: {}]  }
   0x1   :  { %s1204_s23 = smov 0  }
   0x2 LB: > { %s28_s24 = sadd.s32 1, %s1156_s22  ;;  %p875_p0 = scmp.ge.s32.totalorder %s1160_s23, 1  ;;  %s1160_s23 = sphi %s1204_s23, %s16_s23   ;;  %s1156_s22 = sphi %s1202_s22, %s1306_s22   ;;  %s1152_s21 = sphi %s1200_s21, %s1305_s21  }
   0x3   : > { %p30_p1 = scmp.ge.s32.totalorder %s28_s24, 2  ;;  %p249_p2 = scmp.lt.s32.totalorder %s1160_s23, 3 }
   0x5   : > { %s1308_s24 = smov (%p30_p1, %s28_s24), 0  ;;  %p250_p3 = pnand %p875_p0, %p249_p2 }
   0x6   : > { %v335_v0 = vld [vmem:[%s1301_s3] sm:$0xff] (!%p250_p3)  ;;  %v336_v1 = vld [vmem:[%s1301_s3 + $0x8] sm:$0xff] (!%p250_p3)  ;;  %v337_v2 = vld [vmem:[%s1301_s3 + $0x10] sm:$0xff] (!%p250_p3)  ;;  %v1162_v3 = vmov (!%p250_p3), 0.0|0.0   ;;  %vm1163_vm0 = vmmov (!%p250_p3), 0   ;;  %v1164_v6 = vmov (!%p250_p3), 0.0   ;;  %v671_v27 = vlaneseq (!%p250_p3) }
   0x7   : > { %253 = sbr.rel (%p250_p3) target bundleno = 483 (0x1e3), region = 44  ;;  %1053 = vmatprep.subr.bf16.mxu0 (!%p250_p3), %v1162_v3  ;;  %v1054_v4 = vpack.c.bf16 (!%p250_p3), %v336_v1, %v335_v0  ;;  %1065 = vmatprep.subr.bf16.mxu1 (!%p250_p3), %v1162_v3  ;;  %v338_v5 = vld [vmem:[%s1301_s3 + $0x18] sm:$0xff] (!%p250_p3)  ;;  %v339_v8 = vld [vmem:[%s1301_s3 + $0x20] sm:$0xff] (!%p250_p3)  ;;  %v340_v9 = vld [vmem:[%s1301_s3 + $0x28] sm:$0xff] (!%p250_p3)  ;;  %p294_p4 = scmp.lt.s32.totalorder (!%p250_p3), %s1152_s21, 1  ;;  %vm344_vm1 = vcmask (!%p250_p3), 523264  }
   0x8   : > { %993 = vmatprep.mubr.msk.f32.mxu0 (!%p250_p3), %vm1163_vm0, %v1164_v6  ;;  %1012 = vmatprep.mubr.msk.f32.mxu1 (!%p250_p3), %vm1163_vm0, %v1164_v6  ;;  %v1057_v7 = vpack.c.bf16 (!%p250_p3), %v338_v5, %v337_v2  ;;  %v1060_v10 = vpack.c.bf16 (!%p250_p3), %v340_v9, %v339_v8  ;;  %v341_v11 = vld [vmem:[%s1301_s3 + $0x30] sm:$0xff] (!%p250_p3)  ;;  %v342_v12 = vld [vmem:[%s1301_s3 + $0x38] sm:$0xff] (!%p250_p3)  ;;  %vm500_vm2 = vcmask (!%p250_p3), 261120   ;;  %v672_v28 = vshrl.u32 (!%p250_p3), %v671_v27, 7  ;;  %v900_v56 = vld [vmem:[%s1302_s4] ss:$0 sm:$0xff] (!%p250_p3) }
   0x9   : > { %1055 = vmatpush3.bf16.msra.mxu0 (!%p250_p3), %v1054_v4  ;;  %1067 = vmatpush3.bf16.msra.mxu1 (!%p250_p3), %v1054_v4  ;;  %v1063_v13 = vpack.c.bf16 (!%p250_p3), %v342_v12, %v341_v11  ;;  %vm1079_vm3 = vmpackc.low (!%p250_p3), %vm500_vm2, %vm500_vm2  ;;  %vm757_vm4 = vcmask (!%p250_p3), 519168   ;;  %v901_v1 = vld [vmem:[%s1303_s5] ss:$0 sm:$0xff] (!%p250_p3) }
   0xa   : > { %1056 = vmatprep.subr.bf16.mxu0 (!%p250_p3), %v1162_v3  ;;  %1068 = vmatprep.subr.bf16.mxu1 (!%p250_p3), %v1162_v3  ;;  %v673_v33 = vsub.s32 (!%p250_p3), 0, %v672_v28 }
   0xd   : > { %1058 = vmatpush3.bf16.msra.mxu0 (!%p250_p3), %v1057_v7  ;;  %1070 = vmatpush3.bf16.msra.mxu1 (!%p250_p3), %v1057_v7 }
   0xe   : > { %1059 = vmatprep.subr.bf16.mxu0 %v1162_v3  ;;  %1071 = vmatprep.subr.bf16.mxu1 %v1162_v3  ;;  %s1310_s21 = smov (!%p294_p4, %s1152_s21), 1 }
   0xf   : > { %s305_s19 = scalar_lea.vmem %s1299_s1, %s1310_s21  ;;  %s308_s26 = scalar_lea.vmem %s1300_s2, %s1310_s21 }
  0x10   : > { %v343_v14 = vld [vmem:[%s305_s19] sm:$0x1]  ;;  %s912_s27 = sshll.u32 %s1310_s21, 5 }
  0x11   : > { %1061 = vmatpush3.bf16.msra.mxu0 %v1060_v10  ;;  %1073 = vmatpush3.bf16.msra.mxu1 %v1060_v10  ;;  %v418_v15 = vld [vmem:[%s308_s26] sm:$0x1]  ;;  %s301_s30 = scalar_lea.vmem %s1298_s0, %s912_s27  ;;  %s317_s13 = scalar_lea.vmem %s1304_s6, %s912_s27 }
  0x12   : > { %1062 = vmatprep.subr.bf16.mxu0 %v1162_v3  ;;  %1074 = vmatprep.subr.bf16.mxu1 %v1162_v3  ;;  %v923_v29 = vld [vmem:[%s301_s30] sm:$0xff]   ;;  %v938_v30 = vld [vmem:[%s301_s30 + $0x8] sm:$0xff]   ;;  %v939_v31 = vld [vmem:[%s301_s30 + $0x10] sm:$0xff]  }
  0x13   : > { %v940_v32 = vld [vmem:[%s301_s30 + $0x18] sm:$0xff]   ;;  %v924_v34 = vunpack.c.l.bf16 %v923_v29  ;;  %v925_v35 = vunpack.c.h.bf16 %v923_v29  ;;  %v928_v36 = vunpack.c.l.bf16 %v938_v30  ;;  %v929_v37 = vunpack.c.h.bf16 %v938_v30 }
  0x14   : > { %v932_v38 = vunpack.c.l.bf16 %v939_v31  ;;  %v933_v39 = vunpack.c.h.bf16 %v939_v31  ;;  %v936_v40 = vunpack.c.l.bf16 %v940_v32  ;;  %v937_v41 = vunpack.c.h.bf16 %v940_v32 }
  0x15   : > { %1064 = vmatpush3.bf16.msra.mxu0 %v1063_v13  ;;  %1076 = vmatpush3.bf16.msra.mxu1 %v1063_v13 }
  0x16   : > { %1077 = vmatprep.subr.bf16.mxu0 %v1162_v3  ;;  %1093 = vmatprep.subr.bf16.mxu1 %v1162_v3 }
  0x18   : > { %994 = vmatmul.mubr.msk.f32.vlgmr.msra.gmra.mrb[0].mxu0 %vm344_vm1, %v343_v14  ;;  %1013 = vmatmul.mubr.msk.f32.vlgmr.msra.gmra.mrb[0].mxu1 %vm344_vm1, %v418_v15 }
  0x19   : > { %1031 = vmatprep.mubr.msk.f32.mxu0 %vm1163_vm0, %v1164_v6  ;;  %1050 = vmatprep.mubr.msk.f32.mxu1 %vm1163_vm0, %v1164_v6 }
  0x1e   : > { %1080 = vmatpush3.bf16.xpose.msk.msra.mxu0 %vm1079_vm3, %v1054_v4  ;;  %1096 = vmatpush3.bf16.xpose.msk.msra.mxu1 %vm1079_vm3, %v1054_v4 }
  0x1f   : > { %1081 = vmatprep.subr.bf16.mxu0 %v1162_v3  ;;  %1097 = vmatprep.subr.bf16.mxu1 %v1162_v3 }
  0x26   : > { %1084 = vmatpush3.bf16.xpose.msk.msra.mxu0 %vm1079_vm3, %v1057_v7  ;;  %1100 = vmatpush3.bf16.xpose.msk.msra.mxu1 %vm1079_vm3, %v1057_v7 }
  0x27   : > { %1085 = vmatprep.subr.bf16.mxu0 %v1162_v3  ;;  %1101 = vmatprep.subr.bf16.mxu1 %v1162_v3 }
  0x2e   : > { %1088 = vmatpush3.bf16.xpose.msk.msra.mxu0 %vm1079_vm3, %v1060_v10  ;;  %1104 = vmatpush3.bf16.xpose.msk.msra.mxu1 %vm1079_vm3, %v1060_v10 }
  0x2f   : > { %1089 = vmatprep.subr.bf16.mxu0 %v1162_v3  ;;  %1105 = vmatprep.subr.bf16.mxu1 %v1162_v3 }
  0x36   : > { %1092 = vmatpush3.bf16.xpose.msk.msra.mxu0 %vm1079_vm3, %v1063_v13  ;;  %1108 = vmatpush3.bf16.xpose.msk.msra.mxu1 %vm1079_vm3, %v1063_v13 }
  0xeb   : > { %v414_v16 = vpop.f32.mrb[0].mxu0  ;;  %v488_v17 = vpop.f32.mrb[0].mxu1 }
  0xec   : > { %v493_v18 = vmul.f32 0.0078125, %v414_v16  ;;  %v995_v19 = vpop.f32.mrb[1].mxu0  ;;  %v494_v20 = vmul.f32 0.0078125, %v488_v17  ;;  %v1014_v21 = vpop.f32.mrb[1].mxu1 }
  0xee   : > { %v495_v22 = vmul.f32 %v493_v18, %v493_v18  ;;  %1032 = vmatmul.mubr.msk.f32.vlgmr.msra.gmra.mrb[2].mxu0 %vm500_vm2, %v493_v18 }
  0xf0   : > { %v496_v23 = vsub.f32 %v494_v20, %v495_v22 }
  0xf2   : > { %v497_v24 = vmax.f32 %v496_v23, 0.0 }
  0xf4   : > { %v498_v25 = vadd.f32 1e-06, %v497_v24 }
  0xf6   : > { %1136 = vrsqrt.f32 %v498_v25 }
 0x100   : > { %v1137_v26 = vpop.eup %1136 }
 0x101   : > { %1051 = vmatmul.mubr.msk.f32.vlgmr.msra.gmra.mrb[2].mxu1 %vm500_vm2, %v1137_v26 }
 0x1c1   : > { %v594_v42 = vpop.f32.mrb[2].mxu0 }
 0x1c2   : > { %v674_v43 = vrot.slane %v594_v42, %v673_v33  ;;  %v1033_v44 = vpop.f32.mrb[3].mxu0 }
 0x1c4   : > { %v675_v45 = vsub.f32 %v924_v34, %v674_v43  ;;  %v676_v46 = vsub.f32 %v925_v35, %v674_v43  ;;  %v677_v47 = vsub.f32 %v928_v36, %v674_v43  ;;  %v678_v48 = vsub.f32 %v929_v37, %v674_v43 }
 0x1c5   : > { %v679_v49 = vsub.f32 %v932_v38, %v674_v43  ;;  %v680_v50 = vsub.f32 %v933_v39, %v674_v43  ;;  %v681_v51 = vsub.f32 %v936_v40, %v674_v43  ;;  %v682_v52 = vsub.f32 %v937_v41, %v674_v43 }
 0x1d4   : > { %v667_v53 = vpop.f32.mrb[2].mxu1 }
 0x1d5   : > { %v686_v54 = vrot.slane %v667_v53, %v673_v33  ;;  %v1052_v55 = vpop.f32.mrb[3].mxu1 }
 0x1d7   : > { %v687_v57 = vmul.f32 %v686_v54, %v675_v45  ;;  %v688_v58 = vmul.f32 %v686_v54, %v676_v46  ;;  %v689_v59 = vmul.f32 %v686_v54, %v677_v47  ;;  %v690_v60 = vmul.f32 %v686_v54, %v678_v48 }
 0x1d8   : > { %v691_v61 = vmul.f32 %v686_v54, %v679_v49  ;;  %v692_v62 = vmul.f32 %v686_v54, %v680_v50  ;;  %v693_v63 = vmul.f32 %v686_v54, %v681_v51  ;;  %v694_v0 = vmul.f32 %v686_v54, %v682_v52 }
 0x1d9   : > { %v702_v2 = vmul.f32 %v900_v56, %v687_v57  ;;  %v703_v3 = vmul.f32 %v900_v56, %v688_v58  ;;  %v704_v4 = vmul.f32 %v900_v56, %v689_v59  ;;  %v705_v5 = vmul.f32 %v900_v56, %v690_v60 }
 0x1da   : > { %v706_v6 = vmul.f32 %v900_v56, %v691_v61  ;;  %v707_v7 = vmul.f32 %v900_v56, %v692_v62  ;;  %v708_v8 = vmul.f32 %v900_v56, %v693_v63  ;;  %v709_v9 = vmul.f32 %v900_v56, %v694_v0 }
 0x1db   : > { %v717_v10 = vadd.f32 %v901_v1, %v702_v2  ;;  %v718_v11 = vadd.f32 %v901_v1, %v703_v3  ;;  %v719_v12 = vadd.f32 %v901_v1, %v704_v4  ;;  %v720_v13 = vadd.f32 %v901_v1, %v705_v5 }
 0x1dc   : > { %v721_v14 = vadd.f32 %v901_v1, %v706_v6  ;;  %v722_v15 = vadd.f32 %v901_v1, %v707_v7  ;;  %v723_v16 = vadd.f32 %v901_v1, %v708_v8  ;;  %v724_v17 = vadd.f32 %v901_v1, %v709_v9 }
 0x1dd   : > { %v914_v18 = vpack.c.bf16 %v717_v10, %v717_v10  ;;  %v915_v19 = vpack.c.bf16 %v718_v11, %v718_v11  ;;  %v916_v20 = vpack.c.bf16 %v719_v12, %v719_v12  ;;  %v917_v21 = vpack.c.bf16 %v720_v13, %v720_v13 }
 0x1de   : > { %v918_v22 = vpack.c.bf16 %v721_v14, %v721_v14  ;;  %v919_v23 = vpack.c.bf16 %v722_v15, %v722_v15  ;;  %v920_v24 = vpack.c.bf16 %v723_v16, %v723_v16  ;;  %v921_v25 = vpack.c.bf16 %v724_v17, %v724_v17 }
 0x1df   : > { %758 = vst.msk [vmem:[%s317_s13] sm:$0xf] %vm757_vm4, %v914_v18  ;;  %759 = vst.msk [vmem:[%s317_s13 + $0x4] sm:$0xf] %vm757_vm4, %v915_v19 }
 0x1e0   : > { %760 = vst.msk [vmem:[%s317_s13 + $0x8] sm:$0xf] %vm757_vm4, %v916_v20  ;;  %761 = vst.msk [vmem:[%s317_s13 + $0xc] sm:$0xf] %vm757_vm4, %v917_v21 }
 0x1e1   : > { %762 = vst.msk [vmem:[%s317_s13 + $0x10] sm:$0xf] %vm757_vm4, %v918_v22  ;;  %763 = vst.msk [vmem:[%s317_s13 + $0x14] sm:$0xf] %vm757_vm4, %v919_v23 }
 0x1e2   : > { %764 = vst.msk [vmem:[%s317_s13 + $0x18] sm:$0xf] %vm757_vm4, %v920_v24  ;;  %765 = vst.msk [vmem:[%s317_s13 + $0x1c] sm:$0xf] %vm757_vm4, %v921_v25 }
 0x1e3 PF: > { %s16_s23 = sadd.s32 1, %s1160_s23   ;;  %s1305_s21 = smov %s1156_s22 }
 0x1e4   : > { %p13_p5 = scmp.ge.s32.totalorder %s16_s23, 4   ;;  %s1306_s22 = smov %s1308_s24 }
 0x1e6   :  { %15 = sbr.rel (!%p13_p5) target bundleno = 2 (0x2), region = 80 }

// kernel: decoder_forward.62
= control target key start
LH: loop header
LB: loop body
LE: loop exit
PB: predicated region body
PF: predicated region fallthrough
CT: control target
= control target key end

     0   :  { %s1035_s15 = smov 0   ;;  %s1037_s16 = smov 0   ;;  %s1109_s0 = inlined_call_operand.vmem [shape: bf16[2,64,128], index: 0, kind: input, shape index: {}]   ;;  %s1110_s1 = inlined_call_operand.vmem [shape: bf16[128,128], index: 1, kind: input, shape index: {}]   ;;  %s1111_s2 = inlined_call_operand.vmem [shape: f32[1,128], index: 2, kind: input, shape index: {}]   ;;  %s1112_s3 = inlined_call_operand.vmem [shape: bf16[2,64,128], index: 3, kind: input, shape index: {}]   ;;  %s1113_s4 = inlined_call_operand.vmem [shape: bf16[2,64,128], index: 4, kind: output, shape index: {}]  }
   0x1   :  { %s1039_s17 = smov 0  }
   0x2 LB: > { %s40_s18 = sadd.s32 1, %s1004_s16  ;;  %p815_p0 = scmp.ge.s32.totalorder %s1008_s17, 1  ;;  %s1008_s17 = sphi %s1039_s17, %s14_s17   ;;  %s1004_s16 = sphi %s1037_s16, %s1115_s16   ;;  %s1000_s15 = sphi %s1035_s15, %s1114_s15  }
   0x3   : > { %p42_p1 = scmp.ge.s32.totalorder %s40_s18, 2  ;;  %p250_p2 = scmp.lt.s32.totalorder %s1008_s17, 3 }
   0x5   : > { %s1117_s18 = smov (%p42_p1, %s40_s18), 0  ;;  %p251_p3 = pnand %p815_p0, %p250_p2 }
   0x6   : > { %v974_v0 = vld [vmem:[%s1110_s1] sm:$0xff] (!%p251_p3)   ;;  %p314_p4 = scmp.lt.s32.totalorder (!%p251_p3), %s1000_s15, 1  ;;  %v975_v1 = vld [vmem:[%s1110_s1 + $0x8] sm:$0xff] (!%p251_p3)   ;;  %v976_v2 = vld [vmem:[%s1110_s1 + $0x10] sm:$0xff] (!%p251_p3)  }
   0x7   : > { %254 = sbr.rel (%p251_p3) target bundleno = 261 (0x105), region = 36  ;;  %910 = vmatprep.subr.bf16.mxu0 (!%p251_p3), %v974_v0  ;;  %934 = vmatprep.subr.bf16.mxu1 (!%p251_p3), %v974_v0  ;;  %v977_v3 = vld [vmem:[%s1110_s1 + $0x18] sm:$0xff] (!%p251_p3)   ;;  %v978_v6 = vld [vmem:[%s1110_s1 + $0x20] sm:$0xff] (!%p251_p3)   ;;  %v979_v7 = vld [vmem:[%s1110_s1 + $0x28] sm:$0xff] (!%p251_p3)  }
   0x8   : > { %911 = vmatpush3.bf16.msra.mxu0 (!%p251_p3), %v974_v0  ;;  %942 = vmatpush3.bf16.msra.mxu1 (!%p251_p3), %v974_v0  ;;  %v980_v8 = vld [vmem:[%s1110_s1 + $0x30] sm:$0xff] (!%p251_p3)   ;;  %v981_v9 = vld [vmem:[%s1110_s1 + $0x38] sm:$0xff] (!%p251_p3)   ;;  %v834_v16 = vld [vmem:[%s1111_s2] ss:$0 sm:$0xff] (!%p251_p3) }
   0x9   : > { %912 = vmatprep.subr.bf16.mxu0 (!%p251_p3), %v975_v1  ;;  %935 = vmatprep.subr.bf16.mxu1 (!%p251_p3), %v975_v1 }
   0xc   : > { %913 = vmatpush3.bf16.msra.mxu0 (!%p251_p3), %v975_v1  ;;  %943 = vmatpush3.bf16.msra.mxu1 (!%p251_p3), %v975_v1 }
   0xd   : > { %914 = vmatprep.subr.bf16.mxu0 (!%p251_p3), %v976_v2  ;;  %936 = vmatprep.subr.bf16.mxu1 (!%p251_p3), %v976_v2 }
   0xe   : > { %s1119_s15 = smov (!%p314_p4, %s1000_s15), 1 }
   0xf   : > { %s1062_s25 = sshll.u32 %s1119_s15, 5 }
  0x10   : > { %s1068_s28 = scalar_lea.vmem %s1109_s0, %s1062_s25  ;;  %915 = vmatpush3.bf16.msra.mxu0 %v976_v2  ;;  %944 = vmatpush3.bf16.msra.mxu1 %v976_v2  ;;  %s349_s15 = scalar_lea.vmem %s1112_s3, %s1062_s25 }
  0x11   : > { %v982_v4 = vld [vmem:[%s1068_s28] sm:$0xff]   ;;  %v983_v5 = vld [vmem:[%s1068_s28 + $0x10] sm:$0xff]   ;;  %916 = vmatprep.subr.bf16.mxu0 %v977_v3  ;;  %937 = vmatprep.subr.bf16.mxu1 %v977_v3  ;;  %v984_v10 = vld [vmem:[%s1068_s28 + $0x8] sm:$0xff]   ;;  %s362_s23 = scalar_lea.vmem %s1113_s4, %s1062_s25 }
  0x12   : > { %926 = vmatprep.mubr.bf16.mxu0 %v982_v4  ;;  %930 = vmatprep.mubr.bf16.mxu1 %v983_v5  ;;  %v985_v11 = vld [vmem:[%s1068_s28 + $0x18] sm:$0xff]   ;;  %v892_v12 = vld [vmem:[%s349_s15 + $0x8] sm:$0xff]   ;;  %v857_v14 = vld [vmem:[%s349_s15] sm:$0xff]  }
  0x13   : > { %v894_v13 = vld [vmem:[%s349_s15 + $0x18] sm:$0xff]   ;;  %v893_v15 = vld [vmem:[%s349_s15 + $0x10] sm:$0xff]   ;;  %v862_v18 = vunpack.c.l.bf16 %v892_v12  ;;  %v858_v21 = vunpack.c.l.bf16 %v857_v14  ;;  %v863_v27 = vunpack.c.h.bf16 %v892_v12  ;;  %v859_v33 = vunpack.c.h.bf16 %v857_v14 }
  0x14   : > { %917 = vmatpush3.bf16.msra.mxu0 %v977_v3  ;;  %945 = vmatpush3.bf16.msra.mxu1 %v977_v3  ;;  %v870_v20 = vunpack.c.l.bf16 %v894_v13  ;;  %v866_v22 = vunpack.c.l.bf16 %v893_v15  ;;  %v871_v28 = vunpack.c.h.bf16 %v894_v13  ;;  %v867_v34 = vunpack.c.h.bf16 %v893_v15 }
  0x15   : > { %918 = vmatprep.subr.bf16.mxu0 %v978_v6  ;;  %938 = vmatprep.subr.bf16.mxu1 %v978_v6 }
  0x18   : > { %919 = vmatpush3.bf16.msra.mxu0 %v978_v6  ;;  %946 = vmatpush3.bf16.msra.mxu1 %v978_v6 }
  0x19   : > { %920 = vmatprep.subr.bf16.mxu0 %v979_v7  ;;  %939 = vmatprep.subr.bf16.mxu1 %v979_v7 }
  0x1c   : > { %921 = vmatpush3.bf16.msra.mxu0 %v979_v7  ;;  %947 = vmatpush3.bf16.msra.mxu1 %v979_v7 }
  0x1d   : > { %922 = vmatprep.subr.bf16.mxu0 %v980_v8  ;;  %940 = vmatprep.subr.bf16.mxu1 %v980_v8 }
  0x20   : > { %923 = vmatpush3.bf16.msra.mxu0 %v980_v8  ;;  %948 = vmatpush3.bf16.msra.mxu1 %v980_v8 }
  0x21   : > { %924 = vmatprep.subr.bf16.mxu0 %v981_v9  ;;  %941 = vmatprep.subr.bf16.mxu1 %v981_v9 }
  0x24   : > { %925 = vmatpush3.bf16.msra.mxu0 %v981_v9  ;;  %949 = vmatpush3.bf16.msra.mxu1 %v981_v9 }
  0x27   : > { %927 = vmatmul.mubr.bf16.vlgmr.msra.gmra.mrb[0].mxu0 %v984_v10  ;;  %931 = vmatmul.mubr.bf16.vlgmr.msra.gmra.mrb[0].mxu1 %v985_v11 }
  0xfa   : > { %v928_v17 = vpop.f32.mrb[0].mxu0  ;;  %v932_v19 = vpop.f32.mrb[0].mxu1 }
  0xfb   : > { %v582_v23 = vadd.f32 %v928_v17, %v834_v16  ;;  %v586_v24 = vadd.f32 %v932_v19, %v834_v16  ;;  %v515_v25 = vpop.f32.mrb[1].mxu0  ;;  %v531_v26 = vpop.f32.mrb[1].mxu1 }
  0xfc   : > { %v580_v29 = vadd.f32 %v834_v16, %v515_v25  ;;  %v584_v30 = vadd.f32 %v834_v16, %v531_v26  ;;  %v929_v31 = vpop.f32.mrb[2].mxu0  ;;  %v933_v32 = vpop.f32.mrb[2].mxu1 }
  0xfd   : > { %v583_v35 = vadd.f32 %v929_v31, %v834_v16  ;;  %v587_v36 = vadd.f32 %v933_v32, %v834_v16  ;;  %v518_v37 = vpop.f32.mrb[3].mxu0  ;;  %v534_v38 = vpop.f32.mrb[3].mxu1  ;;  %v606_v41 = vadd.f32 %v862_v18, %v582_v23  ;;  %v610_v42 = vadd.f32 %v870_v20, %v586_v24 }
  0xfe   : > { %v581_v39 = vadd.f32 %v834_v16, %v518_v37  ;;  %v585_v40 = vadd.f32 %v834_v16, %v534_v38  ;;  %v604_v45 = vadd.f32 %v858_v21, %v580_v29  ;;  %v608_v46 = vadd.f32 %v866_v22, %v584_v30 }
  0xff   : > { %v607_v43 = vadd.f32 %v863_v27, %v583_v35  ;;  %v611_v44 = vadd.f32 %v871_v28, %v587_v36 }
 0x100   : > { %v605_v47 = vadd.f32 %v859_v33, %v581_v39  ;;  %v609_v48 = vadd.f32 %v867_v34, %v585_v40 }
 0x101   : > { %v880_v49 = vpack.c.bf16 %v607_v43, %v606_v41  ;;  %v890_v50 = vpack.c.bf16 %v611_v44, %v610_v42 }
 0x102   : > { %v875_v51 = vpack.c.bf16 %v605_v47, %v604_v45  ;;  %v885_v52 = vpack.c.bf16 %v609_v48, %v608_v46 }
 0x103   : > { %895 = vst [vmem:[%s362_s23 + $0x8] sm:$0xff] %v880_v49   ;;  %897 = vst [vmem:[%s362_s23 + $0x18] sm:$0xff] %v890_v50  }
 0x104   : > { %876 = vst [vmem:[%s362_s23] sm:$0xff] %v875_v51   ;;  %896 = vst [vmem:[%s362_s23 + $0x10] sm:$0xff] %v885_v52  }
 0x105 PF: > { %s14_s17 = sadd.s32 1, %s1008_s17   ;;  %s1114_s15 = smov %s1004_s16 }
 0x106   : > { %p11_p5 = scmp.ge.s32.totalorder %s14_s17, 4   ;;  %s1115_s16 = smov %s1117_s18 }
 0x108   :  { %13 = sbr.rel (!%p11_p5) target bundleno = 2 (0x2), region = 83 }

// kernel: decoder_forward.61
= control target key start
LH: loop header
LB: loop body
LE: loop exit
PB: predicated region body
PF: predicated region fallthrough
CT: control target
= control target key end

     0   :  { %s1337_s12 = smov 0   ;;  %s1339_s13 = smov 0   ;;  %s1608_s0 = inlined_call_operand.vmem [shape: bf16[2,64,64], index: 0, kind: input, shape index: {}]   ;;  %s1609_s1 = inlined_call_operand.vmem [shape: bf16[2,64,64], index: 1, kind: input, shape index: {}]   ;;  %s1610_s2 = inlined_call_operand.vmem [shape: bf16[2,64,64], index: 2, kind: input, shape index: {}]   ;;  %s1611_s3 = inlined_call_operand.vmem [shape: bf16[2,64,64], index: 3, kind: output, shape index: {}]  }
   0x1   :  { %s1341_s14 = smov 0  }
   0x2 LB: > { %s32_s15 = sadd.s32 1, %s1308_s13  ;;  %p1098_p0 = scmp.ge.s32.totalorder %s1312_s14, 1  ;;  %s1312_s14 = sphi %s1341_s14, %s13_s14   ;;  %s1308_s13 = sphi %s1339_s13, %s1613_s13   ;;  %s1304_s12 = sphi %s1337_s12, %s1612_s12  }
   0x3   : > { %p34_p1 = scmp.ge.s32.totalorder %s32_s15, 2  ;;  %p199_p2 = scmp.lt.s32.totalorder %s1312_s14, 3 }
   0x5   : > { %s1615_s15 = smov (%p34_p1, %s32_s15), 0  ;;  %p200_p3 = pnand %p1098_p0, %p199_p2 }
   0x6   : > { %p250_p4 = scmp.lt.s32.totalorder (!%p200_p3), %s1304_s12, 1  ;;  %vm311_vm0 = vcmask (!%p200_p3), 523264   ;;  %vm294_vm1 = vcmask (!%p200_p3), 7168   ;;  %v1314_v12 = vmov (!%p200_p3), -inf   ;;  %v1315_v37 = vmov (!%p200_p3), 0  }
   0x7   : > { %203 = sbr.rel (%p200_p3) target bundleno = 875 (0x36b), region = 32  ;;  %297 = vst.msk [vmem:[#allocation2 + $0x10] sm:$0xff] (!%p200_p3), %vm294_vm1, %v1314_v12  ;;  %295 = vst.msk [vmem:[#allocation2] sm:$0xff] (!%p200_p3), %vm294_vm1, %v1314_v12  ;;  %1228 = vset.pattern.permute.xlu0 (!%p200_p3), %v1315_v37  ;;  %1229 = vset.pattern.permute.xlu1 (!%p200_p3), %v1315_v37  ;;  %v1316_v38 = vmov (!%p200_p3), 0.0   ;;  %vm959_vm2 = vcmask (!%p200_p3), 519168  }
   0x8   : > { %296 = vst.msk [vmem:[#allocation2 + $0x8] sm:$0xff] (!%p200_p3), %vm294_vm1, %v1314_v12  ;;  %298 = vst.msk [vmem:[#allocation2 + $0x18] sm:$0xff] (!%p200_p3), %vm294_vm1, %v1314_v12 }
   0x9   : > { %299 = vst.msk [vmem:[#allocation2 + $0x20] sm:$0xff] (!%p200_p3), %vm294_vm1, %v1314_v12  ;;  %300 = vst.msk [vmem:[#allocation2 + $0x28] sm:$0xff] (!%p200_p3), %vm294_vm1, %v1314_v12 }
   0xa   : > { %301 = vst.msk [vmem:[#allocation2 + $0x30] sm:$0xff] (!%p200_p3), %vm294_vm1, %v1314_v12  ;;  %302 = vst.msk [vmem:[#allocation2 + $0x38] sm:$0xff] (!%p200_p3), %vm294_vm1, %v1314_v12 }
   0xb   : > { %305 = vst.msk [vmem:[#allocation3 + $0x10] sm:$0xff] (!%p200_p3), %vm294_vm1, %v1316_v38  ;;  %303 = vst.msk [vmem:[#allocation3] sm:$0xff] (!%p200_p3), %vm294_vm1, %v1316_v38 }
   0xc   : > { %304 = vst.msk [vmem:[#allocation3 + $0x8] sm:$0xff] (!%p200_p3), %vm294_vm1, %v1316_v38  ;;  %306 = vst.msk [vmem:[#allocation3 + $0x18] sm:$0xff] (!%p200_p3), %vm294_vm1, %v1316_v38 }
   0xd   : > { %307 = vst.msk [vmem:[#allocation3 + $0x20] sm:$0xff] (!%p200_p3), %vm294_vm1, %v1316_v38  ;;  %308 = vst.msk [vmem:[#allocation3 + $0x28] sm:$0xff] (!%p200_p3), %vm294_vm1, %v1316_v38 }
   0xe   : > { %s1617_s12 = smov (!%p250_p4, %s1304_s12), 1  ;;  %309 = vst.msk [vmem:[#allocation3 + $0x30] sm:$0xff] %vm294_vm1, %v1316_v38  ;;  %310 = vst.msk [vmem:[#allocation3 + $0x38] sm:$0xff] %vm294_vm1, %v1316_v38  ;;  %v1433_v39 = vld [vmem:[#allocation2 + $0x10] sm:$0xff]  ;;  %v1435_v40 = vld [vmem:[#allocation2] sm:$0xff] }
   0xf   : > { %s1355_s16 = sshll.u32 %s1617_s12, 5  ;;  %312 = vst.msk [vmem:[#allocation4] sm:$0xff] %vm311_vm0, %v1316_v38  ;;  %313 = vst.msk [vmem:[#allocation4 + $0x8] sm:$0xff] %vm311_vm0, %v1316_v38  ;;  %v1443_v45 = vld [vmem:[#allocation2 + $0x18] sm:$0xff]  ;;  %v1450_v47 = vld [vmem:[#allocation2 + $0x8] sm:$0xff] }
  0x10   : > { %s267_s19 = scalar_lea.vmem %s1609_s1, %s1355_s16  ;;  %s257_s22 = scalar_lea.vmem %s1608_s0, %s1355_s16  ;;  %314 = vst.msk [vmem:[#allocation4 + $0x10] sm:$0xff] %vm311_vm0, %v1316_v38  ;;  %315 = vst.msk [vmem:[#allocation4 + $0x18] sm:$0xff] %vm311_vm0, %v1316_v38  ;;  %v1468_v54 = vld [vmem:[#allocation2 + $0x20] sm:$0xff]  ;;  %v1474_v57 = vld [vmem:[#allocation2 + $0x28] sm:$0xff] }
  0x11   : > { %v1230_v0 = vld [vmem:[%s267_s19] sm:$0xff]   ;;  %v1231_v1 = vld [vmem:[%s267_s19 + $0x8] sm:$0xff]   ;;  %v1232_v5 = vld [vmem:[%s267_s19 + $0x10] sm:$0xff]   ;;  %316 = vst.msk [vmem:[#allocation4 + $0x20] sm:$0xff] %vm311_vm0, %v1316_v38  ;;  %s277_s25 = scalar_lea.vmem %s1610_s2, %s1355_s16  ;;  %s1581_s28 = scalar_lea.vmem %s1611_s3, %s1355_s16 }
  0x12   : > { %1197 = vmatprep.subr.msk.bf16.mxu0 %vm311_vm0, %v1230_v0  ;;  %v398_v2 = vsel %vm311_vm0, %v1230_v0, 0  ;;  %v1234_v3 = vld [vmem:[%s257_s22] sm:$0xff]   ;;  %v401_v4 = vsel %vm311_vm0, %v1231_v1, 0  ;;  %v404_v6 = vsel %vm311_vm0, %v1232_v5, 0  ;;  %v1233_v7 = vld [vmem:[%s267_s19 + $0x18] sm:$0xff]   ;;  %v1235_v9 = vld [vmem:[%s257_s22 + $0x8] sm:$0xff]  }
  0x13   : > { %1166 = vmatpush3.bf16.xpose.msra.mxu0 %v398_v2  ;;  %1173 = vmatprep.mubr.msk.bf16.mxu0 %vm311_vm0, %v1234_v3  ;;  %v407_v8 = vsel %vm311_vm0, %v1233_v7, 0  ;;  %v1236_v10 = vld [vmem:[%s257_s22 + $0x10] sm:$0xff]   ;;  %v1237_v11 = vld [vmem:[%s257_s22 + $0x18] sm:$0xff]   ;;  %317 = vst.msk [vmem:[#allocation4 + $0x28] sm:$0xff] %vm311_vm0, %v1316_v38  ;;  %318 = vst.msk [vmem:[#allocation4 + $0x30] sm:$0xff] %vm311_vm0, %v1316_v38 }
  0x14   : > { %1198 = vmatprep.subr.msk.bf16.mxu0 %vm311_vm0, %v1231_v1  ;;  %319 = vst.msk [vmem:[#allocation4 + $0x38] sm:$0xff] %vm311_vm0, %v1316_v38  ;;  %v1479_v59 = vld [vmem:[#allocation2 + $0x30] sm:$0xff]  ;;  %v1486_v61 = vld [vmem:[#allocation2 + $0x38] sm:$0xff]  ;;  %v1238_v62 = vld [vmem:[%s277_s25] sm:$0xff]  }
  0x15   : > { %1181 = vmatprep.subr.bf16.mxu1 %v1238_v62 }
  0x16   : > { %1182 = vmatpush3.bf16.msra.mxu1 %v1238_v62 }
  0x1b   : > { %1168 = vmatpush3.bf16.xpose.msra.mxu0 %v401_v4 }
  0x1c   : > { %1199 = vmatprep.subr.msk.bf16.mxu0 %vm311_vm0, %v1232_v5  ;;  %v1239_v5 = vld [vmem:[%s277_s25 + $0x8] sm:$0xff]  }
  0x1d   : > { %1183 = vmatprep.subr.bf16.mxu1 %v1239_v5 }
  0x1e   : > { %1184 = vmatpush3.bf16.msra.mxu1 %v1239_v5 }
  0x23   : > { %1170 = vmatpush3.bf16.xpose.msra.mxu0 %v404_v6 }
  0x24   : > { %1200 = vmatprep.subr.msk.bf16.mxu0 %vm311_vm0, %v1233_v7 }
  0x2b   : > { %1172 = vmatpush3.bf16.xpose.msra.mxu0 %v407_v8 }
  0x32   : > { %1174 = vmatmul.mubr.msk.bf16.vlgmr.msra.gmra.mrb[0].mxu0 %vm311_vm0, %v1235_v9  ;;  %v1240_v9 = vld [vmem:[%s277_s25 + $0x10] sm:$0xff]  }
  0x33   : > { %1177 = vmatprep.mubr.msk.bf16.mxu0 %vm311_vm0, %v1236_v10  ;;  %1185 = vmatprep.subr.bf16.mxu1 %v1240_v9  ;;  %v1241_v10 = vld [vmem:[%s277_s25 + $0x18] sm:$0xff]  }
  0x34   : > { %1186 = vmatpush3.bf16.msra.mxu1 %v1240_v9 }
  0x35   : > { %1187 = vmatprep.subr.bf16.mxu1 %v1241_v10 }
  0x38   : > { %1188 = vmatpush3.bf16.msra.mxu1 %v1241_v10 }
  0x3a   : > { %1178 = vmatmul.mubr.msk.bf16.gmra.mrb[4].mxu0 %vm311_vm0, %v1237_v11 }
 0x105   : > { %v1175_v13 = vpop.f32.mrb[0].mxu0 }
 0x106   : > { %v1385_v14 = vmul.f32 0.125, %v1175_v13  ;;  %v443_v15 = vpop.f32.mrb[1].mxu0 }
 0x107   : > { %v1387_v16 = vmul.f32 0.125, %v443_v15  ;;  %v1176_v17 = vpop.f32.mrb[2].mxu0 }
 0x108   : > { %v1389_v18 = vmul.f32 0.125, %v1176_v17  ;;  %v446_v19 = vpop.f32.mrb[3].mxu0  ;;  %v496_v20 = vsel %vm311_vm0, %v1385_v14, -inf }
 0x109   : > { %v1393_v21 = vmul.f32 0.125, %v446_v19  ;;  %497 = vmax.xlane.f32.xlu1 %v496_v20  ;;  %v490_v22 = vsel %vm311_vm0, %v1387_v16, -inf }
 0x10a   : > { %491 = vmax.xlane.f32.xlu0 %v490_v22  ;;  %v499_v23 = vsel %vm311_vm0, %v1389_v18, -inf }
 0x10b   : > { %v493_v25 = vsel %vm311_vm0, %v1393_v21, -inf }
 0x10d   : > { %500 = vmax.xlane.f32.xlu1 %v499_v23  ;;  %v1179_v24 = vpop.f32.mrb[4].mxu0 }
 0x10e   : > { %494 = vmax.xlane.f32.xlu0 %v493_v25  ;;  %v459_v26 = vpop.f32.mrb[5].mxu0  ;;  %v1403_v30 = vmul.f32 0.125, %v1179_v24 }
 0x10f   : > { %v1401_v27 = vmul.f32 0.125, %v459_v26  ;;  %v1180_v28 = vpop.f32.mrb[6].mxu0 }
 0x110   : > { %v462_v29 = vpop.f32.mrb[7].mxu0  ;;  %v1409_v33 = vmul.f32 0.125, %v1180_v28  ;;  %v508_v35 = vsel %vm311_vm0, %v1403_v30, -inf }
 0x111   : > { %v1405_v31 = vmul.f32 0.125, %v462_v29  ;;  %v502_v32 = vsel %vm311_vm0, %v1401_v27, -inf }
 0x112   : > { %503 = vmax.xlane.f32.xlu0 %v502_v32  ;;  %v511_v36 = vsel %vm311_vm0, %v1409_v33, -inf }
 0x113   : > { %v505_v34 = vsel %vm311_vm0, %v1405_v31, -inf }
 0x114   : > { %506 = vmax.xlane.f32.xlu1 %v505_v34 }
 0x116   : > { %509 = vmax.xlane.f32.xlu0 %v508_v35 }
 0x118   : > { %512 = vmax.xlane.f32.xlu1 %v511_v36 }
 0x196   : > { %v498_v41 = vpop.xlane.xlu1 %497 }
 0x197   : > { %v1438_v42 = vmax.f32 %v1433_v39, %v498_v41  ;;  %v492_v43 = vpop.xlane.xlu0 %491 }
 0x198   : > { %v1441_v44 = vmax.f32 %v1435_v40, %v492_v43 }
 0x199   : > { %v524_v46 = vsub.f32 %v1433_v39, %v1438_v42  ;;  %846 = vst.msk [vmem:[#allocation2 + $0x10] sm:$0xff] %vm294_vm1, %v1438_v42  ;;  %558 = vperm.xlu1 %1229, %v1438_v42  }
 0x19a   : > { %v522_v48 = vsub.f32 %v1435_v40, %v1441_v44  ;;  %844 = vst.msk [vmem:[#allocation2] sm:$0xff] %vm294_vm1, %v1441_v44  ;;  %v501_v49 = vpop.xlane.xlu1 %500  ;;  %548 = vperm.xlu0 %1228, %v1441_v44  }
 0x19b   : > { %v1458_v50 = vmax.f32 %v1443_v45, %v501_v49  ;;  %v495_v51 = vpop.xlane.xlu0 %494 }
 0x19c   : > { %v1461_v52 = vmax.f32 %v1450_v47, %v495_v51 }
 0x19d   : > { %v525_v53 = vsub.f32 %v1443_v45, %v1458_v50  ;;  %847 = vst.msk [vmem:[#allocation2 + $0x18] sm:$0xff] %vm294_vm1, %v1458_v50  ;;  %563 = vperm.xlu1 %1229, %v1458_v50  }
 0x19e   : > { %v523_v55 = vsub.f32 %v1450_v47, %v1461_v52  ;;  %845 = vst.msk [vmem:[#allocation2 + $0x8] sm:$0xff] %vm294_vm1, %v1461_v52 }
 0x19f   : > { %v504_v56 = vpop.xlane.xlu0 %503 }
 0x1a0   : > { %v1477_v58 = vmax.f32 %v1468_v54, %v504_v56 }
 0x1a1   : > { %553 = vperm.xlu1 %1229, %v1461_v52   ;;  %v507_v60 = vpop.xlane.xlu1 %506 }
 0x1a2   : > { %v526_v63 = vsub.f32 %v1468_v54, %v1477_v58  ;;  %848 = vst.msk [vmem:[#allocation2 + $0x20] sm:$0xff] %vm294_vm1, %v1477_v58  ;;  %v1493_v0 = vmax.f32 %v1474_v57, %v507_v60 }
 0x1a3   : > { %v510_v1 = vpop.xlane.xlu0 %509 }
 0x1a4   : > { %v527_v2 = vsub.f32 %v1474_v57, %v1493_v0  ;;  %849 = vst.msk [vmem:[#allocation2 + $0x28] sm:$0xff] %vm294_vm1, %v1493_v0  ;;  %v1500_v3 = vmax.f32 %v1479_v59, %v510_v1  ;;  %v538_v47 = vmul.f32 1.442695, %v526_v63  ;;  %v610_v57 = vld [vmem:[#allocation3] sm:$0xff] }
 0x1a5   : > { %v513_v4 = vpop.xlane.xlu1 %512 }
 0x1a6   : > { %v528_v6 = vsub.f32 %v1479_v59, %v1500_v3  ;;  %850 = vst.msk [vmem:[#allocation2 + $0x30] sm:$0xff] %vm294_vm1, %v1500_v3  ;;  %v1507_v7 = vmax.f32 %v1486_v61, %v513_v4  ;;  %578 = vperm.xlu1 %1229, %v1500_v3   ;;  %v540_v40 = vmul.f32 1.442695, %v527_v2  ;;  %v613_v2 = vld [vmem:[#allocation3 + $0x18] sm:$0xff] }
 0x1a8   : > { %v529_v8 = vsub.f32 %v1486_v61, %v1507_v7  ;;  %851 = vst.msk [vmem:[#allocation2 + $0x38] sm:$0xff] %vm294_vm1, %v1507_v7  ;;  %v542_v39 = vmul.f32 1.442695, %v528_v6 }
 0x1aa   : > { %568 = vperm.xlu1 %1229, %v1477_v58   ;;  %v544_v42 = vmul.f32 1.442695, %v529_v8 }
 0x1ae   : > { %573 = vperm.xlu1 %1229, %v1493_v0  }
 0x1b2   : > { %583 = vperm.xlu1 %1229, %v1507_v7   ;;  %v611_v7 = vld [vmem:[#allocation3 + $0x8] sm:$0xff] }
 0x218   : > { %v559_v11 = vpop.permute.xlu1 %558 }
 0x219   : > { %v588_v12 = vsub.f32 %v1385_v14, %v559_v11  ;;  %v549_v13 = vpop.permute.xlu0 %548 }
 0x21a   : > { %v586_v15 = vsub.f32 %v1387_v16, %v549_v13 }
 0x21b   : > { %v598_v17 = vmul.f32 1.442695, %v588_v12 }
 0x21c   : > { %v594_v19 = vmul.f32 1.442695, %v586_v15  ;;  %v564_v20 = vpop.permute.xlu1 %563 }
 0x21d   : > { %1242 = vpow2.f32 %v598_v17  ;;  %v589_v22 = vsub.f32 %v1389_v18, %v564_v20  ;;  %v532_v17 = vmul.f32 1.442695, %v523_v55  ;;  %v534_v20 = vmul.f32 1.442695, %v524_v46  ;;  %v612_v55 = vld [vmem:[#allocation3 + $0x10] sm:$0xff] }
 0x21e   : > { %1244 = vpow2.f32 %v594_v19  ;;  %v530_v19 = vmul.f32 1.442695, %v522_v48 }
 0x21f   : > { %v600_v23 = vmul.f32 1.442695, %v589_v22  ;;  %v536_v22 = vmul.f32 1.442695, %v525_v53 }
 0x220   : > { %v554_v24 = vpop.permute.xlu1 %553 }
 0x221   : > { %1246 = vpow2.f32 %v600_v23  ;;  %v587_v25 = vsub.f32 %v1393_v21, %v554_v24 }
 0x223   : > { %v596_v26 = vmul.f32 1.442695, %v587_v25 }
 0x225   : > { %1248 = vpow2.f32 %v596_v26  ;;  %v579_v28 = vpop.permute.xlu1 %578 }
 0x226   : > { %v592_v32 = vsub.f32 %v1403_v30, %v579_v28 }
 0x227   : > { %v1243_v29 = vpop.eup %1242 }
 0x228   : > { %v1245_v14 = vpop.eup %1244  ;;  %v632_v16 = vsel %vm311_vm0, %v1243_v29, 0.0  ;;  %v606_v37 = vmul.f32 1.442695, %v592_v32 }
 0x229   : > { %633 = vadd.xlane.f32.xlu0 %v632_v16  ;;  %v569_v34 = vpop.permute.xlu1 %568  ;;  %v626_v35 = vsel %vm311_vm0, %v1245_v14, 0.0 }
 0x22a   : > { %v590_v18 = vsub.f32 %v1401_v27, %v569_v34  ;;  %627 = vadd.xlane.f32.xlu1 %v626_v35  ;;  %v616_v35 = vld [vmem:[#allocation3 + $0x30] sm:$0xff] }
 0x22b   : > { %v1247_v36 = vpop.eup %1246 }
 0x22c   : > { %v602_v38 = vmul.f32 1.442695, %v590_v18  ;;  %v635_v21 = vsel %vm311_vm0, %v1247_v36, 0.0  ;;  %v724_v27 = vpack.c.bf16 %v1247_v36, %v1243_v29  ;;  %v615_v18 = vld [vmem:[#allocation3 + $0x28] sm:$0xff] }
 0x22d   : > { %v574_v41 = vpop.permute.xlu1 %573 }
 0x22e   : > { %1250 = vpow2.f32 %v602_v38  ;;  %v591_v43 = vsub.f32 %v1405_v31, %v574_v41  ;;  %636 = vadd.xlane.f32.xlu1 %v635_v21 }
 0x22f   : > { %v1249_v30 = vpop.eup %1248  ;;  %1252 = vpow2.f32 %v606_v37 }
 0x230   : > { %v604_v49 = vmul.f32 1.442695, %v591_v43  ;;  %v629_v51 = vsel %vm311_vm0, %v1249_v30, 0.0  ;;  %v723_v56 = vpack.c.bf16 %v1249_v30, %v1245_v14  ;;  %v614_v14 = vld [vmem:[#allocation3 + $0x20] sm:$0xff] }
 0x231   : > { %630 = vadd.xlane.f32.xlu0 %v629_v51  ;;  %v584_v60 = vpop.permute.xlu1 %583 }
 0x232   : > { %1254 = vpow2.f32 %v604_v49  ;;  %v593_v62 = vsub.f32 %v1409_v33, %v584_v60  ;;  %1189 = vmatprep.mubr.msk.bf16.mxu1 %vm311_vm0, %v723_v56  ;;  %v617_v49 = vld [vmem:[#allocation3 + $0x38] sm:$0xff] }
 0x233   : > { %1190 = vmatmul.mubr.msk.bf16.vlgmr.msra.gmra.mrb[0].mxu1 %vm311_vm0, %v724_v27 }
 0x234   : > { %v608_v1 = vmul.f32 1.442695, %v593_v62 }
 0x236   : > { %1256 = vpow2.f32 %v608_v1 }
 0x237   : > { %1258 = vpow2.f32 %v532_v17 }
 0x238   : > { %v1251_v31 = vpop.eup %1250  ;;  %1260 = vpow2.f32 %v530_v19 }
 0x239   : > { %v638_v4 = vsel %vm311_vm0, %v1251_v31, 0.0  ;;  %v1253_v5 = vpop.eup %1252  ;;  %1262 = vpow2.f32 %v534_v20  ;;  %v669_v20 = vld [vmem:[#allocation4 + $0x10] sm:$0xff] }
 0x23a   : > { %639 = vadd.xlane.f32.xlu0 %v638_v4  ;;  %v644_v10 = vsel %vm311_vm0, %v1253_v5, 0.0  ;;  %1264 = vpow2.f32 %v536_v22 }
 0x23b   : > { %1266 = vpow2.f32 %v538_v47  ;;  %v667_v47 = vld [vmem:[#allocation4] sm:$0xff] }
 0x23c   : > { %v1255_v9 = vpop.eup %1254  ;;  %1268 = vpow2.f32 %v540_v40  ;;  %v670_v40 = vld [vmem:[#allocation4 + $0x18] sm:$0xff] }
 0x23d   : > { %v641_v11 = vsel %vm311_vm0, %v1255_v9, 0.0  ;;  %v725_v12 = vpack.c.bf16 %v1255_v9, %v1251_v31  ;;  %1270 = vpow2.f32 %v542_v39 }
 0x23e   : > { %645 = vadd.xlane.f32.xlu0 %v644_v10  ;;  %642 = vadd.xlane.f32.xlu1 %v641_v11  ;;  %1272 = vpow2.f32 %v544_v42  ;;  %v668_v42 = vld [vmem:[#allocation4 + $0x8] sm:$0xff] }
 0x23f   : > { %1193 = vmatprep.mubr.msk.bf16.mxu1 %vm311_vm0, %v725_v12 }
 0x240   : > { %v1257_v33 = vpop.eup %1256 }
 0x241   : > { %v647_v13 = vsel %vm311_vm0, %v1257_v33, 0.0  ;;  %v726_v15 = vpack.c.bf16 %v1257_v33, %v1253_v5  ;;  %v1259_v44 = vpop.eup %1258 }
 0x242   : > { %648 = vadd.xlane.f32.xlu1 %v647_v13  ;;  %v1261_v45 = vpop.eup %1260  ;;  %v619_v24 = vmul.f32 %v1259_v44, %v611_v7 }
 0x243   : > { %1194 = vmatmul.mubr.msk.bf16.gmra.mrb[4].mxu1 %vm311_vm0, %v726_v15  ;;  %v1263_v46 = vpop.eup %1262  ;;  %v618_v61 = vmul.f32 %v1261_v45, %v610_v57 }
 0x244   : > { %v1265_v48 = vpop.eup %1264  ;;  %v620_v58 = vmul.f32 %v1263_v46, %v612_v55 }
 0x245   : > { %v1267_v50 = vpop.eup %1266  ;;  %v621_v6 = vmul.f32 %v1265_v48, %v613_v2 }
 0x246   : > { %v1269_v52 = vpop.eup %1268  ;;  %v622_v16 = vmul.f32 %v1267_v50, %v614_v14 }
 0x247   : > { %v1271_v53 = vpop.eup %1270  ;;  %v623_v21 = vmul.f32 %v1269_v52, %v615_v18 }
 0x248   : > { %v1273_v54 = vpop.eup %1272  ;;  %v624_v38 = vmul.f32 %v1271_v53, %v616_v35 }
 0x249   : > { %v625_v60 = vmul.f32 %v1273_v54, %v617_v49 }
 0x253   : > { %682 = vperm.xlu1 %1229, %v1259_v44  }
 0x254   : > { %677 = vperm.xlu0 %1228, %v1261_v45  }
 0x257   : > { %687 = vperm.xlu1 %1229, %v1263_v46  }
 0x258   : > { %692 = vperm.xlu0 %1228, %v1265_v48  }
 0x25b   : > { %697 = vperm.xlu1 %1229, %v1267_v50  }
 0x25c   : > { %702 = vperm.xlu0 %1228, %v1269_v52  }
 0x25f   : > { %707 = vperm.xlu1 %1229, %v1271_v53  }
 0x260   : > { %712 = vperm.xlu0 %1228, %v1273_v54  }
 0x2b6   : > { %v634_v59 = vpop.xlane.xlu0 %633 }
 0x2b7   : > { %v652_v63 = vadd.f32 %v634_v59, %v620_v58  ;;  %v628_v0 = vpop.xlane.xlu1 %627 }
 0x2b8   : > { %v650_v3 = vadd.f32 %v628_v0, %v618_v61  ;;  %v673_v0 = vld [vmem:[#allocation4 + $0x30] sm:$0xff] }
 0x2b9   : > { %661 = vst.msk [vmem:[#allocation3 + $0x10] sm:$0xff] %vm294_vm1, %v652_v63 }
 0x2ba   : > { %659 = vst.msk [vmem:[#allocation3] sm:$0xff] %vm294_vm1, %v650_v3  ;;  %v671_v3 = vld [vmem:[#allocation4 + $0x20] sm:$0xff] }
 0x2bb   : > { %v637_v8 = vpop.xlane.xlu1 %636 }
 0x2bc   : > { %v653_v23 = vadd.f32 %v637_v8, %v621_v6  ;;  %v674_v6 = vld [vmem:[#allocation4 + $0x38] sm:$0xff]  ;;  %v672_v8 = vld [vmem:[#allocation4 + $0x28] sm:$0xff] }
 0x2be   : > { %662 = vst.msk [vmem:[#allocation3 + $0x18] sm:$0xff] %vm294_vm1, %v653_v23  ;;  %v631_v25 = vpop.xlane.xlu0 %630 }
 0x2bf   : > { %v651_v26 = vadd.f32 %v631_v25, %v619_v24 }
 0x2c0   : > { %v865_v28 = vld [vmem:[#allocation3 + $0x10] sm:$0xff] }
 0x2c1   : > { %660 = vst.msk [vmem:[#allocation3 + $0x8] sm:$0xff] %vm294_vm1, %v651_v26  ;;  %1274 = vrcp.f32 %v865_v28  ;;  %v863_v29 = vld [vmem:[#allocation3] sm:$0xff] }
 0x2c2   : > { %1276 = vrcp.f32 %v863_v29 }
 0x2c5   : > { %v866_v32 = vld [vmem:[#allocation3 + $0x18] sm:$0xff] }
 0x2c6   : > { %1278 = vrcp.f32 %v866_v32 }
 0x2c7   : > { %v640_v34 = vpop.xlane.xlu0 %639 }
 0x2c8   : > { %v654_v36 = vadd.f32 %v640_v34, %v622_v16  ;;  %v864_v37 = vld [vmem:[#allocation3 + $0x8] sm:$0xff] }
 0x2c9   : > { %1280 = vrcp.f32 %v864_v37 }
 0x2ca   : > { %663 = vst.msk [vmem:[#allocation3 + $0x20] sm:$0xff] %vm294_vm1, %v654_v36 }
 0x2cb   : > { %v1275_v41 = vpop.eup %1274  ;;  %v646_v43 = vpop.xlane.xlu0 %645 }
 0x2cc   : > { %v643_v30 = vpop.xlane.xlu1 %642  ;;  %v656_v51 = vadd.f32 %v646_v43, %v624_v38  ;;  %891 = vperm.xlu1 %1229, %v1275_v41   ;;  %v1277_v27 = vpop.eup %1276 }
 0x2cd   : > { %v655_v56 = vadd.f32 %v643_v30, %v623_v21 }
 0x2ce   : > { %665 = vst.msk [vmem:[#allocation3 + $0x30] sm:$0xff] %vm294_vm1, %v656_v51 }
 0x2cf   : > { %664 = vst.msk [vmem:[#allocation3 + $0x28] sm:$0xff] %vm294_vm1, %v655_v56 }
 0x2d0   : > { %v649_v62 = vpop.xlane.xlu1 %648  ;;  %v1279_v1 = vpop.eup %1278  ;;  %881 = vperm.xlu1 %1229, %v1277_v27  }
 0x2d1   : > { %v657_v31 = vadd.f32 %v649_v62, %v625_v60  ;;  %896 = vperm.xlu0 %1228, %v1279_v1   ;;  %v867_v4 = vld [vmem:[#allocation3 + $0x20] sm:$0xff] }
 0x2d2   : > { %1282 = vrcp.f32 %v867_v4 }
 0x2d3   : > { %666 = vst.msk [vmem:[#allocation3 + $0x38] sm:$0xff] %vm294_vm1, %v657_v31  ;;  %v1281_v5 = vpop.eup %1280  ;;  %v678_v19 = vpop.permute.xlu0 %677 }
 0x2d4   : > { %v683_v17 = vpop.permute.xlu1 %682  ;;  %v715_v45 = vmul.f32 %v678_v19, %v667_v47 }
 0x2d5   : > { %886 = vperm.xlu0 %1228, %v1281_v5   ;;  %v869_v9 = vld [vmem:[#allocation3 + $0x30] sm:$0xff]  ;;  %v716_v53 = vmul.f32 %v683_v17, %v668_v42 }
 0x2d6   : > { %v868_v10 = vld [vmem:[#allocation3 + $0x28] sm:$0xff]  ;;  %1284 = vrcp.f32 %v869_v9 }
 0x2d7   : > { %1286 = vrcp.f32 %v868_v10  ;;  %v693_v39 = vpop.permute.xlu0 %692 }
 0x2d8   : > { %v688_v22 = vpop.permute.xlu1 %687  ;;  %v718_v48 = vmul.f32 %v693_v39, %v670_v40 }
 0x2d9   : > { %v717_v44 = vmul.f32 %v688_v22, %v669_v20 }
 0x2da   : > { %v870_v11 = vld [vmem:[#allocation3 + $0x38] sm:$0xff] }
 0x2db   : > { %1288 = vrcp.f32 %v870_v11  ;;  %v703_v63 = vpop.permute.xlu0 %702 }
 0x2dc   : > { %v1283_v12 = vpop.eup %1282  ;;  %v698_v61 = vpop.permute.xlu1 %697  ;;  %v720_v14 = vmul.f32 %v703_v63, %v672_v8 }
 0x2dd   : > { %901 = vperm.xlu1 %1229, %v1283_v12   ;;  %v719_v24 = vmul.f32 %v698_v61, %v671_v3 }
 0x2df   : > { %v713_v7 = vpop.permute.xlu0 %712 }
 0x2e0   : > { %v1285_v33 = vpop.eup %1284  ;;  %v708_v2 = vpop.permute.xlu1 %707  ;;  %v722_v26 = vmul.f32 %v713_v7, %v674_v6 }
 0x2e1   : > { %v1287_v13 = vpop.eup %1286  ;;  %911 = vperm.xlu1 %1229, %v1285_v33   ;;  %v721_v23 = vmul.f32 %v708_v2, %v673_v0 }
 0x2e2   : > { %906 = vperm.xlu0 %1228, %v1287_v13  }
 0x2e5   : > { %v1289_v15 = vpop.eup %1288 }
 0x2e6   : > { %916 = vperm.xlu0 %1228, %v1289_v15  }
 0x306   : > { %v1191_v46 = vpop.f32.mrb[0].mxu1 }
 0x307   : > { %v830_v50 = vadd.f32 %v1191_v46, %v717_v44  ;;  %v797_v52 = vpop.f32.mrb[1].mxu1 }
 0x308   : > { %v828_v54 = vadd.f32 %v797_v52, %v715_v45  ;;  %v1192_v55 = vpop.f32.mrb[2].mxu1 }
 0x309   : > { %838 = vst.msk [vmem:[#allocation4 + $0x10] sm:$0xff] %vm311_vm0, %v830_v50  ;;  %v831_v57 = vadd.f32 %v1192_v55, %v718_v48  ;;  %v800_v58 = vpop.f32.mrb[3].mxu1 }
 0x30a   : > { %836 = vst.msk [vmem:[#allocation4] sm:$0xff] %vm311_vm0, %v828_v54  ;;  %v829_v59 = vadd.f32 %v800_v58, %v716_v53 }
 0x30b   : > { %839 = vst.msk [vmem:[#allocation4 + $0x18] sm:$0xff] %vm311_vm0, %v831_v57 }
 0x30c   : > { %837 = vst.msk [vmem:[#allocation4 + $0x8] sm:$0xff] %vm311_vm0, %v829_v59 }
 0x310   : > { %v857_v36 = vld [vmem:[#allocation4 + $0x10] sm:$0xff] }
 0x311   : > { %v855_v41 = vld [vmem:[#allocation4] sm:$0xff] }
 0x312   : > { %v858_v49 = vld [vmem:[#allocation4 + $0x18] sm:$0xff] }
 0x313   : > { %v856_v1 = vld [vmem:[#allocation4 + $0x8] sm:$0xff] }
 0x316   : > { %v1195_v25 = vpop.f32.mrb[4].mxu1 }
 0x317   : > { %v834_v28 = vadd.f32 %v1195_v25, %v721_v23  ;;  %v813_v29 = vpop.f32.mrb[5].mxu1 }
 0x318   : > { %v832_v32 = vadd.f32 %v813_v29, %v719_v24  ;;  %v1196_v16 = vpop.f32.mrb[6].mxu1 }
 0x319   : > { %842 = vst.msk [vmem:[#allocation4 + $0x30] sm:$0xff] %vm311_vm0, %v834_v28  ;;  %v835_v34 = vadd.f32 %v1196_v16, %v722_v26  ;;  %v816_v35 = vpop.f32.mrb[7].mxu1 }
 0x31a   : > { %840 = vst.msk [vmem:[#allocation4 + $0x20] sm:$0xff] %vm311_vm0, %v832_v32  ;;  %v833_v18 = vadd.f32 %v816_v35, %v720_v14 }
 0x31b   : > { %843 = vst.msk [vmem:[#allocation4 + $0x38] sm:$0xff] %vm311_vm0, %v835_v34 }
 0x31c   : > { %841 = vst.msk [vmem:[#allocation4 + $0x28] sm:$0xff] %vm311_vm0, %v833_v18 }
 0x320   : > { %v861_v12 = vld [vmem:[#allocation4 + $0x30] sm:$0xff] }
 0x321   : > { %v859_v5 = vld [vmem:[#allocation4 + $0x20] sm:$0xff] }
 0x322   : > { %v862_v47 = vld [vmem:[#allocation4 + $0x38] sm:$0xff] }
 0x323   : > { %v860_v13 = vld [vmem:[#allocation4 + $0x28] sm:$0xff] }
 0x34b   : > { %v892_v37 = vpop.permute.xlu1 %891 }
 0x34c   : > { %v921_v38 = vmul.f32 %v892_v37, %v857_v36 }
 0x34e   : > { %v1143_v21 = vpack.c.bf16 %v921_v38, %v921_v38 }
 0x34f   : > { %v882_v43 = vpop.permute.xlu1 %881 }
 0x350   : > { %962 = vst.msk [vmem:[%s1581_s28 + $0x8] sm:$0xf] %vm959_vm2, %v1143_v21  ;;  %v919_v30 = vmul.f32 %v882_v43, %v855_v41  ;;  %v897_v51 = vpop.permute.xlu0 %896 }
 0x351   : > { %v922_v56 = vmul.f32 %v897_v51, %v858_v49 }
 0x352   : > { %v1141_v60 = vpack.c.bf16 %v919_v30, %v919_v30 }
 0x353   : > { %v1144_v27 = vpack.c.bf16 %v922_v56, %v922_v56 }
 0x354   : > { %960 = vst.msk [vmem:[%s1581_s28] sm:$0xf] %vm959_vm2, %v1141_v60  ;;  %v887_v62 = vpop.permute.xlu0 %886 }
 0x355   : > { %963 = vst.msk [vmem:[%s1581_s28 + $0xc] sm:$0xf] %vm959_vm2, %v1144_v27  ;;  %v920_v31 = vmul.f32 %v887_v62, %v856_v1 }
 0x357   : > { %v1142_v4 = vpack.c.bf16 %v920_v31, %v920_v31 }
 0x359   : > { %961 = vst.msk [vmem:[%s1581_s28 + $0x4] sm:$0xf] %vm959_vm2, %v1142_v4 }
 0x35c   : > { %v902_v9 = vpop.permute.xlu1 %901 }
 0x35d   : > { %v923_v10 = vmul.f32 %v902_v9, %v859_v5 }
 0x35f   : > { %v1145_v11 = vpack.c.bf16 %v923_v10, %v923_v10 }
 0x360   : > { %v912_v33 = vpop.permute.xlu1 %911 }
 0x361   : > { %964 = vst.msk [vmem:[%s1581_s28 + $0x10] sm:$0xf] %vm959_vm2, %v1145_v11  ;;  %v907_v15 = vpop.permute.xlu0 %906  ;;  %v925_v17 = vmul.f32 %v912_v33, %v861_v12 }
 0x362   : > { %v924_v19 = vmul.f32 %v907_v15, %v860_v13 }
 0x363   : > { %v1147_v20 = vpack.c.bf16 %v925_v17, %v925_v17 }
 0x364   : > { %v1146_v22 = vpack.c.bf16 %v924_v19, %v924_v19 }
 0x365   : > { %966 = vst.msk [vmem:[%s1581_s28 + $0x18] sm:$0xf] %vm959_vm2, %v1147_v20  ;;  %v917_v40 = vpop.permute.xlu0 %916 }
 0x366   : > { %965 = vst.msk [vmem:[%s1581_s28 + $0x14] sm:$0xf] %vm959_vm2, %v1146_v22  ;;  %v926_v39 = vmul.f32 %v917_v40, %v862_v47 }
 0x368   : > { %v1148_v42 = vpack.c.bf16 %v926_v39, %v926_v39 }
 0x36a   : > { %967 = vst.msk [vmem:[%s1581_s28 + $0x1c] sm:$0xf] %vm959_vm2, %v1148_v42 }
 0x36b PF: > { %s13_s14 = sadd.s32 1, %s1312_s14   ;;  %s1612_s12 = smov %s1308_s13 }
 0x36c   : > { %p10_p5 = scmp.ge.s32.totalorder %s13_s14, 4   ;;  %s1613_s13 = smov %s1615_s15 }
 0x36e   :  { %12 = sbr.rel (!%p10_p5) target bundleno = 2 (0x2), region = 76 }

// kernel: decoder_forward.81
= control target key start
LH: loop header
LB: loop body
LE: loop exit
PB: predicated region body
PF: predicated region fallthrough
CT: control target
= control target key end

     0   :  { %s1745_s12 = smov 0   ;;  %s1747_s13 = smov 0   ;;  %s1991_s0 = inlined_call_operand.vmem [shape: bf16[2,256,640], index: 0, kind: input, shape index: {}]   ;;  %s1992_s1 = inlined_call_operand.vmem [shape: bf16[640,128], index: 1, kind: input, shape index: {}]   ;;  %s1993_s2 = inlined_call_operand.vmem [shape: f32[1,128], index: 2, kind: input, shape index: {}]   ;;  %s1994_s3 = inlined_call_operand.vmem [shape: bf16[2,256,128], index: 3, kind: output, shape index: {}]  }
   0x1   :  { %s1749_s14 = smov 0   ;;  %s1751_s15 = smov 0  }
   0x2   :  { %s1753_s16 = smov 0   ;;  %s1755_s17 = smov 0  }
   0x3   :  { %s1757_s18 = smov 0  }
   0x4 LB: > { %s28_s19 = sadd.s32 1, %s1714_s16  ;;  %s39_s20 = sadd.s32 1, %s1718_s17  ;;  %s1722_s18 = sphi %s1757_s18, %s13_s18   ;;  %s1718_s17 = sphi %s1755_s17, %s2000_s17   ;;  %s1714_s16 = sphi %s1753_s16, %s1999_s16   ;;  %s1710_s15 = sphi %s1751_s15, %s1998_s15   ;;  %s1706_s14 = sphi %s1749_s14, %s1997_s14   ;;  %s1702_s13 = sphi %s1747_s13, %s1996_s13   ;;  %s1698_s12 = sphi %s1745_s12, %s1995_s12  }
   0x5   : > { %p29_p0 = scmp.ge.s32.totalorder %s28_s19, 5  ;;  %p57_p1 = scmp.ne.s32.totalorder %s1702_s13, %s1698_s12 }
   0x6   : > { %p58_p2 = scmp.eq.s32.totalorder %s1722_s18, 0  ;;  %s50_s24 = sadd.s32 1, %s1702_s13 }
   0x7   : > { %s2002_s19 = smov (%p29_p0, %s28_s19), 0  ;;  %s2004_s20 = smov (!%p29_p0, %s39_s20), %s1718_s17 }
   0x8   : > { %p59_p3 = por %p58_p2, %p57_p1  ;;  %p41_p4 = scmp.ge.s32.totalorder %s2004_s20, 2 }
   0x9   : > { %s46_s21 = ssub.s32 %s1714_s16, %s2002_s19  ;;  %p1300_p6 = scmp.ge.s32.totalorder %s1722_s18, 10 }
   0xa   : > { %s2006_s20 = smov (%p41_p4, %s2004_s20), 0 }
   0xb   : > { %s43_s22 = ssub.s32 %s1718_s17, %s2006_s20  ;;  %173 = sbr.rel (%p1300_p6) target bundleno = 46 (0x2e), region = 20 }
   0xc   : > { %s47_s23 = sor.u32 %s46_s21, %s43_s22 }
   0xd   : > { %p48_p5 = scmp.eq.s32.totalorder %s47_s23, 0 }
   0xf   : > { %s1796_s25 = scalar_select %p48_p5, %s1702_s13, %s50_s24  }
  0x12   : > { %176 = sbr.rel (!%p59_p3) target bundleno = 46 (0x2e), region = 24  ;;  %s178_s26 = sand.u32 (%p59_p3), 1, %s1702_s13  }
  0x13   : > { %s1586_s27 = smul.u32 (%p59_p3), 160, %s1718_s17  ;;  %s1301_s28 = sshll.u32 (%p59_p3), %s178_s26, 7 }
  0x14   : > { %s1810_s7 = scalar_lea.vmem (%p59_p3), [#allocation3], %s1301_s28 }
  0x15   : > { %s185_s29 = sadd.s32 (%p59_p3), %s1714_s16, %s1586_s27 }
  0x16   : > { %s1302_s30 = sshll.u32 (%p59_p3), %s185_s29, 2 }
  0x17   : > { %s1805_s6 = scalar_lea.vmem (%p59_p3), %s1991_s0, %s1302_s30 }
  0x18   : > { %v203_v0 = vld [vmem:[%s1805_s6] sm:$0xf] (%p59_p3)  ;;  %v205_v1 = vld [vmem:[%s1805_s6 + $0x14] sm:$0xf] (%p59_p3)  ;;  %v207_v2 = vld [vmem:[%s1805_s6 + $0x28] sm:$0xf] (%p59_p3) }
  0x19   : > { %204 = vst [vmem:[%s1810_s7] sm:$0xf] %v203_v0  ;;  %206 = vst [vmem:[%s1810_s7 + $0x4] sm:$0xf] %v205_v1  ;;  %v209_v3 = vld [vmem:[%s1805_s6 + $0x3c] sm:$0xf] }
  0x1a   : > { %208 = vst [vmem:[%s1810_s7 + $0x8] sm:$0xf] %v207_v2  ;;  %v211_v4 = vld [vmem:[%s1805_s6 + $0x50] sm:$0xf]  ;;  %v213_v5 = vld [vmem:[%s1805_s6 + $0x64] sm:$0xf] }
  0x1b   : > { %210 = vst [vmem:[%s1810_s7 + $0xc] sm:$0xf] %v209_v3  ;;  %212 = vst [vmem:[%s1810_s7 + $0x10] sm:$0xf] %v211_v4  ;;  %v215_v6 = vld [vmem:[%s1805_s6 + $0x78] sm:$0xf] }
  0x1c   : > { %214 = vst [vmem:[%s1810_s7 + $0x14] sm:$0xf] %v213_v5  ;;  %v217_v7 = vld [vmem:[%s1805_s6 + $0x8c] sm:$0xf]  ;;  %v219_v8 = vld [vmem:[%s1805_s6 + $0xa0] sm:$0xf] }
  0x1d   : > { %216 = vst [vmem:[%s1810_s7 + $0x18] sm:$0xf] %v215_v6  ;;  %218 = vst [vmem:[%s1810_s7 + $0x1c] sm:$0xf] %v217_v7  ;;  %v221_v9 = vld [vmem:[%s1805_s6 + $0xb4] sm:$0xf] }
  0x1e   : > { %220 = vst [vmem:[%s1810_s7 + $0x20] sm:$0xf] %v219_v8  ;;  %v223_v10 = vld [vmem:[%s1805_s6 + $0xc8] sm:$0xf]  ;;  %v225_v11 = vld [vmem:[%s1805_s6 + $0xdc] sm:$0xf] }
  0x1f   : > { %222 = vst [vmem:[%s1810_s7 + $0x24] sm:$0xf] %v221_v9  ;;  %224 = vst [vmem:[%s1810_s7 + $0x28] sm:$0xf] %v223_v10  ;;  %v227_v12 = vld [vmem:[%s1805_s6 + $0xf0] sm:$0xf] }
  0x20   : > { %226 = vst [vmem:[%s1810_s7 + $0x2c] sm:$0xf] %v225_v11  ;;  %v229_v13 = vld [vmem:[%s1805_s6 + $0x104] sm:$0xf]  ;;  %v231_v14 = vld [vmem:[%s1805_s6 + $0x118] sm:$0xf] }
  0x21   : > { %228 = vst [vmem:[%s1810_s7 + $0x30] sm:$0xf] %v227_v12  ;;  %230 = vst [vmem:[%s1810_s7 + $0x34] sm:$0xf] %v229_v13  ;;  %v233_v15 = vld [vmem:[%s1805_s6 + $0x12c] sm:$0xf] }
  0x22   : > { %232 = vst [vmem:[%s1810_s7 + $0x38] sm:$0xf] %v231_v14  ;;  %v235_v16 = vld [vmem:[%s1805_s6 + $0x140] sm:$0xf]  ;;  %v237_v17 = vld [vmem:[%s1805_s6 + $0x154] sm:$0xf] }
  0x23   : > { %234 = vst [vmem:[%s1810_s7 + $0x3c] sm:$0xf] %v233_v15  ;;  %236 = vst [vmem:[%s1810_s7 + $0x40] sm:$0xf] %v235_v16  ;;  %v239_v18 = vld [vmem:[%s1805_s6 + $0x168] sm:$0xf] }
  0x24   : > { %238 = vst [vmem:[%s1810_s7 + $0x44] sm:$0xf] %v237_v17  ;;  %v241_v19 = vld [vmem:[%s1805_s6 + $0x17c] sm:$0xf]  ;;  %v243_v20 = vld [vmem:[%s1805_s6 + $0x190] sm:$0xf] }
  0x25   : > { %240 = vst [vmem:[%s1810_s7 + $0x48] sm:$0xf] %v239_v18  ;;  %242 = vst [vmem:[%s1810_s7 + $0x4c] sm:$0xf] %v241_v19  ;;  %v245_v21 = vld [vmem:[%s1805_s6 + $0x1a4] sm:$0xf] }
  0x26   : > { %244 = vst [vmem:[%s1810_s7 + $0x50] sm:$0xf] %v243_v20  ;;  %v247_v22 = vld [vmem:[%s1805_s6 + $0x1b8] sm:$0xf]  ;;  %v249_v23 = vld [vmem:[%s1805_s6 + $0x1cc] sm:$0xf] }
  0x27   : > { %246 = vst [vmem:[%s1810_s7 + $0x54] sm:$0xf] %v245_v21  ;;  %248 = vst [vmem:[%s1810_s7 + $0x58] sm:$0xf] %v247_v22  ;;  %v251_v24 = vld [vmem:[%s1805_s6 + $0x1e0] sm:$0xf] }
  0x28   : > { %250 = vst [vmem:[%s1810_s7 + $0x5c] sm:$0xf] %v249_v23  ;;  %v253_v25 = vld [vmem:[%s1805_s6 + $0x1f4] sm:$0xf]  ;;  %v255_v26 = vld [vmem:[%s1805_s6 + $0x208] sm:$0xf] }
  0x29   : > { %252 = vst [vmem:[%s1810_s7 + $0x60] sm:$0xf] %v251_v24  ;;  %254 = vst [vmem:[%s1810_s7 + $0x64] sm:$0xf] %v253_v25  ;;  %v257_v27 = vld [vmem:[%s1805_s6 + $0x21c] sm:$0xf] }
  0x2a   : > { %256 = vst [vmem:[%s1810_s7 + $0x68] sm:$0xf] %v255_v26  ;;  %v259_v28 = vld [vmem:[%s1805_s6 + $0x230] sm:$0xf]  ;;  %v261_v29 = vld [vmem:[%s1805_s6 + $0x244] sm:$0xf] }
  0x2b   : > { %258 = vst [vmem:[%s1810_s7 + $0x6c] sm:$0xf] %v257_v27  ;;  %260 = vst [vmem:[%s1810_s7 + $0x70] sm:$0xf] %v259_v28  ;;  %v263_v30 = vld [vmem:[%s1805_s6 + $0x258] sm:$0xf] }
  0x2c   : > { %262 = vst [vmem:[%s1810_s7 + $0x74] sm:$0xf] %v261_v29  ;;  %v265_v31 = vld [vmem:[%s1805_s6 + $0x26c] sm:$0xf]  ;;  %264 = vst [vmem:[%s1810_s7 + $0x78] sm:$0xf] %v263_v30 }
  0x2d   : > { %266 = vst [vmem:[%s1810_s7 + $0x7c] sm:$0xf] %v265_v31 }
  0x2e PF: > { %p1303_p7 = scmp.ge.s32.totalorder %s1722_s18, 1  ;;  %p364_p8 = scmp.lt.s32.totalorder %s1722_s18, 11 }
  0x30   : > { %p365_p9 = pnand %p1303_p7, %p364_p8 }
  0x31   : > { %s371_s8 = sand.u32 (!%p365_p9), 1, %s1698_s12   ;;  %s1305_s9 = sshll.u32 (!%p365_p9), %s1706_s14, 4 }
  0x32   : > { %368 = sbr.rel (%p365_p9) target bundleno = 363 (0x16b), region = 69  ;;  %s1304_s10 = sshll.u32 (!%p365_p9), %s371_s8, 7 }
  0x33   : > { %p414_p10 = scmp.lt.s32.totalorder (!%p365_p9), %s1305_s9, 79  ;;  %p426_p11 = scmp.lt.s32.totalorder (!%p365_p9), %s1710_s15, 1 }
  0x34   : > { %s1889_s29 = scalar_lea.vmem (!%p365_p9), [#allocation3], %s1304_s10  ;;  %p1309_p12 = scmp.ne.s32.totalorder (!%p365_p9), %s1706_s14, 0 }
  0x39   : > { %s2008_s9 = smov (!%p414_p10, %s1305_s9), 79  ;;  %s2010_s15 = smov (!%p426_p11, %s1710_s15), 1 }
  0x3a   : > { %s1306_s11 = sshll.u32 %s2008_s9, 2  ;;  %s1370_s24 = sshll.u32 %s2010_s15, 7  ;;  %v1724_v32 = vmov (!%p1309_p12), 0.0  }
  0x3b   : > { %s1882_s23 = scalar_lea.vmem %s1992_s1, %s1306_s11  ;;  %s1887_s28 = scalar_lea.vmem %s1994_s3, %s1370_s24  ;;  %443 = vst [vmem:[#allocation2] sm:$0xff] (!%p1309_p12), %v1724_v32  ;;  %444 = vst [vmem:[#allocation2 + $0x8] sm:$0xff] (!%p1309_p12), %v1724_v32 }
  0x3c   : > { %442 = sbr.rel (%p1309_p12) target bundleno = 75 (0x4b), region = 77  ;;  %445 = vst [vmem:[#allocation2 + $0x10] sm:$0xff] (!%p1309_p12), %v1724_v32  ;;  %446 = vst [vmem:[#allocation2 + $0x18] sm:$0xff] (!%p1309_p12), %v1724_v32 }
  0x3d   : > { %447 = vst [vmem:[#allocation2 + $0x20] sm:$0xff] (!%p1309_p12), %v1724_v32  ;;  %448 = vst [vmem:[#allocation2 + $0x28] sm:$0xff] (!%p1309_p12), %v1724_v32 }
  0x3e   : > { %449 = vst [vmem:[#allocation2 + $0x30] sm:$0xff] (!%p1309_p12), %v1724_v32  ;;  %450 = vst [vmem:[#allocation2 + $0x38] sm:$0xff] (!%p1309_p12), %v1724_v32 }
  0x3f   : > { %451 = vst [vmem:[#allocation2 + $0x40] sm:$0xff] (!%p1309_p12), %v1724_v32  ;;  %452 = vst [vmem:[#allocation2 + $0x48] sm:$0xff] (!%p1309_p12), %v1724_v32 }
  0x40   : > { %453 = vst [vmem:[#allocation2 + $0x50] sm:$0xff] (!%p1309_p12), %v1724_v32  ;;  %454 = vst [vmem:[#allocation2 + $0x58] sm:$0xff] (!%p1309_p12), %v1724_v32 }
  0x41   : > { %455 = vst [vmem:[#allocation2 + $0x60] sm:$0xff] (!%p1309_p12), %v1724_v32  ;;  %456 = vst [vmem:[#allocation2 + $0x68] sm:$0xff] (!%p1309_p12), %v1724_v32 }
  0x42   : > { %457 = vst [vmem:[#allocation2 + $0x70] sm:$0xff] (!%p1309_p12), %v1724_v32  ;;  %458 = vst [vmem:[#allocation2 + $0x78] sm:$0xff] (!%p1309_p12), %v1724_v32 }
  0x43   : > { %459 = vst [vmem:[#allocation2 + $0x80] sm:$0xff] %v1724_v32  ;;  %460 = vst [vmem:[#allocation2 + $0x88] sm:$0xff] %v1724_v32 }
  0x44   : > { %461 = vst [vmem:[#allocation2 + $0x90] sm:$0xff] %v1724_v32  ;;  %462 = vst [vmem:[#allocation2 + $0x98] sm:$0xff] %v1724_v32 }
  0x45   : > { %463 = vst [vmem:[#allocation2 + $0xa0] sm:$0xff] %v1724_v32  ;;  %464 = vst [vmem:[#allocation2 + $0xa8] sm:$0xff] %v1724_v32 }
  0x46   : > { %465 = vst [vmem:[#allocation2 + $0xb0] sm:$0xff] %v1724_v32  ;;  %466 = vst [vmem:[#allocation2 + $0xb8] sm:$0xff] %v1724_v32 }
  0x47   : > { %467 = vst [vmem:[#allocation2 + $0xc0] sm:$0xff] %v1724_v32  ;;  %468 = vst [vmem:[#allocation2 + $0xc8] sm:$0xff] %v1724_v32 }
  0x48   : > { %469 = vst [vmem:[#allocation2 + $0xd0] sm:$0xff] %v1724_v32  ;;  %470 = vst [vmem:[#allocation2 + $0xd8] sm:$0xff] %v1724_v32 }
  0x49   : > { %471 = vst [vmem:[#allocation2 + $0xe0] sm:$0xff] %v1724_v32  ;;  %472 = vst [vmem:[#allocation2 + $0xe8] sm:$0xff] %v1724_v32 }
  0x4a   : > { %473 = vst [vmem:[#allocation2 + $0xf0] sm:$0xff] %v1724_v32  ;;  %474 = vst [vmem:[#allocation2 + $0xf8] sm:$0xff] %v1724_v32 }
  0x4b PF: > { %v1644_v33 = vld [vmem:[%s1882_s23] sm:$0xff]   ;;  %v1645_v34 = vld [vmem:[%s1882_s23 + $0x8] sm:$0xff]   ;;  %v1646_v35 = vld [vmem:[%s1882_s23 + $0x10] sm:$0xff]   ;;  %p1334_p13 = scmp.ne.s32.totalorder %s1706_s14, 4 }
  0x4c   : > { %1522 = vmatprep.subr.bf16.mxu0 %v1644_v33  ;;  %1570 = vmatprep.subr.bf16.mxu1 %v1644_v33  ;;  %v1647_v36 = vld [vmem:[%s1882_s23 + $0x18] sm:$0xff]   ;;  %v1652_v37 = vld [vmem:[%s1889_s29] sm:$0xff]   ;;  %v1649_v40 = vld [vmem:[%s1882_s23 + $0x28] sm:$0xff]  }
  0x4d   : > { %1523 = vmatpush3.bf16.msra.mxu0 %v1644_v33  ;;  %1578 = vmatpush3.bf16.msra.mxu1 %v1644_v33  ;;  %v1653_v38 = vld [vmem:[%s1889_s29 + $0x40] sm:$0xff]   ;;  %v1650_v41 = vld [vmem:[%s1882_s23 + $0x30] sm:$0xff]   ;;  %v1651_v42 = vld [vmem:[%s1882_s23 + $0x38] sm:$0xff]  }
  0x4e   : > { %1524 = vmatprep.subr.bf16.mxu0 %v1645_v34  ;;  %1571 = vmatprep.subr.bf16.mxu1 %v1645_v34  ;;  %v1648_v39 = vld [vmem:[%s1882_s23 + $0x20] sm:$0xff]   ;;  %v1654_v43 = vld [vmem:[%s1889_s29 + $0x8] sm:$0xff]   ;;  %v1656_v45 = vld [vmem:[%s1889_s29 + $0x10] sm:$0xff]  }
  0x4f   : > { %1538 = vmatprep.mubr.bf16.mxu0 %v1652_v37  ;;  %1554 = vmatprep.mubr.bf16.mxu1 %v1653_v38  ;;  %v1655_v44 = vld [vmem:[%s1889_s29 + $0x48] sm:$0xff]   ;;  %v1657_v46 = vld [vmem:[%s1889_s29 + $0x50] sm:$0xff]   ;;  %v1658_v47 = vld [vmem:[%s1889_s29 + $0x18] sm:$0xff]  }
  0x50   : > { %v1659_v48 = vld [vmem:[%s1889_s29 + $0x58] sm:$0xff]   ;;  %v1660_v49 = vld [vmem:[%s1889_s29 + $0x20] sm:$0xff]   ;;  %v1662_v51 = vld [vmem:[%s1889_s29 + $0x28] sm:$0xff]  }
  0x51   : > { %1525 = vmatpush3.bf16.msra.mxu0 %v1645_v34  ;;  %1579 = vmatpush3.bf16.msra.mxu1 %v1645_v34  ;;  %v1661_v50 = vld [vmem:[%s1889_s29 + $0x60] sm:$0xff]   ;;  %v1663_v52 = vld [vmem:[%s1889_s29 + $0x68] sm:$0xff]   ;;  %v1664_v53 = vld [vmem:[%s1889_s29 + $0x30] sm:$0xff]  }
  0x52   : > { %1526 = vmatprep.subr.bf16.mxu0 %v1646_v35  ;;  %1572 = vmatprep.subr.bf16.mxu1 %v1646_v35  ;;  %v1665_v54 = vld [vmem:[%s1889_s29 + $0x70] sm:$0xff]   ;;  %v1666_v55 = vld [vmem:[%s1889_s29 + $0x38] sm:$0xff]   ;;  %v475_v59 = vld [vmem:[#allocation2] sm:$0xff] }
  0x53   : > { %v1667_v56 = vld [vmem:[%s1889_s29 + $0x78] sm:$0xff]   ;;  %v477_v57 = vld [vmem:[#allocation2 + $0x10] sm:$0xff]  ;;  %v491_v60 = vld [vmem:[#allocation2 + $0x80] sm:$0xff] }
  0x54   : > { %v493_v58 = vld [vmem:[#allocation2 + $0x90] sm:$0xff]  ;;  %v478_v63 = vld [vmem:[#allocation2 + $0x18] sm:$0xff]  ;;  %v476_v5 = vld [vmem:[#allocation2 + $0x8] sm:$0xff] }
  0x55   : > { %1527 = vmatpush3.bf16.msra.mxu0 %v1646_v35  ;;  %1580 = vmatpush3.bf16.msra.mxu1 %v1646_v35  ;;  %v494_v0 = vld [vmem:[#allocation2 + $0x98] sm:$0xff]  ;;  %v492_v6 = vld [vmem:[#allocation2 + $0x88] sm:$0xff]  ;;  %v481_v17 = vld [vmem:[#allocation2 + $0x30] sm:$0xff] }
  0x56   : > { %1528 = vmatprep.subr.bf16.mxu0 %v1647_v36  ;;  %1573 = vmatprep.subr.bf16.mxu1 %v1647_v36  ;;  %v497_v18 = vld [vmem:[#allocation2 + $0xb0] sm:$0xff]  ;;  %v479_v19 = vld [vmem:[#allocation2 + $0x20] sm:$0xff]  ;;  %v482_v23 = vld [vmem:[#allocation2 + $0x38] sm:$0xff] }
  0x57   : > { %v495_v20 = vld [vmem:[#allocation2 + $0xa0] sm:$0xff]  ;;  %v498_v24 = vld [vmem:[#allocation2 + $0xb8] sm:$0xff]  ;;  %v480_v29 = vld [vmem:[#allocation2 + $0x28] sm:$0xff] }
  0x58   : > { %v496_v30 = vld [vmem:[#allocation2 + $0xa8] sm:$0xff] }
  0x59   : > { %1529 = vmatpush3.bf16.msra.mxu0 %v1647_v36  ;;  %1581 = vmatpush3.bf16.msra.mxu1 %v1647_v36 }
  0x5a   : > { %1530 = vmatprep.subr.bf16.mxu0 %v1648_v39  ;;  %1574 = vmatprep.subr.bf16.mxu1 %v1648_v39 }
  0x5d   : > { %1531 = vmatpush3.bf16.msra.mxu0 %v1648_v39  ;;  %1582 = vmatpush3.bf16.msra.mxu1 %v1648_v39 }
  0x5e   : > { %1532 = vmatprep.subr.bf16.mxu0 %v1649_v40  ;;  %1575 = vmatprep.subr.bf16.mxu1 %v1649_v40 }
  0x61   : > { %1533 = vmatpush3.bf16.msra.mxu0 %v1649_v40  ;;  %1583 = vmatpush3.bf16.msra.mxu1 %v1649_v40 }
  0x62   : > { %1534 = vmatprep.subr.bf16.mxu0 %v1650_v41  ;;  %1576 = vmatprep.subr.bf16.mxu1 %v1650_v41 }
  0x65   : > { %1535 = vmatpush3.bf16.msra.mxu0 %v1650_v41  ;;  %1584 = vmatpush3.bf16.msra.mxu1 %v1650_v41  ;;  %v485_v41 = vld [vmem:[#allocation2 + $0x50] sm:$0xff] }
  0x66   : > { %1536 = vmatprep.subr.bf16.mxu0 %v1651_v42  ;;  %1577 = vmatprep.subr.bf16.mxu1 %v1651_v42 }
  0x69   : > { %1537 = vmatpush3.bf16.msra.mxu0 %v1651_v42  ;;  %1585 = vmatpush3.bf16.msra.mxu1 %v1651_v42  ;;  %v501_v42 = vld [vmem:[#allocation2 + $0xd0] sm:$0xff] }
  0x6c   : > { %1539 = vmatmul.mubr.bf16.vlgmr.msra.gmra.mrb[0].mxu0 %v1654_v43  ;;  %1555 = vmatmul.mubr.bf16.vlgmr.msra.gmra.mrb[0].mxu1 %v1655_v44  ;;  %v483_v43 = vld [vmem:[#allocation2 + $0x40] sm:$0xff] }
  0x6d   : > { %1542 = vmatprep.mubr.bf16.mxu0 %v1656_v45  ;;  %1558 = vmatprep.mubr.bf16.mxu1 %v1657_v46  ;;  %v499_v44 = vld [vmem:[#allocation2 + $0xc0] sm:$0xff] }
  0x74   : > { %1543 = vmatmul.mubr.bf16.gmra.mrb[4].mxu0 %v1658_v47  ;;  %1559 = vmatmul.mubr.bf16.gmra.mrb[4].mxu1 %v1659_v48  ;;  %v486_v47 = vld [vmem:[#allocation2 + $0x58] sm:$0xff] }
  0x75   : > { %1546 = vmatprep.mubr.bf16.mxu0 %v1660_v49  ;;  %1562 = vmatprep.mubr.bf16.mxu1 %v1661_v50  ;;  %v502_v48 = vld [vmem:[#allocation2 + $0xd8] sm:$0xff] }
  0x7c   : > { %1547 = vmatmul.mubr.bf16.gmra.mrb[8].mxu0 %v1662_v51  ;;  %1563 = vmatmul.mubr.bf16.gmra.mrb[8].mxu1 %v1663_v52 }
  0x7d   : > { %1550 = vmatprep.mubr.bf16.mxu0 %v1664_v53  ;;  %1566 = vmatprep.mubr.bf16.mxu1 %v1665_v54  ;;  %v484_v53 = vld [vmem:[#allocation2 + $0x48] sm:$0xff] }
  0x7e   : > { %v500_v54 = vld [vmem:[#allocation2 + $0xc8] sm:$0xff] }
  0x84   : > { %1551 = vmatmul.mubr.bf16.gmra.mrb[12].mxu0 %v1666_v55  ;;  %1567 = vmatmul.mubr.bf16.gmra.mrb[12].mxu1 %v1667_v56 }
 0x13f   : > { %v1540_v61 = vpop.f32.mrb[0].mxu0  ;;  %v1556_v62 = vpop.f32.mrb[0].mxu1 }
 0x140   : > { %v862_v1 = vadd.f32 %v1540_v61, %v477_v57  ;;  %v878_v2 = vadd.f32 %v1556_v62, %v493_v58  ;;  %v733_v3 = vpop.f32.mrb[1].mxu0  ;;  %v797_v4 = vpop.f32.mrb[1].mxu1 }
 0x141   : > { %v860_v7 = vadd.f32 %v733_v3, %v475_v59  ;;  %v876_v8 = vadd.f32 %v797_v4, %v491_v60  ;;  %v1541_v9 = vpop.f32.mrb[2].mxu0  ;;  %v1557_v10 = vpop.f32.mrb[2].mxu1  ;;  %v487_v3 = vld [vmem:[#allocation2 + $0x60] sm:$0xff] }
 0x142   : > { %894 = vst [vmem:[#allocation2 + $0x10] sm:$0xff] %v862_v1  ;;  %910 = vst [vmem:[#allocation2 + $0x90] sm:$0xff] %v878_v2  ;;  %v863_v11 = vadd.f32 %v1541_v9, %v478_v63  ;;  %v879_v12 = vadd.f32 %v1557_v10, %v494_v0  ;;  %v736_v13 = vpop.f32.mrb[3].mxu0  ;;  %v800_v14 = vpop.f32.mrb[3].mxu1  ;;  %v489_v1 = vld [vmem:[#allocation2 + $0x70] sm:$0xff]  ;;  %v503_v4 = vld [vmem:[#allocation2 + $0xe0] sm:$0xff] }
 0x143   : > { %892 = vst [vmem:[#allocation2] sm:$0xff] %v860_v7  ;;  %908 = vst [vmem:[#allocation2 + $0x80] sm:$0xff] %v876_v8  ;;  %v861_v15 = vadd.f32 %v736_v13, %v476_v5  ;;  %v877_v16 = vadd.f32 %v800_v14, %v492_v6  ;;  %v505_v2 = vld [vmem:[#allocation2 + $0xf0] sm:$0xff]  ;;  %v490_v7 = vld [vmem:[#allocation2 + $0x78] sm:$0xff] }
 0x144   : > { %895 = vst [vmem:[#allocation2 + $0x18] sm:$0xff] %v863_v11  ;;  %911 = vst [vmem:[#allocation2 + $0x98] sm:$0xff] %v879_v12  ;;  %v506_v8 = vld [vmem:[#allocation2 + $0xf8] sm:$0xff]  ;;  %v488_v13 = vld [vmem:[#allocation2 + $0x68] sm:$0xff] }
 0x145   : > { %893 = vst [vmem:[#allocation2 + $0x8] sm:$0xff] %v861_v15  ;;  %909 = vst [vmem:[#allocation2 + $0x88] sm:$0xff] %v877_v16  ;;  %v504_v14 = vld [vmem:[#allocation2 + $0xe8] sm:$0xff] }
 0x147   : > { %v1544_v21 = vpop.f32.mrb[4].mxu0  ;;  %v1560_v22 = vpop.f32.mrb[4].mxu1 }
 0x148   : > { %v866_v25 = vadd.f32 %v1544_v21, %v481_v17  ;;  %v882_v26 = vadd.f32 %v1560_v22, %v497_v18  ;;  %v749_v27 = vpop.f32.mrb[5].mxu0  ;;  %v813_v28 = vpop.f32.mrb[5].mxu1 }
 0x149   : > { %v864_v31 = vadd.f32 %v749_v27, %v479_v19  ;;  %v880_v32 = vadd.f32 %v813_v28, %v495_v20  ;;  %v1545_v33 = vpop.f32.mrb[6].mxu0  ;;  %v1561_v34 = vpop.f32.mrb[6].mxu1  ;;  %v1920_v27 = vld [vmem:[%s1993_s2] ss:$0 sm:$0xff] (!%p1334_p13) }
 0x14a   : > { %898 = vst [vmem:[#allocation2 + $0x30] sm:$0xff] %v866_v25  ;;  %914 = vst [vmem:[#allocation2 + $0xb0] sm:$0xff] %v882_v26  ;;  %v867_v35 = vadd.f32 %v1545_v33, %v482_v23  ;;  %v883_v36 = vadd.f32 %v1561_v34, %v498_v24  ;;  %v752_v37 = vpop.f32.mrb[7].mxu0  ;;  %v816_v38 = vpop.f32.mrb[7].mxu1  ;;  %v928_v25 = vld [vmem:[#allocation2] sm:$0xff] (!%p1334_p13) }
 0x14b   : > { %896 = vst [vmem:[#allocation2 + $0x20] sm:$0xff] %v864_v31  ;;  %912 = vst [vmem:[#allocation2 + $0xa0] sm:$0xff] %v880_v32  ;;  %v865_v39 = vadd.f32 %v752_v37, %v480_v29  ;;  %v881_v40 = vadd.f32 %v816_v38, %v496_v30  ;;  %v967_v28 = vadd.f32 (!%p1334_p13), %v1920_v27, %v928_v25  ;;  %v930_v30 = vld [vmem:[#allocation2 + $0x10] sm:$0xff] (!%p1334_p13)  ;;  %v931_v31 = vld [vmem:[#allocation2 + $0x18] sm:$0xff] (!%p1334_p13) }
 0x14c   : > { %899 = vst [vmem:[#allocation2 + $0x38] sm:$0xff] %v867_v35  ;;  %915 = vst [vmem:[#allocation2 + $0xb8] sm:$0xff] %v883_v36  ;;  %v929_v26 = vld [vmem:[#allocation2 + $0x8] sm:$0xff] (!%p1334_p13)  ;;  %v969_v33 = vadd.f32 (!%p1334_p13), %v1920_v27, %v930_v30  ;;  %v970_v34 = vadd.f32 (!%p1334_p13), %v1920_v27, %v931_v31 }
 0x14d   : > { %897 = vst [vmem:[#allocation2 + $0x28] sm:$0xff] %v865_v39  ;;  %913 = vst [vmem:[#allocation2 + $0xa8] sm:$0xff] %v881_v40  ;;  %v968_v29 = vadd.f32 (!%p1334_p13), %v1920_v27, %v929_v26 }
 0x14f   : > { %v1548_v45 = vpop.f32.mrb[8].mxu0  ;;  %v1564_v46 = vpop.f32.mrb[8].mxu1  ;;  %v1406_v39 = vpack.c.bf16 (!%p1334_p13), %v968_v29, %v967_v28 }
 0x150   : > { %v870_v49 = vadd.f32 %v1548_v45, %v485_v41  ;;  %v886_v50 = vadd.f32 %v1564_v46, %v501_v42  ;;  %v765_v51 = vpop.f32.mrb[9].mxu0  ;;  %v829_v52 = vpop.f32.mrb[9].mxu1  ;;  %v1411_v46 = vpack.c.bf16 (!%p1334_p13), %v970_v34, %v969_v33 }
 0x151   : > { %v868_v55 = vadd.f32 %v765_v51, %v483_v43  ;;  %v884_v56 = vadd.f32 %v829_v52, %v499_v44  ;;  %v1549_v57 = vpop.f32.mrb[10].mxu0  ;;  %v1565_v58 = vpop.f32.mrb[10].mxu1  ;;  %v934_v37 = vld [vmem:[#allocation2 + $0x30] sm:$0xff] (!%p1334_p13)  ;;  %1407 = vst [vmem:[%s1887_s28] sm:$0xff] (!%p1334_p13), %v1406_v39  }
 0x152   : > { %902 = vst [vmem:[#allocation2 + $0x50] sm:$0xff] %v870_v49  ;;  %918 = vst [vmem:[#allocation2 + $0xd0] sm:$0xff] %v886_v50  ;;  %v871_v59 = vadd.f32 %v1549_v57, %v486_v47  ;;  %v887_v60 = vadd.f32 %v1565_v58, %v502_v48  ;;  %v768_v61 = vpop.f32.mrb[11].mxu0  ;;  %v832_v62 = vpop.f32.mrb[11].mxu1  ;;  %v932_v32 = vld [vmem:[#allocation2 + $0x20] sm:$0xff] (!%p1334_p13)  ;;  %v973_v41 = vadd.f32 (!%p1334_p13), %v1920_v27, %v934_v37 }
 0x153   : > { %900 = vst [vmem:[#allocation2 + $0x40] sm:$0xff] %v868_v55  ;;  %916 = vst [vmem:[#allocation2 + $0xc0] sm:$0xff] %v884_v56  ;;  %v869_v63 = vadd.f32 %v768_v61, %v484_v53  ;;  %v885_v0 = vadd.f32 %v832_v62, %v500_v54  ;;  %v971_v36 = vadd.f32 (!%p1334_p13), %v1920_v27, %v932_v32  ;;  %v935_v38 = vld [vmem:[#allocation2 + $0x38] sm:$0xff] (!%p1334_p13) }
 0x154   : > { %903 = vst [vmem:[#allocation2 + $0x58] sm:$0xff] %v871_v59  ;;  %919 = vst [vmem:[#allocation2 + $0xd8] sm:$0xff] %v887_v60  ;;  %v933_v35 = vld [vmem:[#allocation2 + $0x28] sm:$0xff] (!%p1334_p13)  ;;  %v974_v42 = vadd.f32 (!%p1334_p13), %v1920_v27, %v935_v38  ;;  %v944_v59 = vld [vmem:[#allocation2 + $0x80] sm:$0xff] (!%p1334_p13) }
 0x155   : > { %901 = vst [vmem:[#allocation2 + $0x48] sm:$0xff] %v869_v63  ;;  %917 = vst [vmem:[#allocation2 + $0xc8] sm:$0xff] %v885_v0  ;;  %v972_v40 = vadd.f32 (!%p1334_p13), %v1920_v27, %v933_v35  ;;  %v945_v0 = vld [vmem:[#allocation2 + $0x88] sm:$0xff] (!%p1334_p13) }
 0x156   : > { %v1421_v54 = vpack.c.bf16 (!%p1334_p13), %v974_v42, %v973_v41  ;;  %1483 = vst [vmem:[%s1887_s28 + $0x8] sm:$0xff] (!%p1334_p13), %v1411_v46  }
 0x157   : > { %v1552_v5 = vpop.f32.mrb[12].mxu0  ;;  %v1568_v6 = vpop.f32.mrb[12].mxu1  ;;  %927 = sbr.rel (%p1334_p13) target bundleno = 363 (0x16b), region = 81  ;;  %v1416_v53 = vpack.c.bf16 (!%p1334_p13), %v972_v40, %v971_v36 }
 0x158   : > { %v874_v9 = vadd.f32 %v1552_v5, %v489_v1  ;;  %v890_v10 = vadd.f32 %v1568_v6, %v505_v2  ;;  %v781_v11 = vpop.f32.mrb[13].mxu0  ;;  %v845_v12 = vpop.f32.mrb[13].mxu1  ;;  %v946_v1 = vld [vmem:[#allocation2 + $0x90] sm:$0xff] (!%p1334_p13)  ;;  %v947_v2 = vld [vmem:[#allocation2 + $0x98] sm:$0xff] (!%p1334_p13)  ;;  %1485 = vst [vmem:[%s1887_s28 + $0x18] sm:$0xff] (!%p1334_p13), %v1421_v54   ;;  %v984_v5 = vadd.f32 (!%p1334_p13), %v1920_v27, %v945_v0 }
 0x159   : > { %v872_v15 = vadd.f32 %v781_v11, %v487_v3  ;;  %v888_v16 = vadd.f32 %v845_v12, %v503_v4  ;;  %v1553_v17 = vpop.f32.mrb[14].mxu0  ;;  %v1569_v18 = vpop.f32.mrb[14].mxu1  ;;  %v938_v45 = vld [vmem:[#allocation2 + $0x50] sm:$0xff] (!%p1334_p13)  ;;  %1484 = vst [vmem:[%s1887_s28 + $0x10] sm:$0xff] (!%p1334_p13), %v1416_v53   ;;  %v983_v4 = vadd.f32 (!%p1334_p13), %v1920_v27, %v944_v59  ;;  %v985_v6 = vadd.f32 (!%p1334_p13), %v1920_v27, %v946_v1 }
 0x15a   : > { %906 = vst [vmem:[#allocation2 + $0x70] sm:$0xff] %v874_v9  ;;  %922 = vst [vmem:[#allocation2 + $0xf0] sm:$0xff] %v890_v10  ;;  %v875_v19 = vadd.f32 %v1553_v17, %v490_v7  ;;  %v891_v20 = vadd.f32 %v1569_v18, %v506_v8  ;;  %v784_v21 = vpop.f32.mrb[15].mxu0  ;;  %v848_v22 = vpop.f32.mrb[15].mxu1  ;;  %v936_v43 = vld [vmem:[#allocation2 + $0x40] sm:$0xff] (!%p1334_p13)  ;;  %v977_v50 = vadd.f32 (!%p1334_p13), %v1920_v27, %v938_v45  ;;  %v949_v8 = vld [vmem:[#allocation2 + $0xa8] sm:$0xff] (!%p1334_p13) }
 0x15b   : > { %904 = vst [vmem:[#allocation2 + $0x60] sm:$0xff] %v872_v15  ;;  %920 = vst [vmem:[#allocation2 + $0xe0] sm:$0xff] %v888_v16  ;;  %v873_v23 = vadd.f32 %v784_v21, %v488_v13  ;;  %v889_v24 = vadd.f32 %v848_v22, %v504_v14  ;;  %v975_v47 = vadd.f32 (!%p1334_p13), %v1920_v27, %v936_v43  ;;  %v939_v49 = vld [vmem:[#allocation2 + $0x58] sm:$0xff] (!%p1334_p13)  ;;  %v948_v7 = vld [vmem:[#allocation2 + $0xa0] sm:$0xff] (!%p1334_p13) }
 0x15c   : > { %907 = vst [vmem:[#allocation2 + $0x78] sm:$0xff] %v875_v19  ;;  %923 = vst [vmem:[#allocation2 + $0xf8] sm:$0xff] %v891_v20  ;;  %v937_v44 = vld [vmem:[#allocation2 + $0x48] sm:$0xff] (!%p1334_p13)  ;;  %v978_v55 = vadd.f32 (!%p1334_p13), %v1920_v27, %v939_v49  ;;  %v950_v9 = vld [vmem:[#allocation2 + $0xb0] sm:$0xff] (!%p1334_p13)  ;;  %v986_v12 = vadd.f32 (!%p1334_p13), %v1920_v27, %v947_v2  ;;  %v987_v13 = vadd.f32 (!%p1334_p13), %v1920_v27, %v948_v7 }
 0x15d   : > { %905 = vst [vmem:[#allocation2 + $0x68] sm:$0xff] %v873_v23  ;;  %921 = vst [vmem:[#allocation2 + $0xe8] sm:$0xff] %v889_v24  ;;  %v976_v48 = vadd.f32 (!%p1334_p13), %v1920_v27, %v937_v44  ;;  %v951_v14 = vld [vmem:[#allocation2 + $0xb8] sm:$0xff] (!%p1334_p13)  ;;  %v952_v15 = vld [vmem:[#allocation2 + $0xc0] sm:$0xff] (!%p1334_p13)  ;;  %v1446_v17 = vpack.c.bf16 (!%p1334_p13), %v984_v5, %v983_v4  ;;  %v988_v18 = vadd.f32 (!%p1334_p13), %v1920_v27, %v949_v8 }
 0x15e   : > { %v1431_v3 = vpack.c.bf16 %v978_v55, %v977_v50  ;;  %v953_v16 = vld [vmem:[#allocation2 + $0xc8] sm:$0xff]  ;;  %v989_v19 = vadd.f32 %v1920_v27, %v950_v9  ;;  %v990_v20 = vadd.f32 %v1920_v27, %v951_v14  ;;  %v954_v21 = vld [vmem:[#allocation2 + $0xd0] sm:$0xff]  ;;  %v955_v22 = vld [vmem:[#allocation2 + $0xd8] sm:$0xff]  ;;  %v1451_v24 = vpack.c.bf16 %v986_v12, %v985_v6 }
 0x15f   : > { %v1426_v60 = vpack.c.bf16 %v976_v48, %v975_v47  ;;  %v991_v25 = vadd.f32 %v1920_v27, %v952_v15  ;;  %v992_v26 = vadd.f32 %v1920_v27, %v953_v16  ;;  %v993_v28 = vadd.f32 %v1920_v27, %v954_v21  ;;  %1490 = vst [vmem:[%s1887_s28 + $0x40] sm:$0xff] %v1446_v17  }
 0x160   : > { %1487 = vst [vmem:[%s1887_s28 + $0x28] sm:$0xff] %v1431_v3   ;;  %v1456_v32 = vpack.c.bf16 %v988_v18, %v987_v13  ;;  %v1461_v33 = vpack.c.bf16 %v990_v20, %v989_v19  ;;  %v994_v34 = vadd.f32 %v1920_v27, %v955_v22  ;;  %1491 = vst [vmem:[%s1887_s28 + $0x48] sm:$0xff] %v1451_v24  }
 0x161   : > { %v942_v57 = vld [vmem:[#allocation2 + $0x70] sm:$0xff]  ;;  %1486 = vst [vmem:[%s1887_s28 + $0x20] sm:$0xff] %v1426_v60   ;;  %v1466_v36 = vpack.c.bf16 %v992_v26, %v991_v25 }
 0x162   : > { %v940_v51 = vld [vmem:[#allocation2 + $0x60] sm:$0xff]  ;;  %v981_v62 = vadd.f32 %v1920_v27, %v942_v57  ;;  %v958_v30 = vld [vmem:[#allocation2 + $0xf0] sm:$0xff]  ;;  %1492 = vst [vmem:[%s1887_s28 + $0x50] sm:$0xff] %v1456_v32   ;;  %1493 = vst [vmem:[%s1887_s28 + $0x58] sm:$0xff] %v1461_v33   ;;  %v1471_v40 = vpack.c.bf16 %v994_v34, %v993_v28 }
 0x163   : > { %v979_v56 = vadd.f32 %v1920_v27, %v940_v51  ;;  %v943_v58 = vld [vmem:[#allocation2 + $0x78] sm:$0xff]  ;;  %v956_v23 = vld [vmem:[#allocation2 + $0xe0] sm:$0xff]  ;;  %v997_v38 = vadd.f32 %v1920_v27, %v958_v30  ;;  %1494 = vst [vmem:[%s1887_s28 + $0x60] sm:$0xff] %v1466_v36  }
 0x164   : > { %v941_v52 = vld [vmem:[#allocation2 + $0x68] sm:$0xff]  ;;  %v982_v63 = vadd.f32 %v1920_v27, %v943_v58  ;;  %v959_v31 = vld [vmem:[#allocation2 + $0xf8] sm:$0xff]  ;;  %v995_v35 = vadd.f32 %v1920_v27, %v956_v23  ;;  %1495 = vst [vmem:[%s1887_s28 + $0x68] sm:$0xff] %v1471_v40  }
 0x165   : > { %v980_v61 = vadd.f32 %v1920_v27, %v941_v52  ;;  %v957_v29 = vld [vmem:[#allocation2 + $0xe8] sm:$0xff]  ;;  %v998_v39 = vadd.f32 %v1920_v27, %v959_v31 }
 0x166   : > { %v1441_v11 = vpack.c.bf16 %v982_v63, %v981_v62  ;;  %v996_v37 = vadd.f32 %v1920_v27, %v957_v29 }
 0x167   : > { %v1436_v10 = vpack.c.bf16 %v980_v61, %v979_v56  ;;  %v1481_v42 = vpack.c.bf16 %v998_v39, %v997_v38 }
 0x168   : > { %1489 = vst [vmem:[%s1887_s28 + $0x38] sm:$0xff] %v1441_v11   ;;  %v1476_v41 = vpack.c.bf16 %v996_v37, %v995_v35 }
 0x169   : > { %1488 = vst [vmem:[%s1887_s28 + $0x30] sm:$0xff] %v1436_v10   ;;  %1497 = vst [vmem:[%s1887_s28 + $0x78] sm:$0xff] %v1481_v42  }
 0x16a   : > { %1496 = vst [vmem:[%s1887_s28 + $0x70] sm:$0xff] %v1476_v41  }
 0x16b PF: > { %s13_s18 = sadd.s32 1, %s1722_s18   ;;  %s1995_s12 = smov %s1702_s13 }
 0x16c   : > { %p10_p0 = scmp.ge.s32.totalorder %s13_s18, 12   ;;  %s1996_s13 = smov %s1796_s25 }
 0x16d   : > { %s1997_s14 = smov %s1714_s16  ;;  %s1998_s15 = smov %s1718_s17 }
 0x16e   : > { %s1999_s16 = smov %s2002_s19  ;;  %s2000_s17 = smov %s2006_s20 }
 0x16f   :  { %12 = sbr.rel (!%p10_p0) target bundleno = 4 (0x4), region = 122 }

// kernel: decoder_forward.82
= control target key start
LH: loop header
LB: loop body
LE: loop exit
PB: predicated region body
PF: predicated region fallthrough
CT: control target
= control target key end

     0   :  { %s666_s9 = smov 0   ;;  %s668_s10 = smov 0   ;;  %s798_s0 = inlined_call_operand.vmem [shape: bf16[2,256,64], index: 0, kind: input, shape index: {}]   ;;  %s799_s1 = inlined_call_operand.vmem [shape: f32[2,1,64], index: 1, kind: output, shape index: {0}]   ;;  %s800_s2 = inlined_call_operand.vmem [shape: f32[2,1,64], index: 2, kind: output, shape index: {1}]  }
   0x1   :  { %s670_s11 = smov 0  }
   0x2 LB: > { %s25_s12 = sadd.s32 1, %s644_s10  ;;  %p516_p0 = scmp.ge.s32.totalorder %s648_s11, 1  ;;  %s648_s11 = sphi %s670_s11, %s13_s11   ;;  %s644_s10 = sphi %s668_s10, %s802_s10   ;;  %s640_s9 = sphi %s666_s9, %s801_s9  }
   0x3   : > { %p27_p1 = scmp.ge.s32.totalorder %s25_s12, 2  ;;  %p134_p2 = scmp.lt.s32.totalorder %s648_s11, 3 }
   0x5   : > { %s804_s12 = smov (%p27_p1, %s25_s12), 0  ;;  %p135_p3 = pnand %p516_p0, %p134_p2 }
   0x6   : > { %p162_p4 = scmp.lt.s32.totalorder (!%p135_p3), %s640_s9, 1  ;;  %vm181_vm0 = vcmask (!%p135_p3), 516096   ;;  %v650_v0 = vmov (!%p135_p3), 0.0   ;;  %vm249_vm1 = vcmask (!%p135_p3), 523264  }
   0x7   : > { %138 = sbr.rel (%p135_p3) target bundleno = 104 (0x68), region = 24 }
   0xe   : > { %s806_s9 = smov (!%p162_p4, %s640_s9), 1 }
   0xf   : > { %s521_s13 = sshll.u32 %s806_s9, 7  ;;  %s687_s16 = scalar_lea.vmem %s799_s1, %s806_s9 }
  0x10   : > { %182 = vst.msk [vmem:[%s687_s16] sm:$0x1] %vm181_vm0, %v650_v0  ;;  %s694_s19 = scalar_lea.vmem %s800_s2, %s806_s9  ;;  %s701_s22 = scalar_lea.vmem %s798_s0, %s521_s13 }
  0x11   : > { %183 = vst.msk [vmem:[%s694_s19] sm:$0x1] %vm181_vm0, %v650_v0  ;;  %v523_v1 = vld [vmem:[%s701_s22] sm:$0xff]   ;;  %v586_v2 = vld [vmem:[%s701_s22 + $0x8] sm:$0xff]   ;;  %v587_v6 = vld [vmem:[%s701_s22 + $0x10] sm:$0xff]  }
  0x12   : > { %v524_v3 = vunpack.c.l.bf16 %v523_v1  ;;  %v525_v4 = vunpack.c.h.bf16 %v523_v1  ;;  %v528_v5 = vunpack.c.l.bf16 %v586_v2  ;;  %v529_v7 = vunpack.c.h.bf16 %v586_v2  ;;  %v588_v14 = vld [vmem:[%s701_s22 + $0x18] sm:$0xff]   ;;  %v589_v21 = vld [vmem:[%s701_s22 + $0x20] sm:$0xff]   ;;  %v590_v27 = vld [vmem:[%s701_s22 + $0x28] sm:$0xff]  }
  0x13   : > { %v532_v12 = vunpack.c.l.bf16 %v587_v6  ;;  %v533_v16 = vunpack.c.h.bf16 %v587_v6  ;;  %v536_v19 = vunpack.c.l.bf16 %v588_v14  ;;  %v537_v23 = vunpack.c.h.bf16 %v588_v14  ;;  %v591_v34 = vld [vmem:[%s701_s22 + $0x30] sm:$0xff]   ;;  %v592_v50 = vld [vmem:[%s701_s22 + $0x38] sm:$0xff]   ;;  %v593_v63 = vld [vmem:[%s701_s22 + $0x40] sm:$0xff]  }
  0x14   : > { %v250_v8 = vsel %vm249_vm1, %v524_v3, 0.0  ;;  %v251_v9 = vsel %vm249_vm1, %v525_v4, 0.0  ;;  %v253_v10 = vsel %vm249_vm1, %v528_v5, 0.0  ;;  %v255_v13 = vsel %vm249_vm1, %v529_v7, 0.0 }
  0x15   : > { %v252_v11 = vadd.f32 %v251_v9, %v250_v8  ;;  %v257_v17 = vsel %vm249_vm1, %v532_v12, 0.0  ;;  %v259_v20 = vsel %vm249_vm1, %v533_v16, 0.0  ;;  %v261_v24 = vsel %vm249_vm1, %v536_v19, 0.0 }
  0x16   : > { %v540_v26 = vunpack.c.l.bf16 %v589_v21  ;;  %v263_v28 = vsel %vm249_vm1, %v537_v23, 0.0  ;;  %v541_v30 = vunpack.c.h.bf16 %v589_v21  ;;  %v544_v32 = vunpack.c.l.bf16 %v590_v27 }
  0x17   : > { %v254_v15 = vadd.f32 %v253_v10, %v252_v11  ;;  %v323_v36 = vmul.f32 %v524_v3, %v524_v3  ;;  %v324_v37 = vmul.f32 %v525_v4, %v525_v4  ;;  %v325_v38 = vmul.f32 %v528_v5, %v528_v5 }
  0x18   : > { %v265_v31 = vsel %vm249_vm1, %v540_v26, 0.0  ;;  %v267_v35 = vsel %vm249_vm1, %v541_v30, 0.0  ;;  %v545_v39 = vunpack.c.h.bf16 %v590_v27  ;;  %v269_v41 = vsel %vm249_vm1, %v544_v32, 0.0 }
  0x19   : > { %v256_v18 = vadd.f32 %v255_v13, %v254_v15  ;;  %v326_v42 = vmul.f32 %v529_v7, %v529_v7  ;;  %v548_v43 = vunpack.c.l.bf16 %v591_v34  ;;  %v327_v46 = vmul.f32 %v532_v12, %v532_v12  ;;  %v594_v12 = vld [vmem:[%s701_s22 + $0x48] sm:$0xff]  }
  0x1a   : > { %v271_v45 = vsel %vm249_vm1, %v545_v39, 0.0  ;;  %v355_v47 = vsel %vm249_vm1, %v323_v36, 0.0  ;;  %v356_v48 = vsel %vm249_vm1, %v324_v37, 0.0  ;;  %v358_v49 = vsel %vm249_vm1, %v325_v38, 0.0  ;;  %v596_v38 = vld [vmem:[%s701_s22 + $0x58] sm:$0xff]  }
  0x1b   : > { %v258_v22 = vadd.f32 %v257_v17, %v256_v18  ;;  %v357_v52 = vadd.f32 %v356_v48, %v355_v47  ;;  %v549_v53 = vunpack.c.h.bf16 %v591_v34  ;;  %v273_v54 = vsel %vm249_vm1, %v548_v43, 0.0 }
  0x1c   : > { %v328_v55 = vmul.f32 %v533_v16, %v533_v16  ;;  %v360_v56 = vsel %vm249_vm1, %v326_v42, 0.0  ;;  %v552_v59 = vunpack.c.l.bf16 %v592_v50  ;;  %v329_v61 = vmul.f32 %v536_v19, %v536_v19 }
  0x1d   : > { %v260_v25 = vadd.f32 %v259_v20, %v258_v22  ;;  %v359_v58 = vadd.f32 %v358_v49, %v357_v52  ;;  %v275_v60 = vsel %vm249_vm1, %v549_v53, 0.0  ;;  %v362_v62 = vsel %vm249_vm1, %v327_v46, 0.0 }
  0x1e   : > { %v553_v2 = vunpack.c.h.bf16 %v592_v50  ;;  %v277_v3 = vsel %vm249_vm1, %v552_v59, 0.0  ;;  %v330_v4 = vmul.f32 %v537_v23, %v537_v23  ;;  %v364_v5 = vsel %vm249_vm1, %v328_v55, 0.0 }
  0x1f   : > { %v262_v29 = vadd.f32 %v261_v24, %v260_v25  ;;  %v361_v1 = vadd.f32 %v360_v56, %v359_v58  ;;  %v556_v8 = vunpack.c.l.bf16 %v593_v63  ;;  %v331_v10 = vmul.f32 %v540_v26, %v540_v26  ;;  %v595_v25 = vld [vmem:[%s701_s22 + $0x50] sm:$0xff]  }
  0x20   : > { %v279_v9 = vsel %vm249_vm1, %v553_v2, 0.0  ;;  %v366_v11 = vsel %vm249_vm1, %v329_v61, 0.0  ;;  %v557_v15 = vunpack.c.h.bf16 %v593_v63  ;;  %v332_v17 = vmul.f32 %v541_v30, %v541_v30 }
  0x21   : > { %v264_v33 = vadd.f32 %v263_v28, %v262_v29  ;;  %v363_v7 = vadd.f32 %v362_v62, %v361_v1  ;;  %v281_v16 = vsel %vm249_vm1, %v556_v8, 0.0  ;;  %v368_v18 = vsel %vm249_vm1, %v330_v4, 0.0 }
  0x22   : > { %v560_v21 = vunpack.c.l.bf16 %v594_v12  ;;  %v283_v22 = vsel %vm249_vm1, %v557_v15, 0.0  ;;  %v333_v23 = vmul.f32 %v544_v32, %v544_v32  ;;  %v370_v24 = vsel %vm249_vm1, %v331_v10, 0.0 }
  0x23   : > { %v266_v40 = vadd.f32 %v265_v31, %v264_v33  ;;  %v365_v14 = vadd.f32 %v364_v5, %v363_v7  ;;  %v561_v28 = vunpack.c.h.bf16 %v594_v12  ;;  %v334_v31 = vmul.f32 %v545_v39, %v545_v39 }
  0x24   : > { %v285_v29 = vsel %vm249_vm1, %v560_v21, 0.0  ;;  %v372_v30 = vsel %vm249_vm1, %v332_v17, 0.0  ;;  %v335_v37 = vmul.f32 %v548_v43, %v548_v43  ;;  %v374_v32 = vsel %vm249_vm1, %v333_v23, 0.0 }
  0x25   : > { %v268_v44 = vadd.f32 %v267_v35, %v266_v40  ;;  %v367_v20 = vadd.f32 %v366_v11, %v365_v14  ;;  %v564_v35 = vunpack.c.l.bf16 %v595_v25  ;;  %v287_v36 = vsel %vm249_vm1, %v561_v28, 0.0 }
  0x26   : > { %v565_v42 = vunpack.c.h.bf16 %v595_v25  ;;  %v376_v39 = vsel %vm249_vm1, %v334_v31, 0.0  ;;  %v568_v48 = vunpack.c.l.bf16 %v596_v38  ;;  %v337_v50 = vmul.f32 %v552_v59, %v552_v59 }
  0x27   : > { %v270_v51 = vadd.f32 %v269_v41, %v268_v44  ;;  %v369_v27 = vadd.f32 %v368_v18, %v367_v20  ;;  %v289_v44 = vsel %vm249_vm1, %v564_v35, 0.0  ;;  %v378_v43 = vsel %vm249_vm1, %v335_v37, 0.0 }
  0x28   : > { %v291_v49 = vsel %vm249_vm1, %v565_v42, 0.0  ;;  %v569_v55 = vunpack.c.h.bf16 %v596_v38  ;;  %v293_v56 = vsel %vm249_vm1, %v568_v48, 0.0  ;;  %v339_v63 = vmul.f32 %v556_v8, %v556_v8 }
  0x29   : > { %v272_v57 = vadd.f32 %v271_v45, %v270_v51  ;;  %v371_v34 = vadd.f32 %v370_v24, %v369_v27  ;;  %v336_v45 = vmul.f32 %v549_v53, %v549_v53  ;;  %v597_v51 = vld [vmem:[%s701_s22 + $0x60] sm:$0xff]   ;;  %v382_v59 = vsel %vm249_vm1, %v337_v50, 0.0 }
  0x2a   : > { %v572_v61 = vunpack.c.l.bf16 %v597_v51  ;;  %v295_v62 = vsel %vm249_vm1, %v569_v55, 0.0  ;;  %v573_v4 = vunpack.c.h.bf16 %v597_v51  ;;  %v341_v12 = vmul.f32 %v560_v21, %v560_v21  ;;  %v600_v21 = vld [vmem:[%s701_s22 + $0x78] sm:$0xff]  }
  0x2b   : > { %v274_v0 = vadd.f32 %v273_v54, %v272_v57  ;;  %v373_v41 = vadd.f32 %v372_v30, %v371_v34  ;;  %v338_v57 = vmul.f32 %v553_v2, %v553_v2  ;;  %v380_v53 = vsel %vm249_vm1, %v336_v45, 0.0 }
  0x2c   : > { %v297_v5 = vsel %vm249_vm1, %v572_v61, 0.0  ;;  %v299_v11 = vsel %vm249_vm1, %v573_v4, 0.0  ;;  %v386_v8 = vsel %vm249_vm1, %v339_v63, 0.0  ;;  %v343_v25 = vmul.f32 %v564_v35, %v564_v35 }
  0x2d   : > { %v276_v6 = vadd.f32 %v275_v60, %v274_v0  ;;  %v375_v47 = vadd.f32 %v374_v32, %v373_v41  ;;  %v598_v0 = vld [vmem:[%s701_s22 + $0x68] sm:$0xff]   ;;  %v384_v2 = vsel %vm249_vm1, %v338_v57, 0.0  ;;  %v584_v37 = vunpack.c.l.bf16 %v600_v21 }
  0x2e   : > { %v576_v10 = vunpack.c.l.bf16 %v598_v0  ;;  %v577_v17 = vunpack.c.h.bf16 %v598_v0  ;;  %v345_v38 = vmul.f32 %v568_v48, %v568_v48  ;;  %v347_v50 = vmul.f32 %v572_v61, %v572_v61 }
  0x2f   : > { %v278_v13 = vadd.f32 %v277_v3, %v276_v6  ;;  %v377_v54 = vadd.f32 %v376_v39, %v375_v47  ;;  %v340_v6 = vmul.f32 %v557_v15, %v557_v15  ;;  %v309_v45 = vsel %vm249_vm1, %v584_v37, 0.0 }
  0x30   : > { %v301_v18 = vsel %vm249_vm1, %v576_v10, 0.0  ;;  %v303_v24 = vsel %vm249_vm1, %v577_v17, 0.0  ;;  %v346_v39 = vmul.f32 %v569_v55, %v569_v55  ;;  %v348_v48 = vmul.f32 %v573_v4, %v573_v4 }
  0x31   : > { %v280_v19 = vadd.f32 %v279_v9, %v278_v13  ;;  %v379_v60 = vadd.f32 %v378_v43, %v377_v54  ;;  %v599_v13 = vld [vmem:[%s701_s22 + $0x70] sm:$0xff]   ;;  %v388_v15 = vsel %vm249_vm1, %v340_v6, 0.0  ;;  %v398_v43 = vsel %vm249_vm1, %v345_v38, 0.0 }
  0x32   : > { %v580_v23 = vunpack.c.l.bf16 %v599_v13  ;;  %v581_v31 = vunpack.c.h.bf16 %v599_v13  ;;  %v400_v54 = vsel %vm249_vm1, %v346_v39, 0.0  ;;  %v404_v63 = vsel %vm249_vm1, %v348_v48, 0.0 }
  0x33   : > { %v282_v26 = vadd.f32 %v281_v16, %v280_v19  ;;  %v381_v3 = vadd.f32 %v380_v53, %v379_v60  ;;  %v342_v19 = vmul.f32 %v561_v28, %v561_v28  ;;  %v349_v53 = vmul.f32 %v576_v10, %v576_v10 }
  0x34   : > { %v305_v30 = vsel %vm249_vm1, %v580_v23, 0.0  ;;  %v307_v32 = vsel %vm249_vm1, %v581_v31, 0.0  ;;  %v351_v0 = vmul.f32 %v580_v23, %v580_v23 }
  0x35   : > { %v284_v33 = vadd.f32 %v283_v22, %v282_v26  ;;  %v383_v9 = vadd.f32 %v382_v59, %v381_v3  ;;  %v390_v26 = vsel %vm249_vm1, %v341_v12, 0.0  ;;  %v392_v34 = vsel %vm249_vm1, %v342_v19, 0.0 }
  0x36   : > { %v410_v10 = vsel %vm249_vm1, %v351_v0, 0.0 }
  0x37   : > { %v286_v40 = vadd.f32 %v285_v29, %v284_v33  ;;  %v385_v16 = vadd.f32 %v384_v2, %v383_v9  ;;  %v344_v33 = vmul.f32 %v565_v42, %v565_v42  ;;  %v353_v9 = vmul.f32 %v584_v37, %v584_v37 }
  0x39   : > { %v288_v46 = vadd.f32 %v287_v36, %v286_v40  ;;  %v387_v22 = vadd.f32 %v386_v8, %v385_v16  ;;  %v394_v40 = vsel %vm249_vm1, %v343_v25, 0.0  ;;  %v248_v8 = vld [vmem:[%s687_s16] sm:$0x1] }
  0x3b   : > { %v290_v52 = vadd.f32 %v289_v44, %v288_v46  ;;  %v389_v29 = vadd.f32 %v388_v15, %v387_v22  ;;  %v585_v44 = vunpack.c.h.bf16 %v600_v21  ;;  %v396_v46 = vsel %vm249_vm1, %v344_v33, 0.0 }
  0x3d   : > { %v292_v58 = vadd.f32 %v291_v49, %v290_v52  ;;  %v391_v36 = vadd.f32 %v390_v26, %v389_v29  ;;  %v311_v49 = vsel %vm249_vm1, %v585_v44, 0.0  ;;  %v354_v13 = vmul.f32 %v585_v44, %v585_v44  ;;  %v322_v29 = vld [vmem:[%s694_s19] sm:$0x1] }
  0x3f   : > { %v294_v1 = vadd.f32 %v293_v56, %v292_v58  ;;  %v393_v41 = vadd.f32 %v392_v34, %v391_v36  ;;  %v402_v58 = vsel %vm249_vm1, %v347_v50, 0.0 }
  0x41   : > { %v296_v7 = vadd.f32 %v295_v62, %v294_v1  ;;  %v395_v42 = vadd.f32 %v394_v40, %v393_v41  ;;  %v350_v62 = vmul.f32 %v577_v17, %v577_v17  ;;  %v406_v1 = vsel %vm249_vm1, %v349_v53, 0.0 }
  0x43   : > { %v298_v14 = vadd.f32 %v297_v5, %v296_v7  ;;  %v397_v52 = vadd.f32 %v396_v46, %v395_v42  ;;  %v352_v5 = vmul.f32 %v581_v31, %v581_v31  ;;  %v408_v6 = vsel %vm249_vm1, %v350_v62, 0.0 }
  0x45   : > { %v300_v20 = vadd.f32 %v299_v11, %v298_v14  ;;  %v399_v57 = vadd.f32 %v398_v43, %v397_v52  ;;  %v412_v14 = vsel %vm249_vm1, %v352_v5, 0.0 }
  0x47   : > { %v302_v27 = vadd.f32 %v301_v18, %v300_v20  ;;  %v401_v60 = vadd.f32 %v400_v54, %v399_v57  ;;  %v414_v18 = vsel %vm249_vm1, %v353_v9, 0.0  ;;  %v416_v20 = vsel %vm249_vm1, %v354_v13, 0.0 }
  0x49   : > { %v304_v28 = vadd.f32 %v303_v24, %v302_v27  ;;  %v403_v61 = vadd.f32 %v402_v58, %v401_v60 }
  0x4b   : > { %v306_v35 = vadd.f32 %v305_v30, %v304_v28  ;;  %v405_v4 = vadd.f32 %v404_v63, %v403_v61 }
  0x4d   : > { %v308_v47 = vadd.f32 %v307_v32, %v306_v35  ;;  %v407_v7 = vadd.f32 %v406_v1, %v405_v4 }
  0x4f   : > { %v310_v51 = vadd.f32 %v309_v45, %v308_v47  ;;  %v409_v12 = vadd.f32 %v408_v6, %v407_v7 }
  0x51   : > { %v312_v56 = vadd.f32 %v311_v49, %v310_v51  ;;  %v411_v17 = vadd.f32 %v410_v10, %v409_v12 }
  0x53   : > { %v313_v55 = vrot.slane %v312_v56, 4  ;;  %v413_v15 = vadd.f32 %v412_v14, %v411_v17 }
  0x55   : > { %v314_v59 = vadd.f32 %v313_v55, %v312_v56  ;;  %v415_v22 = vadd.f32 %v414_v18, %v413_v15 }
  0x57   : > { %v315_v3 = vrot.slane %v314_v59, 2  ;;  %v417_v23 = vadd.f32 %v416_v20, %v415_v22 }
  0x59   : > { %v316_v2 = vadd.f32 %v315_v3, %v314_v59  ;;  %v418_v24 = vrot.slane %v417_v23, 4 }
  0x5b   : > { %v317_v11 = vrot.slane %v316_v2, 1  ;;  %v419_v25 = vadd.f32 %v418_v24, %v417_v23 }
  0x5d   : > { %v318_v16 = vadd.f32 %v317_v11, %v316_v2  ;;  %v420_v26 = vrot.slane %v419_v25, 2 }
  0x5f   : > { %v319_v19 = vadd.f32 %v318_v16, %v248_v8  ;;  %v421_v21 = vadd.f32 %v420_v26, %v419_v25 }
  0x61   : > { %321 = vst.msk [vmem:[%s687_s16] sm:$0x1] %vm181_vm0, %v319_v19  ;;  %v422_v27 = vrot.slane %v421_v21, 1 }
  0x63   : > { %v423_v31 = vadd.f32 %v422_v27, %v421_v21 }
  0x65   : > { %v424_v30 = vadd.f32 %v423_v31, %v322_v29 }
  0x67   : > { %425 = vst.msk [vmem:[%s694_s19] sm:$0x1] %vm181_vm0, %v424_v30 }
  0x68 PF: > { %s13_s11 = sadd.s32 1, %s648_s11   ;;  %s801_s9 = smov %s644_s10 }
  0x69   : > { %p10_p5 = scmp.ge.s32.totalorder %s13_s11, 4   ;;  %s802_s10 = smov %s804_s12 }
  0x6b   :  { %12 = sbr.rel (!%p10_p5) target bundleno = 2 (0x2), region = 70 }

// kernel: decoder_forward.83
= control target key start
LH: loop header
LB: loop body
LE: loop exit
PB: predicated region body
PF: predicated region fallthrough
CT: control target
= control target key end

     0   :  { %s1956_s21 = smov 0   ;;  %s1958_s22 = smov 0   ;;  %s2431_s0 = inlined_call_operand.vmem [shape: bf16[2,256,64], index: 0, kind: input, shape index: {}]   ;;  %s2432_s1 = inlined_call_operand.vmem [shape: f32[2,1,64], index: 1, kind: input, shape index: {}]   ;;  %s2433_s2 = inlined_call_operand.vmem [shape: f32[2,1,64], index: 2, kind: input, shape index: {}]   ;;  %s2434_s3 = inlined_call_operand.vmem [shape: f32[64,32], index: 3, kind: input, shape index: {}]   ;;  %s2435_s4 = inlined_call_operand.vmem [shape: f32[1,64], index: 4, kind: input, shape index: {}]   ;;  %s2436_s5 = inlined_call_operand.vmem [shape: f32[1,64], index: 5, kind: input, shape index: {}]   ;;  %s2437_s6 = inlined_call_operand.vmem [shape: bf16[2,256,64], index: 6, kind: output, shape index: {}]  }
   0x1   :  { %s1960_s23 = smov 0  }
   0x2 LB: > { %s28_s24 = sadd.s32 1, %s1912_s22  ;;  %p1363_p0 = scmp.ge.s32.totalorder %s1916_s23, 1  ;;  %s1916_s23 = sphi %s1960_s23, %s16_s23   ;;  %s1912_s22 = sphi %s1958_s22, %s2445_s22   ;;  %s1908_s21 = sphi %s1956_s21, %s2444_s21  }
   0x3   : > { %p30_p1 = scmp.ge.s32.totalorder %s28_s24, 2  ;;  %p249_p2 = scmp.lt.s32.totalorder %s1916_s23, 3 }
   0x5   : > { %s2447_s24 = smov (%p30_p1, %s28_s24), 0  ;;  %p250_p3 = pnand %p1363_p0, %p249_p2 }
   0x7   : > { %253 = sbr.rel (%p250_p3) target bundleno = 572 (0x23c), region = 44 }
   0xe   : > { %v383_v0 = vld [vmem:[%s2434_s3] sm:$0xff]  ;;  %v384_v1 = vld [vmem:[%s2434_s3 + $0x8] sm:$0xff]  ;;  %v385_v2 = vld [vmem:[%s2434_s3 + $0x10] sm:$0xff]  ;;  %v1918_v3 = vmov 0.0|0.0   ;;  %vm1919_vm0 = vmmov 0   ;;  %v1920_v6 = vmov 0.0   ;;  %v719_v27 = vlaneseq }
   0xf   : > { %1681 = vmatprep.subr.bf16.mxu0 %v1918_v3  ;;  %v1682_v4 = vpack.c.bf16 %v384_v1, %v383_v0  ;;  %1693 = vmatprep.subr.bf16.mxu1 %v1918_v3  ;;  %v386_v5 = vld [vmem:[%s2434_s3 + $0x18] sm:$0xff]  ;;  %v387_v8 = vld [vmem:[%s2434_s3 + $0x20] sm:$0xff]  ;;  %v388_v9 = vld [vmem:[%s2434_s3 + $0x28] sm:$0xff]  ;;  %p294_p4 = scmp.lt.s32.totalorder %s1908_s21, 1  ;;  %vm392_vm1 = vcmask 523264   ;;  %vm548_vm2 = vcmask 261120  }
  0x10   : > { %1621 = vmatprep.mubr.msk.f32.mxu0 %vm1919_vm0, %v1920_v6  ;;  %1640 = vmatprep.mubr.msk.f32.mxu1 %vm1919_vm0, %v1920_v6  ;;  %v1685_v7 = vpack.c.bf16 %v386_v5, %v385_v2  ;;  %v1688_v10 = vpack.c.bf16 %v388_v9, %v387_v8  ;;  %v389_v11 = vld [vmem:[%s2434_s3 + $0x30] sm:$0xff]  ;;  %v390_v12 = vld [vmem:[%s2434_s3 + $0x38] sm:$0xff]  ;;  %vm1707_vm3 = vmpackc.low %vm548_vm2, %vm548_vm2  ;;  %v2033_v33 = vshrl.u32 %v719_v27, 7  ;;  %vm1221_vm4 = vcmask 519168  }
  0x11   : > { %1683 = vmatpush3.bf16.msra.mxu0 %v1682_v4  ;;  %1695 = vmatpush3.bf16.msra.mxu1 %v1682_v4  ;;  %s2449_s21 = smov (!%p294_p4, %s1908_s21), 1  ;;  %v1691_v13 = vpack.c.bf16 %v390_v12, %v389_v11 }
  0x12   : > { %1684 = vmatprep.subr.bf16.mxu0 %v1918_v3  ;;  %1696 = vmatprep.subr.bf16.mxu1 %v1918_v3  ;;  %s305_s19 = scalar_lea.vmem %s2432_s1, %s2449_s21  ;;  %s308_s26 = scalar_lea.vmem %s2433_s2, %s2449_s21  ;;  %v721_v55 = vsub.s32 0, %v2033_v33 }
  0x13   : > { %v391_v14 = vld [vmem:[%s305_s19] sm:$0x1]  ;;  %s1456_s27 = sshll.u32 %s2449_s21, 7 }
  0x14   : > { %v466_v15 = vld [vmem:[%s308_s26] sm:$0x1]  ;;  %s2026_s30 = scalar_lea.vmem %s2431_s0, %s1456_s27  ;;  %s2313_s13 = scalar_lea.vmem %s2437_s6, %s1456_s27 }
  0x15   : > { %1686 = vmatpush3.bf16.msra.mxu0 %v1685_v7  ;;  %1698 = vmatpush3.bf16.msra.mxu1 %v1685_v7  ;;  %v1491_v28 = vld [vmem:[%s2026_s30] sm:$0xff]   ;;  %v1554_v29 = vld [vmem:[%s2026_s30 + $0x8] sm:$0xff]   ;;  %v1555_v30 = vld [vmem:[%s2026_s30 + $0x10] sm:$0xff]  }
  0x16   : > { %1687 = vmatprep.subr.bf16.mxu0 %v1918_v3  ;;  %1699 = vmatprep.subr.bf16.mxu1 %v1918_v3  ;;  %v1556_v31 = vld [vmem:[%s2026_s30 + $0x18] sm:$0xff]   ;;  %v1557_v32 = vld [vmem:[%s2026_s30 + $0x20] sm:$0xff]   ;;  %v1492_v34 = vunpack.c.l.bf16 %v1491_v28  ;;  %v1493_v35 = vunpack.c.h.bf16 %v1491_v28  ;;  %v1558_v36 = vld [vmem:[%s2026_s30 + $0x28] sm:$0xff]   ;;  %v1496_v38 = vunpack.c.l.bf16 %v1554_v29  ;;  %v1497_v39 = vunpack.c.h.bf16 %v1554_v29 }
  0x17   : > { %v1559_v37 = vld [vmem:[%s2026_s30 + $0x30] sm:$0xff]   ;;  %v1500_v40 = vunpack.c.l.bf16 %v1555_v30  ;;  %v1501_v41 = vunpack.c.h.bf16 %v1555_v30  ;;  %v1560_v42 = vld [vmem:[%s2026_s30 + $0x38] sm:$0xff]   ;;  %v1561_v43 = vld [vmem:[%s2026_s30 + $0x40] sm:$0xff]   ;;  %v1504_v44 = vunpack.c.l.bf16 %v1556_v31  ;;  %v1505_v45 = vunpack.c.h.bf16 %v1556_v31 }
  0x18   : > { %v1508_v46 = vunpack.c.l.bf16 %v1557_v32  ;;  %v1509_v47 = vunpack.c.h.bf16 %v1557_v32  ;;  %v1562_v48 = vld [vmem:[%s2026_s30 + $0x48] sm:$0xff]   ;;  %v1563_v49 = vld [vmem:[%s2026_s30 + $0x50] sm:$0xff]   ;;  %v1512_v50 = vunpack.c.l.bf16 %v1558_v36  ;;  %v1513_v51 = vunpack.c.h.bf16 %v1558_v36  ;;  %v1564_v53 = vld [vmem:[%s2026_s30 + $0x58] sm:$0xff]  }
  0x19   : > { %1689 = vmatpush3.bf16.msra.mxu0 %v1688_v10  ;;  %1701 = vmatpush3.bf16.msra.mxu1 %v1688_v10  ;;  %v1516_v52 = vunpack.c.l.bf16 %v1559_v37  ;;  %v1565_v54 = vld [vmem:[%s2026_s30 + $0x60] sm:$0xff]   ;;  %v1517_v56 = vunpack.c.h.bf16 %v1559_v37  ;;  %v1520_v57 = vunpack.c.l.bf16 %v1560_v42  ;;  %v1521_v58 = vunpack.c.h.bf16 %v1560_v42  ;;  %v1566_v60 = vld [vmem:[%s2026_s30 + $0x68] sm:$0xff]   ;;  %v1567_v1 = vld [vmem:[%s2026_s30 + $0x70] sm:$0xff]  }
  0x1a   : > { %1690 = vmatprep.subr.bf16.mxu0 %v1918_v3  ;;  %1702 = vmatprep.subr.bf16.mxu1 %v1918_v3  ;;  %v1524_v59 = vunpack.c.l.bf16 %v1561_v43  ;;  %v1525_v61 = vunpack.c.h.bf16 %v1561_v43  ;;  %v1528_v62 = vunpack.c.l.bf16 %v1562_v48  ;;  %v1529_v63 = vunpack.c.h.bf16 %v1562_v48  ;;  %v1568_v2 = vld [vmem:[%s2026_s30 + $0x78] sm:$0xff]  }
  0x1b   : > { %v1532_v0 = vunpack.c.l.bf16 %v1563_v49  ;;  %v1537_v5 = vunpack.c.h.bf16 %v1564_v53  ;;  %v1541_v8 = vunpack.c.h.bf16 %v1565_v54  ;;  %v1544_v9 = vunpack.c.l.bf16 %v1566_v60 }
  0x1d   : > { %1692 = vmatpush3.bf16.msra.mxu0 %v1691_v13  ;;  %1704 = vmatpush3.bf16.msra.mxu1 %v1691_v13 }
  0x1e   : > { %1705 = vmatprep.subr.bf16.mxu0 %v1918_v3  ;;  %1721 = vmatprep.subr.bf16.mxu1 %v1918_v3 }
  0x20   : > { %1622 = vmatmul.mubr.msk.f32.vlgmr.msra.gmra.mrb[0].mxu0 %vm392_vm1, %v391_v14  ;;  %1641 = vmatmul.mubr.msk.f32.vlgmr.msra.gmra.mrb[0].mxu1 %vm392_vm1, %v466_v15  ;;  %v1549_v14 = vunpack.c.h.bf16 %v1567_v1  ;;  %v1552_v15 = vunpack.c.l.bf16 %v1568_v2 }
  0x21   : > { %1659 = vmatprep.mubr.msk.f32.mxu0 %vm1919_vm0, %v1920_v6  ;;  %1678 = vmatprep.mubr.msk.f32.mxu1 %vm1919_vm0, %v1920_v6  ;;  %v1540_v6 = vunpack.c.l.bf16 %v1565_v54 }
  0x26   : > { %1708 = vmatpush3.bf16.xpose.msk.msra.mxu0 %vm1707_vm3, %v1682_v4  ;;  %1724 = vmatpush3.bf16.xpose.msk.msra.mxu1 %vm1707_vm3, %v1682_v4  ;;  %v1536_v4 = vunpack.c.l.bf16 %v1564_v53 }
  0x27   : > { %1709 = vmatprep.subr.bf16.mxu0 %v1918_v3  ;;  %1725 = vmatprep.subr.bf16.mxu1 %v1918_v3 }
  0x2e   : > { %1712 = vmatpush3.bf16.xpose.msk.msra.mxu0 %vm1707_vm3, %v1685_v7  ;;  %1728 = vmatpush3.bf16.xpose.msk.msra.mxu1 %vm1707_vm3, %v1685_v7 }
  0x2f   : > { %1713 = vmatprep.subr.bf16.mxu0 %v1918_v3  ;;  %1729 = vmatprep.subr.bf16.mxu1 %v1918_v3 }
  0x36   : > { %1716 = vmatpush3.bf16.xpose.msk.msra.mxu0 %vm1707_vm3, %v1688_v10  ;;  %1732 = vmatpush3.bf16.xpose.msk.msra.mxu1 %vm1707_vm3, %v1688_v10  ;;  %v1545_v10 = vunpack.c.h.bf16 %v1566_v60 }
  0x37   : > { %1717 = vmatprep.subr.bf16.mxu0 %v1918_v3  ;;  %1733 = vmatprep.subr.bf16.mxu1 %v1918_v3  ;;  %v1533_v3 = vunpack.c.h.bf16 %v1563_v49 }
  0x3e   : > { %1720 = vmatpush3.bf16.xpose.msk.msra.mxu0 %vm1707_vm3, %v1691_v13  ;;  %1736 = vmatpush3.bf16.xpose.msk.msra.mxu1 %vm1707_vm3, %v1691_v13  ;;  %v1548_v13 = vunpack.c.l.bf16 %v1567_v1 }
  0xf3   : > { %v462_v16 = vpop.f32.mrb[0].mxu0  ;;  %v536_v17 = vpop.f32.mrb[0].mxu1 }
  0xf4   : > { %v541_v18 = vmul.f32 0.001953125, %v462_v16  ;;  %v1623_v19 = vpop.f32.mrb[1].mxu0  ;;  %v542_v20 = vmul.f32 0.001953125, %v536_v17  ;;  %v1642_v21 = vpop.f32.mrb[1].mxu1  ;;  %v1553_v16 = vunpack.c.h.bf16 %v1568_v2 }
  0xf6   : > { %v543_v22 = vmul.f32 %v541_v18, %v541_v18  ;;  %1660 = vmatmul.mubr.msk.f32.vlgmr.msra.gmra.mrb[2].mxu0 %vm548_vm2, %v541_v18 }
  0xf8   : > { %v544_v23 = vsub.f32 %v542_v20, %v543_v22 }
  0xfa   : > { %v545_v24 = vmax.f32 %v544_v23, 0.0 }
  0xfc   : > { %v546_v25 = vadd.f32 1e-06, %v545_v24 }
  0xfe   : > { %1764 = vrsqrt.f32 %v546_v25 }
 0x108   : > { %v1765_v26 = vpop.eup %1764 }
 0x109   : > { %1679 = vmatmul.mubr.msk.f32.vlgmr.msra.gmra.mrb[2].mxu1 %vm548_vm2, %v1765_v26 }
 0x1c9   : > { %v642_v7 = vpop.f32.mrb[2].mxu0 }
 0x1ca   : > { %v722_v11 = vrot.slane %v642_v7, %v721_v55  ;;  %v1661_v12 = vpop.f32.mrb[3].mxu0 }
 0x1cc   : > { %v723_v17 = vsub.f32 %v1492_v34, %v722_v11  ;;  %v724_v18 = vsub.f32 %v1493_v35, %v722_v11  ;;  %v725_v19 = vsub.f32 %v1496_v38, %v722_v11  ;;  %v726_v20 = vsub.f32 %v1497_v39, %v722_v11 }
 0x1cd   : > { %v727_v21 = vsub.f32 %v1500_v40, %v722_v11  ;;  %v728_v22 = vsub.f32 %v1501_v41, %v722_v11  ;;  %v729_v23 = vsub.f32 %v1504_v44, %v722_v11  ;;  %v730_v24 = vsub.f32 %v1505_v45, %v722_v11 }
 0x1ce   : > { %v731_v25 = vsub.f32 %v1508_v46, %v722_v11  ;;  %v732_v26 = vsub.f32 %v1509_v47, %v722_v11  ;;  %v733_v27 = vsub.f32 %v1512_v50, %v722_v11  ;;  %v734_v28 = vsub.f32 %v1513_v51, %v722_v11 }
 0x1cf   : > { %v735_v29 = vsub.f32 %v1516_v52, %v722_v11  ;;  %v736_v30 = vsub.f32 %v1517_v56, %v722_v11  ;;  %v737_v31 = vsub.f32 %v1520_v57, %v722_v11  ;;  %v738_v32 = vsub.f32 %v1521_v58, %v722_v11 }
 0x1d0   : > { %v739_v33 = vsub.f32 %v1524_v59, %v722_v11  ;;  %v740_v36 = vsub.f32 %v1525_v61, %v722_v11  ;;  %v741_v37 = vsub.f32 %v1528_v62, %v722_v11  ;;  %v742_v42 = vsub.f32 %v1529_v63, %v722_v11 }
 0x1d1   : > { %v743_v34 = vsub.f32 %v1532_v0, %v722_v11  ;;  %v744_v35 = vsub.f32 %v1533_v3, %v722_v11  ;;  %v745_v38 = vsub.f32 %v1536_v4, %v722_v11  ;;  %v746_v39 = vsub.f32 %v1537_v5, %v722_v11 }
 0x1d2   : > { %v747_v40 = vsub.f32 %v1540_v6, %v722_v11  ;;  %v748_v41 = vsub.f32 %v1541_v8, %v722_v11  ;;  %v749_v43 = vsub.f32 %v1544_v9, %v722_v11  ;;  %v750_v44 = vsub.f32 %v1545_v10, %v722_v11 }
 0x1d3   : > { %v751_v45 = vsub.f32 %v1548_v13, %v722_v11  ;;  %v752_v46 = vsub.f32 %v1549_v14, %v722_v11  ;;  %v753_v47 = vsub.f32 %v1552_v15, %v722_v11  ;;  %v754_v48 = vsub.f32 %v1553_v16, %v722_v11 }
 0x1dc   : > { %v715_v49 = vpop.f32.mrb[2].mxu1 }
 0x1dd   : > { %v758_v50 = vrot.slane %v715_v49, %v721_v55  ;;  %v1680_v51 = vpop.f32.mrb[3].mxu1 }
 0x1df   : > { %v759_v52 = vmul.f32 %v758_v50, %v723_v17  ;;  %v760_v53 = vmul.f32 %v758_v50, %v724_v18  ;;  %v761_v54 = vmul.f32 %v758_v50, %v725_v19  ;;  %v762_v56 = vmul.f32 %v758_v50, %v726_v20  ;;  %v2078_v20 = vld [vmem:[%s2435_s4] ss:$0 sm:$0xff] }
 0x1e0   : > { %v763_v57 = vmul.f32 %v758_v50, %v727_v21  ;;  %v764_v58 = vmul.f32 %v758_v50, %v728_v22  ;;  %v765_v59 = vmul.f32 %v758_v50, %v729_v23  ;;  %v766_v60 = vmul.f32 %v758_v50, %v730_v24 }
 0x1e1   : > { %v767_v61 = vmul.f32 %v758_v50, %v731_v25  ;;  %v768_v62 = vmul.f32 %v758_v50, %v732_v26  ;;  %v769_v63 = vmul.f32 %v758_v50, %v733_v27  ;;  %v770_v0 = vmul.f32 %v758_v50, %v734_v28  ;;  %v2087_v25 = vld [vmem:[%s2436_s5] ss:$0 sm:$0xff] }
 0x1e2   : > { %v771_v1 = vmul.f32 %v758_v50, %v735_v29  ;;  %v772_v2 = vmul.f32 %v758_v50, %v736_v30  ;;  %v773_v3 = vmul.f32 %v758_v50, %v737_v31  ;;  %v774_v4 = vmul.f32 %v758_v50, %v738_v32 }
 0x1e3   : > { %v775_v5 = vmul.f32 %v758_v50, %v739_v33  ;;  %v776_v6 = vmul.f32 %v758_v50, %v740_v36  ;;  %v2047_v55 = vmul.f32 %v758_v50, %v741_v37  ;;  %v2049_v7 = vmul.f32 %v758_v50, %v742_v42 }
 0x1e4   : > { %v2051_v8 = vmul.f32 %v758_v50, %v743_v34  ;;  %v2053_v9 = vmul.f32 %v758_v50, %v744_v35  ;;  %v2055_v10 = vmul.f32 %v758_v50, %v745_v38  ;;  %v2057_v11 = vmul.f32 %v758_v50, %v746_v39 }
 0x1e5   : > { %v2059_v12 = vmul.f32 %v758_v50, %v747_v40  ;;  %v2061_v13 = vmul.f32 %v758_v50, %v748_v41  ;;  %v2063_v14 = vmul.f32 %v758_v50, %v749_v43  ;;  %v2065_v15 = vmul.f32 %v758_v50, %v750_v44 }
 0x1e6   : > { %v2067_v16 = vmul.f32 %v758_v50, %v751_v45  ;;  %v2069_v17 = vmul.f32 %v758_v50, %v752_v46  ;;  %v2071_v18 = vmul.f32 %v758_v50, %v753_v47  ;;  %v2073_v19 = vmul.f32 %v758_v50, %v754_v48 }
 0x1e7   : > { %v798_v21 = vmul.f32 %v2078_v20, %v759_v52  ;;  %v799_v22 = vmul.f32 %v2078_v20, %v760_v53  ;;  %v800_v23 = vmul.f32 %v2078_v20, %v761_v54  ;;  %v801_v24 = vmul.f32 %v2078_v20, %v762_v56 }
 0x1e8   : > { %v802_v26 = vmul.f32 %v2078_v20, %v763_v57  ;;  %v803_v27 = vmul.f32 %v2078_v20, %v764_v58  ;;  %v804_v28 = vmul.f32 %v2078_v20, %v765_v59  ;;  %v805_v32 = vmul.f32 %v2078_v20, %v766_v60 }
 0x1e9   : > { %v2093_v29 = vadd.f32 %v2087_v25, %v798_v21  ;;  %v2096_v30 = vadd.f32 %v2087_v25, %v799_v22  ;;  %v2099_v31 = vadd.f32 %v2087_v25, %v800_v23  ;;  %v2103_v33 = vadd.f32 %v2087_v25, %v801_v24 }
 0x1ea   : > { %v806_v36 = vmul.f32 %v2078_v20, %v767_v61  ;;  %v2107_v37 = vadd.f32 %v2087_v25, %v802_v26  ;;  %v807_v42 = vmul.f32 %v2078_v20, %v768_v62  ;;  %v808_v34 = vmul.f32 %v2078_v20, %v769_v63 }
 0x1eb   : > { %v2112_v35 = vadd.f32 %v2087_v25, %v803_v27  ;;  %v2115_v38 = vadd.f32 %v2087_v25, %v804_v28  ;;  %v1390_v39 = vmul.f32 -1.442695, %v2093_v29  ;;  %v1391_v40 = vmul.f32 -1.442695, %v2096_v30 }
 0x1ec   : > { %v1392_v41 = vmul.f32 -1.442695, %v2099_v31  ;;  %v809_v43 = vmul.f32 %v2078_v20, %v770_v0  ;;  %v2122_v44 = vadd.f32 %v2087_v25, %v805_v32  ;;  %v1393_v45 = vmul.f32 -1.442695, %v2103_v33 }
 0x1ed   : > { %v810_v46 = vmul.f32 %v2078_v20, %v771_v1  ;;  %v2127_v47 = vadd.f32 %v2087_v25, %v806_v36  ;;  %1766 = vpow2.f32 %v1390_v39  ;;  %v1394_v48 = vmul.f32 -1.442695, %v2107_v37 }
 0x1ee   : > { %v811_v49 = vmul.f32 %v2078_v20, %v772_v2  ;;  %v2132_v50 = vadd.f32 %v2087_v25, %v807_v42  ;;  %1768 = vpow2.f32 %v1391_v40  ;;  %v1395_v51 = vmul.f32 -1.442695, %v2112_v35 }
 0x1ef   : > { %v812_v52 = vmul.f32 %v2078_v20, %v773_v3  ;;  %v2137_v53 = vadd.f32 %v2087_v25, %v808_v34  ;;  %1770 = vpow2.f32 %v1392_v41  ;;  %v1396_v54 = vmul.f32 -1.442695, %v2115_v38 }
 0x1f0   : > { %v813_v56 = vmul.f32 %v2078_v20, %v774_v4  ;;  %v2142_v57 = vadd.f32 %v2087_v25, %v809_v43  ;;  %1772 = vpow2.f32 %v1393_v45  ;;  %v1397_v58 = vmul.f32 -1.442695, %v2122_v44 }
 0x1f1   : > { %v814_v59 = vmul.f32 %v2078_v20, %v775_v5  ;;  %v2147_v60 = vadd.f32 %v2087_v25, %v810_v46  ;;  %1774 = vpow2.f32 %v1394_v48  ;;  %v1398_v61 = vmul.f32 -1.442695, %v2127_v47 }
 0x1f2   : > { %v815_v62 = vmul.f32 %v2078_v20, %v776_v6  ;;  %v2152_v63 = vadd.f32 %v2087_v25, %v811_v49  ;;  %1776 = vpow2.f32 %v1395_v51  ;;  %v1399_v0 = vmul.f32 -1.442695, %v2132_v50 }
 0x1f3   : > { %v816_v1 = vmul.f32 %v2078_v20, %v2047_v55  ;;  %v2158_v2 = vadd.f32 %v2087_v25, %v812_v52  ;;  %1778 = vpow2.f32 %v1396_v54  ;;  %v1400_v3 = vmul.f32 -1.442695, %v2137_v53 }
 0x1f4   : > { %v817_v4 = vmul.f32 %v2078_v20, %v2049_v7  ;;  %v2164_v5 = vadd.f32 %v2087_v25, %v813_v56  ;;  %1780 = vpow2.f32 %v1397_v58  ;;  %v1401_v6 = vmul.f32 -1.442695, %v2142_v57 }
 0x1f5   : > { %v818_v21 = vmul.f32 %v2078_v20, %v2051_v8  ;;  %v2170_v55 = vadd.f32 %v2087_v25, %v814_v59  ;;  %1782 = vpow2.f32 %v1398_v61  ;;  %v1402_v22 = vmul.f32 -1.442695, %v2147_v60 }
 0x1f6   : > { %v819_v23 = vmul.f32 %v2078_v20, %v2053_v9  ;;  %v2176_v7 = vadd.f32 %v2087_v25, %v815_v62  ;;  %1784 = vpow2.f32 %v1399_v0  ;;  %v1403_v24 = vmul.f32 -1.442695, %v2152_v63 }
 0x1f7   : > { %v2179_v26 = vpop.eup %1766  ;;  %v820_v8 = vmul.f32 %v2078_v20, %v2055_v10  ;;  %v2184_v27 = vadd.f32 %v2087_v25, %v816_v1  ;;  %1786 = vpow2.f32 %v1400_v3  ;;  %v1404_v28 = vmul.f32 -1.442695, %v2158_v2 }
 0x1f8   : > { %v2187_v32 = vpop.eup %1768  ;;  %v821_v9 = vmul.f32 %v2078_v20, %v2057_v11  ;;  %v2192_v36 = vadd.f32 %v2087_v25, %v817_v4  ;;  %1788 = vpow2.f32 %v1401_v6  ;;  %v1405_v42 = vmul.f32 -1.442695, %v2164_v5 }
 0x1f9   : > { %v2195_v34 = vpop.eup %1770  ;;  %v822_v10 = vmul.f32 %v2078_v20, %v2059_v12  ;;  %v2200_v39 = vadd.f32 %v2087_v25, %v818_v21  ;;  %1790 = vpow2.f32 %v1402_v22  ;;  %v1406_v40 = vmul.f32 -1.442695, %v2170_v55 }
 0x1fa   : > { %v2203_v41 = vpop.eup %1772  ;;  %v823_v11 = vmul.f32 %v2078_v20, %v2061_v13  ;;  %v2208_v43 = vadd.f32 %v2087_v25, %v819_v23  ;;  %1792 = vpow2.f32 %v1403_v24  ;;  %v1407_v45 = vmul.f32 -1.442695, %v2176_v7 }
 0x1fb   : > { %v2211_v46 = vpop.eup %1774  ;;  %v824_v12 = vmul.f32 %v2078_v20, %v2063_v14  ;;  %v2216_v48 = vadd.f32 %v2087_v25, %v820_v8  ;;  %1794 = vpow2.f32 %v1404_v28  ;;  %v1408_v49 = vmul.f32 -1.442695, %v2184_v27 }
 0x1fc   : > { %v2219_v51 = vpop.eup %1776  ;;  %v825_v13 = vmul.f32 %v2078_v20, %v2065_v15  ;;  %v2224_v52 = vadd.f32 %v2087_v25, %v821_v9  ;;  %1796 = vpow2.f32 %v1405_v42  ;;  %v1409_v54 = vmul.f32 -1.442695, %v2192_v36 }
 0x1fd   : > { %v2227_v56 = vpop.eup %1778  ;;  %v826_v14 = vmul.f32 %v2078_v20, %v2067_v16  ;;  %v2232_v58 = vadd.f32 %v2087_v25, %v822_v10  ;;  %1798 = vpow2.f32 %v1406_v40  ;;  %v1410_v59 = vmul.f32 -1.442695, %v2200_v39 }
 0x1fe   : > { %v2235_v61 = vpop.eup %1780  ;;  %v827_v15 = vmul.f32 %v2078_v20, %v2069_v17  ;;  %v2240_v62 = vadd.f32 %v2087_v25, %v823_v11  ;;  %1800 = vpow2.f32 %v1407_v45  ;;  %v1411_v0 = vmul.f32 -1.442695, %v2208_v43 }
 0x1ff   : > { %v1783_v1 = vpop.eup %1782  ;;  %v828_v16 = vmul.f32 %v2078_v20, %v2071_v18  ;;  %v2246_v3 = vadd.f32 %v2087_v25, %v824_v12  ;;  %1802 = vpow2.f32 %v1408_v49  ;;  %v1412_v4 = vmul.f32 -1.442695, %v2216_v48 }
 0x200   : > { %v1785_v6 = vpop.eup %1784  ;;  %v829_v17 = vmul.f32 %v2078_v20, %v2073_v19  ;;  %v2252_v21 = vadd.f32 %v2087_v25, %v825_v13  ;;  %1804 = vpow2.f32 %v1409_v54  ;;  %v1413_v22 = vmul.f32 -1.442695, %v2224_v52 }
 0x201   : > { %v1787_v23 = vpop.eup %1786  ;;  %v2256_v24 = vadd.f32 %v2087_v25, %v826_v14  ;;  %1806 = vpow2.f32 %v1410_v59  ;;  %v1414_v18 = vmul.f32 -1.442695, %v2232_v58  ;;  %v2260_v28 = vadd.f32 %v2087_v25, %v827_v15 }
 0x202   : > { %v1789_v8 = vpop.eup %1788  ;;  %1808 = vpow2.f32 %v1411_v0  ;;  %v1415_v19 = vmul.f32 -1.442695, %v2240_v62  ;;  %v2264_v9 = vadd.f32 %v2087_v25, %v828_v16  ;;  %v1416_v42 = vmul.f32 -1.442695, %v2246_v3 }
 0x203   : > { %v1791_v20 = vpop.eup %1790  ;;  %1810 = vpow2.f32 %v1412_v4  ;;  %v2268_v40 = vadd.f32 %v2087_v25, %v829_v17  ;;  %v1417_v11 = vmul.f32 -1.442695, %v2252_v21  ;;  %v1418_v12 = vmul.f32 -1.442695, %v2256_v24 }
 0x204   : > { %2440 = vst [vmem:[#allocation2_spill] sm:$0xff] %v2264_v9  ;;  %v1793_v10 = vpop.eup %1792  ;;  %1812 = vpow2.f32 %v1413_v22  ;;  %v1419_v13 = vmul.f32 -1.442695, %v2260_v28  ;;  %v1420_v14 = vmul.f32 -1.442695, %v2264_v9  ;;  %v965_v0 = vadd.f32 1.0, %v2179_v26 }
 0x205   : > { %2441 = vst [vmem:[#allocation3_spill] sm:$0xff] %v2268_v40  ;;  %v1795_v45 = vpop.eup %1794  ;;  %1814 = vpow2.f32 %v1414_v18  ;;  %v1421_v25 = vmul.f32 -1.442695, %v2268_v40  ;;  %v966_v4 = vadd.f32 1.0, %v2187_v32  ;;  %v967_v22 = vadd.f32 1.0, %v2195_v34 }
 0x206   : > { %v1797_v49 = vpop.eup %1796  ;;  %1816 = vpow2.f32 %v1415_v19  ;;  %v968_v19 = vadd.f32 1.0, %v2203_v41 }
 0x207   : > { %v1799_v54 = vpop.eup %1798  ;;  %1818 = vpow2.f32 %v1416_v42  ;;  %v980_v9 = vadd.f32 1.0, %v1797_v49 }
 0x208   : > { %v1801_v59 = vpop.eup %1800  ;;  %1820 = vpow2.f32 %v1417_v11  ;;  %v969_v11 = vadd.f32 1.0, %v2211_v46 }
 0x209   : > { %v1803_v15 = vpop.eup %1802  ;;  %1822 = vpow2.f32 %v1418_v12  ;;  %v970_v12 = vadd.f32 1.0, %v2219_v51 }
 0x20a   : > { %v1805_v16 = vpop.eup %1804  ;;  %1824 = vpow2.f32 %v1419_v13  ;;  %v971_v13 = vadd.f32 1.0, %v2227_v56  ;;  %v976_v56 = vadd.f32 1.0, %v1789_v8  ;;  %v981_v8 = vadd.f32 1.0, %v1799_v54 }
 0x20b   : > { %v2277_v17 = vpop.eup %1806  ;;  %1826 = vpow2.f32 %v1420_v14  ;;  %v972_v14 = vadd.f32 1.0, %v2235_v61  ;;  %v977_v61 = vadd.f32 1.0, %v1791_v20  ;;  %v984_v54 = vadd.f32 1.0, %v1805_v16 }
 0x20c   : > { %v2280_v18 = vpop.eup %1808  ;;  %1828 = vpow2.f32 %v1421_v25  ;;  %v973_v25 = vadd.f32 1.0, %v1783_v1  ;;  %v978_v1 = vadd.f32 1.0, %v1793_v10 }
 0x20d   : > { %v2283_v42 = vpop.eup %1810  ;;  %1830 = vrcp.f32 %v965_v0  ;;  %v974_v0 = vadd.f32 1.0, %v1785_v6  ;;  %v979_v6 = vadd.f32 1.0, %v1795_v45  ;;  %v982_v45 = vadd.f32 1.0, %v1801_v59 }
 0x20e   : > { %v2286_v26 = vpop.eup %1812  ;;  %1832 = vrcp.f32 %v966_v4  ;;  %v975_v4 = vadd.f32 1.0, %v1787_v23  ;;  %v986_v16 = vadd.f32 1.0, %v2280_v18 }
 0x20f   : > { %v2289_v32 = vpop.eup %1814  ;;  %1834 = vrcp.f32 %v967_v22  ;;  %v988_v18 = vadd.f32 1.0, %v2286_v26 }
 0x210   : > { %v2292_v34 = vpop.eup %1816  ;;  %1836 = vrcp.f32 %v968_v19 }
 0x211   : > { %v2295_v41 = vpop.eup %1818  ;;  %1838 = vrcp.f32 %v969_v11  ;;  %v990_v26 = vadd.f32 1.0, %v2292_v34 }
 0x212   : > { %v2297_v46 = vpop.eup %1820  ;;  %1840 = vrcp.f32 %v970_v12 }
 0x213   : > { %v2299_v51 = vpop.eup %1822  ;;  %1842 = vrcp.f32 %v971_v13  ;;  %v992_v34 = vadd.f32 1.0, %v2297_v46 }
 0x214   : > { %v2301_v40 = vpop.eup %1824  ;;  %1844 = vrcp.f32 %v972_v14 }
 0x215   : > { %v2303_v22 = vpop.eup %1826  ;;  %1846 = vrcp.f32 %v973_v25  ;;  %v983_v25 = vadd.f32 1.0, %v1803_v15  ;;  %v994_v46 = vadd.f32 1.0, %v2301_v40 }
 0x216   : > { %v2305_v19 = vpop.eup %1828  ;;  %1848 = vrcp.f32 %v974_v0 }
 0x217   : > { %v1831_v11 = vpop.eup %1830  ;;  %1850 = vrcp.f32 %v975_v4  ;;  %v996_v40 = vadd.f32 1.0, %v2305_v19 }
 0x218   : > { %v1833_v12 = vpop.eup %1832  ;;  %1852 = vrcp.f32 %v976_v56  ;;  %v1061_v23 = vmul.f32 %v1831_v11, %v2093_v29 }
 0x219   : > { %v1835_v13 = vpop.eup %1834  ;;  %1854 = vrcp.f32 %v977_v61  ;;  %v1062_v20 = vmul.f32 %v1833_v12, %v2096_v30 }
 0x21a   : > { %v1837_v10 = vpop.eup %1836  ;;  %1856 = vrcp.f32 %v978_v1  ;;  %v1063_v49 = vmul.f32 %v1835_v13, %v2099_v31  ;;  %v1458_v14 = vpack.c.bf16 %v1061_v23, %v1061_v23  ;;  %v985_v31 = vadd.f32 1.0, %v2277_v17 }
 0x21b   : > { %v1839_v29 = vpop.eup %1838  ;;  %1858 = vrcp.f32 %v979_v6  ;;  %v1064_v0 = vmul.f32 %v1837_v10, %v2103_v33  ;;  %v1459_v4 = vpack.c.bf16 %v1062_v20, %v1062_v20  ;;  %v987_v17 = vadd.f32 1.0, %v2283_v42 }
 0x21c   : > { %v1841_v56 = vpop.eup %1840  ;;  %1860 = vrcp.f32 %v980_v9  ;;  %v1065_v30 = vmul.f32 %v1839_v29, %v2107_v37  ;;  %v1460_v61 = vpack.c.bf16 %v1063_v49, %v1063_v49  ;;  %1222 = vst.msk [vmem:[%s2313_s13] sm:$0xf] %vm1221_vm4, %v1458_v14  ;;  %v989_v42 = vadd.f32 1.0, %v2289_v32 }
 0x21d   : > { %v1843_v59 = vpop.eup %1842  ;;  %1862 = vrcp.f32 %v981_v8  ;;  %v1066_v15 = vmul.f32 %v1841_v56, %v2112_v35  ;;  %v1461_v1 = vpack.c.bf16 %v1064_v0, %v1064_v0  ;;  %1223 = vst.msk [vmem:[%s2313_s13 + $0x4] sm:$0xf] %vm1221_vm4, %v1459_v4  ;;  %v991_v32 = vadd.f32 1.0, %v2295_v41 }
 0x21e   : > { %v1845_v33 = vpop.eup %1844  ;;  %1864 = vrcp.f32 %v982_v45  ;;  %v1067_v37 = vmul.f32 %v1843_v59, %v2115_v38  ;;  %v1462_v9 = vpack.c.bf16 %v1065_v30, %v1065_v30  ;;  %1224 = vst.msk [vmem:[%s2313_s13 + $0x8] sm:$0xf] %vm1221_vm4, %v1460_v61  ;;  %v993_v41 = vadd.f32 1.0, %v2299_v51 }
 0x21f   : > { %v1847_v11 = vpop.eup %1846  ;;  %1866 = vrcp.f32 %v983_v25  ;;  %v1068_v35 = vmul.f32 %v1845_v33, %v2122_v44  ;;  %v1463_v6 = vpack.c.bf16 %v1066_v15, %v1066_v15  ;;  %1225 = vst.msk [vmem:[%s2313_s13 + $0xc] sm:$0xf] %vm1221_vm4, %v1461_v1  ;;  %v995_v51 = vadd.f32 1.0, %v2303_v22 }
 0x220   : > { %v1849_v12 = vpop.eup %1848  ;;  %1868 = vrcp.f32 %v984_v54  ;;  %v1069_v38 = vmul.f32 %v1847_v11, %v2127_v47  ;;  %v1464_v23 = vpack.c.bf16 %v1067_v37, %v1067_v37  ;;  %1226 = vst.msk [vmem:[%s2313_s13 + $0x10] sm:$0xf] %vm1221_vm4, %v1462_v9 }
 0x221   : > { %v1851_v13 = vpop.eup %1850  ;;  %1870 = vrcp.f32 %v985_v31  ;;  %v1070_v44 = vmul.f32 %v1849_v12, %v2132_v50  ;;  %v1465_v8 = vpack.c.bf16 %v1068_v35, %v1068_v35  ;;  %1227 = vst.msk [vmem:[%s2313_s13 + $0x14] sm:$0xf] %vm1221_vm4, %v1463_v6 }
 0x222   : > { %v1853_v20 = vpop.eup %1852  ;;  %1872 = vrcp.f32 %v986_v16  ;;  %v1071_v47 = vmul.f32 %v1851_v13, %v2137_v53  ;;  %v1466_v10 = vpack.c.bf16 %v1069_v38, %v1069_v38  ;;  %1228 = vst.msk [vmem:[%s2313_s13 + $0x18] sm:$0xf] %vm1221_vm4, %v1464_v23 }
 0x223   : > { %v1855_v45 = vpop.eup %1854  ;;  %1874 = vrcp.f32 %v987_v17  ;;  %v1072_v50 = vmul.f32 %v1853_v20, %v2142_v57  ;;  %v1467_v49 = vpack.c.bf16 %v1070_v44, %v1070_v44  ;;  %1229 = vst.msk [vmem:[%s2313_s13 + $0x1c] sm:$0xf] %vm1221_vm4, %v1465_v8 }
 0x224   : > { %v1857_v14 = vpop.eup %1856  ;;  %1876 = vrcp.f32 %v988_v18  ;;  %v1073_v53 = vmul.f32 %v1855_v45, %v2147_v60  ;;  %v1468_v29 = vpack.c.bf16 %v1071_v47, %v1071_v47  ;;  %1230 = vst.msk [vmem:[%s2313_s13 + $0x20] sm:$0xf] %vm1221_vm4, %v1466_v10 }
 0x225   : > { %v1859_v25 = vpop.eup %1858  ;;  %1878 = vrcp.f32 %v989_v42  ;;  %v1074_v57 = vmul.f32 %v1857_v14, %v2152_v63  ;;  %v1469_v0 = vpack.c.bf16 %v1072_v50, %v1072_v50  ;;  %1231 = vst.msk [vmem:[%s2313_s13 + $0x24] sm:$0xf] %vm1221_vm4, %v1467_v49  ;;  %v2442_v50 = vld [vmem:[#allocation2_spill] sm:$0xff] }
 0x226   : > { %v1861_v4 = vpop.eup %1860  ;;  %1880 = vrcp.f32 %v990_v26  ;;  %v1075_v60 = vmul.f32 %v1859_v25, %v2158_v2  ;;  %v1470_v56 = vpack.c.bf16 %v1073_v53, %v1073_v53  ;;  %1232 = vst.msk [vmem:[%s2313_s13 + $0x28] sm:$0xf] %vm1221_vm4, %v1468_v29 }
 0x227   : > { %v1863_v54 = vpop.eup %1862  ;;  %1882 = vrcp.f32 %v991_v32  ;;  %v1076_v63 = vmul.f32 %v1861_v4, %v2164_v5  ;;  %v1471_v30 = vpack.c.bf16 %v1074_v57, %v1074_v57  ;;  %1233 = vst.msk [vmem:[%s2313_s13 + $0x2c] sm:$0xf] %vm1221_vm4, %v1469_v0 }
 0x228   : > { %v1865_v61 = vpop.eup %1864  ;;  %1884 = vrcp.f32 %v992_v34  ;;  %v1077_v2 = vmul.f32 %v1863_v54, %v2170_v55  ;;  %v1472_v59 = vpack.c.bf16 %v1075_v60, %v1075_v60  ;;  %1234 = vst.msk [vmem:[%s2313_s13 + $0x30] sm:$0xf] %vm1221_vm4, %v1470_v56  ;;  %v2443_v34 = vld [vmem:[#allocation3_spill] sm:$0xff] }
 0x229   : > { %v1867_v31 = vpop.eup %1866  ;;  %1886 = vrcp.f32 %v993_v41  ;;  %v1078_v22 = vmul.f32 %v1865_v61, %v2176_v7  ;;  %v1473_v15 = vpack.c.bf16 %v1076_v63, %v1076_v63  ;;  %1235 = vst.msk [vmem:[%s2313_s13 + $0x34] sm:$0xf] %vm1221_vm4, %v1471_v30 }
 0x22a   : > { %v1869_v5 = vpop.eup %1868  ;;  %1888 = vrcp.f32 %v994_v46  ;;  %v1079_v1 = vmul.f32 %v1867_v31, %v2184_v27  ;;  %v1474_v19 = vpack.c.bf16 %v1077_v2, %v1077_v2  ;;  %1236 = vst.msk [vmem:[%s2313_s13 + $0x38] sm:$0xf] %vm1221_vm4, %v1472_v59 }
 0x22b   : > { %v1871_v55 = vpop.eup %1870  ;;  %1890 = vrcp.f32 %v995_v51  ;;  %v1080_v33 = vmul.f32 %v1869_v5, %v2192_v36  ;;  %v1475_v16 = vpack.c.bf16 %v1078_v22, %v1078_v22  ;;  %1237 = vst.msk [vmem:[%s2313_s13 + $0x3c] sm:$0xf] %vm1221_vm4, %v1473_v15 }
 0x22c   : > { %v1873_v7 = vpop.eup %1872  ;;  %1892 = vrcp.f32 %v996_v40  ;;  %v1081_v37 = vmul.f32 %v1871_v55, %v2200_v39  ;;  %v1476_v9 = vpack.c.bf16 %v1079_v1, %v1079_v1  ;;  %1238 = vst.msk [vmem:[%s2313_s13 + $0x40] sm:$0xf] %vm1221_vm4, %v1474_v19 }
 0x22d   : > { %v1875_v27 = vpop.eup %1874  ;;  %v1082_v11 = vmul.f32 %v1873_v7, %v2208_v43  ;;  %v1477_v17 = vpack.c.bf16 %v1080_v33, %v1080_v33  ;;  %1239 = vst.msk [vmem:[%s2313_s13 + $0x44] sm:$0xf] %vm1221_vm4, %v1475_v16 }
 0x22e   : > { %v1877_v36 = vpop.eup %1876  ;;  %v1083_v35 = vmul.f32 %v1875_v27, %v2216_v48  ;;  %v1478_v6 = vpack.c.bf16 %v1081_v37, %v1081_v37  ;;  %1240 = vst.msk [vmem:[%s2313_s13 + $0x48] sm:$0xf] %vm1221_vm4, %v1476_v9 }
 0x22f   : > { %v1879_v12 = vpop.eup %1878  ;;  %v1084_v39 = vmul.f32 %v1877_v36, %v2224_v52  ;;  %v1479_v18 = vpack.c.bf16 %v1082_v11, %v1082_v11  ;;  %1241 = vst.msk [vmem:[%s2313_s13 + $0x4c] sm:$0xf] %vm1221_vm4, %v1477_v17 }
 0x230   : > { %v1881_v38 = vpop.eup %1880  ;;  %v1085_v43 = vmul.f32 %v1879_v12, %v2232_v58  ;;  %v1480_v23 = vpack.c.bf16 %v1083_v35, %v1083_v35  ;;  %1242 = vst.msk [vmem:[%s2313_s13 + $0x50] sm:$0xf] %vm1221_vm4, %v1478_v6 }
 0x231   : > { %v1883_v13 = vpop.eup %1882  ;;  %v1086_v48 = vmul.f32 %v1881_v38, %v2240_v62  ;;  %v1481_v42 = vpack.c.bf16 %v1084_v39, %v1084_v39  ;;  %1243 = vst.msk [vmem:[%s2313_s13 + $0x54] sm:$0xf] %vm1221_vm4, %v1479_v18 }
 0x232   : > { %v1885_v44 = vpop.eup %1884  ;;  %v1087_v52 = vmul.f32 %v1883_v13, %v2246_v3  ;;  %v1482_v8 = vpack.c.bf16 %v1085_v43, %v1085_v43  ;;  %1244 = vst.msk [vmem:[%s2313_s13 + $0x58] sm:$0xf] %vm1221_vm4, %v1480_v23 }
 0x233   : > { %v1887_v20 = vpop.eup %1886  ;;  %v1088_v58 = vmul.f32 %v1885_v44, %v2252_v21  ;;  %v1483_v26 = vpack.c.bf16 %v1086_v48, %v1086_v48  ;;  %1245 = vst.msk [vmem:[%s2313_s13 + $0x5c] sm:$0xf] %vm1221_vm4, %v1481_v42 }
 0x234   : > { %v1889_v47 = vpop.eup %1888  ;;  %v1089_v62 = vmul.f32 %v1887_v20, %v2256_v24  ;;  %v1484_v10 = vpack.c.bf16 %v1087_v52, %v1087_v52  ;;  %1246 = vst.msk [vmem:[%s2313_s13 + $0x60] sm:$0xf] %vm1221_vm4, %v1482_v8 }
 0x235   : > { %v1891_v3 = vpop.eup %1890  ;;  %v1090_v45 = vmul.f32 %v1889_v47, %v2260_v28  ;;  %v1485_v32 = vpack.c.bf16 %v1088_v58, %v1088_v58  ;;  %1247 = vst.msk [vmem:[%s2313_s13 + $0x64] sm:$0xf] %vm1221_vm4, %v1483_v26 }
 0x236   : > { %v1893_v21 = vpop.eup %1892  ;;  %v1091_v49 = vmul.f32 %v1891_v3, %v2442_v50  ;;  %v1486_v14 = vpack.c.bf16 %v1089_v62, %v1089_v62  ;;  %1248 = vst.msk [vmem:[%s2313_s13 + $0x68] sm:$0xf] %vm1221_vm4, %v1484_v10 }
 0x237   : > { %v1092_v24 = vmul.f32 %v1893_v21, %v2443_v34  ;;  %v1487_v53 = vpack.c.bf16 %v1090_v45, %v1090_v45  ;;  %1249 = vst.msk [vmem:[%s2313_s13 + $0x6c] sm:$0xf] %vm1221_vm4, %v1485_v32 }
 0x238   : > { %v1488_v29 = vpack.c.bf16 %v1091_v49, %v1091_v49  ;;  %1250 = vst.msk [vmem:[%s2313_s13 + $0x70] sm:$0xf] %vm1221_vm4, %v1486_v14 }
 0x239   : > { %v1489_v25 = vpack.c.bf16 %v1092_v24, %v1092_v24  ;;  %1251 = vst.msk [vmem:[%s2313_s13 + $0x74] sm:$0xf] %vm1221_vm4, %v1487_v53 }
 0x23a   : > { %1252 = vst.msk [vmem:[%s2313_s13 + $0x78] sm:$0xf] %vm1221_vm4, %v1488_v29 }
 0x23b   : > { %1253 = vst.msk [vmem:[%s2313_s13 + $0x7c] sm:$0xf] %vm1221_vm4, %v1489_v25 }
 0x23c PF: > { %s16_s23 = sadd.s32 1, %s1916_s23   ;;  %s2444_s21 = smov %s1912_s22 }
 0x23d   : > { %p13_p5 = scmp.ge.s32.totalorder %s16_s23, 4   ;;  %s2445_s22 = smov %s2447_s24 }
 0x23f   :  { %15 = sbr.rel (!%p13_p5) target bundleno = 2 (0x2), region = 80 }

// kernel: decoder_forward.85
= control target key start
LH: loop header
LB: loop body
LE: loop exit
PB: predicated region body
PF: predicated region fallthrough
CT: control target
= control target key end

     0   :  { %s666_s9 = smov 0   ;;  %s668_s10 = smov 0   ;;  %s798_s0 = inlined_call_operand.vmem [shape: bf16[2,256,32], index: 0, kind: input, shape index: {}]   ;;  %s799_s1 = inlined_call_operand.vmem [shape: f32[2,1,32], index: 1, kind: output, shape index: {0}]   ;;  %s800_s2 = inlined_call_operand.vmem [shape: f32[2,1,32], index: 2, kind: output, shape index: {1}]  }
   0x1   :  { %s670_s11 = smov 0  }
   0x2 LB: > { %s25_s12 = sadd.s32 1, %s644_s10  ;;  %p516_p0 = scmp.ge.s32.totalorder %s648_s11, 1  ;;  %s648_s11 = sphi %s670_s11, %s13_s11   ;;  %s644_s10 = sphi %s668_s10, %s802_s10   ;;  %s640_s9 = sphi %s666_s9, %s801_s9  }
   0x3   : > { %p27_p1 = scmp.ge.s32.totalorder %s25_s12, 2  ;;  %p134_p2 = scmp.lt.s32.totalorder %s648_s11, 3 }
   0x5   : > { %s804_s12 = smov (%p27_p1, %s25_s12), 0  ;;  %p135_p3 = pnand %p516_p0, %p134_p2 }
   0x6   : > { %p162_p4 = scmp.lt.s32.totalorder (!%p135_p3), %s640_s9, 1  ;;  %vm181_vm0 = vcmask (!%p135_p3), 253952   ;;  %v650_v0 = vmov (!%p135_p3), 0.0   ;;  %vm249_vm1 = vcmask (!%p135_p3), 261120  }
   0x7   : > { %138 = sbr.rel (%p135_p3) target bundleno = 104 (0x68), region = 24 }
   0xe   : > { %s806_s9 = smov (!%p162_p4, %s640_s9), 1 }
   0xf   : > { %s521_s13 = sshll.u32 %s806_s9, 7  ;;  %s687_s16 = scalar_lea.vmem %s799_s1, %s806_s9 }
  0x10   : > { %182 = vst.msk [vmem:[%s687_s16] sm:$0x1] %vm181_vm0, %v650_v0  ;;  %s694_s19 = scalar_lea.vmem %s800_s2, %s806_s9  ;;  %s701_s22 = scalar_lea.vmem %s798_s0, %s521_s13 }
  0x11   : > { %183 = vst.msk [vmem:[%s694_s19] sm:$0x1] %vm181_vm0, %v650_v0  ;;  %v523_v1 = vld [vmem:[%s701_s22] sm:$0xff]   ;;  %v586_v2 = vld [vmem:[%s701_s22 + $0x8] sm:$0xff]   ;;  %v587_v6 = vld [vmem:[%s701_s22 + $0x10] sm:$0xff]  }
  0x12   : > { %v524_v3 = vunpack.c.l.bf16 %v523_v1  ;;  %v525_v4 = vunpack.c.h.bf16 %v523_v1  ;;  %v528_v5 = vunpack.c.l.bf16 %v586_v2  ;;  %v529_v7 = vunpack.c.h.bf16 %v586_v2  ;;  %v588_v14 = vld [vmem:[%s701_s22 + $0x18] sm:$0xff]   ;;  %v589_v21 = vld [vmem:[%s701_s22 + $0x20] sm:$0xff]   ;;  %v590_v27 = vld [vmem:[%s701_s22 + $0x28] sm:$0xff]  }
  0x13   : > { %v532_v12 = vunpack.c.l.bf16 %v587_v6  ;;  %v533_v16 = vunpack.c.h.bf16 %v587_v6  ;;  %v536_v19 = vunpack.c.l.bf16 %v588_v14  ;;  %v537_v23 = vunpack.c.h.bf16 %v588_v14  ;;  %v591_v34 = vld [vmem:[%s701_s22 + $0x30] sm:$0xff]   ;;  %v592_v50 = vld [vmem:[%s701_s22 + $0x38] sm:$0xff]   ;;  %v593_v63 = vld [vmem:[%s701_s22 + $0x40] sm:$0xff]  }
  0x14   : > { %v250_v8 = vsel %vm249_vm1, %v524_v3, 0.0  ;;  %v251_v9 = vsel %vm249_vm1, %v525_v4, 0.0  ;;  %v253_v10 = vsel %vm249_vm1, %v528_v5, 0.0  ;;  %v255_v13 = vsel %vm249_vm1, %v529_v7, 0.0 }
  0x15   : > { %v252_v11 = vadd.f32 %v251_v9, %v250_v8  ;;  %v257_v17 = vsel %vm249_vm1, %v532_v12, 0.0  ;;  %v259_v20 = vsel %vm249_vm1, %v533_v16, 0.0  ;;  %v261_v24 = vsel %vm249_vm1, %v536_v19, 0.0 }
  0x16   : > { %v540_v26 = vunpack.c.l.bf16 %v589_v21  ;;  %v263_v28 = vsel %vm249_vm1, %v537_v23, 0.0  ;;  %v541_v30 = vunpack.c.h.bf16 %v589_v21  ;;  %v544_v32 = vunpack.c.l.bf16 %v590_v27 }
  0x17   : > { %v254_v15 = vadd.f32 %v253_v10, %v252_v11  ;;  %v323_v36 = vmul.f32 %v524_v3, %v524_v3  ;;  %v324_v37 = vmul.f32 %v525_v4, %v525_v4  ;;  %v325_v38 = vmul.f32 %v528_v5, %v528_v5 }
  0x18   : > { %v265_v31 = vsel %vm249_vm1, %v540_v26, 0.0  ;;  %v267_v35 = vsel %vm249_vm1, %v541_v30, 0.0  ;;  %v545_v39 = vunpack.c.h.bf16 %v590_v27  ;;  %v269_v41 = vsel %vm249_vm1, %v544_v32, 0.0 }
  0x19   : > { %v256_v18 = vadd.f32 %v255_v13, %v254_v15  ;;  %v326_v42 = vmul.f32 %v529_v7, %v529_v7  ;;  %v548_v43 = vunpack.c.l.bf16 %v591_v34  ;;  %v327_v46 = vmul.f32 %v532_v12, %v532_v12  ;;  %v594_v12 = vld [vmem:[%s701_s22 + $0x48] sm:$0xff]  }
  0x1a   : > { %v271_v45 = vsel %vm249_vm1, %v545_v39, 0.0  ;;  %v355_v47 = vsel %vm249_vm1, %v323_v36, 0.0  ;;  %v356_v48 = vsel %vm249_vm1, %v324_v37, 0.0  ;;  %v358_v49 = vsel %vm249_vm1, %v325_v38, 0.0  ;;  %v596_v38 = vld [vmem:[%s701_s22 + $0x58] sm:$0xff]  }
  0x1b   : > { %v258_v22 = vadd.f32 %v257_v17, %v256_v18  ;;  %v357_v52 = vadd.f32 %v356_v48, %v355_v47  ;;  %v549_v53 = vunpack.c.h.bf16 %v591_v34  ;;  %v273_v54 = vsel %vm249_vm1, %v548_v43, 0.0 }
  0x1c   : > { %v328_v55 = vmul.f32 %v533_v16, %v533_v16  ;;  %v360_v56 = vsel %vm249_vm1, %v326_v42, 0.0  ;;  %v552_v59 = vunpack.c.l.bf16 %v592_v50  ;;  %v329_v61 = vmul.f32 %v536_v19, %v536_v19 }
  0x1d   : > { %v260_v25 = vadd.f32 %v259_v20, %v258_v22  ;;  %v359_v58 = vadd.f32 %v358_v49, %v357_v52  ;;  %v275_v60 = vsel %vm249_vm1, %v549_v53, 0.0  ;;  %v362_v62 = vsel %vm249_vm1, %v327_v46, 0.0 }
  0x1e   : > { %v553_v2 = vunpack.c.h.bf16 %v592_v50  ;;  %v277_v3 = vsel %vm249_vm1, %v552_v59, 0.0  ;;  %v330_v4 = vmul.f32 %v537_v23, %v537_v23  ;;  %v364_v5 = vsel %vm249_vm1, %v328_v55, 0.0 }
  0x1f   : > { %v262_v29 = vadd.f32 %v261_v24, %v260_v25  ;;  %v361_v1 = vadd.f32 %v360_v56, %v359_v58  ;;  %v556_v8 = vunpack.c.l.bf16 %v593_v63  ;;  %v331_v10 = vmul.f32 %v540_v26, %v540_v26  ;;  %v595_v25 = vld [vmem:[%s701_s22 + $0x50] sm:$0xff]  }
  0x20   : > { %v279_v9 = vsel %vm249_vm1, %v553_v2, 0.0  ;;  %v366_v11 = vsel %vm249_vm1, %v329_v61, 0.0  ;;  %v557_v15 = vunpack.c.h.bf16 %v593_v63  ;;  %v332_v17 = vmul.f32 %v541_v30, %v541_v30 }
  0x21   : > { %v264_v33 = vadd.f32 %v263_v28, %v262_v29  ;;  %v363_v7 = vadd.f32 %v362_v62, %v361_v1  ;;  %v281_v16 = vsel %vm249_vm1, %v556_v8, 0.0  ;;  %v368_v18 = vsel %vm249_vm1, %v330_v4, 0.0 }
  0x22   : > { %v560_v21 = vunpack.c.l.bf16 %v594_v12  ;;  %v283_v22 = vsel %vm249_vm1, %v557_v15, 0.0  ;;  %v333_v23 = vmul.f32 %v544_v32, %v544_v32  ;;  %v370_v24 = vsel %vm249_vm1, %v331_v10, 0.0 }
  0x23   : > { %v266_v40 = vadd.f32 %v265_v31, %v264_v33  ;;  %v365_v14 = vadd.f32 %v364_v5, %v363_v7  ;;  %v561_v28 = vunpack.c.h.bf16 %v594_v12  ;;  %v334_v31 = vmul.f32 %v545_v39, %v545_v39 }
  0x24   : > { %v285_v29 = vsel %vm249_vm1, %v560_v21, 0.0  ;;  %v372_v30 = vsel %vm249_vm1, %v332_v17, 0.0  ;;  %v335_v37 = vmul.f32 %v548_v43, %v548_v43  ;;  %v374_v32 = vsel %vm249_vm1, %v333_v23, 0.0 }
  0x25   : > { %v268_v44 = vadd.f32 %v267_v35, %v266_v40  ;;  %v367_v20 = vadd.f32 %v366_v11, %v365_v14  ;;  %v564_v35 = vunpack.c.l.bf16 %v595_v25  ;;  %v287_v36 = vsel %vm249_vm1, %v561_v28, 0.0 }
  0x26   : > { %v565_v42 = vunpack.c.h.bf16 %v595_v25  ;;  %v376_v39 = vsel %vm249_vm1, %v334_v31, 0.0  ;;  %v568_v48 = vunpack.c.l.bf16 %v596_v38  ;;  %v337_v50 = vmul.f32 %v552_v59, %v552_v59 }
  0x27   : > { %v270_v51 = vadd.f32 %v269_v41, %v268_v44  ;;  %v369_v27 = vadd.f32 %v368_v18, %v367_v20  ;;  %v289_v44 = vsel %vm249_vm1, %v564_v35, 0.0  ;;  %v378_v43 = vsel %vm249_vm1, %v335_v37, 0.0 }
  0x28   : > { %v291_v49 = vsel %vm249_vm1, %v565_v42, 0.0  ;;  %v569_v55 = vunpack.c.h.bf16 %v596_v38  ;;  %v293_v56 = vsel %vm249_vm1, %v568_v48, 0.0  ;;  %v339_v63 = vmul.f32 %v556_v8, %v556_v8 }
  0x29   : > { %v272_v57 = vadd.f32 %v271_v45, %v270_v51  ;;  %v371_v34 = vadd.f32 %v370_v24, %v369_v27  ;;  %v336_v45 = vmul.f32 %v549_v53, %v549_v53  ;;  %v597_v51 = vld [vmem:[%s701_s22 + $0x60] sm:$0xff]   ;;  %v382_v59 = vsel %vm249_vm1, %v337_v50, 0.0 }
  0x2a   : > { %v572_v61 = vunpack.c.l.bf16 %v597_v51  ;;  %v295_v62 = vsel %vm249_vm1, %v569_v55, 0.0  ;;  %v573_v4 = vunpack.c.h.bf16 %v597_v51  ;;  %v341_v12 = vmul.f32 %v560_v21, %v560_v21  ;;  %v600_v21 = vld [vmem:[%s701_s22 + $0x78] sm:$0xff]  }
  0x2b   : > { %v274_v0 = vadd.f32 %v273_v54, %v272_v57  ;;  %v373_v41 = vadd.f32 %v372_v30, %v371_v34  ;;  %v338_v57 = vmul.f32 %v553_v2, %v553_v2  ;;  %v380_v53 = vsel %vm249_vm1, %v336_v45, 0.0 }
  0x2c   : > { %v297_v5 = vsel %vm249_vm1, %v572_v61, 0.0  ;;  %v299_v11 = vsel %vm249_vm1, %v573_v4, 0.0  ;;  %v386_v8 = vsel %vm249_vm1, %v339_v63, 0.0  ;;  %v343_v25 = vmul.f32 %v564_v35, %v564_v35 }
  0x2d   : > { %v276_v6 = vadd.f32 %v275_v60, %v274_v0  ;;  %v375_v47 = vadd.f32 %v374_v32, %v373_v41  ;;  %v598_v0 = vld [vmem:[%s701_s22 + $0x68] sm:$0xff]   ;;  %v384_v2 = vsel %vm249_vm1, %v338_v57, 0.0  ;;  %v584_v37 = vunpack.c.l.bf16 %v600_v21 }
  0x2e   : > { %v576_v10 = vunpack.c.l.bf16 %v598_v0  ;;  %v577_v17 = vunpack.c.h.bf16 %v598_v0  ;;  %v345_v38 = vmul.f32 %v568_v48, %v568_v48  ;;  %v347_v50 = vmul.f32 %v572_v61, %v572_v61 }
  0x2f   : > { %v278_v13 = vadd.f32 %v277_v3, %v276_v6  ;;  %v377_v54 = vadd.f32 %v376_v39, %v375_v47  ;;  %v340_v6 = vmul.f32 %v557_v15, %v557_v15  ;;  %v309_v45 = vsel %vm249_vm1, %v584_v37, 0.0 }
  0x30   : > { %v301_v18 = vsel %vm249_vm1, %v576_v10, 0.0  ;;  %v303_v24 = vsel %vm249_vm1, %v577_v17, 0.0  ;;  %v346_v39 = vmul.f32 %v569_v55, %v569_v55  ;;  %v348_v48 = vmul.f32 %v573_v4, %v573_v4 }
  0x31   : > { %v280_v19 = vadd.f32 %v279_v9, %v278_v13  ;;  %v379_v60 = vadd.f32 %v378_v43, %v377_v54  ;;  %v599_v13 = vld [vmem:[%s701_s22 + $0x70] sm:$0xff]   ;;  %v388_v15 = vsel %vm249_vm1, %v340_v6, 0.0  ;;  %v398_v43 = vsel %vm249_vm1, %v345_v38, 0.0 }
  0x32   : > { %v580_v23 = vunpack.c.l.bf16 %v599_v13  ;;  %v581_v31 = vunpack.c.h.bf16 %v599_v13  ;;  %v400_v54 = vsel %vm249_vm1, %v346_v39, 0.0  ;;  %v404_v63 = vsel %vm249_vm1, %v348_v48, 0.0 }
  0x33   : > { %v282_v26 = vadd.f32 %v281_v16, %v280_v19  ;;  %v381_v3 = vadd.f32 %v380_v53, %v379_v60  ;;  %v342_v19 = vmul.f32 %v561_v28, %v561_v28  ;;  %v349_v53 = vmul.f32 %v576_v10, %v576_v10 }
  0x34   : > { %v305_v30 = vsel %vm249_vm1, %v580_v23, 0.0  ;;  %v307_v32 = vsel %vm249_vm1, %v581_v31, 0.0  ;;  %v351_v0 = vmul.f32 %v580_v23, %v580_v23 }
  0x35   : > { %v284_v33 = vadd.f32 %v283_v22, %v282_v26  ;;  %v383_v9 = vadd.f32 %v382_v59, %v381_v3  ;;  %v390_v26 = vsel %vm249_vm1, %v341_v12, 0.0  ;;  %v392_v34 = vsel %vm249_vm1, %v342_v19, 0.0 }
  0x36   : > { %v410_v10 = vsel %vm249_vm1, %v351_v0, 0.0 }
  0x37   : > { %v286_v40 = vadd.f32 %v285_v29, %v284_v33  ;;  %v385_v16 = vadd.f32 %v384_v2, %v383_v9  ;;  %v344_v33 = vmul.f32 %v565_v42, %v565_v42  ;;  %v353_v9 = vmul.f32 %v584_v37, %v584_v37 }
  0x39   : > { %v288_v46 = vadd.f32 %v287_v36, %v286_v40  ;;  %v387_v22 = vadd.f32 %v386_v8, %v385_v16  ;;  %v394_v40 = vsel %vm249_vm1, %v343_v25, 0.0  ;;  %v248_v8 = vld [vmem:[%s687_s16] sm:$0x1] }
  0x3b   : > { %v290_v52 = vadd.f32 %v289_v44, %v288_v46  ;;  %v389_v29 = vadd.f32 %v388_v15, %v387_v22  ;;  %v585_v44 = vunpack.c.h.bf16 %v600_v21  ;;  %v396_v46 = vsel %vm249_vm1, %v344_v33, 0.0 }
  0x3d   : > { %v292_v58 = vadd.f32 %v291_v49, %v290_v52  ;;  %v391_v36 = vadd.f32 %v390_v26, %v389_v29  ;;  %v311_v49 = vsel %vm249_vm1, %v585_v44, 0.0  ;;  %v354_v13 = vmul.f32 %v585_v44, %v585_v44  ;;  %v322_v29 = vld [vmem:[%s694_s19] sm:$0x1] }
  0x3f   : > { %v294_v1 = vadd.f32 %v293_v56, %v292_v58  ;;  %v393_v41 = vadd.f32 %v392_v34, %v391_v36  ;;  %v402_v58 = vsel %vm249_vm1, %v347_v50, 0.0 }
  0x41   : > { %v296_v7 = vadd.f32 %v295_v62, %v294_v1  ;;  %v395_v42 = vadd.f32 %v394_v40, %v393_v41  ;;  %v350_v62 = vmul.f32 %v577_v17, %v577_v17  ;;  %v406_v1 = vsel %vm249_vm1, %v349_v53, 0.0 }
  0x43   : > { %v298_v14 = vadd.f32 %v297_v5, %v296_v7  ;;  %v397_v52 = vadd.f32 %v396_v46, %v395_v42  ;;  %v352_v5 = vmul.f32 %v581_v31, %v581_v31  ;;  %v408_v6 = vsel %vm249_vm1, %v350_v62, 0.0 }
  0x45   : > { %v300_v20 = vadd.f32 %v299_v11, %v298_v14  ;;  %v399_v57 = vadd.f32 %v398_v43, %v397_v52  ;;  %v412_v14 = vsel %vm249_vm1, %v352_v5, 0.0 }
  0x47   : > { %v302_v27 = vadd.f32 %v301_v18, %v300_v20  ;;  %v401_v60 = vadd.f32 %v400_v54, %v399_v57  ;;  %v414_v18 = vsel %vm249_vm1, %v353_v9, 0.0  ;;  %v416_v20 = vsel %vm249_vm1, %v354_v13, 0.0 }
  0x49   : > { %v304_v28 = vadd.f32 %v303_v24, %v302_v27  ;;  %v403_v61 = vadd.f32 %v402_v58, %v401_v60 }
  0x4b   : > { %v306_v35 = vadd.f32 %v305_v30, %v304_v28  ;;  %v405_v4 = vadd.f32 %v404_v63, %v403_v61 }
  0x4d   : > { %v308_v47 = vadd.f32 %v307_v32, %v306_v35  ;;  %v407_v7 = vadd.f32 %v406_v1, %v405_v4 }
  0x4f   : > { %v310_v51 = vadd.f32 %v309_v45, %v308_v47  ;;  %v409_v12 = vadd.f32 %v408_v6, %v407_v7 }
  0x51   : > { %v312_v56 = vadd.f32 %v311_v49, %v310_v51  ;;  %v411_v17 = vadd.f32 %v410_v10, %v409_v12 }
  0x53   : > { %v313_v55 = vrot.slane %v312_v56, 4  ;;  %v413_v15 = vadd.f32 %v412_v14, %v411_v17 }
  0x55   : > { %v314_v59 = vadd.f32 %v313_v55, %v312_v56  ;;  %v415_v22 = vadd.f32 %v414_v18, %v413_v15 }
  0x57   : > { %v315_v3 = vrot.slane %v314_v59, 2  ;;  %v417_v23 = vadd.f32 %v416_v20, %v415_v22 }
  0x59   : > { %v316_v2 = vadd.f32 %v315_v3, %v314_v59  ;;  %v418_v24 = vrot.slane %v417_v23, 4 }
  0x5b   : > { %v317_v11 = vrot.slane %v316_v2, 1  ;;  %v419_v25 = vadd.f32 %v418_v24, %v417_v23 }
  0x5d   : > { %v318_v16 = vadd.f32 %v317_v11, %v316_v2  ;;  %v420_v26 = vrot.slane %v419_v25, 2 }
  0x5f   : > { %v319_v19 = vadd.f32 %v318_v16, %v248_v8  ;;  %v421_v21 = vadd.f32 %v420_v26, %v419_v25 }
  0x61   : > { %321 = vst.msk [vmem:[%s687_s16] sm:$0x1] %vm181_vm0, %v319_v19  ;;  %v422_v27 = vrot.slane %v421_v21, 1 }
  0x63   : > { %v423_v31 = vadd.f32 %v422_v27, %v421_v21 }
  0x65   : > { %v424_v30 = vadd.f32 %v423_v31, %v322_v29 }
  0x67   : > { %425 = vst.msk [vmem:[%s694_s19] sm:$0x1] %vm181_vm0, %v424_v30 }
  0x68 PF: > { %s13_s11 = sadd.s32 1, %s648_s11   ;;  %s801_s9 = smov %s644_s10 }
  0x69   : > { %p10_p5 = scmp.ge.s32.totalorder %s13_s11, 4   ;;  %s802_s10 = smov %s804_s12 }
  0x6b   :  { %12 = sbr.rel (!%p10_p5) target bundleno = 2 (0x2), region = 70 }

// kernel: decoder_forward.86
= control target key start
LH: loop header
LB: loop body
LE: loop exit
PB: predicated region body
PF: predicated region fallthrough
CT: control target
= control target key end

     0   :  { %s1855_s21 = smov 0   ;;  %s1857_s22 = smov 0   ;;  %s2316_s0 = inlined_call_operand.vmem [shape: bf16[2,256,32], index: 0, kind: input, shape index: {}]   ;;  %s2317_s1 = inlined_call_operand.vmem [shape: f32[2,1,32], index: 1, kind: input, shape index: {}]   ;;  %s2318_s2 = inlined_call_operand.vmem [shape: f32[2,1,32], index: 2, kind: input, shape index: {}]   ;;  %s2319_s3 = inlined_call_operand.vmem [shape: f32[32,32], index: 3, kind: input, shape index: {}]   ;;  %s2320_s4 = inlined_call_operand.vmem [shape: f32[1,32], index: 4, kind: input, shape index: {}]   ;;  %s2321_s5 = inlined_call_operand.vmem [shape: f32[1,32], index: 5, kind: input, shape index: {}]   ;;  %s2322_s6 = inlined_call_operand.vmem [shape: bf16[2,256,32], index: 6, kind: output, shape index: {}]  }
   0x1   :  { %s1859_s23 = smov 0  }
   0x2 LB: > { %s28_s24 = sadd.s32 1, %s1811_s22  ;;  %p1346_p0 = scmp.ge.s32.totalorder %s1815_s23, 1  ;;  %s1815_s23 = sphi %s1859_s23, %s16_s23   ;;  %s1811_s22 = sphi %s1857_s22, %s2330_s22   ;;  %s1807_s21 = sphi %s1855_s21, %s2329_s21  }
   0x3   : > { %p30_p1 = scmp.ge.s32.totalorder %s28_s24, 2  ;;  %p249_p2 = scmp.lt.s32.totalorder %s1815_s23, 3 }
   0x5   : > { %s2332_s24 = smov (%p30_p1, %s28_s24), 0  ;;  %p250_p3 = pnand %p1346_p0, %p249_p2 }
   0x7   : > { %253 = sbr.rel (%p250_p3) target bundleno = 564 (0x234), region = 44 }
   0xe   : > { %v383_v0 = vld [vmem:[%s2319_s3] sm:$0xff]  ;;  %v384_v1 = vld [vmem:[%s2319_s3 + $0x8] sm:$0xff]  ;;  %v385_v2 = vld [vmem:[%s2319_s3 + $0x10] sm:$0xff]  ;;  %v1817_v3 = vmov 0.0|0.0   ;;  %p294_p4 = scmp.lt.s32.totalorder %s1807_s21, 1  ;;  %vm1818_vm0 = vmmov 0   ;;  %v702_v21 = vlaneseq }
   0xf   : > { %1608 = vmatprep.subr.bf16.mxu0 %v1817_v3  ;;  %v1609_v4 = vpack.c.bf16 %v384_v1, %v383_v0  ;;  %1614 = vmatprep.subr.bf16.mxu1 %v1817_v3  ;;  %v386_v5 = vld [vmem:[%s2319_s3 + $0x18] sm:$0xff]  ;;  %v1819_v6 = vmov 0.0   ;;  %vm388_vm1 = vcmask 261120   ;;  %vm1204_vm3 = vcmask 257024  }
  0x10   : > { %1572 = vmatprep.mubr.msk.f32.mxu0 %vm1818_vm0, %v1819_v6  ;;  %1583 = vmatprep.mubr.msk.f32.mxu1 %vm1818_vm0, %v1819_v6  ;;  %v1612_v7 = vpack.c.bf16 %v386_v5, %v385_v2  ;;  %s2334_s21 = smov (!%p294_p4, %s1807_s21), 1  ;;  %vm1622_vm2 = vmpackc.low %vm388_vm1, %vm388_vm1  ;;  %v1918_v27 = vshrl.u32 %v702_v21, 7 }
  0x11   : > { %1610 = vmatpush3.bf16.msra.mxu0 %v1609_v4  ;;  %1616 = vmatpush3.bf16.msra.mxu1 %v1609_v4  ;;  %s305_s11 = scalar_lea.vmem %s2317_s1, %s2334_s21  ;;  %s308_s14 = scalar_lea.vmem %s2318_s2, %s2334_s21 }
  0x12   : > { %1611 = vmatprep.subr.bf16.mxu0 %v1817_v3  ;;  %1617 = vmatprep.subr.bf16.mxu1 %v1817_v3  ;;  %v387_v8 = vld [vmem:[%s305_s11] sm:$0x1]  ;;  %s1431_s15 = sshll.u32 %s2334_s21, 7  ;;  %v704_v49 = vsub.s32 0, %v1918_v27 }
  0x13   : > { %v462_v9 = vld [vmem:[%s308_s14] sm:$0x1]  ;;  %s1911_s18 = scalar_lea.vmem %s2316_s0, %s1431_s15  ;;  %s2198_s29 = scalar_lea.vmem %s2322_s6, %s1431_s15 }
  0x14   : > { %v1466_v22 = vld [vmem:[%s1911_s18] sm:$0xff]   ;;  %v1529_v23 = vld [vmem:[%s1911_s18 + $0x8] sm:$0xff]   ;;  %v1530_v24 = vld [vmem:[%s1911_s18 + $0x10] sm:$0xff]  }
  0x15   : > { %1613 = vmatpush3.bf16.msra.mxu0 %v1612_v7  ;;  %1619 = vmatpush3.bf16.msra.mxu1 %v1612_v7  ;;  %v1531_v25 = vld [vmem:[%s1911_s18 + $0x18] sm:$0xff]   ;;  %v1532_v26 = vld [vmem:[%s1911_s18 + $0x20] sm:$0xff]   ;;  %v1467_v28 = vunpack.c.l.bf16 %v1466_v22  ;;  %v1468_v29 = vunpack.c.h.bf16 %v1466_v22  ;;  %v1533_v30 = vld [vmem:[%s1911_s18 + $0x28] sm:$0xff]   ;;  %v1471_v32 = vunpack.c.l.bf16 %v1529_v23  ;;  %v1472_v33 = vunpack.c.h.bf16 %v1529_v23 }
  0x16   : > { %1620 = vmatprep.subr.bf16.mxu0 %v1817_v3  ;;  %1628 = vmatprep.subr.bf16.mxu1 %v1817_v3  ;;  %v1534_v31 = vld [vmem:[%s1911_s18 + $0x30] sm:$0xff]   ;;  %v1475_v34 = vunpack.c.l.bf16 %v1530_v24  ;;  %v1476_v35 = vunpack.c.h.bf16 %v1530_v24  ;;  %v1535_v36 = vld [vmem:[%s1911_s18 + $0x38] sm:$0xff]   ;;  %v1536_v37 = vld [vmem:[%s1911_s18 + $0x40] sm:$0xff]   ;;  %v1479_v38 = vunpack.c.l.bf16 %v1531_v25  ;;  %v1480_v39 = vunpack.c.h.bf16 %v1531_v25 }
  0x17   : > { %v1483_v40 = vunpack.c.l.bf16 %v1532_v26  ;;  %v1484_v41 = vunpack.c.h.bf16 %v1532_v26  ;;  %v1537_v42 = vld [vmem:[%s1911_s18 + $0x48] sm:$0xff]   ;;  %v1538_v43 = vld [vmem:[%s1911_s18 + $0x50] sm:$0xff]   ;;  %v1487_v44 = vunpack.c.l.bf16 %v1533_v30  ;;  %v1488_v45 = vunpack.c.h.bf16 %v1533_v30  ;;  %v1539_v47 = vld [vmem:[%s1911_s18 + $0x58] sm:$0xff]  }
  0x18   : > { %1573 = vmatmul.mubr.msk.f32.vlgmr.msra.gmra.mrb[0].mxu0 %vm388_vm1, %v387_v8  ;;  %1584 = vmatmul.mubr.msk.f32.vlgmr.msra.gmra.mrb[0].mxu1 %vm388_vm1, %v462_v9  ;;  %v1491_v46 = vunpack.c.l.bf16 %v1534_v31  ;;  %v1540_v48 = vld [vmem:[%s1911_s18 + $0x60] sm:$0xff]   ;;  %v1492_v50 = vunpack.c.h.bf16 %v1534_v31  ;;  %v1495_v51 = vunpack.c.l.bf16 %v1535_v36  ;;  %v1496_v52 = vunpack.c.h.bf16 %v1535_v36  ;;  %v1541_v54 = vld [vmem:[%s1911_s18 + $0x68] sm:$0xff]   ;;  %v1542_v59 = vld [vmem:[%s1911_s18 + $0x70] sm:$0xff]  }
  0x19   : > { %1594 = vmatprep.mubr.msk.f32.mxu0 %vm1818_vm0, %v1819_v6  ;;  %1605 = vmatprep.mubr.msk.f32.mxu1 %vm1818_vm0, %v1819_v6  ;;  %v1499_v53 = vunpack.c.l.bf16 %v1536_v37  ;;  %v1500_v55 = vunpack.c.h.bf16 %v1536_v37  ;;  %v1503_v56 = vunpack.c.l.bf16 %v1537_v42  ;;  %v1504_v57 = vunpack.c.h.bf16 %v1537_v42  ;;  %v1543_v60 = vld [vmem:[%s1911_s18 + $0x78] sm:$0xff]  }
  0x1a   : > { %v1507_v58 = vunpack.c.l.bf16 %v1538_v43  ;;  %v1508_v61 = vunpack.c.h.bf16 %v1538_v43  ;;  %v1511_v62 = vunpack.c.l.bf16 %v1539_v47  ;;  %v1512_v63 = vunpack.c.h.bf16 %v1539_v47 }
  0x1b   : > { %v1515_v0 = vunpack.c.l.bf16 %v1540_v48  ;;  %v1516_v2 = vunpack.c.h.bf16 %v1540_v48  ;;  %v1524_v8 = vunpack.c.h.bf16 %v1542_v59  ;;  %v1527_v9 = vunpack.c.l.bf16 %v1543_v60 }
  0x1e   : > { %1623 = vmatpush3.bf16.xpose.msk.msra.mxu0 %vm1622_vm2, %v1609_v4  ;;  %1631 = vmatpush3.bf16.xpose.msk.msra.mxu1 %vm1622_vm2, %v1609_v4  ;;  %v1520_v4 = vunpack.c.h.bf16 %v1541_v54 }
  0x1f   : > { %1624 = vmatprep.subr.bf16.mxu0 %v1817_v3  ;;  %1632 = vmatprep.subr.bf16.mxu1 %v1817_v3  ;;  %v1519_v3 = vunpack.c.l.bf16 %v1541_v54 }
  0x26   : > { %1627 = vmatpush3.bf16.xpose.msk.msra.mxu0 %vm1622_vm2, %v1612_v7  ;;  %1635 = vmatpush3.bf16.xpose.msk.msra.mxu1 %vm1622_vm2, %v1612_v7  ;;  %v1523_v7 = vunpack.c.l.bf16 %v1542_v59 }
  0xeb   : > { %v458_v10 = vpop.f32.mrb[0].mxu0  ;;  %v532_v14 = vpop.f32.mrb[0].mxu1 }
  0xec   : > { %v537_v11 = vmul.f32 0.00390625, %v458_v10  ;;  %v1574_v12 = vpop.f32.mrb[1].mxu0  ;;  %v538_v15 = vmul.f32 0.00390625, %v532_v14  ;;  %v1585_v16 = vpop.f32.mrb[1].mxu1  ;;  %v1528_v10 = vunpack.c.h.bf16 %v1543_v60 }
  0xee   : > { %v539_v13 = vmul.f32 %v537_v11, %v537_v11  ;;  %1595 = vmatmul.mubr.msk.f32.vlgmr.msra.gmra.mrb[2].mxu0 %vm388_vm1, %v537_v11 }
  0xf0   : > { %v540_v17 = vsub.f32 %v538_v15, %v539_v13 }
  0xf2   : > { %v541_v18 = vmax.f32 %v540_v17, 0.0 }
  0xf4   : > { %v542_v19 = vadd.f32 1e-06, %v541_v18 }
  0xf6   : > { %1663 = vrsqrt.f32 %v542_v19 }
 0x100   : > { %v1664_v20 = vpop.eup %1663 }
 0x101   : > { %1606 = vmatmul.mubr.msk.f32.vlgmr.msra.gmra.mrb[2].mxu1 %vm388_vm1, %v1664_v20 }
 0x1c1   : > { %v625_v1 = vpop.f32.mrb[2].mxu0 }
 0x1c2   : > { %v705_v5 = vrot.slane %v625_v1, %v704_v49  ;;  %v1596_v6 = vpop.f32.mrb[3].mxu0 }
 0x1c4   : > { %v706_v11 = vsub.f32 %v1467_v28, %v705_v5  ;;  %v707_v12 = vsub.f32 %v1468_v29, %v705_v5  ;;  %v708_v13 = vsub.f32 %v1471_v32, %v705_v5  ;;  %v709_v14 = vsub.f32 %v1472_v33, %v705_v5 }
 0x1c5   : > { %v710_v15 = vsub.f32 %v1475_v34, %v705_v5  ;;  %v711_v16 = vsub.f32 %v1476_v35, %v705_v5  ;;  %v712_v17 = vsub.f32 %v1479_v38, %v705_v5  ;;  %v713_v18 = vsub.f32 %v1480_v39, %v705_v5 }
 0x1c6   : > { %v714_v19 = vsub.f32 %v1483_v40, %v705_v5  ;;  %v715_v20 = vsub.f32 %v1484_v41, %v705_v5  ;;  %v716_v21 = vsub.f32 %v1487_v44, %v705_v5  ;;  %v717_v22 = vsub.f32 %v1488_v45, %v705_v5 }
 0x1c7   : > { %v718_v23 = vsub.f32 %v1491_v46, %v705_v5  ;;  %v719_v24 = vsub.f32 %v1492_v50, %v705_v5  ;;  %v720_v25 = vsub.f32 %v1495_v51, %v705_v5  ;;  %v721_v26 = vsub.f32 %v1496_v52, %v705_v5 }
 0x1c8   : > { %v722_v27 = vsub.f32 %v1499_v53, %v705_v5  ;;  %v723_v30 = vsub.f32 %v1500_v55, %v705_v5  ;;  %v724_v31 = vsub.f32 %v1503_v56, %v705_v5  ;;  %v725_v36 = vsub.f32 %v1504_v57, %v705_v5 }
 0x1c9   : > { %v726_v28 = vsub.f32 %v1507_v58, %v705_v5  ;;  %v727_v29 = vsub.f32 %v1508_v61, %v705_v5  ;;  %v728_v32 = vsub.f32 %v1511_v62, %v705_v5  ;;  %v729_v33 = vsub.f32 %v1512_v63, %v705_v5 }
 0x1ca   : > { %v730_v34 = vsub.f32 %v1515_v0, %v705_v5  ;;  %v731_v35 = vsub.f32 %v1516_v2, %v705_v5  ;;  %v732_v37 = vsub.f32 %v1519_v3, %v705_v5  ;;  %v733_v38 = vsub.f32 %v1520_v4, %v705_v5 }
 0x1cb   : > { %v734_v39 = vsub.f32 %v1523_v7, %v705_v5  ;;  %v735_v40 = vsub.f32 %v1524_v8, %v705_v5  ;;  %v736_v41 = vsub.f32 %v1527_v9, %v705_v5  ;;  %v737_v42 = vsub.f32 %v1528_v10, %v705_v5 }
 0x1d4   : > { %v698_v43 = vpop.f32.mrb[2].mxu1 }
 0x1d5   : > { %v741_v44 = vrot.slane %v698_v43, %v704_v49  ;;  %v1607_v45 = vpop.f32.mrb[3].mxu1 }
 0x1d7   : > { %v742_v46 = vmul.f32 %v741_v44, %v706_v11  ;;  %v743_v47 = vmul.f32 %v741_v44, %v707_v12  ;;  %v744_v48 = vmul.f32 %v741_v44, %v708_v13  ;;  %v745_v50 = vmul.f32 %v741_v44, %v709_v14  ;;  %v1963_v14 = vld [vmem:[%s2320_s4] ss:$0 sm:$0xff] }
 0x1d8   : > { %v746_v51 = vmul.f32 %v741_v44, %v710_v15  ;;  %v747_v52 = vmul.f32 %v741_v44, %v711_v16  ;;  %v748_v53 = vmul.f32 %v741_v44, %v712_v17  ;;  %v749_v54 = vmul.f32 %v741_v44, %v713_v18 }
 0x1d9   : > { %v750_v55 = vmul.f32 %v741_v44, %v714_v19  ;;  %v751_v56 = vmul.f32 %v741_v44, %v715_v20  ;;  %v752_v57 = vmul.f32 %v741_v44, %v716_v21  ;;  %v753_v58 = vmul.f32 %v741_v44, %v717_v22  ;;  %v1972_v19 = vld [vmem:[%s2321_s5] ss:$0 sm:$0xff] }
 0x1da   : > { %v754_v59 = vmul.f32 %v741_v44, %v718_v23  ;;  %v755_v60 = vmul.f32 %v741_v44, %v719_v24  ;;  %v756_v61 = vmul.f32 %v741_v44, %v720_v25  ;;  %v757_v62 = vmul.f32 %v741_v44, %v721_v26 }
 0x1db   : > { %v758_v63 = vmul.f32 %v741_v44, %v722_v27  ;;  %v759_v0 = vmul.f32 %v741_v44, %v723_v30  ;;  %v1932_v49 = vmul.f32 %v741_v44, %v724_v31  ;;  %v1934_v1 = vmul.f32 %v741_v44, %v725_v36 }
 0x1dc   : > { %v1936_v2 = vmul.f32 %v741_v44, %v726_v28  ;;  %v1938_v3 = vmul.f32 %v741_v44, %v727_v29  ;;  %v1940_v4 = vmul.f32 %v741_v44, %v728_v32  ;;  %v1942_v5 = vmul.f32 %v741_v44, %v729_v33 }
 0x1dd   : > { %v1944_v6 = vmul.f32 %v741_v44, %v730_v34  ;;  %v1946_v7 = vmul.f32 %v741_v44, %v731_v35  ;;  %v1948_v8 = vmul.f32 %v741_v44, %v732_v37  ;;  %v1950_v9 = vmul.f32 %v741_v44, %v733_v38 }
 0x1de   : > { %v1952_v10 = vmul.f32 %v741_v44, %v734_v39  ;;  %v1954_v11 = vmul.f32 %v741_v44, %v735_v40  ;;  %v1956_v12 = vmul.f32 %v741_v44, %v736_v41  ;;  %v1958_v13 = vmul.f32 %v741_v44, %v737_v42 }
 0x1df   : > { %v781_v15 = vmul.f32 %v1963_v14, %v742_v46  ;;  %v782_v16 = vmul.f32 %v1963_v14, %v743_v47  ;;  %v783_v17 = vmul.f32 %v1963_v14, %v744_v48  ;;  %v784_v18 = vmul.f32 %v1963_v14, %v745_v50 }
 0x1e0   : > { %v785_v20 = vmul.f32 %v1963_v14, %v746_v51  ;;  %v786_v21 = vmul.f32 %v1963_v14, %v747_v52  ;;  %v787_v22 = vmul.f32 %v1963_v14, %v748_v53  ;;  %v788_v26 = vmul.f32 %v1963_v14, %v749_v54 }
 0x1e1   : > { %v1978_v23 = vadd.f32 %v1972_v19, %v781_v15  ;;  %v1981_v24 = vadd.f32 %v1972_v19, %v782_v16  ;;  %v1984_v25 = vadd.f32 %v1972_v19, %v783_v17  ;;  %v1988_v27 = vadd.f32 %v1972_v19, %v784_v18 }
 0x1e2   : > { %v789_v30 = vmul.f32 %v1963_v14, %v750_v55  ;;  %v1992_v31 = vadd.f32 %v1972_v19, %v785_v20  ;;  %v790_v36 = vmul.f32 %v1963_v14, %v751_v56  ;;  %v791_v28 = vmul.f32 %v1963_v14, %v752_v57 }
 0x1e3   : > { %v1997_v29 = vadd.f32 %v1972_v19, %v786_v21  ;;  %v2000_v32 = vadd.f32 %v1972_v19, %v787_v22  ;;  %v1365_v33 = vmul.f32 -1.442695, %v1978_v23  ;;  %v1366_v34 = vmul.f32 -1.442695, %v1981_v24 }
 0x1e4   : > { %v1367_v35 = vmul.f32 -1.442695, %v1984_v25  ;;  %v792_v37 = vmul.f32 %v1963_v14, %v753_v58  ;;  %v2007_v38 = vadd.f32 %v1972_v19, %v788_v26  ;;  %v1368_v39 = vmul.f32 -1.442695, %v1988_v27 }
 0x1e5   : > { %v793_v40 = vmul.f32 %v1963_v14, %v754_v59  ;;  %v2012_v41 = vadd.f32 %v1972_v19, %v789_v30  ;;  %1665 = vpow2.f32 %v1365_v33  ;;  %v1369_v42 = vmul.f32 -1.442695, %v1992_v31 }
 0x1e6   : > { %v794_v43 = vmul.f32 %v1963_v14, %v755_v60  ;;  %v2017_v44 = vadd.f32 %v1972_v19, %v790_v36  ;;  %1667 = vpow2.f32 %v1366_v34  ;;  %v1370_v45 = vmul.f32 -1.442695, %v1997_v29 }
 0x1e7   : > { %v795_v46 = vmul.f32 %v1963_v14, %v756_v61  ;;  %v2022_v47 = vadd.f32 %v1972_v19, %v791_v28  ;;  %1669 = vpow2.f32 %v1367_v35  ;;  %v1371_v48 = vmul.f32 -1.442695, %v2000_v32 }
 0x1e8   : > { %v796_v50 = vmul.f32 %v1963_v14, %v757_v62  ;;  %v2027_v51 = vadd.f32 %v1972_v19, %v792_v37  ;;  %1671 = vpow2.f32 %v1368_v39  ;;  %v1372_v52 = vmul.f32 -1.442695, %v2007_v38 }
 0x1e9   : > { %v797_v53 = vmul.f32 %v1963_v14, %v758_v63  ;;  %v2032_v54 = vadd.f32 %v1972_v19, %v793_v40  ;;  %1673 = vpow2.f32 %v1369_v42  ;;  %v1373_v55 = vmul.f32 -1.442695, %v2012_v41 }
 0x1ea   : > { %v798_v56 = vmul.f32 %v1963_v14, %v759_v0  ;;  %v2037_v57 = vadd.f32 %v1972_v19, %v794_v43  ;;  %1675 = vpow2.f32 %v1370_v45  ;;  %v1374_v58 = vmul.f32 -1.442695, %v2017_v44 }
 0x1eb   : > { %v799_v59 = vmul.f32 %v1963_v14, %v1932_v49  ;;  %v2043_v60 = vadd.f32 %v1972_v19, %v795_v46  ;;  %1677 = vpow2.f32 %v1371_v48  ;;  %v1375_v61 = vmul.f32 -1.442695, %v2022_v47 }
 0x1ec   : > { %v800_v62 = vmul.f32 %v1963_v14, %v1934_v1  ;;  %v2049_v63 = vadd.f32 %v1972_v19, %v796_v50  ;;  %1679 = vpow2.f32 %v1372_v52  ;;  %v1376_v0 = vmul.f32 -1.442695, %v2027_v51 }
 0x1ed   : > { %v801_v15 = vmul.f32 %v1963_v14, %v1936_v2  ;;  %v2055_v49 = vadd.f32 %v1972_v19, %v797_v53  ;;  %1681 = vpow2.f32 %v1373_v55  ;;  %v1377_v16 = vmul.f32 -1.442695, %v2032_v54 }
 0x1ee   : > { %v802_v17 = vmul.f32 %v1963_v14, %v1938_v3  ;;  %v2061_v1 = vadd.f32 %v1972_v19, %v798_v56  ;;  %1683 = vpow2.f32 %v1374_v58  ;;  %v1378_v18 = vmul.f32 -1.442695, %v2037_v57 }
 0x1ef   : > { %v2064_v20 = vpop.eup %1665  ;;  %v803_v2 = vmul.f32 %v1963_v14, %v1940_v4  ;;  %v2069_v21 = vadd.f32 %v1972_v19, %v799_v59  ;;  %1685 = vpow2.f32 %v1375_v61  ;;  %v1379_v22 = vmul.f32 -1.442695, %v2043_v60 }
 0x1f0   : > { %v2072_v26 = vpop.eup %1667  ;;  %v804_v3 = vmul.f32 %v1963_v14, %v1942_v5  ;;  %v2077_v30 = vadd.f32 %v1972_v19, %v800_v62  ;;  %1687 = vpow2.f32 %v1376_v0  ;;  %v1380_v36 = vmul.f32 -1.442695, %v2049_v63 }
 0x1f1   : > { %v2080_v28 = vpop.eup %1669  ;;  %v805_v4 = vmul.f32 %v1963_v14, %v1944_v6  ;;  %v2085_v33 = vadd.f32 %v1972_v19, %v801_v15  ;;  %1689 = vpow2.f32 %v1377_v16  ;;  %v1381_v34 = vmul.f32 -1.442695, %v2055_v49 }
 0x1f2   : > { %v2088_v35 = vpop.eup %1671  ;;  %v806_v5 = vmul.f32 %v1963_v14, %v1946_v7  ;;  %v2093_v37 = vadd.f32 %v1972_v19, %v802_v17  ;;  %1691 = vpow2.f32 %v1378_v18  ;;  %v1382_v39 = vmul.f32 -1.442695, %v2061_v1 }
 0x1f3   : > { %v2096_v40 = vpop.eup %1673  ;;  %v807_v6 = vmul.f32 %v1963_v14, %v1948_v8  ;;  %v2101_v42 = vadd.f32 %v1972_v19, %v803_v2  ;;  %1693 = vpow2.f32 %v1379_v22  ;;  %v1383_v43 = vmul.f32 -1.442695, %v2069_v21 }
 0x1f4   : > { %v2104_v45 = vpop.eup %1675  ;;  %v808_v7 = vmul.f32 %v1963_v14, %v1950_v9  ;;  %v2109_v46 = vadd.f32 %v1972_v19, %v804_v3  ;;  %1695 = vpow2.f32 %v1380_v36  ;;  %v1384_v48 = vmul.f32 -1.442695, %v2077_v30 }
 0x1f5   : > { %v2112_v50 = vpop.eup %1677  ;;  %v809_v8 = vmul.f32 %v1963_v14, %v1952_v10  ;;  %v2117_v52 = vadd.f32 %v1972_v19, %v805_v4  ;;  %1697 = vpow2.f32 %v1381_v34  ;;  %v1385_v53 = vmul.f32 -1.442695, %v2085_v33 }
 0x1f6   : > { %v2120_v55 = vpop.eup %1679  ;;  %v810_v9 = vmul.f32 %v1963_v14, %v1954_v11  ;;  %v2125_v56 = vadd.f32 %v1972_v19, %v806_v5  ;;  %1699 = vpow2.f32 %v1382_v39  ;;  %v1386_v58 = vmul.f32 -1.442695, %v2093_v37 }
 0x1f7   : > { %v1682_v59 = vpop.eup %1681  ;;  %v811_v10 = vmul.f32 %v1963_v14, %v1956_v12  ;;  %v2131_v61 = vadd.f32 %v1972_v19, %v807_v6  ;;  %1701 = vpow2.f32 %v1383_v43  ;;  %v1387_v62 = vmul.f32 -1.442695, %v2101_v42 }
 0x1f8   : > { %v1684_v0 = vpop.eup %1683  ;;  %v812_v11 = vmul.f32 %v1963_v14, %v1958_v13  ;;  %v2137_v15 = vadd.f32 %v1972_v19, %v808_v7  ;;  %1703 = vpow2.f32 %v1384_v48  ;;  %v1388_v16 = vmul.f32 -1.442695, %v2109_v46 }
 0x1f9   : > { %v1686_v17 = vpop.eup %1685  ;;  %v2141_v18 = vadd.f32 %v1972_v19, %v809_v8  ;;  %1705 = vpow2.f32 %v1385_v53  ;;  %v1389_v12 = vmul.f32 -1.442695, %v2117_v52  ;;  %v2145_v22 = vadd.f32 %v1972_v19, %v810_v9 }
 0x1fa   : > { %v1688_v2 = vpop.eup %1687  ;;  %1707 = vpow2.f32 %v1386_v58  ;;  %v1390_v13 = vmul.f32 -1.442695, %v2125_v56  ;;  %v2149_v3 = vadd.f32 %v1972_v19, %v811_v10  ;;  %v1391_v36 = vmul.f32 -1.442695, %v2131_v61 }
 0x1fb   : > { %v1690_v14 = vpop.eup %1689  ;;  %1709 = vpow2.f32 %v1387_v62  ;;  %v2153_v34 = vadd.f32 %v1972_v19, %v812_v11  ;;  %v1392_v5 = vmul.f32 -1.442695, %v2137_v15  ;;  %v1393_v6 = vmul.f32 -1.442695, %v2141_v18 }
 0x1fc   : > { %2325 = vst [vmem:[#allocation2_spill] sm:$0xff] %v2149_v3  ;;  %v1692_v4 = vpop.eup %1691  ;;  %1711 = vpow2.f32 %v1388_v16  ;;  %v1394_v7 = vmul.f32 -1.442695, %v2145_v22  ;;  %v1395_v8 = vmul.f32 -1.442695, %v2149_v3  ;;  %v948_v58 = vadd.f32 1.0, %v2064_v20 }
 0x1fd   : > { %2326 = vst [vmem:[#allocation3_spill] sm:$0xff] %v2153_v34  ;;  %v1694_v39 = vpop.eup %1693  ;;  %1713 = vpow2.f32 %v1389_v12  ;;  %v1396_v19 = vmul.f32 -1.442695, %v2153_v34  ;;  %v949_v62 = vadd.f32 1.0, %v2072_v26  ;;  %v950_v16 = vadd.f32 1.0, %v2080_v28 }
 0x1fe   : > { %v1696_v43 = vpop.eup %1695  ;;  %1715 = vpow2.f32 %v1390_v13  ;;  %v951_v13 = vadd.f32 1.0, %v2088_v35 }
 0x1ff   : > { %v1698_v48 = vpop.eup %1697  ;;  %1717 = vpow2.f32 %v1391_v36  ;;  %v963_v3 = vadd.f32 1.0, %v1696_v43 }
 0x200   : > { %v1700_v53 = vpop.eup %1699  ;;  %1719 = vpow2.f32 %v1392_v5  ;;  %v952_v5 = vadd.f32 1.0, %v2096_v40 }
 0x201   : > { %v1702_v9 = vpop.eup %1701  ;;  %1721 = vpow2.f32 %v1393_v6  ;;  %v953_v6 = vadd.f32 1.0, %v2104_v45 }
 0x202   : > { %v1704_v10 = vpop.eup %1703  ;;  %1723 = vpow2.f32 %v1394_v7  ;;  %v954_v7 = vadd.f32 1.0, %v2112_v50  ;;  %v959_v50 = vadd.f32 1.0, %v1688_v2  ;;  %v964_v2 = vadd.f32 1.0, %v1698_v48 }
 0x203   : > { %v2162_v11 = vpop.eup %1705  ;;  %1725 = vpow2.f32 %v1395_v8  ;;  %v955_v8 = vadd.f32 1.0, %v2120_v55  ;;  %v960_v55 = vadd.f32 1.0, %v1690_v14  ;;  %v967_v48 = vadd.f32 1.0, %v1704_v10 }
 0x204   : > { %v2165_v12 = vpop.eup %1707  ;;  %1727 = vpow2.f32 %v1396_v19  ;;  %v956_v19 = vadd.f32 1.0, %v1682_v59  ;;  %v961_v59 = vadd.f32 1.0, %v1692_v4 }
 0x205   : > { %v2168_v36 = vpop.eup %1709  ;;  %1729 = vrcp.f32 %v948_v58  ;;  %v957_v58 = vadd.f32 1.0, %v1684_v0  ;;  %v962_v0 = vadd.f32 1.0, %v1694_v39  ;;  %v965_v39 = vadd.f32 1.0, %v1700_v53 }
 0x206   : > { %v2171_v20 = vpop.eup %1711  ;;  %1731 = vrcp.f32 %v949_v62  ;;  %v958_v62 = vadd.f32 1.0, %v1686_v17  ;;  %v969_v10 = vadd.f32 1.0, %v2165_v12 }
 0x207   : > { %v2174_v26 = vpop.eup %1713  ;;  %1733 = vrcp.f32 %v950_v16  ;;  %v971_v12 = vadd.f32 1.0, %v2171_v20 }
 0x208   : > { %v2177_v28 = vpop.eup %1715  ;;  %1735 = vrcp.f32 %v951_v13 }
 0x209   : > { %v2180_v35 = vpop.eup %1717  ;;  %1737 = vrcp.f32 %v952_v5  ;;  %v973_v20 = vadd.f32 1.0, %v2177_v28 }
 0x20a   : > { %v2182_v40 = vpop.eup %1719  ;;  %1739 = vrcp.f32 %v953_v6 }
 0x20b   : > { %v2184_v45 = vpop.eup %1721  ;;  %1741 = vrcp.f32 %v954_v7  ;;  %v975_v28 = vadd.f32 1.0, %v2182_v40 }
 0x20c   : > { %v2186_v34 = vpop.eup %1723  ;;  %1743 = vrcp.f32 %v955_v8 }
 0x20d   : > { %v2188_v16 = vpop.eup %1725  ;;  %1745 = vrcp.f32 %v956_v19  ;;  %v966_v19 = vadd.f32 1.0, %v1702_v9  ;;  %v977_v40 = vadd.f32 1.0, %v2186_v34 }
 0x20e   : > { %v2190_v13 = vpop.eup %1727  ;;  %1747 = vrcp.f32 %v957_v58 }
 0x20f   : > { %v1730_v5 = vpop.eup %1729  ;;  %1749 = vrcp.f32 %v958_v62  ;;  %v979_v34 = vadd.f32 1.0, %v2190_v13 }
 0x210   : > { %v1732_v6 = vpop.eup %1731  ;;  %1751 = vrcp.f32 %v959_v50  ;;  %v1044_v17 = vmul.f32 %v1730_v5, %v1978_v23 }
 0x211   : > { %v1734_v7 = vpop.eup %1733  ;;  %1753 = vrcp.f32 %v960_v55  ;;  %v1045_v14 = vmul.f32 %v1732_v6, %v1981_v24 }
 0x212   : > { %v1736_v4 = vpop.eup %1735  ;;  %1755 = vrcp.f32 %v961_v59  ;;  %v1046_v43 = vmul.f32 %v1734_v7, %v1984_v25  ;;  %v1433_v8 = vpack.c.bf16 %v1044_v17, %v1044_v17  ;;  %v968_v25 = vadd.f32 1.0, %v2162_v11 }
 0x213   : > { %v1738_v23 = vpop.eup %1737  ;;  %1757 = vrcp.f32 %v962_v0  ;;  %v1047_v58 = vmul.f32 %v1736_v4, %v1988_v27  ;;  %v1434_v62 = vpack.c.bf16 %v1045_v14, %v1045_v14  ;;  %v970_v11 = vadd.f32 1.0, %v2168_v36 }
 0x214   : > { %v1740_v50 = vpop.eup %1739  ;;  %1759 = vrcp.f32 %v963_v3  ;;  %v1048_v24 = vmul.f32 %v1738_v23, %v1992_v31  ;;  %v1435_v55 = vpack.c.bf16 %v1046_v43, %v1046_v43  ;;  %1205 = vst.msk [vmem:[%s2198_s29] sm:$0xf] %vm1204_vm3, %v1433_v8  ;;  %v972_v36 = vadd.f32 1.0, %v2174_v26 }
 0x215   : > { %v1742_v53 = vpop.eup %1741  ;;  %1761 = vrcp.f32 %v964_v2  ;;  %v1049_v9 = vmul.f32 %v1740_v50, %v1997_v29  ;;  %v1436_v59 = vpack.c.bf16 %v1047_v58, %v1047_v58  ;;  %1206 = vst.msk [vmem:[%s2198_s29 + $0x4] sm:$0xf] %vm1204_vm3, %v1434_v62  ;;  %v974_v26 = vadd.f32 1.0, %v2180_v35 }
 0x216   : > { %v1744_v27 = vpop.eup %1743  ;;  %1763 = vrcp.f32 %v965_v39  ;;  %v1050_v31 = vmul.f32 %v1742_v53, %v2000_v32  ;;  %v1437_v3 = vpack.c.bf16 %v1048_v24, %v1048_v24  ;;  %1207 = vst.msk [vmem:[%s2198_s29 + $0x8] sm:$0xf] %vm1204_vm3, %v1435_v55  ;;  %v976_v35 = vadd.f32 1.0, %v2184_v45 }
 0x217   : > { %v1746_v5 = vpop.eup %1745  ;;  %1765 = vrcp.f32 %v966_v19  ;;  %v1051_v29 = vmul.f32 %v1744_v27, %v2007_v38  ;;  %v1438_v0 = vpack.c.bf16 %v1049_v9, %v1049_v9  ;;  %1208 = vst.msk [vmem:[%s2198_s29 + $0xc] sm:$0xf] %vm1204_vm3, %v1436_v59  ;;  %v978_v45 = vadd.f32 1.0, %v2188_v16 }
 0x218   : > { %v1748_v6 = vpop.eup %1747  ;;  %1767 = vrcp.f32 %v967_v48  ;;  %v1052_v32 = vmul.f32 %v1746_v5, %v2012_v41  ;;  %v1439_v17 = vpack.c.bf16 %v1050_v31, %v1050_v31  ;;  %1209 = vst.msk [vmem:[%s2198_s29 + $0x10] sm:$0xf] %vm1204_vm3, %v1437_v3 }
 0x219   : > { %v1750_v7 = vpop.eup %1749  ;;  %1769 = vrcp.f32 %v968_v25  ;;  %v1053_v38 = vmul.f32 %v1748_v6, %v2017_v44  ;;  %v1440_v2 = vpack.c.bf16 %v1051_v29, %v1051_v29  ;;  %1210 = vst.msk [vmem:[%s2198_s29 + $0x14] sm:$0xf] %vm1204_vm3, %v1438_v0 }
 0x21a   : > { %v1752_v14 = vpop.eup %1751  ;;  %1771 = vrcp.f32 %v969_v10  ;;  %v1054_v41 = vmul.f32 %v1750_v7, %v2022_v47  ;;  %v1441_v4 = vpack.c.bf16 %v1052_v32, %v1052_v32  ;;  %1211 = vst.msk [vmem:[%s2198_s29 + $0x18] sm:$0xf] %vm1204_vm3, %v1439_v17 }
 0x21b   : > { %v1754_v39 = vpop.eup %1753  ;;  %1773 = vrcp.f32 %v970_v11  ;;  %v1055_v44 = vmul.f32 %v1752_v14, %v2027_v51  ;;  %v1442_v43 = vpack.c.bf16 %v1053_v38, %v1053_v38  ;;  %1212 = vst.msk [vmem:[%s2198_s29 + $0x1c] sm:$0xf] %vm1204_vm3, %v1440_v2 }
 0x21c   : > { %v1756_v8 = vpop.eup %1755  ;;  %1775 = vrcp.f32 %v971_v12  ;;  %v1056_v47 = vmul.f32 %v1754_v39, %v2032_v54  ;;  %v1443_v23 = vpack.c.bf16 %v1054_v41, %v1054_v41  ;;  %1213 = vst.msk [vmem:[%s2198_s29 + $0x20] sm:$0xf] %vm1204_vm3, %v1441_v4 }
 0x21d   : > { %v1758_v19 = vpop.eup %1757  ;;  %1777 = vrcp.f32 %v972_v36  ;;  %v1057_v51 = vmul.f32 %v1756_v8, %v2037_v57  ;;  %v1444_v58 = vpack.c.bf16 %v1055_v44, %v1055_v44  ;;  %1214 = vst.msk [vmem:[%s2198_s29 + $0x24] sm:$0xf] %vm1204_vm3, %v1442_v43  ;;  %v2327_v44 = vld [vmem:[#allocation2_spill] sm:$0xff] }
 0x21e   : > { %v1760_v62 = vpop.eup %1759  ;;  %1779 = vrcp.f32 %v973_v20  ;;  %v1058_v54 = vmul.f32 %v1758_v19, %v2043_v60  ;;  %v1445_v50 = vpack.c.bf16 %v1056_v47, %v1056_v47  ;;  %1215 = vst.msk [vmem:[%s2198_s29 + $0x28] sm:$0xf] %vm1204_vm3, %v1443_v23 }
 0x21f   : > { %v1762_v48 = vpop.eup %1761  ;;  %1781 = vrcp.f32 %v974_v26  ;;  %v1059_v57 = vmul.f32 %v1760_v62, %v2049_v63  ;;  %v1446_v24 = vpack.c.bf16 %v1057_v51, %v1057_v51  ;;  %1216 = vst.msk [vmem:[%s2198_s29 + $0x2c] sm:$0xf] %vm1204_vm3, %v1444_v58 }
 0x220   : > { %v1764_v55 = vpop.eup %1763  ;;  %1783 = vrcp.f32 %v975_v28  ;;  %v1060_v60 = vmul.f32 %v1762_v48, %v2055_v49  ;;  %v1447_v53 = vpack.c.bf16 %v1058_v54, %v1058_v54  ;;  %1217 = vst.msk [vmem:[%s2198_s29 + $0x30] sm:$0xf] %vm1204_vm3, %v1445_v50  ;;  %v2328_v28 = vld [vmem:[#allocation3_spill] sm:$0xff] }
 0x221   : > { %v1766_v25 = vpop.eup %1765  ;;  %1785 = vrcp.f32 %v976_v35  ;;  %v1061_v16 = vmul.f32 %v1764_v55, %v2061_v1  ;;  %v1448_v9 = vpack.c.bf16 %v1059_v57, %v1059_v57  ;;  %1218 = vst.msk [vmem:[%s2198_s29 + $0x34] sm:$0xf] %vm1204_vm3, %v1446_v24 }
 0x222   : > { %v1768_v63 = vpop.eup %1767  ;;  %1787 = vrcp.f32 %v977_v40  ;;  %v1062_v59 = vmul.f32 %v1766_v25, %v2069_v21  ;;  %v1449_v13 = vpack.c.bf16 %v1060_v60, %v1060_v60  ;;  %1219 = vst.msk [vmem:[%s2198_s29 + $0x38] sm:$0xf] %vm1204_vm3, %v1447_v53 }
 0x223   : > { %v1770_v49 = vpop.eup %1769  ;;  %1789 = vrcp.f32 %v978_v45  ;;  %v1063_v27 = vmul.f32 %v1768_v63, %v2077_v30  ;;  %v1450_v10 = vpack.c.bf16 %v1061_v16, %v1061_v16  ;;  %1220 = vst.msk [vmem:[%s2198_s29 + $0x3c] sm:$0xf] %vm1204_vm3, %v1448_v9 }
 0x224   : > { %v1772_v1 = vpop.eup %1771  ;;  %1791 = vrcp.f32 %v979_v34  ;;  %v1064_v31 = vmul.f32 %v1770_v49, %v2085_v33  ;;  %v1451_v3 = vpack.c.bf16 %v1062_v59, %v1062_v59  ;;  %1221 = vst.msk [vmem:[%s2198_s29 + $0x40] sm:$0xf] %vm1204_vm3, %v1449_v13 }
 0x225   : > { %v1774_v21 = vpop.eup %1773  ;;  %v1065_v5 = vmul.f32 %v1772_v1, %v2093_v37  ;;  %v1452_v11 = vpack.c.bf16 %v1063_v27, %v1063_v27  ;;  %1222 = vst.msk [vmem:[%s2198_s29 + $0x44] sm:$0xf] %vm1204_vm3, %v1450_v10 }
 0x226   : > { %v1776_v30 = vpop.eup %1775  ;;  %v1066_v29 = vmul.f32 %v1774_v21, %v2101_v42  ;;  %v1453_v0 = vpack.c.bf16 %v1064_v31, %v1064_v31  ;;  %1223 = vst.msk [vmem:[%s2198_s29 + $0x48] sm:$0xf] %vm1204_vm3, %v1451_v3 }
 0x227   : > { %v1778_v6 = vpop.eup %1777  ;;  %v1067_v33 = vmul.f32 %v1776_v30, %v2109_v46  ;;  %v1454_v12 = vpack.c.bf16 %v1065_v5, %v1065_v5  ;;  %1224 = vst.msk [vmem:[%s2198_s29 + $0x4c] sm:$0xf] %vm1204_vm3, %v1452_v11 }
 0x228   : > { %v1780_v32 = vpop.eup %1779  ;;  %v1068_v37 = vmul.f32 %v1778_v6, %v2117_v52  ;;  %v1455_v17 = vpack.c.bf16 %v1066_v29, %v1066_v29  ;;  %1225 = vst.msk [vmem:[%s2198_s29 + $0x50] sm:$0xf] %vm1204_vm3, %v1453_v0 }
 0x229   : > { %v1782_v7 = vpop.eup %1781  ;;  %v1069_v42 = vmul.f32 %v1780_v32, %v2125_v56  ;;  %v1456_v36 = vpack.c.bf16 %v1067_v33, %v1067_v33  ;;  %1226 = vst.msk [vmem:[%s2198_s29 + $0x54] sm:$0xf] %vm1204_vm3, %v1454_v12 }
 0x22a   : > { %v1784_v38 = vpop.eup %1783  ;;  %v1070_v46 = vmul.f32 %v1782_v7, %v2131_v61  ;;  %v1457_v2 = vpack.c.bf16 %v1068_v37, %v1068_v37  ;;  %1227 = vst.msk [vmem:[%s2198_s29 + $0x58] sm:$0xf] %vm1204_vm3, %v1455_v17 }
 0x22b   : > { %v1786_v14 = vpop.eup %1785  ;;  %v1071_v52 = vmul.f32 %v1784_v38, %v2137_v15  ;;  %v1458_v20 = vpack.c.bf16 %v1069_v42, %v1069_v42  ;;  %1228 = vst.msk [vmem:[%s2198_s29 + $0x5c] sm:$0xf] %vm1204_vm3, %v1456_v36 }
 0x22c   : > { %v1788_v41 = vpop.eup %1787  ;;  %v1072_v56 = vmul.f32 %v1786_v14, %v2141_v18  ;;  %v1459_v4 = vpack.c.bf16 %v1070_v46, %v1070_v46  ;;  %1229 = vst.msk [vmem:[%s2198_s29 + $0x60] sm:$0xf] %vm1204_vm3, %v1457_v2 }
 0x22d   : > { %v1790_v61 = vpop.eup %1789  ;;  %v1073_v39 = vmul.f32 %v1788_v41, %v2145_v22  ;;  %v1460_v26 = vpack.c.bf16 %v1071_v52, %v1071_v52  ;;  %1230 = vst.msk [vmem:[%s2198_s29 + $0x64] sm:$0xf] %vm1204_vm3, %v1458_v20 }
 0x22e   : > { %v1792_v15 = vpop.eup %1791  ;;  %v1074_v43 = vmul.f32 %v1790_v61, %v2327_v44  ;;  %v1461_v8 = vpack.c.bf16 %v1072_v56, %v1072_v56  ;;  %1231 = vst.msk [vmem:[%s2198_s29 + $0x68] sm:$0xf] %vm1204_vm3, %v1459_v4 }
 0x22f   : > { %v1075_v18 = vmul.f32 %v1792_v15, %v2328_v28  ;;  %v1462_v47 = vpack.c.bf16 %v1073_v39, %v1073_v39  ;;  %1232 = vst.msk [vmem:[%s2198_s29 + $0x6c] sm:$0xf] %vm1204_vm3, %v1460_v26 }
 0x230   : > { %v1463_v23 = vpack.c.bf16 %v1074_v43, %v1074_v43  ;;  %1233 = vst.msk [vmem:[%s2198_s29 + $0x70] sm:$0xf] %vm1204_vm3, %v1461_v8 }
 0x231   : > { %v1464_v19 = vpack.c.bf16 %v1075_v18, %v1075_v18  ;;  %1234 = vst.msk [vmem:[%s2198_s29 + $0x74] sm:$0xf] %vm1204_vm3, %v1462_v47 }
 0x232   : > { %1235 = vst.msk [vmem:[%s2198_s29 + $0x78] sm:$0xf] %vm1204_vm3, %v1463_v23 }
 0x233   : > { %1236 = vst.msk [vmem:[%s2198_s29 + $0x7c] sm:$0xf] %vm1204_vm3, %v1464_v19 }
 0x234 PF: > { %s16_s23 = sadd.s32 1, %s1815_s23   ;;  %s2329_s21 = smov %s1811_s22 }
 0x235   : > { %p13_p5 = scmp.ge.s32.totalorder %s16_s23, 4   ;;  %s2330_s22 = smov %s2332_s24 }
 0x237   :  { %15 = sbr.rel (!%p13_p5) target bundleno = 2 (0x2), region = 80 }

// kernel: decoder_forward.87
= control target key start
LH: loop header
LB: loop body
LE: loop exit
PB: predicated region body
PF: predicated region fallthrough
CT: control target
= control target key end

     0   :  { %s1525_s12 = smov 0   ;;  %s1527_s13 = smov 0   ;;  %s1662_s0 = inlined_call_operand.vmem [shape: bf16[2,256,128], index: 0, kind: input, shape index: {}]   ;;  %s1663_s1 = inlined_call_operand.vmem [shape: bf16[128,128], index: 1, kind: input, shape index: {}]   ;;  %s1664_s2 = inlined_call_operand.vmem [shape: f32[1,128], index: 2, kind: input, shape index: {}]   ;;  %s1665_s3 = inlined_call_operand.vmem [shape: bf16[2,256,128], index: 3, kind: output, shape index: {}]  }
   0x1   :  { %s1529_s14 = smov 0  }
   0x2 LB: > { %s39_s15 = sadd.s32 1, %s1499_s13  ;;  %p1152_p0 = scmp.ge.s32.totalorder %s1503_s14, 1  ;;  %s1503_s14 = sphi %s1529_s14, %s13_s14   ;;  %s1499_s13 = sphi %s1527_s13, %s1667_s13   ;;  %s1495_s12 = sphi %s1525_s12, %s1666_s12  }
   0x3   : > { %p41_p1 = scmp.ge.s32.totalorder %s39_s15, 2  ;;  %p203_p2 = scmp.lt.s32.totalorder %s1503_s14, 3 }
   0x5   : > { %s1669_s15 = smov (%p41_p1, %s39_s15), 0  ;;  %p204_p3 = pnand %p1152_p0, %p203_p2 }
   0x6   : > { %v1457_v0 = vld [vmem:[%s1663_s1] sm:$0xff] (!%p204_p3)   ;;  %p253_p4 = scmp.lt.s32.totalorder (!%p204_p3), %s1495_s12, 1  ;;  %v1458_v1 = vld [vmem:[%s1663_s1 + $0x8] sm:$0xff] (!%p204_p3)   ;;  %v1459_v2 = vld [vmem:[%s1663_s1 + $0x10] sm:$0xff] (!%p204_p3)  }
   0x7   : > { %207 = sbr.rel (%p204_p3) target bundleno = 283 (0x11b), region = 32  ;;  %1369 = vmatprep.subr.bf16.mxu0 (!%p204_p3), %v1457_v0  ;;  %1417 = vmatprep.subr.bf16.mxu1 (!%p204_p3), %v1457_v0  ;;  %v1460_v3 = vld [vmem:[%s1663_s1 + $0x18] sm:$0xff] (!%p204_p3)   ;;  %v1461_v6 = vld [vmem:[%s1663_s1 + $0x20] sm:$0xff] (!%p204_p3)   ;;  %v1462_v7 = vld [vmem:[%s1663_s1 + $0x28] sm:$0xff] (!%p204_p3)  }
   0x8   : > { %1370 = vmatpush3.bf16.msra.mxu0 (!%p204_p3), %v1457_v0  ;;  %1425 = vmatpush3.bf16.msra.mxu1 (!%p204_p3), %v1457_v0  ;;  %v1463_v8 = vld [vmem:[%s1663_s1 + $0x30] sm:$0xff] (!%p204_p3)   ;;  %v1464_v9 = vld [vmem:[%s1663_s1 + $0x38] sm:$0xff] (!%p204_p3)   ;;  %v1596_v25 = vld [vmem:[%s1664_s2] ss:$0 sm:$0xff] (!%p204_p3) }
   0x9   : > { %1371 = vmatprep.subr.bf16.mxu0 (!%p204_p3), %v1458_v1  ;;  %1418 = vmatprep.subr.bf16.mxu1 (!%p204_p3), %v1458_v1 }
   0xc   : > { %1372 = vmatpush3.bf16.msra.mxu0 (!%p204_p3), %v1458_v1  ;;  %1426 = vmatpush3.bf16.msra.mxu1 (!%p204_p3), %v1458_v1 }
   0xd   : > { %1373 = vmatprep.subr.bf16.mxu0 (!%p204_p3), %v1459_v2  ;;  %1419 = vmatprep.subr.bf16.mxu1 (!%p204_p3), %v1459_v2 }
   0xe   : > { %s1671_s12 = smov (!%p253_p4, %s1495_s12), 1 }
   0xf   : > { %s1216_s22 = sshll.u32 %s1671_s12, 7 }
  0x10   : > { %s1560_s25 = scalar_lea.vmem %s1662_s0, %s1216_s22  ;;  %1374 = vmatpush3.bf16.msra.mxu0 %v1459_v2  ;;  %1427 = vmatpush3.bf16.msra.mxu1 %v1459_v2  ;;  %s1609_s17 = scalar_lea.vmem %s1665_s3, %s1216_s22 }
  0x11   : > { %v1465_v4 = vld [vmem:[%s1560_s25] sm:$0xff]   ;;  %1375 = vmatprep.subr.bf16.mxu0 %v1460_v3  ;;  %1420 = vmatprep.subr.bf16.mxu1 %v1460_v3  ;;  %v1467_v10 = vld [vmem:[%s1560_s25 + $0x8] sm:$0xff]   ;;  %v1469_v12 = vld [vmem:[%s1560_s25 + $0x10] sm:$0xff]  }
  0x12   : > { %v1466_v5 = vld [vmem:[%s1560_s25 + $0x40] sm:$0xff]   ;;  %1385 = vmatprep.mubr.bf16.mxu0 %v1465_v4  ;;  %v1468_v11 = vld [vmem:[%s1560_s25 + $0x48] sm:$0xff]   ;;  %v1470_v13 = vld [vmem:[%s1560_s25 + $0x50] sm:$0xff]  }
  0x13   : > { %1401 = vmatprep.mubr.bf16.mxu1 %v1466_v5  ;;  %v1471_v14 = vld [vmem:[%s1560_s25 + $0x18] sm:$0xff]   ;;  %v1473_v16 = vld [vmem:[%s1560_s25 + $0x20] sm:$0xff]   ;;  %v1475_v18 = vld [vmem:[%s1560_s25 + $0x28] sm:$0xff]  }
  0x14   : > { %1376 = vmatpush3.bf16.msra.mxu0 %v1460_v3  ;;  %1428 = vmatpush3.bf16.msra.mxu1 %v1460_v3  ;;  %v1472_v15 = vld [vmem:[%s1560_s25 + $0x58] sm:$0xff]   ;;  %v1474_v17 = vld [vmem:[%s1560_s25 + $0x60] sm:$0xff]   ;;  %v1476_v19 = vld [vmem:[%s1560_s25 + $0x68] sm:$0xff]  }
  0x15   : > { %1377 = vmatprep.subr.bf16.mxu0 %v1461_v6  ;;  %1421 = vmatprep.subr.bf16.mxu1 %v1461_v6  ;;  %v1477_v20 = vld [vmem:[%s1560_s25 + $0x30] sm:$0xff]   ;;  %v1479_v22 = vld [vmem:[%s1560_s25 + $0x38] sm:$0xff]  }
  0x16   : > { %v1478_v21 = vld [vmem:[%s1560_s25 + $0x70] sm:$0xff]   ;;  %v1480_v23 = vld [vmem:[%s1560_s25 + $0x78] sm:$0xff]  }
  0x18   : > { %1378 = vmatpush3.bf16.msra.mxu0 %v1461_v6  ;;  %1429 = vmatpush3.bf16.msra.mxu1 %v1461_v6 }
  0x19   : > { %1379 = vmatprep.subr.bf16.mxu0 %v1462_v7  ;;  %1422 = vmatprep.subr.bf16.mxu1 %v1462_v7 }
  0x1c   : > { %1380 = vmatpush3.bf16.msra.mxu0 %v1462_v7  ;;  %1430 = vmatpush3.bf16.msra.mxu1 %v1462_v7 }
  0x1d   : > { %1381 = vmatprep.subr.bf16.mxu0 %v1463_v8  ;;  %1423 = vmatprep.subr.bf16.mxu1 %v1463_v8 }
  0x20   : > { %1382 = vmatpush3.bf16.msra.mxu0 %v1463_v8  ;;  %1431 = vmatpush3.bf16.msra.mxu1 %v1463_v8 }
  0x21   : > { %1383 = vmatprep.subr.bf16.mxu0 %v1464_v9  ;;  %1424 = vmatprep.subr.bf16.mxu1 %v1464_v9 }
  0x24   : > { %1384 = vmatpush3.bf16.msra.mxu0 %v1464_v9  ;;  %1432 = vmatpush3.bf16.msra.mxu1 %v1464_v9 }
  0x27   : > { %1386 = vmatmul.mubr.bf16.vlgmr.msra.gmra.mrb[0].mxu0 %v1467_v10  ;;  %1402 = vmatmul.mubr.bf16.vlgmr.msra.gmra.mrb[0].mxu1 %v1468_v11 }
  0x28   : > { %1389 = vmatprep.mubr.bf16.mxu0 %v1469_v12  ;;  %1405 = vmatprep.mubr.bf16.mxu1 %v1470_v13 }
  0x2f   : > { %1390 = vmatmul.mubr.bf16.gmra.mrb[4].mxu0 %v1471_v14  ;;  %1406 = vmatmul.mubr.bf16.gmra.mrb[4].mxu1 %v1472_v15 }
  0x30   : > { %1393 = vmatprep.mubr.bf16.mxu0 %v1473_v16  ;;  %1409 = vmatprep.mubr.bf16.mxu1 %v1474_v17 }
  0x37   : > { %1394 = vmatmul.mubr.bf16.gmra.mrb[8].mxu0 %v1475_v18  ;;  %1410 = vmatmul.mubr.bf16.gmra.mrb[8].mxu1 %v1476_v19 }
  0x38   : > { %1397 = vmatprep.mubr.bf16.mxu0 %v1477_v20  ;;  %1413 = vmatprep.mubr.bf16.mxu1 %v1478_v21 }
  0x3f   : > { %1398 = vmatmul.mubr.bf16.gmra.mrb[12].mxu0 %v1479_v22  ;;  %1414 = vmatmul.mubr.bf16.gmra.mrb[12].mxu1 %v1480_v23 }
  0xfa   : > { %v1387_v24 = vpop.f32.mrb[0].mxu0  ;;  %v1403_v26 = vpop.f32.mrb[0].mxu1 }
  0xfb   : > { %v585_v27 = vpop.f32.mrb[1].mxu0  ;;  %v649_v28 = vpop.f32.mrb[1].mxu1  ;;  %v820_v31 = vadd.f32 %v1387_v24, %v1596_v25  ;;  %v836_v32 = vadd.f32 %v1403_v26, %v1596_v25 }
  0xfc   : > { %v1388_v29 = vpop.f32.mrb[2].mxu0  ;;  %v1404_v30 = vpop.f32.mrb[2].mxu1  ;;  %v818_v37 = vadd.f32 %v1596_v25, %v585_v27  ;;  %v834_v38 = vadd.f32 %v1596_v25, %v649_v28 }
  0xfd   : > { %v821_v33 = vadd.f32 %v1388_v29, %v1596_v25  ;;  %v837_v34 = vadd.f32 %v1404_v30, %v1596_v25  ;;  %v588_v35 = vpop.f32.mrb[3].mxu0  ;;  %v652_v36 = vpop.f32.mrb[3].mxu1 }
  0xfe   : > { %v819_v39 = vadd.f32 %v1596_v25, %v588_v35  ;;  %v835_v40 = vadd.f32 %v1596_v25, %v652_v36 }
  0xff   : > { %v1258_v41 = vpack.c.bf16 %v821_v33, %v820_v31  ;;  %v1298_v42 = vpack.c.bf16 %v837_v34, %v836_v32 }
 0x100   : > { %v1253_v43 = vpack.c.bf16 %v819_v39, %v818_v37  ;;  %v1293_v44 = vpack.c.bf16 %v835_v40, %v834_v38 }
 0x101   : > { %1330 = vst [vmem:[%s1609_s17 + $0x8] sm:$0xff] %v1258_v41   ;;  %1338 = vst [vmem:[%s1609_s17 + $0x48] sm:$0xff] %v1298_v42  }
 0x102   : > { %1254 = vst [vmem:[%s1609_s17] sm:$0xff] %v1253_v43   ;;  %1337 = vst [vmem:[%s1609_s17 + $0x40] sm:$0xff] %v1293_v44   ;;  %v1391_v45 = vpop.f32.mrb[4].mxu0  ;;  %v1407_v46 = vpop.f32.mrb[4].mxu1 }
 0x103   : > { %v601_v47 = vpop.f32.mrb[5].mxu0  ;;  %v665_v48 = vpop.f32.mrb[5].mxu1  ;;  %v824_v51 = vadd.f32 %v1391_v45, %v1596_v25  ;;  %v840_v52 = vadd.f32 %v1407_v46, %v1596_v25 }
 0x104   : > { %v1392_v49 = vpop.f32.mrb[6].mxu0  ;;  %v1408_v50 = vpop.f32.mrb[6].mxu1  ;;  %v822_v57 = vadd.f32 %v1596_v25, %v601_v47  ;;  %v838_v58 = vadd.f32 %v1596_v25, %v665_v48 }
 0x105   : > { %v825_v53 = vadd.f32 %v1392_v49, %v1596_v25  ;;  %v841_v54 = vadd.f32 %v1408_v50, %v1596_v25  ;;  %v604_v55 = vpop.f32.mrb[7].mxu0  ;;  %v668_v56 = vpop.f32.mrb[7].mxu1 }
 0x106   : > { %v823_v59 = vadd.f32 %v1596_v25, %v604_v55  ;;  %v839_v60 = vadd.f32 %v1596_v25, %v668_v56 }
 0x107   : > { %v1268_v61 = vpack.c.bf16 %v825_v53, %v824_v51  ;;  %v1308_v62 = vpack.c.bf16 %v841_v54, %v840_v52 }
 0x108   : > { %v1263_v63 = vpack.c.bf16 %v823_v59, %v822_v57  ;;  %v1303_v0 = vpack.c.bf16 %v839_v60, %v838_v58 }
 0x109   : > { %1332 = vst [vmem:[%s1609_s17 + $0x18] sm:$0xff] %v1268_v61   ;;  %1340 = vst [vmem:[%s1609_s17 + $0x58] sm:$0xff] %v1308_v62  }
 0x10a   : > { %1331 = vst [vmem:[%s1609_s17 + $0x10] sm:$0xff] %v1263_v63   ;;  %1339 = vst [vmem:[%s1609_s17 + $0x50] sm:$0xff] %v1303_v0   ;;  %v1395_v1 = vpop.f32.mrb[8].mxu0  ;;  %v1411_v2 = vpop.f32.mrb[8].mxu1 }
 0x10b   : > { %v617_v3 = vpop.f32.mrb[9].mxu0  ;;  %v681_v4 = vpop.f32.mrb[9].mxu1  ;;  %v828_v7 = vadd.f32 %v1395_v1, %v1596_v25  ;;  %v844_v8 = vadd.f32 %v1411_v2, %v1596_v25 }
 0x10c   : > { %v1396_v5 = vpop.f32.mrb[10].mxu0  ;;  %v1412_v6 = vpop.f32.mrb[10].mxu1  ;;  %v826_v13 = vadd.f32 %v1596_v25, %v617_v3  ;;  %v842_v14 = vadd.f32 %v1596_v25, %v681_v4 }
 0x10d   : > { %v829_v9 = vadd.f32 %v1396_v5, %v1596_v25  ;;  %v845_v10 = vadd.f32 %v1412_v6, %v1596_v25  ;;  %v620_v11 = vpop.f32.mrb[11].mxu0  ;;  %v684_v12 = vpop.f32.mrb[11].mxu1 }
 0x10e   : > { %v827_v15 = vadd.f32 %v1596_v25, %v620_v11  ;;  %v843_v16 = vadd.f32 %v1596_v25, %v684_v12 }
 0x10f   : > { %v1278_v17 = vpack.c.bf16 %v829_v9, %v828_v7  ;;  %v1318_v18 = vpack.c.bf16 %v845_v10, %v844_v8 }
 0x110   : > { %v1273_v19 = vpack.c.bf16 %v827_v15, %v826_v13  ;;  %v1313_v20 = vpack.c.bf16 %v843_v16, %v842_v14 }
 0x111   : > { %1334 = vst [vmem:[%s1609_s17 + $0x28] sm:$0xff] %v1278_v17   ;;  %1342 = vst [vmem:[%s1609_s17 + $0x68] sm:$0xff] %v1318_v18  }
 0x112   : > { %1333 = vst [vmem:[%s1609_s17 + $0x20] sm:$0xff] %v1273_v19   ;;  %1341 = vst [vmem:[%s1609_s17 + $0x60] sm:$0xff] %v1313_v20   ;;  %v1399_v21 = vpop.f32.mrb[12].mxu0  ;;  %v1415_v22 = vpop.f32.mrb[12].mxu1 }
 0x113   : > { %v633_v23 = vpop.f32.mrb[13].mxu0  ;;  %v697_v24 = vpop.f32.mrb[13].mxu1  ;;  %v832_v28 = vadd.f32 %v1399_v21, %v1596_v25  ;;  %v848_v29 = vadd.f32 %v1415_v22, %v1596_v25 }
 0x114   : > { %v1400_v26 = vpop.f32.mrb[14].mxu0  ;;  %v1416_v27 = vpop.f32.mrb[14].mxu1  ;;  %v830_v34 = vadd.f32 %v1596_v25, %v633_v23  ;;  %v846_v35 = vadd.f32 %v1596_v25, %v697_v24 }
 0x115   : > { %v833_v30 = vadd.f32 %v1400_v26, %v1596_v25  ;;  %v849_v31 = vadd.f32 %v1416_v27, %v1596_v25  ;;  %v636_v32 = vpop.f32.mrb[15].mxu0  ;;  %v700_v33 = vpop.f32.mrb[15].mxu1 }
 0x116   : > { %v831_v36 = vadd.f32 %v1596_v25, %v636_v32  ;;  %v847_v37 = vadd.f32 %v1596_v25, %v700_v33 }
 0x117   : > { %v1288_v38 = vpack.c.bf16 %v833_v30, %v832_v28  ;;  %v1328_v39 = vpack.c.bf16 %v849_v31, %v848_v29 }
 0x118   : > { %v1283_v40 = vpack.c.bf16 %v831_v36, %v830_v34  ;;  %v1323_v41 = vpack.c.bf16 %v847_v37, %v846_v35 }
 0x119   : > { %1336 = vst [vmem:[%s1609_s17 + $0x38] sm:$0xff] %v1288_v38   ;;  %1344 = vst [vmem:[%s1609_s17 + $0x78] sm:$0xff] %v1328_v39  }
 0x11a   : > { %1335 = vst [vmem:[%s1609_s17 + $0x30] sm:$0xff] %v1283_v40   ;;  %1343 = vst [vmem:[%s1609_s17 + $0x70] sm:$0xff] %v1323_v41  }
 0x11b PF: > { %s13_s14 = sadd.s32 1, %s1503_s14   ;;  %s1666_s12 = smov %s1499_s13 }
 0x11c   : > { %p10_p5 = scmp.ge.s32.totalorder %s13_s14, 4   ;;  %s1667_s13 = smov %s1669_s15 }
 0x11e   :  { %12 = sbr.rel (!%p10_p5) target bundleno = 2 (0x2), region = 76 }

// kernel: decoder_forward.88
= control target key start
LH: loop header
LB: loop body
LE: loop exit
PB: predicated region body
PF: predicated region fallthrough
CT: control target
= control target key end

     0   :  { %s2518_s15 = smov 0   ;;  %s2520_s16 = smov 0   ;;  %s2799_s0 = inlined_call_operand.vmem [shape: bf16[2,256,384], index: 0, kind: input, shape index: {}]   ;;  %s2800_s1 = inlined_call_operand.vmem [shape: bf16[384,128], index: 1, kind: input, shape index: {}]   ;;  %s2801_s2 = inlined_call_operand.vmem [shape: f32[1,128], index: 2, kind: input, shape index: {}]   ;;  %s2802_s3 = inlined_call_operand.vmem [shape: bf16[2,256,128], index: 3, kind: input, shape index: {}]   ;;  %s2803_s4 = inlined_call_operand.vmem [shape: bf16[2,256,128], index: 4, kind: output, shape index: {}]  }
   0x1   :  { %s2522_s17 = smov 0  }
   0x2 LB: > { %s40_s18 = sadd.s32 1, %s2487_s16  ;;  %p1835_p0 = scmp.ge.s32.totalorder %s2491_s17, 1  ;;  %s2491_s17 = sphi %s2522_s17, %s14_s17   ;;  %s2487_s16 = sphi %s2520_s16, %s2805_s16   ;;  %s2483_s15 = sphi %s2518_s15, %s2804_s15  }
   0x3   : > { %p42_p1 = scmp.ge.s32.totalorder %s40_s18, 2  ;;  %p253_p2 = scmp.lt.s32.totalorder %s2491_s17, 3 }
   0x5   : > { %s2807_s18 = smov (%p42_p1, %s40_s18), 0  ;;  %p254_p3 = pnand %p1835_p0, %p253_p2 }
   0x6   : > { %v2381_v0 = vld [vmem:[%s2800_s1 + $0x40] sm:$0xff] (!%p254_p3)   ;;  %v2383_v2 = vld [vmem:[%s2800_s1 + $0x48] sm:$0xff] (!%p254_p3)   ;;  %p320_p4 = scmp.lt.s32.totalorder (!%p254_p3), %s2483_s15, 1  ;;  %v2385_v4 = vld [vmem:[%s2800_s1 + $0x50] sm:$0xff] (!%p254_p3)  }
   0x7   : > { %257 = sbr.rel (%p254_p3) target bundleno = 353 (0x161), region = 36  ;;  %v2382_v1 = vld [vmem:[%s2800_s1] sm:$0xff] (!%p254_p3)   ;;  %2156 = vmatprep.subr.bf16.mxu0 (!%p254_p3), %v2381_v0  ;;  %2340 = vmatprep.subr.bf16.mxu1 (!%p254_p3), %v2381_v0  ;;  %v2384_v3 = vld [vmem:[%s2800_s1 + $0x8] sm:$0xff] (!%p254_p3)   ;;  %v2386_v5 = vld [vmem:[%s2800_s1 + $0x10] sm:$0xff] (!%p254_p3)  }
   0x8   : > { %2157 = vmatpush3.bf16.msra.mxu0 (!%p254_p3), %v2382_v1  ;;  %2348 = vmatpush3.bf16.msra.mxu1 (!%p254_p3), %v2382_v1  ;;  %v2387_v6 = vld [vmem:[%s2800_s1 + $0x58] sm:$0xff] (!%p254_p3)   ;;  %v2389_v8 = vld [vmem:[%s2800_s1 + $0x60] sm:$0xff] (!%p254_p3)   ;;  %v2391_v10 = vld [vmem:[%s2800_s1 + $0x68] sm:$0xff] (!%p254_p3)  }
   0x9   : > { %2158 = vmatprep.subr.bf16.mxu0 (!%p254_p3), %v2383_v2  ;;  %2341 = vmatprep.subr.bf16.mxu1 (!%p254_p3), %v2383_v2  ;;  %v2388_v7 = vld [vmem:[%s2800_s1 + $0x18] sm:$0xff] (!%p254_p3)   ;;  %v2390_v9 = vld [vmem:[%s2800_s1 + $0x20] sm:$0xff] (!%p254_p3)   ;;  %v2392_v13 = vld [vmem:[%s2800_s1 + $0x28] sm:$0xff] (!%p254_p3)  }
   0xa   : > { %v2393_v14 = vld [vmem:[%s2800_s1 + $0x70] sm:$0xff] (!%p254_p3)   ;;  %v2395_v16 = vld [vmem:[%s2800_s1 + $0x78] sm:$0xff] (!%p254_p3)   ;;  %v2403_v18 = vld [vmem:[%s2800_s1 + $0x80] sm:$0xff] (!%p254_p3)  }
   0xb   : > { %v2394_v15 = vld [vmem:[%s2800_s1 + $0x30] sm:$0xff] (!%p254_p3)   ;;  %v2396_v17 = vld [vmem:[%s2800_s1 + $0x38] sm:$0xff] (!%p254_p3)   ;;  %v2404_v22 = vld [vmem:[%s2800_s1 + $0x88] sm:$0xff] (!%p254_p3)  }
   0xc   : > { %2159 = vmatpush3.bf16.msra.mxu0 (!%p254_p3), %v2384_v3  ;;  %2349 = vmatpush3.bf16.msra.mxu1 (!%p254_p3), %v2384_v3  ;;  %v2411_v25 = vld [vmem:[%s2800_s1 + $0x90] sm:$0xff] (!%p254_p3)   ;;  %v2412_v27 = vld [vmem:[%s2800_s1 + $0x98] sm:$0xff] (!%p254_p3)   ;;  %v2419_v30 = vld [vmem:[%s2800_s1 + $0xa0] sm:$0xff] (!%p254_p3)  }
   0xd   : > { %2160 = vmatprep.subr.bf16.mxu0 (!%p254_p3), %v2385_v4  ;;  %2342 = vmatprep.subr.bf16.mxu1 (!%p254_p3), %v2385_v4  ;;  %v2420_v33 = vld [vmem:[%s2800_s1 + $0xa8] sm:$0xff] (!%p254_p3)   ;;  %v2427_v36 = vld [vmem:[%s2800_s1 + $0xb0] sm:$0xff] (!%p254_p3)   ;;  %v2428_v40 = vld [vmem:[%s2800_s1 + $0xb8] sm:$0xff] (!%p254_p3)  }
   0xe   : > { %s2809_s15 = smov (!%p320_p4, %s2483_s15), 1 }
   0xf   : > { %s2356_s7 = smul.u32 384, %s2809_s15 }
  0x10   : > { %2161 = vmatpush3.bf16.msra.mxu0 %v2386_v5  ;;  %2350 = vmatpush3.bf16.msra.mxu1 %v2386_v5 }
  0x11   : > { %2162 = vmatprep.subr.bf16.mxu0 %v2387_v6  ;;  %2343 = vmatprep.subr.bf16.mxu1 %v2387_v6  ;;  %s2569_s14 = scalar_lea.vmem %s2799_s0, %s2356_s7 }
  0x12   : > { %v2399_v11 = vld [vmem:[%s2569_s14 + $0x4] ss:$12 sps:$4 sm:$0xff]   ;;  %v2397_v19 = vld [vmem:[%s2569_s14] ss:$12 sps:$4 sm:$0xff]   ;;  %v2405_v21 = vld [vmem:[%s2569_s14 + $0x1c] ss:$12 sps:$4 sm:$0xff]  }
  0x13   : > { %v2402_v12 = vld [vmem:[%s2569_s14 + $0x124] ss:$12 sps:$4 sm:$0xff]   ;;  %985 = vmatprep.mubr.bf16.mxu0 %v2399_v11  ;;  %v2400_v20 = vld [vmem:[%s2569_s14 + $0x120] ss:$12 sps:$4 sm:$0xff]   ;;  %v2407_v23 = vld [vmem:[%s2569_s14 + $0x13c] ss:$12 sps:$4 sm:$0xff]  }
  0x14   : > { %2163 = vmatpush3.bf16.msra.mxu0 %v2388_v7  ;;  %2351 = vmatpush3.bf16.msra.mxu1 %v2388_v7  ;;  %v2409_v24 = vld [vmem:[%s2569_s14 + $0x18] ss:$12 sps:$4 sm:$0xff]   ;;  %v2413_v28 = vld [vmem:[%s2569_s14 + $0x34] ss:$12 sps:$4 sm:$0xff]   ;;  %v2417_v31 = vld [vmem:[%s2569_s14 + $0x30] ss:$12 sps:$4 sm:$0xff]  }
  0x15   : > { %2164 = vmatprep.subr.bf16.mxu0 %v2389_v8  ;;  %2344 = vmatprep.subr.bf16.mxu1 %v2389_v8  ;;  %v2410_v26 = vld [vmem:[%s2569_s14 + $0x138] ss:$12 sps:$4 sm:$0xff]   ;;  %v2415_v29 = vld [vmem:[%s2569_s14 + $0x154] ss:$12 sps:$4 sm:$0xff]   ;;  %v2418_v32 = vld [vmem:[%s2569_s14 + $0x150] ss:$12 sps:$4 sm:$0xff]  }
  0x16   : > { %1081 = vmatprep.mubr.bf16.mxu1 %v2402_v12  ;;  %v2421_v34 = vld [vmem:[%s2569_s14 + $0x4c] ss:$12 sps:$4 sm:$0xff]   ;;  %v2425_v37 = vld [vmem:[%s2569_s14 + $0x48] ss:$12 sps:$4 sm:$0xff]   ;;  %v2429_v39 = vld [vmem:[%s2569_s14 + $0x64] ss:$12 sps:$4 sm:$0xff]  }
  0x17   : > { %v2423_v35 = vld [vmem:[%s2569_s14 + $0x16c] ss:$12 sps:$4 sm:$0xff]   ;;  %v2426_v38 = vld [vmem:[%s2569_s14 + $0x168] ss:$12 sps:$4 sm:$0xff]   ;;  %v2438_v47 = vld [vmem:[%s2569_s14 + $0x50] ss:$12 sps:$4 sm:$0xff]  }
  0x18   : > { %2165 = vmatpush3.bf16.msra.mxu0 %v2390_v9  ;;  %2352 = vmatpush3.bf16.msra.mxu1 %v2390_v9  ;;  %v2431_v41 = vld [vmem:[%s2569_s14 + $0x8] ss:$12 sps:$4 sm:$0xff]   ;;  %v2432_v42 = vld [vmem:[%s2569_s14 + $0x60] ss:$12 sps:$4 sm:$0xff]   ;;  %v2436_v45 = vld [vmem:[%s2569_s14 + $0x38] ss:$12 sps:$4 sm:$0xff]  }
  0x19   : > { %2166 = vmatprep.subr.bf16.mxu0 %v2391_v10  ;;  %2345 = vmatprep.subr.bf16.mxu1 %v2391_v10  ;;  %v2433_v43 = vld [vmem:[%s2569_s14 + $0x20] ss:$12 sps:$4 sm:$0xff]   ;;  %v2434_v44 = vld [vmem:[%s2569_s14 + $0x7c] ss:$12 sps:$4 sm:$0xff]   ;;  %v2437_v46 = vld [vmem:[%s2569_s14 + $0x78] ss:$12 sps:$4 sm:$0xff]  }
  0x1a   : > { %v2439_v48 = vld [vmem:[%s2569_s14 + $0x94] ss:$12 sps:$4 sm:$0xff]   ;;  %v2442_v50 = vld [vmem:[%s2569_s14 + $0x90] ss:$12 sps:$4 sm:$0xff]   ;;  %v2444_v52 = vld [vmem:[%s2569_s14 + $0xac] ss:$12 sps:$4 sm:$0xff]  }
  0x1b   : > { %v2441_v49 = vld [vmem:[%s2569_s14 + $0x68] ss:$12 sps:$4 sm:$0xff]   ;;  %v2443_v51 = vld [vmem:[%s2569_s14 + $0x80] ss:$12 sps:$4 sm:$0xff]   ;;  %v2446_v53 = vld [vmem:[%s2569_s14 + $0x98] ss:$12 sps:$4 sm:$0xff]  }
  0x1c   : > { %2167 = vmatpush3.bf16.msra.mxu0 %v2392_v13  ;;  %2353 = vmatpush3.bf16.msra.mxu1 %v2392_v13  ;;  %v2447_v54 = vld [vmem:[%s2569_s14 + $0xa8] ss:$12 sps:$4 sm:$0xff]   ;;  %v2448_v55 = vld [vmem:[%s2569_s14 + $0xb0] ss:$12 sps:$4 sm:$0xff]   ;;  %v2452_v58 = vld [vmem:[%s2569_s14 + $0xc0] ss:$12 sps:$4 sm:$0xff]  }
  0x1d   : > { %2168 = vmatprep.subr.bf16.mxu0 %v2393_v14  ;;  %2346 = vmatprep.subr.bf16.mxu1 %v2393_v14  ;;  %v2449_v56 = vld [vmem:[%s2569_s14 + $0xc4] ss:$12 sps:$4 sm:$0xff]   ;;  %v2451_v57 = vld [vmem:[%s2569_s14 + $0xc8] ss:$12 sps:$4 sm:$0xff]   ;;  %v2453_v59 = vld [vmem:[%s2569_s14 + $0xe0] ss:$12 sps:$4 sm:$0xff]  }
  0x1e   : > { %v2454_v60 = vld [vmem:[%s2569_s14 + $0xdc] ss:$12 sps:$4 sm:$0xff]   ;;  %v2456_v61 = vld [vmem:[%s2569_s14 + $0xf8] ss:$12 sps:$4 sm:$0xff]   ;;  %v2459_v0 = vld [vmem:[%s2569_s14 + $0xf4] ss:$12 sps:$4 sm:$0xff]  }
  0x1f   : > { %v2457_v62 = vld [vmem:[%s2569_s14 + $0xd8] ss:$12 sps:$4 sm:$0xff]   ;;  %v2458_v63 = vld [vmem:[%s2569_s14 + $0x110] ss:$12 sps:$4 sm:$0xff]   ;;  %v2461_v1 = vld [vmem:[%s2569_s14 + $0x128] ss:$12 sps:$4 sm:$0xff]  }
  0x20   : > { %2169 = vmatpush3.bf16.msra.mxu0 %v2394_v15  ;;  %2354 = vmatpush3.bf16.msra.mxu1 %v2394_v15  ;;  %v2462_v2 = vld [vmem:[%s2569_s14 + $0xf0] ss:$12 sps:$4 sm:$0xff]   ;;  %v2463_v3 = vld [vmem:[%s2569_s14 + $0x140] ss:$12 sps:$4 sm:$0xff]   ;;  %v2466_v5 = vld [vmem:[%s2569_s14 + $0x158] ss:$12 sps:$4 sm:$0xff]  }
  0x21   : > { %2170 = vmatprep.subr.bf16.mxu0 %v2395_v16  ;;  %2347 = vmatprep.subr.bf16.mxu1 %v2395_v16  ;;  %v2464_v4 = vld [vmem:[%s2569_s14 + $0x10c] ss:$12 sps:$4 sm:$0xff]   ;;  %v2467_v6 = vld [vmem:[%s2569_s14 + $0x108] ss:$12 sps:$4 sm:$0xff]   ;;  %v2468_v7 = vld [vmem:[%s2569_s14 + $0x170] ss:$12 sps:$4 sm:$0xff]  }
  0x22   : > { %s1948_s14 = sshll.u32 %s2809_s15, 7 }
  0x23   : > { %s2690_s30 = scalar_lea.vmem %s2802_s3, %s1948_s14  ;;  %s2713_s9 = scalar_lea.vmem %s2803_s4, %s1948_s14 }
  0x24   : > { %2171 = vmatpush3.bf16.msra.mxu0 %v2396_v17  ;;  %2355 = vmatpush3.bf16.msra.mxu1 %v2396_v17 }
  0x25   : > { %2292 = vmatprep.subr.bf16.mxu1 %v2403_v18 }
  0x27   : > { %986 = vmatmul.mubr.bf16.vlgmr.msra.gmra.mrb[0].mxu0 %v2397_v19  ;;  %1082 = vmatmul.mubr.bf16.vlgmr.msra.gmra.mrb[0].mxu1 %v2400_v20 }
  0x28   : > { %2293 = vmatpush3.bf16.msra.mxu1 %v2403_v18  ;;  %993 = vmatprep.mubr.bf16.mxu0 %v2405_v21 }
  0x29   : > { %2294 = vmatprep.subr.bf16.mxu1 %v2404_v22  ;;  %1089 = vmatprep.mubr.bf16.mxu1 %v2407_v23 }
  0x2c   : > { %2295 = vmatpush3.bf16.msra.mxu1 %v2404_v22 }
  0x2d   : > { %2296 = vmatprep.subr.bf16.mxu1 %v2411_v25 }
  0x2f   : > { %994 = vmatmul.mubr.bf16.gmra.mrb[4].mxu0 %v2409_v24  ;;  %1090 = vmatmul.mubr.bf16.gmra.mrb[4].mxu1 %v2410_v26 }
  0x30   : > { %2297 = vmatpush3.bf16.msra.mxu1 %v2411_v25  ;;  %1001 = vmatprep.mubr.bf16.mxu0 %v2413_v28 }
  0x31   : > { %2298 = vmatprep.subr.bf16.mxu1 %v2412_v27  ;;  %1097 = vmatprep.mubr.bf16.mxu1 %v2415_v29 }
  0x34   : > { %2299 = vmatpush3.bf16.msra.mxu1 %v2412_v27 }
  0x35   : > { %2300 = vmatprep.subr.bf16.mxu1 %v2419_v30 }
  0x37   : > { %1002 = vmatmul.mubr.bf16.gmra.mrb[8].mxu0 %v2417_v31  ;;  %1098 = vmatmul.mubr.bf16.gmra.mrb[8].mxu1 %v2418_v32 }
  0x38   : > { %2301 = vmatpush3.bf16.msra.mxu1 %v2419_v30  ;;  %1009 = vmatprep.mubr.bf16.mxu0 %v2421_v34 }
  0x39   : > { %2302 = vmatprep.subr.bf16.mxu1 %v2420_v33  ;;  %1105 = vmatprep.mubr.bf16.mxu1 %v2423_v35 }
  0x3c   : > { %2303 = vmatpush3.bf16.msra.mxu1 %v2420_v33 }
  0x3d   : > { %2304 = vmatprep.subr.bf16.mxu1 %v2427_v36 }
  0x3f   : > { %1010 = vmatmul.mubr.bf16.gmra.mrb[12].mxu0 %v2425_v37  ;;  %1106 = vmatmul.mubr.bf16.gmra.mrb[12].mxu1 %v2426_v38 }
  0x40   : > { %2305 = vmatpush3.bf16.msra.mxu1 %v2427_v36  ;;  %1017 = vmatprep.mubr.bf16.mxu0 %v2429_v39 }
  0x41   : > { %2306 = vmatprep.subr.bf16.mxu1 %v2428_v40  ;;  %2308 = vmatprep.mubr.bf16.mxu1 %v2431_v41 }
  0x44   : > { %2307 = vmatpush3.bf16.msra.mxu1 %v2428_v40 }
  0x47   : > { %1018 = vmatmul.mubr.bf16.gmra.mrb[16].mxu0 %v2432_v42  ;;  %2309 = vmatmul.mubr.bf16.vlgmr.msra.gmra.mrb[16].mxu1 %v2433_v43 }
  0x48   : > { %1025 = vmatprep.mubr.bf16.mxu0 %v2434_v44  ;;  %2312 = vmatprep.mubr.bf16.mxu1 %v2436_v45 }
  0x4f   : > { %1026 = vmatmul.mubr.bf16.gmra.mrb[20].mxu0 %v2437_v46  ;;  %2313 = vmatmul.mubr.bf16.gmra.mrb[20].mxu1 %v2438_v47 }
  0x50   : > { %1033 = vmatprep.mubr.bf16.mxu0 %v2439_v48  ;;  %2316 = vmatprep.mubr.bf16.mxu1 %v2441_v49 }
  0x57   : > { %1034 = vmatmul.mubr.bf16.gmra.mrb[24].mxu0 %v2442_v50  ;;  %2317 = vmatmul.mubr.bf16.gmra.mrb[24].mxu1 %v2443_v51 }
  0x58   : > { %1041 = vmatprep.mubr.bf16.mxu0 %v2444_v52  ;;  %2320 = vmatprep.mubr.bf16.mxu1 %v2446_v53 }
  0x5f   : > { %1042 = vmatmul.mubr.bf16.gmra.mrb[28].mxu0 %v2447_v54  ;;  %2321 = vmatmul.mubr.bf16.gmra.mrb[28].mxu1 %v2448_v55 }
  0x60   : > { %1049 = vmatprep.mubr.bf16.mxu0 %v2449_v56  ;;  %2324 = vmatprep.mubr.bf16.mxu1 %v2451_v57  ;;  %v2126_v56 = vld [vmem:[%s2690_s30 + $0x8] sm:$0xff]  }
  0x67   : > { %1050 = vmatmul.mubr.bf16.gmra.mrb[32].mxu0 %v2452_v58  ;;  %2325 = vmatmul.mubr.bf16.gmra.mrb[32].mxu1 %v2453_v59  ;;  %v2696_v59 = vld [vmem:[%s2801_s2] ss:$0 sm:$0xff] }
  0x68   : > { %1057 = vmatprep.mubr.bf16.mxu0 %v2454_v60  ;;  %2328 = vmatprep.mubr.bf16.mxu1 %v2456_v61  ;;  %v1983_v60 = vld [vmem:[%s2690_s30] sm:$0xff]  }
  0x6f   : > { %1058 = vmatmul.mubr.bf16.gmra.mrb[36].mxu0 %v2457_v62  ;;  %2329 = vmatmul.mubr.bf16.gmra.mrb[36].mxu1 %v2458_v63 }
  0x70   : > { %1065 = vmatprep.mubr.bf16.mxu0 %v2459_v0  ;;  %2332 = vmatprep.mubr.bf16.mxu1 %v2461_v1  ;;  %v1988_v0 = vunpack.c.l.bf16 %v2126_v56 }
  0x77   : > { %1066 = vmatmul.mubr.bf16.gmra.mrb[40].mxu0 %v2462_v2  ;;  %2333 = vmatmul.mubr.bf16.gmra.mrb[40].mxu1 %v2463_v3 }
  0x78   : > { %1073 = vmatprep.mubr.bf16.mxu0 %v2464_v4  ;;  %2336 = vmatprep.mubr.bf16.mxu1 %v2466_v5 }
  0x7f   : > { %1074 = vmatmul.mubr.bf16.gmra.mrb[44].mxu0 %v2467_v6  ;;  %2337 = vmatmul.mubr.bf16.gmra.mrb[44].mxu1 %v2468_v7  ;;  %v1984_v6 = vunpack.c.l.bf16 %v1983_v60 }
  0xfa   : > { %v2172_v8 = vpop.f32.mrb[0].mxu0  ;;  %v2244_v9 = vpop.f32.mrb[0].mxu1 }
  0xfb   : > { %v2173_v10 = vpop.f32.mrb[1].mxu0  ;;  %v2245_v11 = vpop.f32.mrb[1].mxu1 }
  0xfc   : > { %v2174_v12 = vadd.f32 %v2173_v10, %v2172_v8  ;;  %v2664_v13 = vadd.f32 %v2245_v11, %v2244_v9  ;;  %v2175_v14 = vpop.f32.mrb[2].mxu0  ;;  %v2247_v15 = vpop.f32.mrb[2].mxu1  ;;  %v1989_v8 = vunpack.c.h.bf16 %v2126_v56 }
  0xfd   : > { %v2176_v16 = vpop.f32.mrb[3].mxu0  ;;  %v2248_v17 = vpop.f32.mrb[3].mxu1 }
  0xfe   : > { %v2177_v18 = vadd.f32 %v2176_v16, %v2175_v14  ;;  %v2666_v19 = vadd.f32 %v2248_v17, %v2247_v15  ;;  %v1985_v16 = vunpack.c.h.bf16 %v1983_v60  ;;  %v2130_v60 = vld [vmem:[%s2690_s30 + $0x28] sm:$0xff]  }
 0x102   : > { %v2178_v20 = vpop.f32.mrb[4].mxu0  ;;  %v2250_v21 = vpop.f32.mrb[4].mxu1 }
 0x103   : > { %v2179_v22 = vpop.f32.mrb[5].mxu0  ;;  %v2251_v23 = vpop.f32.mrb[5].mxu1 }
 0x104   : > { %v2180_v24 = vadd.f32 %v2179_v22, %v2178_v20  ;;  %v2668_v25 = vadd.f32 %v2251_v23, %v2250_v21  ;;  %v2181_v26 = vpop.f32.mrb[6].mxu0  ;;  %v2253_v27 = vpop.f32.mrb[6].mxu1  ;;  %v2128_v22 = vld [vmem:[%s2690_s30 + $0x18] sm:$0xff]  }
 0x105   : > { %v2182_v28 = vpop.f32.mrb[7].mxu0  ;;  %v2254_v29 = vpop.f32.mrb[7].mxu1 }
 0x106   : > { %v2183_v30 = vadd.f32 %v2182_v28, %v2181_v26  ;;  %v2670_v31 = vadd.f32 %v2254_v29, %v2253_v27 }
 0x10a   : > { %v2184_v32 = vpop.f32.mrb[8].mxu0  ;;  %v2256_v33 = vpop.f32.mrb[8].mxu1 }
 0x10b   : > { %v2185_v34 = vpop.f32.mrb[9].mxu0  ;;  %v2257_v35 = vpop.f32.mrb[9].mxu1 }
 0x10c   : > { %v2672_v36 = vadd.f32 %v2185_v34, %v2184_v32  ;;  %v2674_v37 = vadd.f32 %v2257_v35, %v2256_v33  ;;  %v2187_v38 = vpop.f32.mrb[10].mxu0  ;;  %v2259_v39 = vpop.f32.mrb[10].mxu1  ;;  %v1996_v34 = vunpack.c.l.bf16 %v2128_v22 }
 0x10d   : > { %v2188_v40 = vpop.f32.mrb[11].mxu0  ;;  %v2260_v41 = vpop.f32.mrb[11].mxu1 }
 0x10e   : > { %v2676_v42 = vadd.f32 %v2188_v40, %v2187_v38  ;;  %v2678_v43 = vadd.f32 %v2260_v41, %v2259_v39 }
 0x112   : > { %v2190_v44 = vpop.f32.mrb[12].mxu0  ;;  %v2262_v45 = vpop.f32.mrb[12].mxu1 }
 0x113   : > { %v2191_v46 = vpop.f32.mrb[13].mxu0  ;;  %v2263_v47 = vpop.f32.mrb[13].mxu1 }
 0x114   : > { %v2192_v48 = vadd.f32 %v2191_v46, %v2190_v44  ;;  %v2681_v49 = vadd.f32 %v2263_v47, %v2262_v45  ;;  %v2193_v50 = vpop.f32.mrb[14].mxu0  ;;  %v2265_v51 = vpop.f32.mrb[14].mxu1  ;;  %v1997_v46 = vunpack.c.h.bf16 %v2128_v22 }
 0x115   : > { %v2194_v52 = vpop.f32.mrb[15].mxu0  ;;  %v2266_v53 = vpop.f32.mrb[15].mxu1 }
 0x116   : > { %v2195_v54 = vadd.f32 %v2194_v52, %v2193_v50  ;;  %v2683_v55 = vadd.f32 %v2266_v53, %v2265_v51 }
 0x11a   : > { %v2196_v57 = vpop.f32.mrb[16].mxu0  ;;  %v2310_v58 = vpop.f32.mrb[16].mxu1 }
 0x11b   : > { %v1157_v61 = vadd.f32 %v2310_v58, %v2180_v24  ;;  %v2197_v62 = vpop.f32.mrb[17].mxu0  ;;  %v1148_v63 = vpop.f32.mrb[17].mxu1 }
 0x11c   : > { %v2699_v1 = vadd.f32 %v2197_v62, %v2196_v57  ;;  %v1149_v2 = vadd.f32 %v2174_v12, %v1148_v63  ;;  %v2199_v3 = vpop.f32.mrb[18].mxu0  ;;  %v2311_v4 = vpop.f32.mrb[18].mxu1 }
 0x11d   : > { %v1383_v5 = vadd.f32 %v2696_v59, %v1157_v61  ;;  %v1160_v7 = vadd.f32 %v2311_v4, %v2183_v30  ;;  %v2200_v9 = vpop.f32.mrb[19].mxu0  ;;  %v1151_v10 = vpop.f32.mrb[19].mxu1 }
 0x11e   : > { %v1381_v11 = vadd.f32 %v2696_v59, %v1149_v2  ;;  %v2703_v14 = vadd.f32 %v2200_v9, %v2199_v3  ;;  %v1152_v15 = vadd.f32 %v2177_v18, %v1151_v10  ;;  %v2127_v18 = vld [vmem:[%s2690_s30 + $0x10] sm:$0xff]  }
 0x11f   : > { %v1384_v12 = vadd.f32 %v2696_v59, %v1160_v7  ;;  %v1479_v20 = vadd.f32 %v1988_v0, %v1383_v5  ;;  %v1992_v44 = vunpack.c.l.bf16 %v2127_v18  ;;  %v1993_v53 = vunpack.c.h.bf16 %v2127_v18  ;;  %v2129_v0 = vld [vmem:[%s2690_s30 + $0x20] sm:$0xff]  }
 0x120   : > { %v1382_v17 = vadd.f32 %v2696_v59, %v1152_v15  ;;  %v1477_v23 = vadd.f32 %v1984_v6, %v1381_v11  ;;  %v2004_v6 = vunpack.c.l.bf16 %v2130_v60  ;;  %v2000_v15 = vunpack.c.l.bf16 %v2129_v0 }
 0x121   : > { %v1480_v21 = vadd.f32 %v1989_v8, %v1384_v12  ;;  %v2005_v12 = vunpack.c.h.bf16 %v2130_v60 }
 0x122   : > { %v1478_v24 = vadd.f32 %v1985_v16, %v1382_v17  ;;  %v2202_v26 = vpop.f32.mrb[20].mxu0  ;;  %v2314_v27 = vpop.f32.mrb[20].mxu1 }
 0x123   : > { %v2054_v28 = vpack.c.bf16 %v1480_v21, %v1479_v20  ;;  %v1173_v29 = vadd.f32 %v2314_v27, %v2192_v48  ;;  %v2203_v30 = vpop.f32.mrb[21].mxu0  ;;  %v1164_v32 = vpop.f32.mrb[21].mxu1 }
 0x124   : > { %v2049_v33 = vpack.c.bf16 %v1478_v24, %v1477_v23  ;;  %v2204_v35 = vadd.f32 %v2203_v30, %v2202_v26  ;;  %v1165_v38 = vadd.f32 %v2672_v36, %v1164_v32  ;;  %v2205_v39 = vpop.f32.mrb[22].mxu0  ;;  %v2315_v40 = vpop.f32.mrb[22].mxu1  ;;  %v2001_v24 = vunpack.c.h.bf16 %v2129_v0 }
 0x125   : > { %2141 = vst [vmem:[%s2713_s9 + $0x8] sm:$0xff] %v2054_v28   ;;  %v1387_v41 = vadd.f32 %v2696_v59, %v1173_v29  ;;  %v1176_v45 = vadd.f32 %v2315_v40, %v2195_v54  ;;  %v2206_v47 = vpop.f32.mrb[23].mxu0  ;;  %v1167_v48 = vpop.f32.mrb[23].mxu1  ;;  %v2132_v40 = vld [vmem:[%s2690_s30 + $0x38] sm:$0xff]  }
 0x126   : > { %2050 = vst [vmem:[%s2713_s9] sm:$0xff] %v2049_v33   ;;  %v1385_v50 = vadd.f32 %v2696_v59, %v1165_v38  ;;  %v2207_v51 = vadd.f32 %v2206_v47, %v2205_v39  ;;  %v1168_v52 = vadd.f32 %v2676_v42, %v1167_v48  ;;  %v2131_v33 = vld [vmem:[%s2690_s30 + $0x30] sm:$0xff]   ;;  %v2013_v60 = vunpack.c.h.bf16 %v2132_v40 }
 0x127   : > { %v1388_v36 = vadd.f32 %v2696_v59, %v1176_v45  ;;  %v1483_v57 = vadd.f32 %v1996_v34, %v1387_v41 }
 0x128   : > { %v1386_v56 = vadd.f32 %v2696_v59, %v1168_v52  ;;  %v1481_v54 = vadd.f32 %v1992_v44, %v1385_v50  ;;  %v2009_v50 = vunpack.c.h.bf16 %v2131_v33 }
 0x129   : > { %v1484_v58 = vadd.f32 %v1997_v46, %v1388_v36  ;;  %v2008_v46 = vunpack.c.l.bf16 %v2131_v33 }
 0x12a   : > { %v1482_v61 = vadd.f32 %v1993_v53, %v1386_v56  ;;  %v2208_v62 = vpop.f32.mrb[24].mxu0  ;;  %v2318_v63 = vpop.f32.mrb[24].mxu1  ;;  %v2012_v56 = vunpack.c.l.bf16 %v2132_v40 }
 0x12b   : > { %v2064_v2 = vpack.c.bf16 %v1484_v58, %v1483_v57  ;;  %v1189_v3 = vadd.f32 %v2318_v63, %v2204_v35  ;;  %v2209_v4 = vpop.f32.mrb[25].mxu0  ;;  %v1180_v5 = vpop.f32.mrb[25].mxu1 }
 0x12c   : > { %v2059_v42 = vpack.c.bf16 %v1482_v61, %v1481_v54  ;;  %v2210_v7 = vadd.f32 %v2209_v4, %v2208_v62  ;;  %v1181_v8 = vadd.f32 %v2699_v1, %v1180_v5  ;;  %v2211_v9 = vpop.f32.mrb[26].mxu0  ;;  %v2319_v10 = vpop.f32.mrb[26].mxu1 }
 0x12d   : > { %2143 = vst [vmem:[%s2713_s9 + $0x18] sm:$0xff] %v2064_v2   ;;  %v1391_v11 = vadd.f32 %v2696_v59, %v1189_v3  ;;  %v1192_v16 = vadd.f32 %v2319_v10, %v2207_v51  ;;  %v2212_v17 = vpop.f32.mrb[27].mxu0  ;;  %v1183_v20 = vpop.f32.mrb[27].mxu1  ;;  %v2133_v10 = vld [vmem:[%s2690_s30 + $0x40] sm:$0xff]  }
 0x12e   : > { %2142 = vst [vmem:[%s2713_s9 + $0x10] sm:$0xff] %v2059_v42   ;;  %v1389_v21 = vadd.f32 %v2696_v59, %v1181_v8  ;;  %v2213_v22 = vadd.f32 %v2212_v17, %v2211_v9  ;;  %v1184_v23 = vadd.f32 %v2703_v14, %v1183_v20 }
 0x12f   : > { %v1392_v1 = vadd.f32 %v2696_v59, %v1192_v16  ;;  %v1487_v27 = vadd.f32 %v2004_v6, %v1391_v11 }
 0x130   : > { %v1390_v26 = vadd.f32 %v2696_v59, %v1184_v23  ;;  %v1485_v28 = vadd.f32 %v2000_v15, %v1389_v21  ;;  %v2016_v21 = vunpack.c.l.bf16 %v2133_v10  ;;  %v2017_v23 = vunpack.c.h.bf16 %v2133_v10 }
 0x131   : > { %v1488_v18 = vadd.f32 %v2005_v12, %v1392_v1 }
 0x132   : > { %v1486_v29 = vadd.f32 %v2001_v24, %v1390_v26  ;;  %v2214_v30 = vpop.f32.mrb[28].mxu0  ;;  %v2322_v32 = vpop.f32.mrb[28].mxu1 }
 0x133   : > { %v2074_v34 = vpack.c.bf16 %v1488_v18, %v1487_v27  ;;  %v2215_v35 = vpop.f32.mrb[29].mxu0  ;;  %v1196_v38 = vpop.f32.mrb[29].mxu1 }
 0x134   : > { %v2069_v39 = vpack.c.bf16 %v1486_v29, %v1485_v28  ;;  %v2216_v14 = vadd.f32 %v2215_v35, %v2214_v30  ;;  %v1197_v41 = vadd.f32 %v2210_v7, %v1196_v38  ;;  %v2217_v44 = vpop.f32.mrb[30].mxu0  ;;  %v2323_v45 = vpop.f32.mrb[30].mxu1 }
 0x135   : > { %2145 = vst [vmem:[%s2713_s9 + $0x28] sm:$0xff] %v2074_v34   ;;  %v2218_v47 = vpop.f32.mrb[31].mxu0  ;;  %v1199_v48 = vpop.f32.mrb[31].mxu1  ;;  %v2134_v34 = vld [vmem:[%s2690_s30 + $0x48] sm:$0xff]  }
 0x136   : > { %2144 = vst [vmem:[%s2713_s9 + $0x20] sm:$0xff] %v2069_v39   ;;  %v1205_v51 = vadd.f32 %v2322_v32, %v2216_v14  ;;  %v1393_v52 = vadd.f32 %v2696_v59, %v1197_v41  ;;  %v2219_v53 = vadd.f32 %v2218_v47, %v2217_v44  ;;  %v1200_v36 = vadd.f32 %v2213_v22, %v1199_v48 }
 0x137   : > { %v2020_v44 = vunpack.c.l.bf16 %v2134_v34 }
 0x138   : > { %v1395_v57 = vadd.f32 %v2696_v59, %v1205_v51  ;;  %v1208_v58 = vadd.f32 %v2323_v45, %v2219_v53  ;;  %v1394_v54 = vadd.f32 %v2696_v59, %v1200_v36  ;;  %v1489_v61 = vadd.f32 %v2008_v46, %v1393_v52  ;;  %v2138_v51 = vld [vmem:[%s2690_s30 + $0x68] sm:$0xff]  }
 0x139   : > { %v2021_v46 = vunpack.c.h.bf16 %v2134_v34  ;;  %v2139_v34 = vld [vmem:[%s2690_s30 + $0x70] sm:$0xff]  }
 0x13a   : > { %v1396_v62 = vadd.f32 %v2696_v59, %v1208_v58  ;;  %v1490_v63 = vadd.f32 %v2009_v50, %v1394_v54  ;;  %v2220_v0 = vpop.f32.mrb[32].mxu0  ;;  %v2326_v2 = vpop.f32.mrb[32].mxu1  ;;  %v1491_v5 = vadd.f32 %v2012_v56, %v1395_v57  ;;  %v2137_v56 = vld [vmem:[%s2690_s30 + $0x60] sm:$0xff]  }
 0x13b   : > { %v2221_v3 = vpop.f32.mrb[33].mxu0  ;;  %v1212_v4 = vpop.f32.mrb[33].mxu1 }
 0x13c   : > { %v1492_v42 = vadd.f32 %v2013_v60, %v1396_v62  ;;  %v2079_v6 = vpack.c.bf16 %v1490_v63, %v1489_v61  ;;  %v2222_v7 = vadd.f32 %v2221_v3, %v2220_v0  ;;  %v2223_v8 = vpop.f32.mrb[34].mxu0  ;;  %v2327_v9 = vpop.f32.mrb[34].mxu1  ;;  %v2036_v0 = vunpack.c.l.bf16 %v2138_v51 }
 0x13d   : > { %v2224_v11 = vpop.f32.mrb[35].mxu0  ;;  %v1215_v15 = vpop.f32.mrb[35].mxu1 }
 0x13e   : > { %v2084_v16 = vpack.c.bf16 %v1492_v42, %v1491_v5  ;;  %2146 = vst [vmem:[%s2713_s9 + $0x30] sm:$0xff] %v2079_v6   ;;  %v1213_v12 = vadd.f32 %v2222_v7, %v1212_v4  ;;  %v2225_v17 = vadd.f32 %v2224_v11, %v2223_v8  ;;  %v2037_v4 = vunpack.c.h.bf16 %v2138_v51 }
 0x13f   : > { %v2032_v7 = vunpack.c.l.bf16 %v2137_v56  ;;  %v2033_v11 = vunpack.c.h.bf16 %v2137_v56 }
 0x140   : > { %2147 = vst [vmem:[%s2713_s9 + $0x38] sm:$0xff] %v2084_v16   ;;  %v1397_v20 = vadd.f32 %v2696_v59, %v1213_v12  ;;  %v1216_v22 = vadd.f32 %v2225_v17, %v1215_v15  ;;  %v2140_v15 = vld [vmem:[%s2690_s30 + $0x78] sm:$0xff]  }
 0x142   : > { %v1398_v24 = vadd.f32 %v2696_v59, %v1216_v22  ;;  %v2226_v1 = vpop.f32.mrb[36].mxu0  ;;  %v2747_v26 = vpop.f32.mrb[36].mxu1  ;;  %v1493_v28 = vadd.f32 %v2016_v21, %v1397_v20 }
 0x143   : > { %v2227_v27 = vpop.f32.mrb[37].mxu0  ;;  %v1228_v18 = vpop.f32.mrb[37].mxu1 }
 0x144   : > { %v1494_v29 = vadd.f32 %v2017_v23, %v1398_v24  ;;  %v2228_v30 = vadd.f32 %v2227_v27, %v2226_v1  ;;  %v2229_v32 = vpop.f32.mrb[38].mxu0  ;;  %v2749_v33 = vpop.f32.mrb[38].mxu1  ;;  %v2044_v27 = vunpack.c.l.bf16 %v2140_v15 }
 0x145   : > { %v2230_v35 = vpop.f32.mrb[39].mxu0  ;;  %v1231_v38 = vpop.f32.mrb[39].mxu1 }
 0x146   : > { %v2089_v39 = vpack.c.bf16 %v1494_v29, %v1493_v28  ;;  %v1221_v14 = vadd.f32 %v2326_v2, %v2228_v30  ;;  %v2231_v40 = vadd.f32 %v2230_v35, %v2229_v32  ;;  %v2135_v2 = vld [vmem:[%s2690_s30 + $0x50] sm:$0xff]  }
 0x147   : > { %v2024_v12 = vunpack.c.l.bf16 %v2135_v2  ;;  %v2025_v17 = vunpack.c.h.bf16 %v2135_v2 }
 0x148   : > { %2148 = vst [vmem:[%s2713_s9 + $0x40] sm:$0xff] %v2089_v39   ;;  %v1399_v41 = vadd.f32 %v2696_v59, %v1221_v14  ;;  %v1224_v45 = vadd.f32 %v2327_v9, %v2231_v40 }
 0x14a   : > { %v1400_v47 = vadd.f32 %v2696_v59, %v1224_v45  ;;  %v2232_v48 = vpop.f32.mrb[40].mxu0  ;;  %v2334_v50 = vpop.f32.mrb[40].mxu1  ;;  %v1495_v57 = vadd.f32 %v2020_v44, %v1399_v41 }
 0x14b   : > { %v1253_v52 = vadd.f32 %v2334_v50, %v2668_v25  ;;  %v2233_v53 = vpop.f32.mrb[41].mxu0  ;;  %v1244_v36 = vpop.f32.mrb[41].mxu1 }
 0x14c   : > { %v1496_v58 = vadd.f32 %v2021_v46, %v1400_v47  ;;  %v2234_v60 = vadd.f32 %v2233_v53, %v2232_v48  ;;  %v1245_v54 = vadd.f32 %v2664_v13, %v1244_v36  ;;  %v2235_v61 = vpop.f32.mrb[42].mxu0  ;;  %v2335_v62 = vpop.f32.mrb[42].mxu1  ;;  %v2136_v46 = vld [vmem:[%s2690_s30 + $0x58] sm:$0xff]   ;;  %v2040_v53 = vunpack.c.l.bf16 %v2139_v34 }
 0x14d   : > { %v1407_v63 = vadd.f32 %v2696_v59, %v1253_v52  ;;  %v1256_v3 = vadd.f32 %v2335_v62, %v2670_v31  ;;  %v2236_v25 = vpop.f32.mrb[43].mxu0  ;;  %v1247_v5 = vpop.f32.mrb[43].mxu1 }
 0x14e   : > { %v2094_v42 = vpack.c.bf16 %v1496_v58, %v1495_v57  ;;  %v1229_v6 = vadd.f32 %v2234_v60, %v1228_v18  ;;  %v2237_v8 = vadd.f32 %v2236_v25, %v2235_v61  ;;  %v1405_v9 = vadd.f32 %v2696_v59, %v1245_v54 }
 0x14f   : > { %v1408_v13 = vadd.f32 %v2696_v59, %v1256_v3  ;;  %v1248_v10 = vadd.f32 %v2666_v19, %v1247_v5  ;;  %v1503_v20 = vadd.f32 %v2036_v0, %v1407_v63  ;;  %v2041_v58 = vunpack.c.h.bf16 %v2139_v34 }
 0x150   : > { %2149 = vst [vmem:[%s2713_s9 + $0x48] sm:$0xff] %v2094_v42   ;;  %v1401_v16 = vadd.f32 %v2696_v59, %v1229_v6  ;;  %v1232_v31 = vadd.f32 %v2237_v8, %v1231_v38  ;;  %v1501_v19 = vadd.f32 %v2032_v7, %v1405_v9  ;;  %v2028_v60 = vunpack.c.l.bf16 %v2136_v46 }
 0x151   : > { %v1504_v21 = vadd.f32 %v2037_v4, %v1408_v13  ;;  %v1406_v22 = vadd.f32 %v2696_v59, %v1248_v10 }
 0x152   : > { %v1402_v23 = vadd.f32 %v2696_v59, %v1232_v31  ;;  %v2238_v24 = vpop.f32.mrb[44].mxu0  ;;  %v2338_v1 = vpop.f32.mrb[44].mxu1  ;;  %v1497_v35 = vadd.f32 %v2024_v12, %v1401_v16 }
 0x153   : > { %v2114_v18 = vpack.c.bf16 %v1504_v21, %v1503_v20  ;;  %v1502_v28 = vadd.f32 %v2033_v11, %v1406_v22  ;;  %v1269_v29 = vadd.f32 %v2338_v1, %v2681_v49  ;;  %v2239_v30 = vpop.f32.mrb[45].mxu0  ;;  %v1260_v32 = vpop.f32.mrb[45].mxu1  ;;  %v2045_v49 = vunpack.c.h.bf16 %v2140_v15 }
 0x154   : > { %v1498_v38 = vadd.f32 %v2025_v17, %v1402_v23  ;;  %v2240_v39 = vadd.f32 %v2239_v30, %v2238_v24  ;;  %v1261_v14 = vadd.f32 %v2674_v37, %v1260_v32  ;;  %v2241_v40 = vpop.f32.mrb[46].mxu0  ;;  %v2339_v41 = vpop.f32.mrb[46].mxu1 }
 0x155   : > { %2153 = vst [vmem:[%s2713_s9 + $0x68] sm:$0xff] %v2114_v18   ;;  %v2109_v44 = vpack.c.bf16 %v1502_v28, %v1501_v19  ;;  %v1411_v45 = vadd.f32 %v2696_v59, %v1269_v29  ;;  %v1272_v47 = vadd.f32 %v2339_v41, %v2683_v55  ;;  %v2242_v48 = vpop.f32.mrb[47].mxu0  ;;  %v1263_v50 = vpop.f32.mrb[47].mxu1 }
 0x156   : > { %v2099_v51 = vpack.c.bf16 %v1498_v38, %v1497_v35  ;;  %v1237_v52 = vadd.f32 %v2747_v26, %v2240_v39  ;;  %v2243_v36 = vadd.f32 %v2242_v48, %v2241_v40  ;;  %v1409_v37 = vadd.f32 %v2696_v59, %v1261_v14 }
 0x157   : > { %2152 = vst [vmem:[%s2713_s9 + $0x60] sm:$0xff] %v2109_v44   ;;  %v1412_v56 = vadd.f32 %v2696_v59, %v1272_v47  ;;  %v1264_v57 = vadd.f32 %v2678_v43, %v1263_v50  ;;  %v2029_v26 = vunpack.c.h.bf16 %v2136_v46  ;;  %v1507_v61 = vadd.f32 %v2044_v27, %v1411_v45 }
 0x158   : > { %2150 = vst [vmem:[%s2713_s9 + $0x50] sm:$0xff] %v2099_v51   ;;  %v1403_v55 = vadd.f32 %v2696_v59, %v1237_v52  ;;  %v1240_v54 = vadd.f32 %v2749_v33, %v2243_v36  ;;  %v1505_v2 = vadd.f32 %v2040_v53, %v1409_v37 }
 0x159   : > { %v1508_v62 = vadd.f32 %v2045_v49, %v1412_v56  ;;  %v1410_v63 = vadd.f32 %v2696_v59, %v1264_v57 }
 0x15a   : > { %v1404_v0 = vadd.f32 %v2696_v59, %v1240_v54  ;;  %v1499_v4 = vadd.f32 %v2028_v60, %v1403_v55 }
 0x15b   : > { %v2124_v3 = vpack.c.bf16 %v1508_v62, %v1507_v61  ;;  %v1506_v43 = vadd.f32 %v2041_v58, %v1410_v63 }
 0x15c   : > { %v1500_v25 = vadd.f32 %v2029_v26, %v1404_v0 }
 0x15d   : > { %2155 = vst [vmem:[%s2713_s9 + $0x78] sm:$0xff] %v2124_v3   ;;  %v2119_v5 = vpack.c.bf16 %v1506_v43, %v1505_v2 }
 0x15e   : > { %v2104_v42 = vpack.c.bf16 %v1500_v25, %v1499_v4 }
 0x15f   : > { %2154 = vst [vmem:[%s2713_s9 + $0x70] sm:$0xff] %v2119_v5  }
 0x160   : > { %2151 = vst [vmem:[%s2713_s9 + $0x58] sm:$0xff] %v2104_v42  }
 0x161 PF: > { %s14_s17 = sadd.s32 1, %s2491_s17   ;;  %s2804_s15 = smov %s2487_s16 }
 0x162   : > { %p11_p5 = scmp.ge.s32.totalorder %s14_s17, 4   ;;  %s2805_s16 = smov %s2807_s18 }
 0x164   :  { %13 = sbr.rel (!%p11_p5) target bundleno = 2 (0x2), region = 83 }

// kernel: decoder_forward.91
= control target key start
LH: loop header
LB: loop body
LE: loop exit
PB: predicated region body
PF: predicated region fallthrough
CT: control target
= control target key end

     0   :  { %s2240_s12 = smov 0   ;;  %s2242_s13 = smov 0   ;;  %s2478_s0 = inlined_call_operand.vmem [shape: bf16[2,256,384], index: 0, kind: input, shape index: {}]   ;;  %s2479_s1 = inlined_call_operand.vmem [shape: bf16[384,128], index: 1, kind: input, shape index: {}]   ;;  %s2480_s2 = inlined_call_operand.vmem [shape: f32[1,128], index: 2, kind: input, shape index: {}]   ;;  %s2481_s3 = inlined_call_operand.vmem [shape: bf16[2,256,128], index: 3, kind: output, shape index: {}]  }
   0x1   :  { %s2244_s14 = smov 0  }
   0x2 LB: > { %s39_s15 = sadd.s32 1, %s2214_s13  ;;  %p1644_p0 = scmp.ge.s32.totalorder %s2218_s14, 1  ;;  %s2218_s14 = sphi %s2244_s14, %s13_s14   ;;  %s2214_s13 = sphi %s2242_s13, %s2483_s13   ;;  %s2210_s12 = sphi %s2240_s12, %s2482_s12  }
   0x3   : > { %p41_p1 = scmp.ge.s32.totalorder %s39_s15, 2  ;;  %p206_p2 = scmp.lt.s32.totalorder %s2218_s14, 3 }
   0x5   : > { %s2485_s15 = smov (%p41_p1, %s39_s15), 0  ;;  %p207_p3 = pnand %p1644_p0, %p206_p2 }
   0x6   : > { %v2108_v0 = vld [vmem:[%s2479_s1 + $0x40] sm:$0xff] (!%p207_p3)   ;;  %v2110_v2 = vld [vmem:[%s2479_s1 + $0x48] sm:$0xff] (!%p207_p3)   ;;  %p259_p4 = scmp.lt.s32.totalorder (!%p207_p3), %s2210_s12, 1  ;;  %v2112_v4 = vld [vmem:[%s2479_s1 + $0x50] sm:$0xff] (!%p207_p3)  }
   0x7   : > { %210 = sbr.rel (%p207_p3) target bundleno = 351 (0x15f), region = 32  ;;  %v2109_v1 = vld [vmem:[%s2479_s1] sm:$0xff] (!%p207_p3)   ;;  %1883 = vmatprep.subr.bf16.mxu0 (!%p207_p3), %v2108_v0  ;;  %2067 = vmatprep.subr.bf16.mxu1 (!%p207_p3), %v2108_v0  ;;  %v2111_v3 = vld [vmem:[%s2479_s1 + $0x8] sm:$0xff] (!%p207_p3)   ;;  %v2113_v5 = vld [vmem:[%s2479_s1 + $0x10] sm:$0xff] (!%p207_p3)  }
   0x8   : > { %1884 = vmatpush3.bf16.msra.mxu0 (!%p207_p3), %v2109_v1  ;;  %2075 = vmatpush3.bf16.msra.mxu1 (!%p207_p3), %v2109_v1  ;;  %v2114_v6 = vld [vmem:[%s2479_s1 + $0x58] sm:$0xff] (!%p207_p3)   ;;  %v2116_v8 = vld [vmem:[%s2479_s1 + $0x60] sm:$0xff] (!%p207_p3)   ;;  %v2118_v10 = vld [vmem:[%s2479_s1 + $0x68] sm:$0xff] (!%p207_p3)  }
   0x9   : > { %1885 = vmatprep.subr.bf16.mxu0 (!%p207_p3), %v2110_v2  ;;  %2068 = vmatprep.subr.bf16.mxu1 (!%p207_p3), %v2110_v2  ;;  %v2115_v7 = vld [vmem:[%s2479_s1 + $0x18] sm:$0xff] (!%p207_p3)   ;;  %v2117_v9 = vld [vmem:[%s2479_s1 + $0x20] sm:$0xff] (!%p207_p3)   ;;  %v2119_v13 = vld [vmem:[%s2479_s1 + $0x28] sm:$0xff] (!%p207_p3)  }
   0xa   : > { %v2120_v14 = vld [vmem:[%s2479_s1 + $0x70] sm:$0xff] (!%p207_p3)   ;;  %v2122_v16 = vld [vmem:[%s2479_s1 + $0x78] sm:$0xff] (!%p207_p3)   ;;  %v2130_v18 = vld [vmem:[%s2479_s1 + $0x80] sm:$0xff] (!%p207_p3)  }
   0xb   : > { %v2121_v15 = vld [vmem:[%s2479_s1 + $0x30] sm:$0xff] (!%p207_p3)   ;;  %v2123_v17 = vld [vmem:[%s2479_s1 + $0x38] sm:$0xff] (!%p207_p3)   ;;  %v2131_v22 = vld [vmem:[%s2479_s1 + $0x88] sm:$0xff] (!%p207_p3)  }
   0xc   : > { %1886 = vmatpush3.bf16.msra.mxu0 (!%p207_p3), %v2111_v3  ;;  %2076 = vmatpush3.bf16.msra.mxu1 (!%p207_p3), %v2111_v3  ;;  %v2138_v25 = vld [vmem:[%s2479_s1 + $0x90] sm:$0xff] (!%p207_p3)   ;;  %v2139_v27 = vld [vmem:[%s2479_s1 + $0x98] sm:$0xff] (!%p207_p3)   ;;  %v2146_v30 = vld [vmem:[%s2479_s1 + $0xa0] sm:$0xff] (!%p207_p3)  }
   0xd   : > { %1887 = vmatprep.subr.bf16.mxu0 (!%p207_p3), %v2112_v4  ;;  %2069 = vmatprep.subr.bf16.mxu1 (!%p207_p3), %v2112_v4  ;;  %v2147_v33 = vld [vmem:[%s2479_s1 + $0xa8] sm:$0xff] (!%p207_p3)   ;;  %v2154_v36 = vld [vmem:[%s2479_s1 + $0xb0] sm:$0xff] (!%p207_p3)   ;;  %v2155_v40 = vld [vmem:[%s2479_s1 + $0xb8] sm:$0xff] (!%p207_p3)  }
   0xe   : > { %s2487_s12 = smov (!%p259_p4, %s2210_s12), 1 }
   0xf   : > { %s2083_s30 = smul.u32 384, %s2487_s12  ;;  %s1755_s24 = sshll.u32 %s2487_s12, 7 }
  0x10   : > { %1888 = vmatpush3.bf16.msra.mxu0 %v2113_v5  ;;  %2077 = vmatpush3.bf16.msra.mxu1 %v2113_v5  ;;  %s2414_s27 = scalar_lea.vmem %s2481_s3, %s1755_s24 }
  0x11   : > { %1889 = vmatprep.subr.bf16.mxu0 %v2114_v6  ;;  %2070 = vmatprep.subr.bf16.mxu1 %v2114_v6  ;;  %s2291_s10 = scalar_lea.vmem %s2478_s0, %s2083_s30 }
  0x12   : > { %v2126_v11 = vld [vmem:[%s2291_s10 + $0x4] ss:$12 sps:$4 sm:$0xff]   ;;  %v2124_v19 = vld [vmem:[%s2291_s10] ss:$12 sps:$4 sm:$0xff]   ;;  %v2132_v21 = vld [vmem:[%s2291_s10 + $0x1c] ss:$12 sps:$4 sm:$0xff]  }
  0x13   : > { %v2129_v12 = vld [vmem:[%s2291_s10 + $0x124] ss:$12 sps:$4 sm:$0xff]   ;;  %911 = vmatprep.mubr.bf16.mxu0 %v2126_v11  ;;  %v2127_v20 = vld [vmem:[%s2291_s10 + $0x120] ss:$12 sps:$4 sm:$0xff]   ;;  %v2134_v23 = vld [vmem:[%s2291_s10 + $0x13c] ss:$12 sps:$4 sm:$0xff]  }
  0x14   : > { %1890 = vmatpush3.bf16.msra.mxu0 %v2115_v7  ;;  %2078 = vmatpush3.bf16.msra.mxu1 %v2115_v7  ;;  %v2136_v24 = vld [vmem:[%s2291_s10 + $0x18] ss:$12 sps:$4 sm:$0xff]   ;;  %v2140_v28 = vld [vmem:[%s2291_s10 + $0x34] ss:$12 sps:$4 sm:$0xff]   ;;  %v2144_v31 = vld [vmem:[%s2291_s10 + $0x30] ss:$12 sps:$4 sm:$0xff]  }
  0x15   : > { %1891 = vmatprep.subr.bf16.mxu0 %v2116_v8  ;;  %2071 = vmatprep.subr.bf16.mxu1 %v2116_v8  ;;  %v2137_v26 = vld [vmem:[%s2291_s10 + $0x138] ss:$12 sps:$4 sm:$0xff]   ;;  %v2142_v29 = vld [vmem:[%s2291_s10 + $0x154] ss:$12 sps:$4 sm:$0xff]   ;;  %v2145_v32 = vld [vmem:[%s2291_s10 + $0x150] ss:$12 sps:$4 sm:$0xff]  }
  0x16   : > { %1007 = vmatprep.mubr.bf16.mxu1 %v2129_v12  ;;  %v2148_v34 = vld [vmem:[%s2291_s10 + $0x4c] ss:$12 sps:$4 sm:$0xff]   ;;  %v2152_v37 = vld [vmem:[%s2291_s10 + $0x48] ss:$12 sps:$4 sm:$0xff]   ;;  %v2156_v39 = vld [vmem:[%s2291_s10 + $0x64] ss:$12 sps:$4 sm:$0xff]  }
  0x17   : > { %v2150_v35 = vld [vmem:[%s2291_s10 + $0x16c] ss:$12 sps:$4 sm:$0xff]   ;;  %v2153_v38 = vld [vmem:[%s2291_s10 + $0x168] ss:$12 sps:$4 sm:$0xff]   ;;  %v2165_v47 = vld [vmem:[%s2291_s10 + $0x50] ss:$12 sps:$4 sm:$0xff]  }
  0x18   : > { %1892 = vmatpush3.bf16.msra.mxu0 %v2117_v9  ;;  %2079 = vmatpush3.bf16.msra.mxu1 %v2117_v9  ;;  %v2158_v41 = vld [vmem:[%s2291_s10 + $0x8] ss:$12 sps:$4 sm:$0xff]   ;;  %v2159_v42 = vld [vmem:[%s2291_s10 + $0x60] ss:$12 sps:$4 sm:$0xff]   ;;  %v2163_v45 = vld [vmem:[%s2291_s10 + $0x38] ss:$12 sps:$4 sm:$0xff]  }
  0x19   : > { %1893 = vmatprep.subr.bf16.mxu0 %v2118_v10  ;;  %2072 = vmatprep.subr.bf16.mxu1 %v2118_v10  ;;  %v2160_v43 = vld [vmem:[%s2291_s10 + $0x20] ss:$12 sps:$4 sm:$0xff]   ;;  %v2161_v44 = vld [vmem:[%s2291_s10 + $0x7c] ss:$12 sps:$4 sm:$0xff]   ;;  %v2164_v46 = vld [vmem:[%s2291_s10 + $0x78] ss:$12 sps:$4 sm:$0xff]  }
  0x1a   : > { %v2166_v48 = vld [vmem:[%s2291_s10 + $0x94] ss:$12 sps:$4 sm:$0xff]   ;;  %v2169_v50 = vld [vmem:[%s2291_s10 + $0x90] ss:$12 sps:$4 sm:$0xff]   ;;  %v2171_v52 = vld [vmem:[%s2291_s10 + $0xac] ss:$12 sps:$4 sm:$0xff]  }
  0x1b   : > { %v2168_v49 = vld [vmem:[%s2291_s10 + $0x68] ss:$12 sps:$4 sm:$0xff]   ;;  %v2170_v51 = vld [vmem:[%s2291_s10 + $0x80] ss:$12 sps:$4 sm:$0xff]   ;;  %v2173_v53 = vld [vmem:[%s2291_s10 + $0x98] ss:$12 sps:$4 sm:$0xff]  }
  0x1c   : > { %1894 = vmatpush3.bf16.msra.mxu0 %v2119_v13  ;;  %2080 = vmatpush3.bf16.msra.mxu1 %v2119_v13  ;;  %v2174_v54 = vld [vmem:[%s2291_s10 + $0xa8] ss:$12 sps:$4 sm:$0xff]   ;;  %v2175_v55 = vld [vmem:[%s2291_s10 + $0xb0] ss:$12 sps:$4 sm:$0xff]   ;;  %v2179_v58 = vld [vmem:[%s2291_s10 + $0xc0] ss:$12 sps:$4 sm:$0xff]  }
  0x1d   : > { %1895 = vmatprep.subr.bf16.mxu0 %v2120_v14  ;;  %2073 = vmatprep.subr.bf16.mxu1 %v2120_v14  ;;  %v2176_v56 = vld [vmem:[%s2291_s10 + $0xc4] ss:$12 sps:$4 sm:$0xff]   ;;  %v2178_v57 = vld [vmem:[%s2291_s10 + $0xc8] ss:$12 sps:$4 sm:$0xff]   ;;  %v2180_v59 = vld [vmem:[%s2291_s10 + $0xe0] ss:$12 sps:$4 sm:$0xff]  }
  0x1e   : > { %v2181_v60 = vld [vmem:[%s2291_s10 + $0xdc] ss:$12 sps:$4 sm:$0xff]   ;;  %v2183_v61 = vld [vmem:[%s2291_s10 + $0xf8] ss:$12 sps:$4 sm:$0xff]   ;;  %v2186_v0 = vld [vmem:[%s2291_s10 + $0xf4] ss:$12 sps:$4 sm:$0xff]  }
  0x1f   : > { %v2184_v62 = vld [vmem:[%s2291_s10 + $0xd8] ss:$12 sps:$4 sm:$0xff]   ;;  %v2185_v63 = vld [vmem:[%s2291_s10 + $0x110] ss:$12 sps:$4 sm:$0xff]   ;;  %v2188_v1 = vld [vmem:[%s2291_s10 + $0x128] ss:$12 sps:$4 sm:$0xff]  }
  0x20   : > { %1896 = vmatpush3.bf16.msra.mxu0 %v2121_v15  ;;  %2081 = vmatpush3.bf16.msra.mxu1 %v2121_v15  ;;  %v2189_v2 = vld [vmem:[%s2291_s10 + $0xf0] ss:$12 sps:$4 sm:$0xff]   ;;  %v2190_v3 = vld [vmem:[%s2291_s10 + $0x140] ss:$12 sps:$4 sm:$0xff]   ;;  %v2193_v5 = vld [vmem:[%s2291_s10 + $0x158] ss:$12 sps:$4 sm:$0xff]  }
  0x21   : > { %1897 = vmatprep.subr.bf16.mxu0 %v2122_v16  ;;  %2074 = vmatprep.subr.bf16.mxu1 %v2122_v16  ;;  %v2191_v4 = vld [vmem:[%s2291_s10 + $0x10c] ss:$12 sps:$4 sm:$0xff]   ;;  %v2194_v6 = vld [vmem:[%s2291_s10 + $0x108] ss:$12 sps:$4 sm:$0xff]   ;;  %v2195_v7 = vld [vmem:[%s2291_s10 + $0x170] ss:$12 sps:$4 sm:$0xff]  }
  0x24   : > { %1898 = vmatpush3.bf16.msra.mxu0 %v2123_v17  ;;  %2082 = vmatpush3.bf16.msra.mxu1 %v2123_v17 }
  0x25   : > { %2019 = vmatprep.subr.bf16.mxu1 %v2130_v18 }
  0x27   : > { %912 = vmatmul.mubr.bf16.vlgmr.msra.gmra.mrb[0].mxu0 %v2124_v19  ;;  %1008 = vmatmul.mubr.bf16.vlgmr.msra.gmra.mrb[0].mxu1 %v2127_v20 }
  0x28   : > { %2020 = vmatpush3.bf16.msra.mxu1 %v2130_v18  ;;  %919 = vmatprep.mubr.bf16.mxu0 %v2132_v21 }
  0x29   : > { %2021 = vmatprep.subr.bf16.mxu1 %v2131_v22  ;;  %1015 = vmatprep.mubr.bf16.mxu1 %v2134_v23 }
  0x2c   : > { %2022 = vmatpush3.bf16.msra.mxu1 %v2131_v22 }
  0x2d   : > { %2023 = vmatprep.subr.bf16.mxu1 %v2138_v25 }
  0x2f   : > { %920 = vmatmul.mubr.bf16.gmra.mrb[4].mxu0 %v2136_v24  ;;  %1016 = vmatmul.mubr.bf16.gmra.mrb[4].mxu1 %v2137_v26 }
  0x30   : > { %2024 = vmatpush3.bf16.msra.mxu1 %v2138_v25  ;;  %927 = vmatprep.mubr.bf16.mxu0 %v2140_v28 }
  0x31   : > { %2025 = vmatprep.subr.bf16.mxu1 %v2139_v27  ;;  %1023 = vmatprep.mubr.bf16.mxu1 %v2142_v29 }
  0x34   : > { %2026 = vmatpush3.bf16.msra.mxu1 %v2139_v27 }
  0x35   : > { %2027 = vmatprep.subr.bf16.mxu1 %v2146_v30 }
  0x37   : > { %928 = vmatmul.mubr.bf16.gmra.mrb[8].mxu0 %v2144_v31  ;;  %1024 = vmatmul.mubr.bf16.gmra.mrb[8].mxu1 %v2145_v32 }
  0x38   : > { %2028 = vmatpush3.bf16.msra.mxu1 %v2146_v30  ;;  %935 = vmatprep.mubr.bf16.mxu0 %v2148_v34 }
  0x39   : > { %2029 = vmatprep.subr.bf16.mxu1 %v2147_v33  ;;  %1031 = vmatprep.mubr.bf16.mxu1 %v2150_v35 }
  0x3c   : > { %2030 = vmatpush3.bf16.msra.mxu1 %v2147_v33 }
  0x3d   : > { %2031 = vmatprep.subr.bf16.mxu1 %v2154_v36 }
  0x3f   : > { %936 = vmatmul.mubr.bf16.gmra.mrb[12].mxu0 %v2152_v37  ;;  %1032 = vmatmul.mubr.bf16.gmra.mrb[12].mxu1 %v2153_v38 }
  0x40   : > { %2032 = vmatpush3.bf16.msra.mxu1 %v2154_v36  ;;  %943 = vmatprep.mubr.bf16.mxu0 %v2156_v39 }
  0x41   : > { %2033 = vmatprep.subr.bf16.mxu1 %v2155_v40  ;;  %2035 = vmatprep.mubr.bf16.mxu1 %v2158_v41 }
  0x44   : > { %2034 = vmatpush3.bf16.msra.mxu1 %v2155_v40 }
  0x47   : > { %944 = vmatmul.mubr.bf16.gmra.mrb[16].mxu0 %v2159_v42  ;;  %2036 = vmatmul.mubr.bf16.vlgmr.msra.gmra.mrb[16].mxu1 %v2160_v43 }
  0x48   : > { %951 = vmatprep.mubr.bf16.mxu0 %v2161_v44  ;;  %2039 = vmatprep.mubr.bf16.mxu1 %v2163_v45 }
  0x4f   : > { %952 = vmatmul.mubr.bf16.gmra.mrb[20].mxu0 %v2164_v46  ;;  %2040 = vmatmul.mubr.bf16.gmra.mrb[20].mxu1 %v2165_v47 }
  0x50   : > { %959 = vmatprep.mubr.bf16.mxu0 %v2166_v48  ;;  %2043 = vmatprep.mubr.bf16.mxu1 %v2168_v49 }
  0x57   : > { %960 = vmatmul.mubr.bf16.gmra.mrb[24].mxu0 %v2169_v50  ;;  %2044 = vmatmul.mubr.bf16.gmra.mrb[24].mxu1 %v2170_v51 }
  0x58   : > { %967 = vmatprep.mubr.bf16.mxu0 %v2171_v52  ;;  %2047 = vmatprep.mubr.bf16.mxu1 %v2173_v53 }
  0x5f   : > { %968 = vmatmul.mubr.bf16.gmra.mrb[28].mxu0 %v2174_v54  ;;  %2048 = vmatmul.mubr.bf16.gmra.mrb[28].mxu1 %v2175_v55 }
  0x60   : > { %975 = vmatprep.mubr.bf16.mxu0 %v2176_v56  ;;  %2051 = vmatprep.mubr.bf16.mxu1 %v2178_v57 }
  0x67   : > { %976 = vmatmul.mubr.bf16.gmra.mrb[32].mxu0 %v2179_v58  ;;  %2052 = vmatmul.mubr.bf16.gmra.mrb[32].mxu1 %v2180_v59 }
  0x68   : > { %983 = vmatprep.mubr.bf16.mxu0 %v2181_v60  ;;  %2055 = vmatprep.mubr.bf16.mxu1 %v2183_v61  ;;  %v2405_v61 = vld [vmem:[%s2480_s2] ss:$0 sm:$0xff] }
  0x6f   : > { %984 = vmatmul.mubr.bf16.gmra.mrb[36].mxu0 %v2184_v62  ;;  %2056 = vmatmul.mubr.bf16.gmra.mrb[36].mxu1 %v2185_v63 }
  0x70   : > { %991 = vmatprep.mubr.bf16.mxu0 %v2186_v0  ;;  %2059 = vmatprep.mubr.bf16.mxu1 %v2188_v1 }
  0x77   : > { %992 = vmatmul.mubr.bf16.gmra.mrb[40].mxu0 %v2189_v2  ;;  %2060 = vmatmul.mubr.bf16.gmra.mrb[40].mxu1 %v2190_v3 }
  0x78   : > { %999 = vmatprep.mubr.bf16.mxu0 %v2191_v4  ;;  %2063 = vmatprep.mubr.bf16.mxu1 %v2193_v5 }
  0x7f   : > { %1000 = vmatmul.mubr.bf16.gmra.mrb[44].mxu0 %v2194_v6  ;;  %2064 = vmatmul.mubr.bf16.gmra.mrb[44].mxu1 %v2195_v7 }
  0xfa   : > { %v1899_v8 = vpop.f32.mrb[0].mxu0  ;;  %v1971_v9 = vpop.f32.mrb[0].mxu1 }
  0xfb   : > { %v1900_v10 = vpop.f32.mrb[1].mxu0  ;;  %v1972_v11 = vpop.f32.mrb[1].mxu1 }
  0xfc   : > { %v1901_v12 = vadd.f32 %v1900_v10, %v1899_v8  ;;  %v2386_v13 = vadd.f32 %v1972_v11, %v1971_v9  ;;  %v1902_v14 = vpop.f32.mrb[2].mxu0  ;;  %v1974_v15 = vpop.f32.mrb[2].mxu1 }
  0xfd   : > { %v1903_v16 = vpop.f32.mrb[3].mxu0  ;;  %v1975_v17 = vpop.f32.mrb[3].mxu1 }
  0xfe   : > { %v1904_v18 = vadd.f32 %v1903_v16, %v1902_v14  ;;  %v2388_v19 = vadd.f32 %v1975_v17, %v1974_v15 }
 0x102   : > { %v1905_v20 = vpop.f32.mrb[4].mxu0  ;;  %v1977_v21 = vpop.f32.mrb[4].mxu1 }
 0x103   : > { %v1906_v22 = vpop.f32.mrb[5].mxu0  ;;  %v1978_v23 = vpop.f32.mrb[5].mxu1 }
 0x104   : > { %v1907_v24 = vadd.f32 %v1906_v22, %v1905_v20  ;;  %v2390_v25 = vadd.f32 %v1978_v23, %v1977_v21  ;;  %v1908_v26 = vpop.f32.mrb[6].mxu0  ;;  %v1980_v27 = vpop.f32.mrb[6].mxu1 }
 0x105   : > { %v1909_v28 = vpop.f32.mrb[7].mxu0  ;;  %v1981_v29 = vpop.f32.mrb[7].mxu1 }
 0x106   : > { %v1910_v30 = vadd.f32 %v1909_v28, %v1908_v26  ;;  %v2392_v31 = vadd.f32 %v1981_v29, %v1980_v27 }
 0x10a   : > { %v1911_v32 = vpop.f32.mrb[8].mxu0  ;;  %v1983_v33 = vpop.f32.mrb[8].mxu1 }
 0x10b   : > { %v1912_v34 = vpop.f32.mrb[9].mxu0  ;;  %v1984_v35 = vpop.f32.mrb[9].mxu1 }
 0x10c   : > { %v1913_v36 = vadd.f32 %v1912_v34, %v1911_v32  ;;  %v2394_v37 = vadd.f32 %v1984_v35, %v1983_v33  ;;  %v1914_v38 = vpop.f32.mrb[10].mxu0  ;;  %v1986_v39 = vpop.f32.mrb[10].mxu1 }
 0x10d   : > { %v1915_v40 = vpop.f32.mrb[11].mxu0  ;;  %v1987_v41 = vpop.f32.mrb[11].mxu1 }
 0x10e   : > { %v1916_v42 = vadd.f32 %v1915_v40, %v1914_v38  ;;  %v2396_v43 = vadd.f32 %v1987_v41, %v1986_v39 }
 0x112   : > { %v1917_v44 = vpop.f32.mrb[12].mxu0  ;;  %v1989_v45 = vpop.f32.mrb[12].mxu1 }
 0x113   : > { %v1918_v46 = vpop.f32.mrb[13].mxu0  ;;  %v1990_v47 = vpop.f32.mrb[13].mxu1 }
 0x114   : > { %v1919_v48 = vadd.f32 %v1918_v46, %v1917_v44  ;;  %v2398_v49 = vadd.f32 %v1990_v47, %v1989_v45  ;;  %v1920_v50 = vpop.f32.mrb[14].mxu0  ;;  %v1992_v51 = vpop.f32.mrb[14].mxu1 }
 0x115   : > { %v1921_v52 = vpop.f32.mrb[15].mxu0  ;;  %v1993_v53 = vpop.f32.mrb[15].mxu1 }
 0x116   : > { %v1922_v54 = vadd.f32 %v1921_v52, %v1920_v50  ;;  %v2400_v55 = vadd.f32 %v1993_v53, %v1992_v51 }
 0x11a   : > { %v1923_v56 = vpop.f32.mrb[16].mxu0  ;;  %v2037_v57 = vpop.f32.mrb[16].mxu1 }
 0x11b   : > { %v1083_v58 = vadd.f32 %v2037_v57, %v1907_v24  ;;  %v1924_v59 = vpop.f32.mrb[17].mxu0  ;;  %v1074_v60 = vpop.f32.mrb[17].mxu1 }
 0x11c   : > { %v1925_v62 = vadd.f32 %v1924_v59, %v1923_v56  ;;  %v1075_v63 = vadd.f32 %v1901_v12, %v1074_v60  ;;  %v1926_v0 = vpop.f32.mrb[18].mxu0  ;;  %v2038_v1 = vpop.f32.mrb[18].mxu1 }
 0x11d   : > { %v1086_v2 = vadd.f32 %v2038_v1, %v1910_v30  ;;  %v1927_v3 = vpop.f32.mrb[19].mxu0  ;;  %v1077_v4 = vpop.f32.mrb[19].mxu1  ;;  %v1309_v7 = vadd.f32 %v2405_v61, %v1083_v58 }
 0x11e   : > { %v1928_v5 = vadd.f32 %v1927_v3, %v1926_v0  ;;  %v1078_v6 = vadd.f32 %v1904_v18, %v1077_v4  ;;  %v1307_v9 = vadd.f32 %v2405_v61, %v1075_v63 }
 0x11f   : > { %v1310_v8 = vadd.f32 %v2405_v61, %v1086_v2 }
 0x120   : > { %v1308_v10 = vadd.f32 %v2405_v61, %v1078_v6 }
 0x121   : > { %v1796_v11 = vpack.c.bf16 %v1310_v8, %v1309_v7 }
 0x122   : > { %v1791_v12 = vpack.c.bf16 %v1308_v10, %v1307_v9  ;;  %v1929_v14 = vpop.f32.mrb[20].mxu0  ;;  %v2041_v15 = vpop.f32.mrb[20].mxu1 }
 0x123   : > { %1868 = vst [vmem:[%s2414_s27 + $0x8] sm:$0xff] %v1796_v11   ;;  %v1099_v16 = vadd.f32 %v2041_v15, %v1919_v48  ;;  %v1930_v17 = vpop.f32.mrb[21].mxu0  ;;  %v1090_v18 = vpop.f32.mrb[21].mxu1 }
 0x124   : > { %1792 = vst [vmem:[%s2414_s27] sm:$0xff] %v1791_v12   ;;  %v1931_v20 = vadd.f32 %v1930_v17, %v1929_v14  ;;  %v1091_v21 = vadd.f32 %v1913_v36, %v1090_v18  ;;  %v1932_v22 = vpop.f32.mrb[22].mxu0  ;;  %v2042_v23 = vpop.f32.mrb[22].mxu1 }
 0x125   : > { %v1102_v24 = vadd.f32 %v2042_v23, %v1922_v54  ;;  %v1933_v26 = vpop.f32.mrb[23].mxu0  ;;  %v1093_v27 = vpop.f32.mrb[23].mxu1  ;;  %v1313_v30 = vadd.f32 %v2405_v61, %v1099_v16 }
 0x126   : > { %v1934_v28 = vadd.f32 %v1933_v26, %v1932_v22  ;;  %v1094_v29 = vadd.f32 %v1916_v42, %v1093_v27  ;;  %v1311_v33 = vadd.f32 %v2405_v61, %v1091_v21 }
 0x127   : > { %v1314_v32 = vadd.f32 %v2405_v61, %v1102_v24 }
 0x128   : > { %v1312_v34 = vadd.f32 %v2405_v61, %v1094_v29 }
 0x129   : > { %v1806_v35 = vpack.c.bf16 %v1314_v32, %v1313_v30 }
 0x12a   : > { %v1801_v38 = vpack.c.bf16 %v1312_v34, %v1311_v33  ;;  %v1935_v36 = vpop.f32.mrb[24].mxu0  ;;  %v2045_v39 = vpop.f32.mrb[24].mxu1 }
 0x12b   : > { %1870 = vst [vmem:[%s2414_s27 + $0x18] sm:$0xff] %v1806_v35   ;;  %v1115_v40 = vadd.f32 %v2045_v39, %v1931_v20  ;;  %v1936_v41 = vpop.f32.mrb[25].mxu0  ;;  %v1106_v44 = vpop.f32.mrb[25].mxu1 }
 0x12c   : > { %1869 = vst [vmem:[%s2414_s27 + $0x10] sm:$0xff] %v1801_v38   ;;  %v1937_v45 = vadd.f32 %v1936_v41, %v1935_v36  ;;  %v1107_v46 = vadd.f32 %v1925_v62, %v1106_v44  ;;  %v1938_v42 = vpop.f32.mrb[26].mxu0  ;;  %v2046_v47 = vpop.f32.mrb[26].mxu1 }
 0x12d   : > { %v1118_v48 = vadd.f32 %v2046_v47, %v1934_v28  ;;  %v1939_v50 = vpop.f32.mrb[27].mxu0  ;;  %v1109_v51 = vpop.f32.mrb[27].mxu1  ;;  %v1317_v54 = vadd.f32 %v2405_v61, %v1115_v40 }
 0x12e   : > { %v1940_v52 = vadd.f32 %v1939_v50, %v1938_v42  ;;  %v1110_v53 = vadd.f32 %v1928_v5, %v1109_v51  ;;  %v1315_v57 = vadd.f32 %v2405_v61, %v1107_v46 }
 0x12f   : > { %v1318_v56 = vadd.f32 %v2405_v61, %v1118_v48 }
 0x130   : > { %v1316_v58 = vadd.f32 %v2405_v61, %v1110_v53 }
 0x131   : > { %v1816_v59 = vpack.c.bf16 %v1318_v56, %v1317_v54 }
 0x132   : > { %v1811_v60 = vpack.c.bf16 %v1316_v58, %v1315_v57  ;;  %v1941_v62 = vpop.f32.mrb[28].mxu0  ;;  %v2049_v63 = vpop.f32.mrb[28].mxu1 }
 0x133   : > { %1872 = vst [vmem:[%s2414_s27 + $0x28] sm:$0xff] %v1816_v59   ;;  %v1942_v0 = vpop.f32.mrb[29].mxu0  ;;  %v1122_v1 = vpop.f32.mrb[29].mxu1 }
 0x134   : > { %1871 = vst [vmem:[%s2414_s27 + $0x20] sm:$0xff] %v1811_v60   ;;  %v1943_v2 = vadd.f32 %v1942_v0, %v1941_v62  ;;  %v1123_v3 = vadd.f32 %v1937_v45, %v1122_v1  ;;  %v1944_v4 = vpop.f32.mrb[30].mxu0  ;;  %v2050_v5 = vpop.f32.mrb[30].mxu1 }
 0x135   : > { %v1945_v6 = vpop.f32.mrb[31].mxu0  ;;  %v1125_v7 = vpop.f32.mrb[31].mxu1 }
 0x136   : > { %v1131_v8 = vadd.f32 %v2049_v63, %v1943_v2  ;;  %v1946_v9 = vadd.f32 %v1945_v6, %v1944_v4  ;;  %v1126_v10 = vadd.f32 %v1940_v52, %v1125_v7  ;;  %v1319_v11 = vadd.f32 %v2405_v61, %v1123_v3 }
 0x138   : > { %v1134_v12 = vadd.f32 %v2050_v5, %v1946_v9  ;;  %v1320_v14 = vadd.f32 %v2405_v61, %v1126_v10  ;;  %v1321_v15 = vadd.f32 %v2405_v61, %v1131_v8 }
 0x13a   : > { %v1322_v16 = vadd.f32 %v2405_v61, %v1134_v12  ;;  %v1821_v17 = vpack.c.bf16 %v1320_v14, %v1319_v11  ;;  %v1947_v18 = vpop.f32.mrb[32].mxu0  ;;  %v2053_v20 = vpop.f32.mrb[32].mxu1 }
 0x13b   : > { %v1948_v21 = vpop.f32.mrb[33].mxu0  ;;  %v1138_v22 = vpop.f32.mrb[33].mxu1 }
 0x13c   : > { %v1826_v23 = vpack.c.bf16 %v1322_v16, %v1321_v15  ;;  %1873 = vst [vmem:[%s2414_s27 + $0x30] sm:$0xff] %v1821_v17   ;;  %v1949_v24 = vadd.f32 %v1948_v21, %v1947_v18  ;;  %v1950_v26 = vpop.f32.mrb[34].mxu0  ;;  %v2054_v27 = vpop.f32.mrb[34].mxu1 }
 0x13d   : > { %v1951_v28 = vpop.f32.mrb[35].mxu0  ;;  %v1141_v29 = vpop.f32.mrb[35].mxu1 }
 0x13e   : > { %1874 = vst [vmem:[%s2414_s27 + $0x38] sm:$0xff] %v1826_v23   ;;  %v1139_v30 = vadd.f32 %v1949_v24, %v1138_v22  ;;  %v1952_v32 = vadd.f32 %v1951_v28, %v1950_v26 }
 0x140   : > { %v1142_v33 = vadd.f32 %v1952_v32, %v1141_v29  ;;  %v1323_v34 = vadd.f32 %v2405_v61, %v1139_v30 }
 0x142   : > { %v1324_v35 = vadd.f32 %v2405_v61, %v1142_v33  ;;  %v1953_v38 = vpop.f32.mrb[36].mxu0  ;;  %v2057_v36 = vpop.f32.mrb[36].mxu1 }
 0x143   : > { %v1954_v39 = vpop.f32.mrb[37].mxu0  ;;  %v1154_v40 = vpop.f32.mrb[37].mxu1 }
 0x144   : > { %v1831_v41 = vpack.c.bf16 %v1324_v35, %v1323_v34  ;;  %v1955_v44 = vadd.f32 %v1954_v39, %v1953_v38  ;;  %v1956_v45 = vpop.f32.mrb[38].mxu0  ;;  %v2058_v46 = vpop.f32.mrb[38].mxu1 }
 0x145   : > { %v1957_v42 = vpop.f32.mrb[39].mxu0  ;;  %v1157_v47 = vpop.f32.mrb[39].mxu1 }
 0x146   : > { %1875 = vst [vmem:[%s2414_s27 + $0x40] sm:$0xff] %v1831_v41   ;;  %v1147_v48 = vadd.f32 %v2053_v20, %v1955_v44  ;;  %v1958_v50 = vadd.f32 %v1957_v42, %v1956_v45 }
 0x148   : > { %v1150_v51 = vadd.f32 %v2054_v27, %v1958_v50  ;;  %v1325_v52 = vadd.f32 %v2405_v61, %v1147_v48 }
 0x14a   : > { %v1326_v53 = vadd.f32 %v2405_v61, %v1150_v51  ;;  %v1959_v54 = vpop.f32.mrb[40].mxu0  ;;  %v2061_v56 = vpop.f32.mrb[40].mxu1 }
 0x14b   : > { %v1179_v57 = vadd.f32 %v2061_v56, %v2390_v25  ;;  %v1960_v58 = vpop.f32.mrb[41].mxu0  ;;  %v1170_v59 = vpop.f32.mrb[41].mxu1 }
 0x14c   : > { %v1836_v60 = vpack.c.bf16 %v1326_v53, %v1325_v52  ;;  %v1961_v62 = vadd.f32 %v1960_v58, %v1959_v54  ;;  %v1171_v63 = vadd.f32 %v2386_v13, %v1170_v59  ;;  %v1962_v0 = vpop.f32.mrb[42].mxu0  ;;  %v2062_v1 = vpop.f32.mrb[42].mxu1 }
 0x14d   : > { %v1182_v2 = vadd.f32 %v2062_v1, %v2392_v31  ;;  %v1963_v3 = vpop.f32.mrb[43].mxu0  ;;  %v1173_v4 = vpop.f32.mrb[43].mxu1  ;;  %v1333_v25 = vadd.f32 %v2405_v61, %v1179_v57 }
 0x14e   : > { %1876 = vst [vmem:[%s2414_s27 + $0x48] sm:$0xff] %v1836_v60   ;;  %v1155_v5 = vadd.f32 %v1961_v62, %v1154_v40  ;;  %v1964_v6 = vadd.f32 %v1963_v3, %v1962_v0  ;;  %v1174_v7 = vadd.f32 %v2388_v19, %v1173_v4  ;;  %v1331_v9 = vadd.f32 %v2405_v61, %v1171_v63 }
 0x14f   : > { %v1334_v8 = vadd.f32 %v2405_v61, %v1182_v2 }
 0x150   : > { %v1158_v13 = vadd.f32 %v1964_v6, %v1157_v47  ;;  %v1332_v10 = vadd.f32 %v2405_v61, %v1174_v7  ;;  %v1327_v31 = vadd.f32 %v2405_v61, %v1155_v5 }
 0x151   : > { %v1856_v11 = vpack.c.bf16 %v1334_v8, %v1333_v25 }
 0x152   : > { %v1328_v12 = vadd.f32 %v2405_v61, %v1158_v13  ;;  %v1851_v14 = vpack.c.bf16 %v1332_v10, %v1331_v9  ;;  %v1965_v15 = vpop.f32.mrb[44].mxu0  ;;  %v2065_v16 = vpop.f32.mrb[44].mxu1 }
 0x153   : > { %1880 = vst [vmem:[%s2414_s27 + $0x68] sm:$0xff] %v1856_v11   ;;  %v1195_v19 = vadd.f32 %v2065_v16, %v2398_v49  ;;  %v1966_v17 = vpop.f32.mrb[45].mxu0  ;;  %v1186_v18 = vpop.f32.mrb[45].mxu1 }
 0x154   : > { %v1841_v20 = vpack.c.bf16 %v1328_v12, %v1327_v31  ;;  %1879 = vst [vmem:[%s2414_s27 + $0x60] sm:$0xff] %v1851_v14   ;;  %v1967_v21 = vadd.f32 %v1966_v17, %v1965_v15  ;;  %v1187_v22 = vadd.f32 %v2394_v37, %v1186_v18  ;;  %v1968_v23 = vpop.f32.mrb[46].mxu0  ;;  %v2066_v24 = vpop.f32.mrb[46].mxu1 }
 0x155   : > { %v1198_v26 = vadd.f32 %v2066_v24, %v2400_v55  ;;  %v1969_v27 = vpop.f32.mrb[47].mxu0  ;;  %v1189_v28 = vpop.f32.mrb[47].mxu1  ;;  %v1337_v32 = vadd.f32 %v2405_v61, %v1195_v19 }
 0x156   : > { %1877 = vst [vmem:[%s2414_s27 + $0x50] sm:$0xff] %v1841_v20   ;;  %v1163_v29 = vadd.f32 %v2057_v36, %v1967_v21  ;;  %v1970_v30 = vadd.f32 %v1969_v27, %v1968_v23  ;;  %v1190_v49 = vadd.f32 %v2396_v43, %v1189_v28  ;;  %v1335_v37 = vadd.f32 %v2405_v61, %v1187_v22 }
 0x157   : > { %v1338_v33 = vadd.f32 %v2405_v61, %v1198_v26 }
 0x158   : > { %v1166_v34 = vadd.f32 %v2058_v46, %v1970_v30  ;;  %v1336_v35 = vadd.f32 %v2405_v61, %v1190_v49  ;;  %v1329_v38 = vadd.f32 %v2405_v61, %v1163_v29 }
 0x159   : > { %v1866_v55 = vpack.c.bf16 %v1338_v33, %v1337_v32 }
 0x15a   : > { %v1330_v39 = vadd.f32 %v2405_v61, %v1166_v34  ;;  %v1861_v40 = vpack.c.bf16 %v1336_v35, %v1335_v37 }
 0x15b   : > { %1882 = vst [vmem:[%s2414_s27 + $0x78] sm:$0xff] %v1866_v55  }
 0x15c   : > { %v1846_v36 = vpack.c.bf16 %v1330_v39, %v1329_v38  ;;  %1881 = vst [vmem:[%s2414_s27 + $0x70] sm:$0xff] %v1861_v40  }
 0x15e   : > { %1878 = vst [vmem:[%s2414_s27 + $0x58] sm:$0xff] %v1846_v36  }
 0x15f PF: > { %s13_s14 = sadd.s32 1, %s2218_s14   ;;  %s2482_s12 = smov %s2214_s13 }
 0x160   : > { %p10_p5 = scmp.ge.s32.totalorder %s13_s14, 4   ;;  %s2483_s13 = smov %s2485_s15 }
 0x162   :  { %12 = sbr.rel (!%p10_p5) target bundleno = 2 (0x2), region = 76 }

</bundles_post_ra>
